<compile_context>
chip_gen: v7x
topology: tpu7x:2x2x1
jax: 0.10.0
libtpu: 0.0.40
codegen_flags: <defaults>
</compile_context>

<pallas_src>
import math

import jax
import jax.numpy as jnp
from jax.experimental import pallas as pl
from jax.experimental.pallas import tpu as pltpu

LANES = 128


def _round_up(v, m):
    return (v + m - 1) // m * m


def _pad_to(x, shape):
    return jnp.pad(x, [(0, s - d) for d, s in zip(x.shape, shape)])


# --------------------------- fused forward kernel ---------------------------

def _make_kernel(dims, num_classes):
    (W0, OH1, OW1, PW1, OH2, OW2, PW2, OH3, OW3) = dims

    def conv3x3_relu(in_ref, w_ref, b_ref, acc, w_in, oh):
        """Valid 3x3 conv + bias + ReLU in the 'wide' row layout.

        in_ref rows are h*w_in + w (channels on lanes); the conv is 9 shifted
        contiguous-slab bf16 matmuls accumulated (f32) into acc[0:oh*w_in).
        Output columns w >= ow are junk and are never read downstream."""
        rows = oh * w_in
        for t in range(9):
            kh, kw = t // 3, t % 3
            lhs = in_ref[pl.ds(kh * w_in + kw, rows), :].astype(jnp.bfloat16)
            contrib = jnp.dot(lhs, w_ref[t], preferred_element_type=jnp.float32)
            if t == 0:
                acc[pl.ds(0, rows), :] = contrib
            else:
                acc[pl.ds(0, rows), :] += contrib
        acc[pl.ds(0, rows), :] = jnp.maximum(
            acc[pl.ds(0, rows), :] + b_ref[...], 0.0)

    def maxpool2x2(acc, dst_ref, w_in, oh, ow):
        """2x2/stride-2 max pool from the wide conv layout in acc into a dense
        (ph*pw, C) layout in dst_ref.  The stride-2 column selection uses tiny
        constant 0/1 matmuls (MXU) instead of strided vector loads."""
        ph_n, pw_n = oh // 2, ow // 2
        col = jax.lax.broadcasted_iota(jnp.int32, (pw_n, ow), 1)
        row = jax.lax.broadcasted_iota(jnp.int32, (pw_n, ow), 0)
        s_even = (col == 2 * row).astype(jnp.float32)
        s_odd = (col == 2 * row + 1).astype(jnp.float32)
        for ph in range(ph_n):
            top = acc[pl.ds((2 * ph) * w_in, ow), :]
            bot = acc[pl.ds((2 * ph + 1) * w_in, ow), :]
            m = jnp.maximum(top, bot)                                    # (ow, 128)
            e = jnp.dot(s_even, m, preferred_element_type=jnp.float32)   # rows 2*pw
            o = jnp.dot(s_odd, m, preferred_element_type=jnp.float32)    # rows 2*pw+1
            dst_ref[pl.ds(ph * pw_n, pw_n), :] = jnp.maximum(e, o)

    def kernel(x_ref, w1, b1, w2, b2, w3, b3, wf1, bf1, wf2, bf2,
               out_ref, acc, p1, p2):
        # Keep the never-written tail rows of the pooled buffers finite: the
        # next conv's junk output columns read them (valid outputs never do).
        p1[...] = jnp.zeros_like(p1)
        p2[...] = jnp.zeros_like(p2)

        # conv1 (+ folded BatchNorm; Dropout is eval-mode identity) + ReLU, pool
        conv3x3_relu(x_ref, w1, b1, acc, W0, OH1)
        maxpool2x2(acc, p1, W0, OH1, OW1)
        # conv2 + ReLU, pool
        conv3x3_relu(p1, w2, b2, acc, PW1, OH2)
        maxpool2x2(acc, p2, PW1, OH2, OW2)
        # conv3 + ReLU
        conv3x3_relu(p2, w3, b3, acc, PW2, OH3)

        # fc1: flatten + Linear, expressed as an (OH3 x OW3) "conv"; the taps
        # were reordered on the host to match PyTorch's NCHW flatten.  + ReLU.
        r = jnp.zeros((1, LANES), jnp.float32)
        for t in range(OH3 * OW3):
            oh, ow = t // OW3, t % OW3
            lhs = acc[pl.ds(oh * PW2 + ow, 1), :].astype(jnp.bfloat16)
            r = r + jnp.dot(lhs, wf1[t], preferred_element_type=jnp.float32)
        h = jnp.maximum(r + bf1[...], 0.0)

        # fc2 + log_softmax (f32, padded class lanes masked out)
        logits = jnp.dot(h.astype(jnp.bfloat16), wf2[...],
                         preferred_element_type=jnp.float32) + bf2[...]
        lane = jax.lax.broadcasted_iota(jnp.int32, (1, LANES), 1)
        logits = jnp.where(lane < num_classes, logits, -1e30)
        mx = jnp.max(logits, axis=-1, keepdims=True)
        s = logits - mx
        lse = jnp.log(jnp.sum(jnp.exp(s), axis=-1, keepdims=True))
        out_ref[...] = s - lse

    return kernel


# ----------------------- host-side parameter packing ------------------------

def _conv_taps(w):
    """(OC, IC, 3, 3) torch conv weight -> (9, 128, 128) bf16 taps [ic, oc]."""
    oc, ic, kh, kw = w.shape
    t = jnp.transpose(w, (2, 3, 1, 0)).reshape(kh * kw, ic, oc)
    return _pad_to(t, (kh * kw, LANES, LANES)).astype(jnp.bfloat16)


def _fc1_taps(w, c_in, oh, ow):
    """torch Linear weight (out, c_in*oh*ow) in NCHW flatten order ->
    (oh*ow, 128, 128) bf16 taps [c_in, out] matching the in-kernel NHWC rows."""
    out_f = w.shape[0]
    t = w.reshape(out_f, c_in, oh, ow)
    t = jnp.transpose(t, (2, 3, 1, 0)).reshape(oh * ow, c_in, out_f)
    return _pad_to(t, (oh * ow, LANES, LANES)).astype(jnp.bfloat16)


def _bias_row(b):
    return _pad_to(b.reshape(1, -1).astype(jnp.float32), (1, LANES))


# ------------------------------- forward pass -------------------------------

def cnn_forward(x, params, eps=1e-5):
    N, C, H, W = x.shape
    OH1, OW1 = H - 2, W - 2          # conv1 (3x3, stride 1, valid)
    PH1, PW1 = OH1 // 2, OW1 // 2    # max_pool2d(2)
    OH2, OW2 = PH1 - 2, PW1 - 2      # conv2
    PH2, PW2 = OH2 // 2, OW2 // 2    # max_pool2d(2)
    OH3, OW3 = PH2 - 2, PW2 - 2      # conv3
    assert OH3 >= 1 and OW3 >= 1, "image too small for the 3-conv/2-pool stack"
    num_classes = params["fc2_b"].shape[0]

    # Fold eval-mode BatchNorm into conv1; pack all weights tap-major / padded.
    scale = params["bn_gamma"] / jnp.sqrt(params["bn_var"] + eps)
    w1 = params["conv1_w"] * scale[:, None, None, None]
    b1 = (params["conv1_b"] - params["bn_mean"]) * scale + params["bn_beta"]

    w1_t, w2_t, w3_t = _conv_taps(w1), _conv_taps(params["conv2_w"]), _conv_taps(params["conv3_w"])
    wf1_t = _fc1_taps(params["fc1_w"], 64, OH3, OW3)
    wf2_t = _pad_to(params["fc2_w"].T, (LANES, LANES)).astype(jnp.bfloat16)
    b1_p, b2_p, b3_p = _bias_row(b1), _bias_row(params["conv2_b"]), _bias_row(params["conv3_b"])
    bf1_p, bf2_p = _bias_row(params["fc1_b"]), _bias_row(params["fc2_b"])

    # Input: NCHW -> channels-last rows (row = h*W + w, channels on lanes).
    xrows_pad = _round_up(H * W + 2, 8)          # +2: last junk-column over-read
    xin = jnp.transpose(x, (0, 2, 3, 1)).reshape(N, H * W, C).astype(jnp.float32)
    xin = _pad_to(xin, (N, xrows_pad, LANES))

    acc_rows = _round_up(OH1 * W, 8)             # largest "wide" conv output
    p1_rows = _round_up(PH1 * PW1 + 2, 8)
    p2_rows = _round_up(PH2 * PW2 + 2, 8)

    dims = (W, OH1, OW1, PW1, OH2, OW2, PW2, OH3, OW3)
    kernel = _make_kernel(dims, num_classes)

    def full(a):
        return pl.BlockSpec(a.shape, lambda n, nd=a.ndim: (0,) * nd)

    out = pl.pallas_call(
        kernel,
        out_shape=jax.ShapeDtypeStruct((N, 1, LANES), jnp.float32),
        grid=(N,),
        in_specs=[
            pl.BlockSpec((None, xrows_pad, LANES), lambda n: (n, 0, 0)),
            full(w1_t), full(b1_p), full(w2_t), full(b2_p),
            full(w3_t), full(b3_p), full(wf1_t), full(bf1_p),
            full(wf2_t), full(bf2_p),
        ],
        out_specs=pl.BlockSpec((None, 1, LANES), lambda n: (n, 0, 0)),
        scratch_shapes=[
            pltpu.VMEM((acc_rows, LANES), jnp.float32),   # conv accumulator
            pltpu.VMEM((p1_rows, LANES), jnp.float32),    # pool1 output
            pltpu.VMEM((p2_rows, LANES), jnp.float32),    # pool2 output
        ],
        compiler_params=pltpu.CompilerParams(
            dimension_semantics=("parallel",)),
    )(xin, w1_t, b1_p, w2_t, b2_p, w3_t, b3_p, wf1_t, bf1_p, wf2_t, bf2_p)
    return out[:, 0, :num_classes]


# ----------------------------- parameter init -------------------------------

def _fc_size(h, w):
    h, w = h - 2, w - 2          # conv1
    h, w = h // 2, w // 2        # pool
    h, w = h - 2, w - 2          # conv2
    h, w = h // 2, w // 2        # pool
    h, w = h - 2, w - 2          # conv3
    return 64 * h * w


def init_params(key, num_classes, channels, image_height, image_width):
    def uniform(k, shape, fan_in):
        bound = 1.0 / math.sqrt(fan_in)
        return jax.random.uniform(k, shape, jnp.float32, -bound, bound)

    ks = jax.random.split(key, 10)
    fc_size = _fc_size(image_height, image_width)
    return {
        "conv1_w": uniform(ks[0], (32, channels, 3, 3), channels * 9),
        "conv1_b": uniform(ks[1], (32,), channels * 9),
        "conv2_w": uniform(ks[2], (64, 32, 3, 3), 32 * 9),
        "conv2_b": uniform(ks[3], (64,), 32 * 9),
        "conv3_w": uniform(ks[4], (64, 64, 3, 3), 64 * 9),
        "conv3_b": uniform(ks[5], (64,), 64 * 9),
        # BatchNorm2d(32) defaults: gamma=1, beta=0, running_mean=0, running_var=1
        "bn_gamma": jnp.ones((32,), jnp.float32),
        "bn_beta": jnp.zeros((32,), jnp.float32),
        "bn_mean": jnp.zeros((32,), jnp.float32),
        "bn_var": jnp.ones((32,), jnp.float32),
        "fc1_w": uniform(ks[6], (64, fc_size), fc_size),   # torch Linear: (out, in)
        "fc1_b": uniform(ks[7], (64,), fc_size),
        "fc2_w": uniform(ks[8], (num_classes, 64), 64),
        "fc2_b": uniform(ks[9], (num_classes,), 64),
    }


if __name__ == "__main__":
    num_classes, channels, H, W = 10, 3, 28, 28   # 28x28 is the smallest family of
    key = jax.random.PRNGKey(0)                   # sizes the 3-conv/2-pool stack allows
    pkey, xkey = jax.random.split(key)
    params = init_params(pkey, num_classes, channels, H, W)
    x = jax.random.normal(xkey, (2, channels, H, W), jnp.float32)

    out = jax.jit(cnn_forward)(x, params)
    out = jax.block_until_ready(out)
    assert out.shape == (2, num_classes)
    assert bool(jnp.all(jnp.isfinite(out)))
    print("KERNEL_OK")
</pallas_src>

<mosaic_0001>
module attributes {stable_mosaic.version = 11 : i64} {
  func.func @kernel(%arg0: i32, %arg1: memref<1x792x128xf32, #tpu.memory_space<vmem>>, %arg2: memref<9x128x128xbf16, #tpu.memory_space<vmem>>, %arg3: memref<1x128xf32, #tpu.memory_space<vmem>>, %arg4: memref<9x128x128xbf16, #tpu.memory_space<vmem>>, %arg5: memref<1x128xf32, #tpu.memory_space<vmem>>, %arg6: memref<9x128x128xbf16, #tpu.memory_space<vmem>>, %arg7: memref<1x128xf32, #tpu.memory_space<vmem>>, %arg8: memref<9x128x128xbf16, #tpu.memory_space<vmem>>, %arg9: memref<1x128xf32, #tpu.memory_space<vmem>>, %arg10: memref<128x128xbf16, #tpu.memory_space<vmem>>, %arg11: memref<1x128xf32, #tpu.memory_space<vmem>>, %arg12: memref<1x1x128xf32, #tpu.memory_space<vmem>>, %arg13: memref<728x128xf32, #tpu.memory_space<vmem>>, %arg14: memref<176x128xf32, #tpu.memory_space<vmem>>, %arg15: memref<32x128xf32, #tpu.memory_space<vmem>>) attributes {dimension_semantics = [#tpu.dimension_semantics<parallel>], iteration_bounds = array<i64: 2>, scalar_prefetch = 0 : i64, scratch_operands = 3 : i64, tpu.core_type = #tpu.core_type<tc>, window_params = [{transform_indices = @transform_0, window_bounds = array<i64: 1, 792, 128>}, {pipeline_mode = #tpu.pipeline_mode<synchronous>, transform_indices = @transform_1, window_bounds = array<i64: 9, 128, 128>}, {pipeline_mode = #tpu.pipeline_mode<synchronous>, transform_indices = @transform_2, window_bounds = array<i64: 1, 128>}, {pipeline_mode = #tpu.pipeline_mode<synchronous>, transform_indices = @transform_3, window_bounds = array<i64: 9, 128, 128>}, {pipeline_mode = #tpu.pipeline_mode<synchronous>, transform_indices = @transform_4, window_bounds = array<i64: 1, 128>}, {pipeline_mode = #tpu.pipeline_mode<synchronous>, transform_indices = @transform_5, window_bounds = array<i64: 9, 128, 128>}, {pipeline_mode = #tpu.pipeline_mode<synchronous>, transform_indices = @transform_6, window_bounds = array<i64: 1, 128>}, {pipeline_mode = #tpu.pipeline_mode<synchronous>, transform_indices = @transform_7, window_bounds = array<i64: 9, 128, 128>}, {pipeline_mode = #tpu.pipeline_mode<synchronous>, transform_indices = @transform_8, window_bounds = array<i64: 1, 128>}, {pipeline_mode = #tpu.pipeline_mode<synchronous>, transform_indices = @transform_9, window_bounds = array<i64: 128, 128>}, {pipeline_mode = #tpu.pipeline_mode<synchronous>, transform_indices = @transform_10, window_bounds = array<i64: 1, 128>}, {transform_indices = @transform_11, window_bounds = array<i64: 1, 1, 128>}]} {
    %cst = arith.constant 0.000000e+00 : f32
    %0 = vector.broadcast %cst : f32 to vector<176x128xf32>
    %c0 = arith.constant 0 : index
    %c0_0 = arith.constant 0 : index
    %1 = vector.load %arg14[%c0, %c0_0] : memref<176x128xf32, #tpu.memory_space<vmem>>, vector<176x128xf32>
    tpu.vector_store %arg14[%c0, %c0_0], %0 {strides = array<i32>} : memref<176x128xf32, #tpu.memory_space<vmem>>, vector<176x128xf32>,
    %cst_1 = arith.constant 0.000000e+00 : f32
    %2 = vector.broadcast %cst_1 : f32 to vector<32x128xf32>
    %c0_2 = arith.constant 0 : index
    %c0_3 = arith.constant 0 : index
    %3 = vector.load %arg15[%c0_2, %c0_3] : memref<32x128xf32, #tpu.memory_space<vmem>>, vector<32x128xf32>
    tpu.vector_store %arg15[%c0_2, %c0_3], %2 {strides = array<i32>} : memref<32x128xf32, #tpu.memory_space<vmem>>, vector<32x128xf32>,
    %c0_4 = arith.constant 0 : index
    %c0_5 = arith.constant 0 : index
    %c0_6 = arith.constant 0 : index
    %4 = vector.load %arg1[%c0_4, %c0_5, %c0_6] : memref<1x792x128xf32, #tpu.memory_space<vmem>>, vector<1x728x128xf32>
    %5 = vector.shape_cast %4 : vector<1x728x128xf32> to vector<728x128xf32>
    %6 = arith.truncf %5 : vector<728x128xf32> to vector<728x128xbf16>
    %c0_7 = arith.constant 0 : index
    %c0_8 = arith.constant 0 : index
    %c0_9 = arith.constant 0 : index
    %7 = vector.load %arg2[%c0_7, %c0_8, %c0_9] : memref<9x128x128xbf16, #tpu.memory_space<vmem>>, vector<1x128x128xbf16>
    %8 = vector.shape_cast %7 : vector<1x128x128xbf16> to vector<128x128xbf16>
    %cst_10 = arith.constant dense<0.000000e+00> : vector<728x128xf32>
    %9 = tpu.matmul %6, %8, %cst_10 {dimension_numbers = #tpu.dot_dimension_numbers<[1], [0], [0], [1], [0, 0, 1, 1], [], []>} : vector<728x128xbf16>, vector<128x128xbf16>, vector<728x128xf32> -> vector<728x128xf32>
    %c0_11 = arith.constant 0 : index
    %c0_12 = arith.constant 0 : index
    %10 = vector.load %arg13[%c0_11, %c0_12] : memref<728x128xf32, #tpu.memory_space<vmem>>, vector<728x128xf32>
    tpu.vector_store %arg13[%c0_11, %c0_12], %9 {strides = array<i32>} : memref<728x128xf32, #tpu.memory_space<vmem>>, vector<728x128xf32>,
    %c0_13 = arith.constant 0 : index
    %c1 = arith.constant 1 : index
    %c0_14 = arith.constant 0 : index
    %11 = vector.load %arg1[%c0_13, %c1, %c0_14] : memref<1x792x128xf32, #tpu.memory_space<vmem>>, vector<1x728x128xf32>
    %12 = vector.shape_cast %11 : vector<1x728x128xf32> to vector<728x128xf32>
    %13 = arith.truncf %12 : vector<728x128xf32> to vector<728x128xbf16>
    %c1_15 = arith.constant 1 : index
    %c0_16 = arith.constant 0 : index
    %c0_17 = arith.constant 0 : index
    %14 = vector.load %arg2[%c1_15, %c0_16, %c0_17] : memref<9x128x128xbf16, #tpu.memory_space<vmem>>, vector<1x128x128xbf16>
    %15 = vector.shape_cast %14 : vector<1x128x128xbf16> to vector<128x128xbf16>
    %cst_18 = arith.constant dense<0.000000e+00> : vector<728x128xf32>
    %16 = tpu.matmul %13, %15, %cst_18 {dimension_numbers = #tpu.dot_dimension_numbers<[1], [0], [0], [1], [0, 0, 1, 1], [], []>} : vector<728x128xbf16>, vector<128x128xbf16>, vector<728x128xf32> -> vector<728x128xf32>
    %c0_19 = arith.constant 0 : index
    %c0_20 = arith.constant 0 : index
    %17 = vector.load %arg13[%c0_19, %c0_20] : memref<728x128xf32, #tpu.memory_space<vmem>>, vector<728x128xf32>
    %18 = arith.addf %17, %16 : vector<728x128xf32>
    %c0_21 = arith.constant 0 : index
    %c0_22 = arith.constant 0 : index
    %19 = vector.load %arg13[%c0_21, %c0_22] : memref<728x128xf32, #tpu.memory_space<vmem>>, vector<728x128xf32>
    tpu.vector_store %arg13[%c0_21, %c0_22], %18 {strides = array<i32>} : memref<728x128xf32, #tpu.memory_space<vmem>>, vector<728x128xf32>,
    %c0_23 = arith.constant 0 : index
    %c2 = arith.constant 2 : index
    %c0_24 = arith.constant 0 : index
    %20 = vector.load %arg1[%c0_23, %c2, %c0_24] : memref<1x792x128xf32, #tpu.memory_space<vmem>>, vector<1x728x128xf32>
    %21 = vector.shape_cast %20 : vector<1x728x128xf32> to vector<728x128xf32>
    %22 = arith.truncf %21 : vector<728x128xf32> to vector<728x128xbf16>
    %c2_25 = arith.constant 2 : index
    %c0_26 = arith.constant 0 : index
    %c0_27 = arith.constant 0 : index
    %23 = vector.load %arg2[%c2_25, %c0_26, %c0_27] : memref<9x128x128xbf16, #tpu.memory_space<vmem>>, vector<1x128x128xbf16>
    %24 = vector.shape_cast %23 : vector<1x128x128xbf16> to vector<128x128xbf16>
    %cst_28 = arith.constant dense<0.000000e+00> : vector<728x128xf32>
    %25 = tpu.matmul %22, %24, %cst_28 {dimension_numbers = #tpu.dot_dimension_numbers<[1], [0], [0], [1], [0, 0, 1, 1], [], []>} : vector<728x128xbf16>, vector<128x128xbf16>, vector<728x128xf32> -> vector<728x128xf32>
    %c0_29 = arith.constant 0 : index
    %c0_30 = arith.constant 0 : index
    %26 = vector.load %arg13[%c0_29, %c0_30] : memref<728x128xf32, #tpu.memory_space<vmem>>, vector<728x128xf32>
    %27 = arith.addf %26, %25 : vector<728x128xf32>
    %c0_31 = arith.constant 0 : index
    %c0_32 = arith.constant 0 : index
    %28 = vector.load %arg13[%c0_31, %c0_32] : memref<728x128xf32, #tpu.memory_space<vmem>>, vector<728x128xf32>
    tpu.vector_store %arg13[%c0_31, %c0_32], %27 {strides = array<i32>} : memref<728x128xf32, #tpu.memory_space<vmem>>, vector<728x128xf32>,
    %c0_33 = arith.constant 0 : index
    %c28 = arith.constant 28 : index
    %c0_34 = arith.constant 0 : index
    %29 = vector.load %arg1[%c0_33, %c28, %c0_34] : memref<1x792x128xf32, #tpu.memory_space<vmem>>, vector<1x728x128xf32>
    %30 = vector.shape_cast %29 : vector<1x728x128xf32> to vector<728x128xf32>
    %31 = arith.truncf %30 : vector<728x128xf32> to vector<728x128xbf16>
    %c3 = arith.constant 3 : index
    %c0_35 = arith.constant 0 : index
    %c0_36 = arith.constant 0 : index
    %32 = vector.load %arg2[%c3, %c0_35, %c0_36] : memref<9x128x128xbf16, #tpu.memory_space<vmem>>, vector<1x128x128xbf16>
    %33 = vector.shape_cast %32 : vector<1x128x128xbf16> to vector<128x128xbf16>
    %cst_37 = arith.constant dense<0.000000e+00> : vector<728x128xf32>
    %34 = tpu.matmul %31, %33, %cst_37 {dimension_numbers = #tpu.dot_dimension_numbers<[1], [0], [0], [1], [0, 0, 1, 1], [], []>} : vector<728x128xbf16>, vector<128x128xbf16>, vector<728x128xf32> -> vector<728x128xf32>
    %c0_38 = arith.constant 0 : index
    %c0_39 = arith.constant 0 : index
    %35 = vector.load %arg13[%c0_38, %c0_39] : memref<728x128xf32, #tpu.memory_space<vmem>>, vector<728x128xf32>
    %36 = arith.addf %35, %34 : vector<728x128xf32>
    %c0_40 = arith.constant 0 : index
    %c0_41 = arith.constant 0 : index
    %37 = vector.load %arg13[%c0_40, %c0_41] : memref<728x128xf32, #tpu.memory_space<vmem>>, vector<728x128xf32>
    tpu.vector_store %arg13[%c0_40, %c0_41], %36 {strides = array<i32>} : memref<728x128xf32, #tpu.memory_space<vmem>>, vector<728x128xf32>,
    %c0_42 = arith.constant 0 : index
    %c29 = arith.constant 29 : index
    %c0_43 = arith.constant 0 : index
    %38 = vector.load %arg1[%c0_42, %c29, %c0_43] : memref<1x792x128xf32, #tpu.memory_space<vmem>>, vector<1x728x128xf32>
    %39 = vector.shape_cast %38 : vector<1x728x128xf32> to vector<728x128xf32>
    %40 = arith.truncf %39 : vector<728x128xf32> to vector<728x128xbf16>
    %c4 = arith.constant 4 : index
    %c0_44 = arith.constant 0 : index
    %c0_45 = arith.constant 0 : index
    %41 = vector.load %arg2[%c4, %c0_44, %c0_45] : memref<9x128x128xbf16, #tpu.memory_space<vmem>>, vector<1x128x128xbf16>
    %42 = vector.shape_cast %41 : vector<1x128x128xbf16> to vector<128x128xbf16>
    %cst_46 = arith.constant dense<0.000000e+00> : vector<728x128xf32>
    %43 = tpu.matmul %40, %42, %cst_46 {dimension_numbers = #tpu.dot_dimension_numbers<[1], [0], [0], [1], [0, 0, 1, 1], [], []>} : vector<728x128xbf16>, vector<128x128xbf16>, vector<728x128xf32> -> vector<728x128xf32>
    %c0_47 = arith.constant 0 : index
    %c0_48 = arith.constant 0 : index
    %44 = vector.load %arg13[%c0_47, %c0_48] : memref<728x128xf32, #tpu.memory_space<vmem>>, vector<728x128xf32>
    %45 = arith.addf %44, %43 : vector<728x128xf32>
    %c0_49 = arith.constant 0 : index
    %c0_50 = arith.constant 0 : index
    %46 = vector.load %arg13[%c0_49, %c0_50] : memref<728x128xf32, #tpu.memory_space<vmem>>, vector<728x128xf32>
    tpu.vector_store %arg13[%c0_49, %c0_50], %45 {strides = array<i32>} : memref<728x128xf32, #tpu.memory_space<vmem>>, vector<728x128xf32>,
    %c0_51 = arith.constant 0 : index
    %c30 = arith.constant 30 : index
    %c0_52 = arith.constant 0 : index
    %47 = vector.load %arg1[%c0_51, %c30, %c0_52] : memref<1x792x128xf32, #tpu.memory_space<vmem>>, vector<1x728x128xf32>
    %48 = vector.shape_cast %47 : vector<1x728x128xf32> to vector<728x128xf32>
    %49 = arith.truncf %48 : vector<728x128xf32> to vector<728x128xbf16>
    %c5 = arith.constant 5 : index
    %c0_53 = arith.constant 0 : index
    %c0_54 = arith.constant 0 : index
    %50 = vector.load %arg2[%c5, %c0_53, %c0_54] : memref<9x128x128xbf16, #tpu.memory_space<vmem>>, vector<1x128x128xbf16>
    %51 = vector.shape_cast %50 : vector<1x128x128xbf16> to vector<128x128xbf16>
    %cst_55 = arith.constant dense<0.000000e+00> : vector<728x128xf32>
    %52 = tpu.matmul %49, %51, %cst_55 {dimension_numbers = #tpu.dot_dimension_numbers<[1], [0], [0], [1], [0, 0, 1, 1], [], []>} : vector<728x128xbf16>, vector<128x128xbf16>, vector<728x128xf32> -> vector<728x128xf32>
    %c0_56 = arith.constant 0 : index
    %c0_57 = arith.constant 0 : index
    %53 = vector.load %arg13[%c0_56, %c0_57] : memref<728x128xf32, #tpu.memory_space<vmem>>, vector<728x128xf32>
    %54 = arith.addf %53, %52 : vector<728x128xf32>
    %c0_58 = arith.constant 0 : index
    %c0_59 = arith.constant 0 : index
    %55 = vector.load %arg13[%c0_58, %c0_59] : memref<728x128xf32, #tpu.memory_space<vmem>>, vector<728x128xf32>
    tpu.vector_store %arg13[%c0_58, %c0_59], %54 {strides = array<i32>} : memref<728x128xf32, #tpu.memory_space<vmem>>, vector<728x128xf32>,
    %c0_60 = arith.constant 0 : index
    %c56 = arith.constant 56 : index
    %c0_61 = arith.constant 0 : index
    %56 = vector.load %arg1[%c0_60, %c56, %c0_61] : memref<1x792x128xf32, #tpu.memory_space<vmem>>, vector<1x728x128xf32>
    %57 = vector.shape_cast %56 : vector<1x728x128xf32> to vector<728x128xf32>
    %58 = arith.truncf %57 : vector<728x128xf32> to vector<728x128xbf16>
    %c6 = arith.constant 6 : index
    %c0_62 = arith.constant 0 : index
    %c0_63 = arith.constant 0 : index
    %59 = vector.load %arg2[%c6, %c0_62, %c0_63] : memref<9x128x128xbf16, #tpu.memory_space<vmem>>, vector<1x128x128xbf16>
    %60 = vector.shape_cast %59 : vector<1x128x128xbf16> to vector<128x128xbf16>
    %cst_64 = arith.constant dense<0.000000e+00> : vector<728x128xf32>
    %61 = tpu.matmul %58, %60, %cst_64 {dimension_numbers = #tpu.dot_dimension_numbers<[1], [0], [0], [1], [0, 0, 1, 1], [], []>} : vector<728x128xbf16>, vector<128x128xbf16>, vector<728x128xf32> -> vector<728x128xf32>
    %c0_65 = arith.constant 0 : index
    %c0_66 = arith.constant 0 : index
    %62 = vector.load %arg13[%c0_65, %c0_66] : memref<728x128xf32, #tpu.memory_space<vmem>>, vector<728x128xf32>
    %63 = arith.addf %62, %61 : vector<728x128xf32>
    %c0_67 = arith.constant 0 : index
    %c0_68 = arith.constant 0 : index
    %64 = vector.load %arg13[%c0_67, %c0_68] : memref<728x128xf32, #tpu.memory_space<vmem>>, vector<728x128xf32>
    tpu.vector_store %arg13[%c0_67, %c0_68], %63 {strides = array<i32>} : memref<728x128xf32, #tpu.memory_space<vmem>>, vector<728x128xf32>,
    %c0_69 = arith.constant 0 : index
    %c57 = arith.constant 57 : index
    %c0_70 = arith.constant 0 : index
    %65 = vector.load %arg1[%c0_69, %c57, %c0_70] : memref<1x792x128xf32, #tpu.memory_space<vmem>>, vector<1x728x128xf32>
    %66 = vector.shape_cast %65 : vector<1x728x128xf32> to vector<728x128xf32>
    %67 = arith.truncf %66 : vector<728x128xf32> to vector<728x128xbf16>
    %c7 = arith.constant 7 : index
    %c0_71 = arith.constant 0 : index
    %c0_72 = arith.constant 0 : index
    %68 = vector.load %arg2[%c7, %c0_71, %c0_72] : memref<9x128x128xbf16, #tpu.memory_space<vmem>>, vector<1x128x128xbf16>
    %69 = vector.shape_cast %68 : vector<1x128x128xbf16> to vector<128x128xbf16>
    %cst_73 = arith.constant dense<0.000000e+00> : vector<728x128xf32>
    %70 = tpu.matmul %67, %69, %cst_73 {dimension_numbers = #tpu.dot_dimension_numbers<[1], [0], [0], [1], [0, 0, 1, 1], [], []>} : vector<728x128xbf16>, vector<128x128xbf16>, vector<728x128xf32> -> vector<728x128xf32>
    %c0_74 = arith.constant 0 : index
    %c0_75 = arith.constant 0 : index
    %71 = vector.load %arg13[%c0_74, %c0_75] : memref<728x128xf32, #tpu.memory_space<vmem>>, vector<728x128xf32>
    %72 = arith.addf %71, %70 : vector<728x128xf32>
    %c0_76 = arith.constant 0 : index
    %c0_77 = arith.constant 0 : index
    %73 = vector.load %arg13[%c0_76, %c0_77] : memref<728x128xf32, #tpu.memory_space<vmem>>, vector<728x128xf32>
    tpu.vector_store %arg13[%c0_76, %c0_77], %72 {strides = array<i32>} : memref<728x128xf32, #tpu.memory_space<vmem>>, vector<728x128xf32>,
    %c0_78 = arith.constant 0 : index
    %c58 = arith.constant 58 : index
    %c0_79 = arith.constant 0 : index
    %74 = vector.load %arg1[%c0_78, %c58, %c0_79] : memref<1x792x128xf32, #tpu.memory_space<vmem>>, vector<1x728x128xf32>
    %75 = vector.shape_cast %74 : vector<1x728x128xf32> to vector<728x128xf32>
    %76 = arith.truncf %75 : vector<728x128xf32> to vector<728x128xbf16>
    %c8 = arith.constant 8 : index
    %c0_80 = arith.constant 0 : index
    %c0_81 = arith.constant 0 : index
    %77 = vector.load %arg2[%c8, %c0_80, %c0_81] : memref<9x128x128xbf16, #tpu.memory_space<vmem>>, vector<1x128x128xbf16>
    %78 = vector.shape_cast %77 : vector<1x128x128xbf16> to vector<128x128xbf16>
    %cst_82 = arith.constant dense<0.000000e+00> : vector<728x128xf32>
    %79 = tpu.matmul %76, %78, %cst_82 {dimension_numbers = #tpu.dot_dimension_numbers<[1], [0], [0], [1], [0, 0, 1, 1], [], []>} : vector<728x128xbf16>, vector<128x128xbf16>, vector<728x128xf32> -> vector<728x128xf32>
    %c0_83 = arith.constant 0 : index
    %c0_84 = arith.constant 0 : index
    %80 = vector.load %arg13[%c0_83, %c0_84] : memref<728x128xf32, #tpu.memory_space<vmem>>, vector<728x128xf32>
    %81 = arith.addf %80, %79 : vector<728x128xf32>
    %c0_85 = arith.constant 0 : index
    %c0_86 = arith.constant 0 : index
    %82 = vector.load %arg13[%c0_85, %c0_86] : memref<728x128xf32, #tpu.memory_space<vmem>>, vector<728x128xf32>
    tpu.vector_store %arg13[%c0_85, %c0_86], %81 {strides = array<i32>} : memref<728x128xf32, #tpu.memory_space<vmem>>, vector<728x128xf32>,
    %c0_87 = arith.constant 0 : index
    %c0_88 = arith.constant 0 : index
    %83 = vector.load %arg13[%c0_87, %c0_88] : memref<728x128xf32, #tpu.memory_space<vmem>>, vector<728x128xf32>
    %c0_89 = arith.constant 0 : index
    %c0_90 = arith.constant 0 : index
    %84 = vector.load %arg3[%c0_89, %c0_90] : memref<1x128xf32, #tpu.memory_space<vmem>>, vector<1x128xf32>
    %85 = vector.broadcast %84 : vector<1x128xf32> to vector<728x128xf32>
    %86 = arith.addf %83, %85 : vector<728x128xf32>
    %cst_91 = arith.constant 0.000000e+00 : f32
    %87 = vector.broadcast %cst_91 : f32 to vector<728x128xf32>
    %88 = arith.maximumf %86, %87 : vector<728x128xf32>
    %c0_92 = arith.constant 0 : index
    %c0_93 = arith.constant 0 : index
    %89 = vector.load %arg13[%c0_92, %c0_93] : memref<728x128xf32, #tpu.memory_space<vmem>>, vector<728x128xf32>
    tpu.vector_store %arg13[%c0_92, %c0_93], %88 {strides = array<i32>} : memref<728x128xf32, #tpu.memory_space<vmem>>, vector<728x128xf32>,
    %90 = tpu.iota {dimensions = array<i32: 1>} : vector<13x26xi32>
    %91 = tpu.iota {dimensions = array<i32: 0>} : vector<13x26xi32>
    %c2_i32 = arith.constant 2 : i32
    %92 = vector.broadcast %c2_i32 : i32 to vector<13x26xi32>
    %93 = arith.muli %92, %91 : vector<13x26xi32>
    %94 = arith.cmpi eq, %90, %93 : vector<13x26xi32>
    %95 = arith.extui %94 : vector<13x26xi1> to vector<13x26xi32>
    %96 = arith.sitofp %95 : vector<13x26xi32> to vector<13x26xf32>
    %c2_i32_94 = arith.constant 2 : i32
    %97 = vector.broadcast %c2_i32_94 : i32 to vector<13x26xi32>
    %98 = arith.muli %97, %91 : vector<13x26xi32>
    %c1_i32 = arith.constant 1 : i32
    %99 = vector.broadcast %c1_i32 : i32 to vector<13x26xi32>
    %100 = arith.addi %98, %99 : vector<13x26xi32>
    %101 = arith.cmpi eq, %90, %100 : vector<13x26xi32>
    %102 = arith.extui %101 : vector<13x26xi1> to vector<13x26xi32>
    %103 = arith.sitofp %102 : vector<13x26xi32> to vector<13x26xf32>
    %c0_95 = arith.constant 0 : index
    %c0_96 = arith.constant 0 : index
    %104 = vector.load %arg13[%c0_95, %c0_96] : memref<728x128xf32, #tpu.memory_space<vmem>>, vector<26x128xf32>
    %c28_97 = arith.constant 28 : index
    %c0_98 = arith.constant 0 : index
    %105 = vector.load %arg13[%c28_97, %c0_98] : memref<728x128xf32, #tpu.memory_space<vmem>>, vector<26x128xf32>
    %106 = arith.maximumf %104, %105 : vector<26x128xf32>
    %cst_99 = arith.constant dense<0.000000e+00> : vector<13x128xf32>
    %107 = tpu.matmul %96, %106, %cst_99 {dimension_numbers = #tpu.dot_dimension_numbers<[1], [0], [0], [1], [0, 0, 1, 1], [], []>} : vector<13x26xf32>, vector<26x128xf32>, vector<13x128xf32> -> vector<13x128xf32>
    %cst_100 = arith.constant dense<0.000000e+00> : vector<13x128xf32>
    %108 = tpu.matmul %103, %106, %cst_100 {dimension_numbers = #tpu.dot_dimension_numbers<[1], [0], [0], [1], [0, 0, 1, 1], [], []>} : vector<13x26xf32>, vector<26x128xf32>, vector<13x128xf32> -> vector<13x128xf32>
    %109 = arith.maximumf %107, %108 : vector<13x128xf32>
    %c0_101 = arith.constant 0 : index
    %c0_102 = arith.constant 0 : index
    %110 = vector.load %arg14[%c0_101, %c0_102] : memref<176x128xf32, #tpu.memory_space<vmem>>, vector<13x128xf32>
    tpu.vector_store %arg14[%c0_101, %c0_102], %109 {strides = array<i32>} : memref<176x128xf32, #tpu.memory_space<vmem>>, vector<13x128xf32>,
    %c56_103 = arith.constant 56 : index
    %c0_104 = arith.constant 0 : index
    %111 = vector.load %arg13[%c56_103, %c0_104] : memref<728x128xf32, #tpu.memory_space<vmem>>, vector<26x128xf32>
    %c84 = arith.constant 84 : index
    %c0_105 = arith.constant 0 : index
    %112 = vector.load %arg13[%c84, %c0_105] : memref<728x128xf32, #tpu.memory_space<vmem>>, vector<26x128xf32>
    %113 = arith.maximumf %111, %112 : vector<26x128xf32>
    %cst_106 = arith.constant dense<0.000000e+00> : vector<13x128xf32>
    %114 = tpu.matmul %96, %113, %cst_106 {dimension_numbers = #tpu.dot_dimension_numbers<[1], [0], [0], [1], [0, 0, 1, 1], [], []>} : vector<13x26xf32>, vector<26x128xf32>, vector<13x128xf32> -> vector<13x128xf32>
    %cst_107 = arith.constant dense<0.000000e+00> : vector<13x128xf32>
    %115 = tpu.matmul %103, %113, %cst_107 {dimension_numbers = #tpu.dot_dimension_numbers<[1], [0], [0], [1], [0, 0, 1, 1], [], []>} : vector<13x26xf32>, vector<26x128xf32>, vector<13x128xf32> -> vector<13x128xf32>
    %116 = arith.maximumf %114, %115 : vector<13x128xf32>
    %c13 = arith.constant 13 : index
    %c0_108 = arith.constant 0 : index
    %117 = vector.load %arg14[%c13, %c0_108] : memref<176x128xf32, #tpu.memory_space<vmem>>, vector<13x128xf32>
    tpu.vector_store %arg14[%c13, %c0_108], %116 {strides = array<i32>} : memref<176x128xf32, #tpu.memory_space<vmem>>, vector<13x128xf32>,
    %c112 = arith.constant 112 : index
    %c0_109 = arith.constant 0 : index
    %118 = vector.load %arg13[%c112, %c0_109] : memref<728x128xf32, #tpu.memory_space<vmem>>, vector<26x128xf32>
    %c140 = arith.constant 140 : index
    %c0_110 = arith.constant 0 : index
    %119 = vector.load %arg13[%c140, %c0_110] : memref<728x128xf32, #tpu.memory_space<vmem>>, vector<26x128xf32>
    %120 = arith.maximumf %118, %119 : vector<26x128xf32>
    %cst_111 = arith.constant dense<0.000000e+00> : vector<13x128xf32>
    %121 = tpu.matmul %96, %120, %cst_111 {dimension_numbers = #tpu.dot_dimension_numbers<[1], [0], [0], [1], [0, 0, 1, 1], [], []>} : vector<13x26xf32>, vector<26x128xf32>, vector<13x128xf32> -> vector<13x128xf32>
    %cst_112 = arith.constant dense<0.000000e+00> : vector<13x128xf32>
    %122 = tpu.matmul %103, %120, %cst_112 {dimension_numbers = #tpu.dot_dimension_numbers<[1], [0], [0], [1], [0, 0, 1, 1], [], []>} : vector<13x26xf32>, vector<26x128xf32>, vector<13x128xf32> -> vector<13x128xf32>
    %123 = arith.maximumf %121, %122 : vector<13x128xf32>
    %c26 = arith.constant 26 : index
    %c0_113 = arith.constant 0 : index
    %124 = vector.load %arg14[%c26, %c0_113] : memref<176x128xf32, #tpu.memory_space<vmem>>, vector<13x128xf32>
    tpu.vector_store %arg14[%c26, %c0_113], %123 {strides = array<i32>} : memref<176x128xf32, #tpu.memory_space<vmem>>, vector<13x128xf32>,
    %c168 = arith.constant 168 : index
    %c0_114 = arith.constant 0 : index
    %125 = vector.load %arg13[%c168, %c0_114] : memref<728x128xf32, #tpu.memory_space<vmem>>, vector<26x128xf32>
    %c196 = arith.constant 196 : index
    %c0_115 = arith.constant 0 : index
    %126 = vector.load %arg13[%c196, %c0_115] : memref<728x128xf32, #tpu.memory_space<vmem>>, vector<26x128xf32>
    %127 = arith.maximumf %125, %126 : vector<26x128xf32>
    %cst_116 = arith.constant dense<0.000000e+00> : vector<13x128xf32>
    %128 = tpu.matmul %96, %127, %cst_116 {dimension_numbers = #tpu.dot_dimension_numbers<[1], [0], [0], [1], [0, 0, 1, 1], [], []>} : vector<13x26xf32>, vector<26x128xf32>, vector<13x128xf32> -> vector<13x128xf32>
    %cst_117 = arith.constant dense<0.000000e+00> : vector<13x128xf32>
    %129 = tpu.matmul %103, %127, %cst_117 {dimension_numbers = #tpu.dot_dimension_numbers<[1], [0], [0], [1], [0, 0, 1, 1], [], []>} : vector<13x26xf32>, vector<26x128xf32>, vector<13x128xf32> -> vector<13x128xf32>
    %130 = arith.maximumf %128, %129 : vector<13x128xf32>
    %c39 = arith.constant 39 : index
    %c0_118 = arith.constant 0 : index
    %131 = vector.load %arg14[%c39, %c0_118] : memref<176x128xf32, #tpu.memory_space<vmem>>, vector<13x128xf32>
    tpu.vector_store %arg14[%c39, %c0_118], %130 {strides = array<i32>} : memref<176x128xf32, #tpu.memory_space<vmem>>, vector<13x128xf32>,
    %c224 = arith.constant 224 : index
    %c0_119 = arith.constant 0 : index
    %132 = vector.load %arg13[%c224, %c0_119] : memref<728x128xf32, #tpu.memory_space<vmem>>, vector<26x128xf32>
    %c252 = arith.constant 252 : index
    %c0_120 = arith.constant 0 : index
    %133 = vector.load %arg13[%c252, %c0_120] : memref<728x128xf32, #tpu.memory_space<vmem>>, vector<26x128xf32>
    %134 = arith.maximumf %132, %133 : vector<26x128xf32>
    %cst_121 = arith.constant dense<0.000000e+00> : vector<13x128xf32>
    %135 = tpu.matmul %96, %134, %cst_121 {dimension_numbers = #tpu.dot_dimension_numbers<[1], [0], [0], [1], [0, 0, 1, 1], [], []>} : vector<13x26xf32>, vector<26x128xf32>, vector<13x128xf32> -> vector<13x128xf32>
    %cst_122 = arith.constant dense<0.000000e+00> : vector<13x128xf32>
    %136 = tpu.matmul %103, %134, %cst_122 {dimension_numbers = #tpu.dot_dimension_numbers<[1], [0], [0], [1], [0, 0, 1, 1], [], []>} : vector<13x26xf32>, vector<26x128xf32>, vector<13x128xf32> -> vector<13x128xf32>
    %137 = arith.maximumf %135, %136 : vector<13x128xf32>
    %c52 = arith.constant 52 : index
    %c0_123 = arith.constant 0 : index
    %138 = vector.load %arg14[%c52, %c0_123] : memref<176x128xf32, #tpu.memory_space<vmem>>, vector<13x128xf32>
    tpu.vector_store %arg14[%c52, %c0_123], %137 {strides = array<i32>} : memref<176x128xf32, #tpu.memory_space<vmem>>, vector<13x128xf32>,
    %c280 = arith.constant 280 : index
    %c0_124 = arith.constant 0 : index
    %139 = vector.load %arg13[%c280, %c0_124] : memref<728x128xf32, #tpu.memory_space<vmem>>, vector<26x128xf32>
    %c308 = arith.constant 308 : index
    %c0_125 = arith.constant 0 : index
    %140 = vector.load %arg13[%c308, %c0_125] : memref<728x128xf32, #tpu.memory_space<vmem>>, vector<26x128xf32>
    %141 = arith.maximumf %139, %140 : vector<26x128xf32>
    %cst_126 = arith.constant dense<0.000000e+00> : vector<13x128xf32>
    %142 = tpu.matmul %96, %141, %cst_126 {dimension_numbers = #tpu.dot_dimension_numbers<[1], [0], [0], [1], [0, 0, 1, 1], [], []>} : vector<13x26xf32>, vector<26x128xf32>, vector<13x128xf32> -> vector<13x128xf32>
    %cst_127 = arith.constant dense<0.000000e+00> : vector<13x128xf32>
    %143 = tpu.matmul %103, %141, %cst_127 {dimension_numbers = #tpu.dot_dimension_numbers<[1], [0], [0], [1], [0, 0, 1, 1], [], []>} : vector<13x26xf32>, vector<26x128xf32>, vector<13x128xf32> -> vector<13x128xf32>
    %144 = arith.maximumf %142, %143 : vector<13x128xf32>
    %c65 = arith.constant 65 : index
    %c0_128 = arith.constant 0 : index
    %145 = vector.load %arg14[%c65, %c0_128] : memref<176x128xf32, #tpu.memory_space<vmem>>, vector<13x128xf32>
    tpu.vector_store %arg14[%c65, %c0_128], %144 {strides = array<i32>} : memref<176x128xf32, #tpu.memory_space<vmem>>, vector<13x128xf32>,
    %c336 = arith.constant 336 : index
    %c0_129 = arith.constant 0 : index
    %146 = vector.load %arg13[%c336, %c0_129] : memref<728x128xf32, #tpu.memory_space<vmem>>, vector<26x128xf32>
    %c364 = arith.constant 364 : index
    %c0_130 = arith.constant 0 : index
    %147 = vector.load %arg13[%c364, %c0_130] : memref<728x128xf32, #tpu.memory_space<vmem>>, vector<26x128xf32>
    %148 = arith.maximumf %146, %147 : vector<26x128xf32>
    %cst_131 = arith.constant dense<0.000000e+00> : vector<13x128xf32>
    %149 = tpu.matmul %96, %148, %cst_131 {dimension_numbers = #tpu.dot_dimension_numbers<[1], [0], [0], [1], [0, 0, 1, 1], [], []>} : vector<13x26xf32>, vector<26x128xf32>, vector<13x128xf32> -> vector<13x128xf32>
    %cst_132 = arith.constant dense<0.000000e+00> : vector<13x128xf32>
    %150 = tpu.matmul %103, %148, %cst_132 {dimension_numbers = #tpu.dot_dimension_numbers<[1], [0], [0], [1], [0, 0, 1, 1], [], []>} : vector<13x26xf32>, vector<26x128xf32>, vector<13x128xf32> -> vector<13x128xf32>
    %151 = arith.maximumf %149, %150 : vector<13x128xf32>
    %c78 = arith.constant 78 : index
    %c0_133 = arith.constant 0 : index
    %152 = vector.load %arg14[%c78, %c0_133] : memref<176x128xf32, #tpu.memory_space<vmem>>, vector<13x128xf32>
    tpu.vector_store %arg14[%c78, %c0_133], %151 {strides = array<i32>} : memref<176x128xf32, #tpu.memory_space<vmem>>, vector<13x128xf32>,
    %c392 = arith.constant 392 : index
    %c0_134 = arith.constant 0 : index
    %153 = vector.load %arg13[%c392, %c0_134] : memref<728x128xf32, #tpu.memory_space<vmem>>, vector<26x128xf32>
    %c420 = arith.constant 420 : index
    %c0_135 = arith.constant 0 : index
    %154 = vector.load %arg13[%c420, %c0_135] : memref<728x128xf32, #tpu.memory_space<vmem>>, vector<26x128xf32>
    %155 = arith.maximumf %153, %154 : vector<26x128xf32>
    %cst_136 = arith.constant dense<0.000000e+00> : vector<13x128xf32>
    %156 = tpu.matmul %96, %155, %cst_136 {dimension_numbers = #tpu.dot_dimension_numbers<[1], [0], [0], [1], [0, 0, 1, 1], [], []>} : vector<13x26xf32>, vector<26x128xf32>, vector<13x128xf32> -> vector<13x128xf32>
    %cst_137 = arith.constant dense<0.000000e+00> : vector<13x128xf32>
    %157 = tpu.matmul %103, %155, %cst_137 {dimension_numbers = #tpu.dot_dimension_numbers<[1], [0], [0], [1], [0, 0, 1, 1], [], []>} : vector<13x26xf32>, vector<26x128xf32>, vector<13x128xf32> -> vector<13x128xf32>
    %158 = arith.maximumf %156, %157 : vector<13x128xf32>
    %c91 = arith.constant 91 : index
    %c0_138 = arith.constant 0 : index
    %159 = vector.load %arg14[%c91, %c0_138] : memref<176x128xf32, #tpu.memory_space<vmem>>, vector<13x128xf32>
    tpu.vector_store %arg14[%c91, %c0_138], %158 {strides = array<i32>} : memref<176x128xf32, #tpu.memory_space<vmem>>, vector<13x128xf32>,
    %c448 = arith.constant 448 : index
    %c0_139 = arith.constant 0 : index
    %160 = vector.load %arg13[%c448, %c0_139] : memref<728x128xf32, #tpu.memory_space<vmem>>, vector<26x128xf32>
    %c476 = arith.constant 476 : index
    %c0_140 = arith.constant 0 : index
    %161 = vector.load %arg13[%c476, %c0_140] : memref<728x128xf32, #tpu.memory_space<vmem>>, vector<26x128xf32>
    %162 = arith.maximumf %160, %161 : vector<26x128xf32>
    %cst_141 = arith.constant dense<0.000000e+00> : vector<13x128xf32>
    %163 = tpu.matmul %96, %162, %cst_141 {dimension_numbers = #tpu.dot_dimension_numbers<[1], [0], [0], [1], [0, 0, 1, 1], [], []>} : vector<13x26xf32>, vector<26x128xf32>, vector<13x128xf32> -> vector<13x128xf32>
    %cst_142 = arith.constant dense<0.000000e+00> : vector<13x128xf32>
    %164 = tpu.matmul %103, %162, %cst_142 {dimension_numbers = #tpu.dot_dimension_numbers<[1], [0], [0], [1], [0, 0, 1, 1], [], []>} : vector<13x26xf32>, vector<26x128xf32>, vector<13x128xf32> -> vector<13x128xf32>
    %165 = arith.maximumf %163, %164 : vector<13x128xf32>
    %c104 = arith.constant 104 : index
    %c0_143 = arith.constant 0 : index
    %166 = vector.load %arg14[%c104, %c0_143] : memref<176x128xf32, #tpu.memory_space<vmem>>, vector<13x128xf32>
    tpu.vector_store %arg14[%c104, %c0_143], %165 {strides = array<i32>} : memref<176x128xf32, #tpu.memory_space<vmem>>, vector<13x128xf32>,
    %c504 = arith.constant 504 : index
    %c0_144 = arith.constant 0 : index
    %167 = vector.load %arg13[%c504, %c0_144] : memref<728x128xf32, #tpu.memory_space<vmem>>, vector<26x128xf32>
    %c532 = arith.constant 532 : index
    %c0_145 = arith.constant 0 : index
    %168 = vector.load %arg13[%c532, %c0_145] : memref<728x128xf32, #tpu.memory_space<vmem>>, vector<26x128xf32>
    %169 = arith.maximumf %167, %168 : vector<26x128xf32>
    %cst_146 = arith.constant dense<0.000000e+00> : vector<13x128xf32>
    %170 = tpu.matmul %96, %169, %cst_146 {dimension_numbers = #tpu.dot_dimension_numbers<[1], [0], [0], [1], [0, 0, 1, 1], [], []>} : vector<13x26xf32>, vector<26x128xf32>, vector<13x128xf32> -> vector<13x128xf32>
    %cst_147 = arith.constant dense<0.000000e+00> : vector<13x128xf32>
    %171 = tpu.matmul %103, %169, %cst_147 {dimension_numbers = #tpu.dot_dimension_numbers<[1], [0], [0], [1], [0, 0, 1, 1], [], []>} : vector<13x26xf32>, vector<26x128xf32>, vector<13x128xf32> -> vector<13x128xf32>
    %172 = arith.maximumf %170, %171 : vector<13x128xf32>
    %c117 = arith.constant 117 : index
    %c0_148 = arith.constant 0 : index
    %173 = vector.load %arg14[%c117, %c0_148] : memref<176x128xf32, #tpu.memory_space<vmem>>, vector<13x128xf32>
    tpu.vector_store %arg14[%c117, %c0_148], %172 {strides = array<i32>} : memref<176x128xf32, #tpu.memory_space<vmem>>, vector<13x128xf32>,
    %c560 = arith.constant 560 : index
    %c0_149 = arith.constant 0 : index
    %174 = vector.load %arg13[%c560, %c0_149] : memref<728x128xf32, #tpu.memory_space<vmem>>, vector<26x128xf32>
    %c588 = arith.constant 588 : index
    %c0_150 = arith.constant 0 : index
    %175 = vector.load %arg13[%c588, %c0_150] : memref<728x128xf32, #tpu.memory_space<vmem>>, vector<26x128xf32>
    %176 = arith.maximumf %174, %175 : vector<26x128xf32>
    %cst_151 = arith.constant dense<0.000000e+00> : vector<13x128xf32>
    %177 = tpu.matmul %96, %176, %cst_151 {dimension_numbers = #tpu.dot_dimension_numbers<[1], [0], [0], [1], [0, 0, 1, 1], [], []>} : vector<13x26xf32>, vector<26x128xf32>, vector<13x128xf32> -> vector<13x128xf32>
    %cst_152 = arith.constant dense<0.000000e+00> : vector<13x128xf32>
    %178 = tpu.matmul %103, %176, %cst_152 {dimension_numbers = #tpu.dot_dimension_numbers<[1], [0], [0], [1], [0, 0, 1, 1], [], []>} : vector<13x26xf32>, vector<26x128xf32>, vector<13x128xf32> -> vector<13x128xf32>
    %179 = arith.maximumf %177, %178 : vector<13x128xf32>
    %c130 = arith.constant 130 : index
    %c0_153 = arith.constant 0 : index
    %180 = vector.load %arg14[%c130, %c0_153] : memref<176x128xf32, #tpu.memory_space<vmem>>, vector<13x128xf32>
    tpu.vector_store %arg14[%c130, %c0_153], %179 {strides = array<i32>} : memref<176x128xf32, #tpu.memory_space<vmem>>, vector<13x128xf32>,
    %c616 = arith.constant 616 : index
    %c0_154 = arith.constant 0 : index
    %181 = vector.load %arg13[%c616, %c0_154] : memref<728x128xf32, #tpu.memory_space<vmem>>, vector<26x128xf32>
    %c644 = arith.constant 644 : index
    %c0_155 = arith.constant 0 : index
    %182 = vector.load %arg13[%c644, %c0_155] : memref<728x128xf32, #tpu.memory_space<vmem>>, vector<26x128xf32>
    %183 = arith.maximumf %181, %182 : vector<26x128xf32>
    %cst_156 = arith.constant dense<0.000000e+00> : vector<13x128xf32>
    %184 = tpu.matmul %96, %183, %cst_156 {dimension_numbers = #tpu.dot_dimension_numbers<[1], [0], [0], [1], [0, 0, 1, 1], [], []>} : vector<13x26xf32>, vector<26x128xf32>, vector<13x128xf32> -> vector<13x128xf32>
    %cst_157 = arith.constant dense<0.000000e+00> : vector<13x128xf32>
    %185 = tpu.matmul %103, %183, %cst_157 {dimension_numbers = #tpu.dot_dimension_numbers<[1], [0], [0], [1], [0, 0, 1, 1], [], []>} : vector<13x26xf32>, vector<26x128xf32>, vector<13x128xf32> -> vector<13x128xf32>
    %186 = arith.maximumf %184, %185 : vector<13x128xf32>
    %c143 = arith.constant 143 : index
    %c0_158 = arith.constant 0 : index
    %187 = vector.load %arg14[%c143, %c0_158] : memref<176x128xf32, #tpu.memory_space<vmem>>, vector<13x128xf32>
    tpu.vector_store %arg14[%c143, %c0_158], %186 {strides = array<i32>} : memref<176x128xf32, #tpu.memory_space<vmem>>, vector<13x128xf32>,
    %c672 = arith.constant 672 : index
    %c0_159 = arith.constant 0 : index
    %188 = vector.load %arg13[%c672, %c0_159] : memref<728x128xf32, #tpu.memory_space<vmem>>, vector<26x128xf32>
    %c700 = arith.constant 700 : index
    %c0_160 = arith.constant 0 : index
    %189 = vector.load %arg13[%c700, %c0_160] : memref<728x128xf32, #tpu.memory_space<vmem>>, vector<26x128xf32>
    %190 = arith.maximumf %188, %189 : vector<26x128xf32>
    %cst_161 = arith.constant dense<0.000000e+00> : vector<13x128xf32>
    %191 = tpu.matmul %96, %190, %cst_161 {dimension_numbers = #tpu.dot_dimension_numbers<[1], [0], [0], [1], [0, 0, 1, 1], [], []>} : vector<13x26xf32>, vector<26x128xf32>, vector<13x128xf32> -> vector<13x128xf32>
    %cst_162 = arith.constant dense<0.000000e+00> : vector<13x128xf32>
    %192 = tpu.matmul %103, %190, %cst_162 {dimension_numbers = #tpu.dot_dimension_numbers<[1], [0], [0], [1], [0, 0, 1, 1], [], []>} : vector<13x26xf32>, vector<26x128xf32>, vector<13x128xf32> -> vector<13x128xf32>
    %193 = arith.maximumf %191, %192 : vector<13x128xf32>
    %c156 = arith.constant 156 : index
    %c0_163 = arith.constant 0 : index
    %194 = vector.load %arg14[%c156, %c0_163] : memref<176x128xf32, #tpu.memory_space<vmem>>, vector<13x128xf32>
    tpu.vector_store %arg14[%c156, %c0_163], %193 {strides = array<i32>} : memref<176x128xf32, #tpu.memory_space<vmem>>, vector<13x128xf32>,
    %c0_164 = arith.constant 0 : index
    %c0_165 = arith.constant 0 : index
    %195 = vector.load %arg14[%c0_164, %c0_165] : memref<176x128xf32, #tpu.memory_space<vmem>>, vector<143x128xf32>
    %196 = arith.truncf %195 : vector<143x128xf32> to vector<143x128xbf16>
    %c0_166 = arith.constant 0 : index
    %c0_167 = arith.constant 0 : index
    %c0_168 = arith.constant 0 : index
    %197 = vector.load %arg4[%c0_166, %c0_167, %c0_168] : memref<9x128x128xbf16, #tpu.memory_space<vmem>>, vector<1x128x128xbf16>
    %198 = vector.shape_cast %197 : vector<1x128x128xbf16> to vector<128x128xbf16>
    %cst_169 = arith.constant dense<0.000000e+00> : vector<143x128xf32>
    %199 = tpu.matmul %196, %198, %cst_169 {dimension_numbers = #tpu.dot_dimension_numbers<[1], [0], [0], [1], [0, 0, 1, 1], [], []>} : vector<143x128xbf16>, vector<128x128xbf16>, vector<143x128xf32> -> vector<143x128xf32>
    %c0_170 = arith.constant 0 : index
    %c0_171 = arith.constant 0 : index
    %200 = vector.load %arg13[%c0_170, %c0_171] : memref<728x128xf32, #tpu.memory_space<vmem>>, vector<143x128xf32>
    tpu.vector_store %arg13[%c0_170, %c0_171], %199 {strides = array<i32>} : memref<728x128xf32, #tpu.memory_space<vmem>>, vector<143x128xf32>,
    %c1_172 = arith.constant 1 : index
    %c0_173 = arith.constant 0 : index
    %201 = vector.load %arg14[%c1_172, %c0_173] : memref<176x128xf32, #tpu.memory_space<vmem>>, vector<143x128xf32>
    %202 = arith.truncf %201 : vector<143x128xf32> to vector<143x128xbf16>
    %c1_174 = arith.constant 1 : index
    %c0_175 = arith.constant 0 : index
    %c0_176 = arith.constant 0 : index
    %203 = vector.load %arg4[%c1_174, %c0_175, %c0_176] : memref<9x128x128xbf16, #tpu.memory_space<vmem>>, vector<1x128x128xbf16>
    %204 = vector.shape_cast %203 : vector<1x128x128xbf16> to vector<128x128xbf16>
    %cst_177 = arith.constant dense<0.000000e+00> : vector<143x128xf32>
    %205 = tpu.matmul %202, %204, %cst_177 {dimension_numbers = #tpu.dot_dimension_numbers<[1], [0], [0], [1], [0, 0, 1, 1], [], []>} : vector<143x128xbf16>, vector<128x128xbf16>, vector<143x128xf32> -> vector<143x128xf32>
    %c0_178 = arith.constant 0 : index
    %c0_179 = arith.constant 0 : index
    %206 = vector.load %arg13[%c0_178, %c0_179] : memref<728x128xf32, #tpu.memory_space<vmem>>, vector<143x128xf32>
    %207 = arith.addf %206, %205 : vector<143x128xf32>
    %c0_180 = arith.constant 0 : index
    %c0_181 = arith.constant 0 : index
    %208 = vector.load %arg13[%c0_180, %c0_181] : memref<728x128xf32, #tpu.memory_space<vmem>>, vector<143x128xf32>
    tpu.vector_store %arg13[%c0_180, %c0_181], %207 {strides = array<i32>} : memref<728x128xf32, #tpu.memory_space<vmem>>, vector<143x128xf32>,
    %c2_182 = arith.constant 2 : index
    %c0_183 = arith.constant 0 : index
    %209 = vector.load %arg14[%c2_182, %c0_183] : memref<176x128xf32, #tpu.memory_space<vmem>>, vector<143x128xf32>
    %210 = arith.truncf %209 : vector<143x128xf32> to vector<143x128xbf16>
    %c2_184 = arith.constant 2 : index
    %c0_185 = arith.constant 0 : index
    %c0_186 = arith.constant 0 : index
    %211 = vector.load %arg4[%c2_184, %c0_185, %c0_186] : memref<9x128x128xbf16, #tpu.memory_space<vmem>>, vector<1x128x128xbf16>
    %212 = vector.shape_cast %211 : vector<1x128x128xbf16> to vector<128x128xbf16>
    %cst_187 = arith.constant dense<0.000000e+00> : vector<143x128xf32>
    %213 = tpu.matmul %210, %212, %cst_187 {dimension_numbers = #tpu.dot_dimension_numbers<[1], [0], [0], [1], [0, 0, 1, 1], [], []>} : vector<143x128xbf16>, vector<128x128xbf16>, vector<143x128xf32> -> vector<143x128xf32>
    %c0_188 = arith.constant 0 : index
    %c0_189 = arith.constant 0 : index
    %214 = vector.load %arg13[%c0_188, %c0_189] : memref<728x128xf32, #tpu.memory_space<vmem>>, vector<143x128xf32>
    %215 = arith.addf %214, %213 : vector<143x128xf32>
    %c0_190 = arith.constant 0 : index
    %c0_191 = arith.constant 0 : index
    %216 = vector.load %arg13[%c0_190, %c0_191] : memref<728x128xf32, #tpu.memory_space<vmem>>, vector<143x128xf32>
    tpu.vector_store %arg13[%c0_190, %c0_191], %215 {strides = array<i32>} : memref<728x128xf32, #tpu.memory_space<vmem>>, vector<143x128xf32>,
    %c13_192 = arith.constant 13 : index
    %c0_193 = arith.constant 0 : index
    %217 = vector.load %arg14[%c13_192, %c0_193] : memref<176x128xf32, #tpu.memory_space<vmem>>, vector<143x128xf32>
    %218 = arith.truncf %217 : vector<143x128xf32> to vector<143x128xbf16>
    %c3_194 = arith.constant 3 : index
    %c0_195 = arith.constant 0 : index
    %c0_196 = arith.constant 0 : index
    %219 = vector.load %arg4[%c3_194, %c0_195, %c0_196] : memref<9x128x128xbf16, #tpu.memory_space<vmem>>, vector<1x128x128xbf16>
    %220 = vector.shape_cast %219 : vector<1x128x128xbf16> to vector<128x128xbf16>
    %cst_197 = arith.constant dense<0.000000e+00> : vector<143x128xf32>
    %221 = tpu.matmul %218, %220, %cst_197 {dimension_numbers = #tpu.dot_dimension_numbers<[1], [0], [0], [1], [0, 0, 1, 1], [], []>} : vector<143x128xbf16>, vector<128x128xbf16>, vector<143x128xf32> -> vector<143x128xf32>
    %c0_198 = arith.constant 0 : index
    %c0_199 = arith.constant 0 : index
    %222 = vector.load %arg13[%c0_198, %c0_199] : memref<728x128xf32, #tpu.memory_space<vmem>>, vector<143x128xf32>
    %223 = arith.addf %222, %221 : vector<143x128xf32>
    %c0_200 = arith.constant 0 : index
    %c0_201 = arith.constant 0 : index
    %224 = vector.load %arg13[%c0_200, %c0_201] : memref<728x128xf32, #tpu.memory_space<vmem>>, vector<143x128xf32>
    tpu.vector_store %arg13[%c0_200, %c0_201], %223 {strides = array<i32>} : memref<728x128xf32, #tpu.memory_space<vmem>>, vector<143x128xf32>,
    %c14 = arith.constant 14 : index
    %c0_202 = arith.constant 0 : index
    %225 = vector.load %arg14[%c14, %c0_202] : memref<176x128xf32, #tpu.memory_space<vmem>>, vector<143x128xf32>
    %226 = arith.truncf %225 : vector<143x128xf32> to vector<143x128xbf16>
    %c4_203 = arith.constant 4 : index
    %c0_204 = arith.constant 0 : index
    %c0_205 = arith.constant 0 : index
    %227 = vector.load %arg4[%c4_203, %c0_204, %c0_205] : memref<9x128x128xbf16, #tpu.memory_space<vmem>>, vector<1x128x128xbf16>
    %228 = vector.shape_cast %227 : vector<1x128x128xbf16> to vector<128x128xbf16>
    %cst_206 = arith.constant dense<0.000000e+00> : vector<143x128xf32>
    %229 = tpu.matmul %226, %228, %cst_206 {dimension_numbers = #tpu.dot_dimension_numbers<[1], [0], [0], [1], [0, 0, 1, 1], [], []>} : vector<143x128xbf16>, vector<128x128xbf16>, vector<143x128xf32> -> vector<143x128xf32>
    %c0_207 = arith.constant 0 : index
    %c0_208 = arith.constant 0 : index
    %230 = vector.load %arg13[%c0_207, %c0_208] : memref<728x128xf32, #tpu.memory_space<vmem>>, vector<143x128xf32>
    %231 = arith.addf %230, %229 : vector<143x128xf32>
    %c0_209 = arith.constant 0 : index
    %c0_210 = arith.constant 0 : index
    %232 = vector.load %arg13[%c0_209, %c0_210] : memref<728x128xf32, #tpu.memory_space<vmem>>, vector<143x128xf32>
    tpu.vector_store %arg13[%c0_209, %c0_210], %231 {strides = array<i32>} : memref<728x128xf32, #tpu.memory_space<vmem>>, vector<143x128xf32>,
    %c15 = arith.constant 15 : index
    %c0_211 = arith.constant 0 : index
    %233 = vector.load %arg14[%c15, %c0_211] : memref<176x128xf32, #tpu.memory_space<vmem>>, vector<143x128xf32>
    %234 = arith.truncf %233 : vector<143x128xf32> to vector<143x128xbf16>
    %c5_212 = arith.constant 5 : index
    %c0_213 = arith.constant 0 : index
    %c0_214 = arith.constant 0 : index
    %235 = vector.load %arg4[%c5_212, %c0_213, %c0_214] : memref<9x128x128xbf16, #tpu.memory_space<vmem>>, vector<1x128x128xbf16>
    %236 = vector.shape_cast %235 : vector<1x128x128xbf16> to vector<128x128xbf16>
    %cst_215 = arith.constant dense<0.000000e+00> : vector<143x128xf32>
    %237 = tpu.matmul %234, %236, %cst_215 {dimension_numbers = #tpu.dot_dimension_numbers<[1], [0], [0], [1], [0, 0, 1, 1], [], []>} : vector<143x128xbf16>, vector<128x128xbf16>, vector<143x128xf32> -> vector<143x128xf32>
    %c0_216 = arith.constant 0 : index
    %c0_217 = arith.constant 0 : index
    %238 = vector.load %arg13[%c0_216, %c0_217] : memref<728x128xf32, #tpu.memory_space<vmem>>, vector<143x128xf32>
    %239 = arith.addf %238, %237 : vector<143x128xf32>
    %c0_218 = arith.constant 0 : index
    %c0_219 = arith.constant 0 : index
    %240 = vector.load %arg13[%c0_218, %c0_219] : memref<728x128xf32, #tpu.memory_space<vmem>>, vector<143x128xf32>
    tpu.vector_store %arg13[%c0_218, %c0_219], %239 {strides = array<i32>} : memref<728x128xf32, #tpu.memory_space<vmem>>, vector<143x128xf32>,
    %c26_220 = arith.constant 26 : index
    %c0_221 = arith.constant 0 : index
    %241 = vector.load %arg14[%c26_220, %c0_221] : memref<176x128xf32, #tpu.memory_space<vmem>>, vector<143x128xf32>
    %242 = arith.truncf %241 : vector<143x128xf32> to vector<143x128xbf16>
    %c6_222 = arith.constant 6 : index
    %c0_223 = arith.constant 0 : index
    %c0_224 = arith.constant 0 : index
    %243 = vector.load %arg4[%c6_222, %c0_223, %c0_224] : memref<9x128x128xbf16, #tpu.memory_space<vmem>>, vector<1x128x128xbf16>
    %244 = vector.shape_cast %243 : vector<1x128x128xbf16> to vector<128x128xbf16>
    %cst_225 = arith.constant dense<0.000000e+00> : vector<143x128xf32>
    %245 = tpu.matmul %242, %244, %cst_225 {dimension_numbers = #tpu.dot_dimension_numbers<[1], [0], [0], [1], [0, 0, 1, 1], [], []>} : vector<143x128xbf16>, vector<128x128xbf16>, vector<143x128xf32> -> vector<143x128xf32>
    %c0_226 = arith.constant 0 : index
    %c0_227 = arith.constant 0 : index
    %246 = vector.load %arg13[%c0_226, %c0_227] : memref<728x128xf32, #tpu.memory_space<vmem>>, vector<143x128xf32>
    %247 = arith.addf %246, %245 : vector<143x128xf32>
    %c0_228 = arith.constant 0 : index
    %c0_229 = arith.constant 0 : index
    %248 = vector.load %arg13[%c0_228, %c0_229] : memref<728x128xf32, #tpu.memory_space<vmem>>, vector<143x128xf32>
    tpu.vector_store %arg13[%c0_228, %c0_229], %247 {strides = array<i32>} : memref<728x128xf32, #tpu.memory_space<vmem>>, vector<143x128xf32>,
    %c27 = arith.constant 27 : index
    %c0_230 = arith.constant 0 : index
    %249 = vector.load %arg14[%c27, %c0_230] : memref<176x128xf32, #tpu.memory_space<vmem>>, vector<143x128xf32>
    %250 = arith.truncf %249 : vector<143x128xf32> to vector<143x128xbf16>
    %c7_231 = arith.constant 7 : index
    %c0_232 = arith.constant 0 : index
    %c0_233 = arith.constant 0 : index
    %251 = vector.load %arg4[%c7_231, %c0_232, %c0_233] : memref<9x128x128xbf16, #tpu.memory_space<vmem>>, vector<1x128x128xbf16>
    %252 = vector.shape_cast %251 : vector<1x128x128xbf16> to vector<128x128xbf16>
    %cst_234 = arith.constant dense<0.000000e+00> : vector<143x128xf32>
    %253 = tpu.matmul %250, %252, %cst_234 {dimension_numbers = #tpu.dot_dimension_numbers<[1], [0], [0], [1], [0, 0, 1, 1], [], []>} : vector<143x128xbf16>, vector<128x128xbf16>, vector<143x128xf32> -> vector<143x128xf32>
    %c0_235 = arith.constant 0 : index
    %c0_236 = arith.constant 0 : index
    %254 = vector.load %arg13[%c0_235, %c0_236] : memref<728x128xf32, #tpu.memory_space<vmem>>, vector<143x128xf32>
    %255 = arith.addf %254, %253 : vector<143x128xf32>
    %c0_237 = arith.constant 0 : index
    %c0_238 = arith.constant 0 : index
    %256 = vector.load %arg13[%c0_237, %c0_238] : memref<728x128xf32, #tpu.memory_space<vmem>>, vector<143x128xf32>
    tpu.vector_store %arg13[%c0_237, %c0_238], %255 {strides = array<i32>} : memref<728x128xf32, #tpu.memory_space<vmem>>, vector<143x128xf32>,
    %c28_239 = arith.constant 28 : index
    %c0_240 = arith.constant 0 : index
    %257 = vector.load %arg14[%c28_239, %c0_240] : memref<176x128xf32, #tpu.memory_space<vmem>>, vector<143x128xf32>
    %258 = arith.truncf %257 : vector<143x128xf32> to vector<143x128xbf16>
    %c8_241 = arith.constant 8 : index
    %c0_242 = arith.constant 0 : index
    %c0_243 = arith.constant 0 : index
    %259 = vector.load %arg4[%c8_241, %c0_242, %c0_243] : memref<9x128x128xbf16, #tpu.memory_space<vmem>>, vector<1x128x128xbf16>
    %260 = vector.shape_cast %259 : vector<1x128x128xbf16> to vector<128x128xbf16>
    %cst_244 = arith.constant dense<0.000000e+00> : vector<143x128xf32>
    %261 = tpu.matmul %258, %260, %cst_244 {dimension_numbers = #tpu.dot_dimension_numbers<[1], [0], [0], [1], [0, 0, 1, 1], [], []>} : vector<143x128xbf16>, vector<128x128xbf16>, vector<143x128xf32> -> vector<143x128xf32>
    %c0_245 = arith.constant 0 : index
    %c0_246 = arith.constant 0 : index
    %262 = vector.load %arg13[%c0_245, %c0_246] : memref<728x128xf32, #tpu.memory_space<vmem>>, vector<143x128xf32>
    %263 = arith.addf %262, %261 : vector<143x128xf32>
    %c0_247 = arith.constant 0 : index
    %c0_248 = arith.constant 0 : index
    %264 = vector.load %arg13[%c0_247, %c0_248] : memref<728x128xf32, #tpu.memory_space<vmem>>, vector<143x128xf32>
    tpu.vector_store %arg13[%c0_247, %c0_248], %263 {strides = array<i32>} : memref<728x128xf32, #tpu.memory_space<vmem>>, vector<143x128xf32>,
    %c0_249 = arith.constant 0 : index
    %c0_250 = arith.constant 0 : index
    %265 = vector.load %arg13[%c0_249, %c0_250] : memref<728x128xf32, #tpu.memory_space<vmem>>, vector<143x128xf32>
    %c0_251 = arith.constant 0 : index
    %c0_252 = arith.constant 0 : index
    %266 = vector.load %arg5[%c0_251, %c0_252] : memref<1x128xf32, #tpu.memory_space<vmem>>, vector<1x128xf32>
    %267 = vector.broadcast %266 : vector<1x128xf32> to vector<143x128xf32>
    %268 = arith.addf %265, %267 : vector<143x128xf32>
    %cst_253 = arith.constant 0.000000e+00 : f32
    %269 = vector.broadcast %cst_253 : f32 to vector<143x128xf32>
    %270 = arith.maximumf %268, %269 : vector<143x128xf32>
    %c0_254 = arith.constant 0 : index
    %c0_255 = arith.constant 0 : index
    %271 = vector.load %arg13[%c0_254, %c0_255] : memref<728x128xf32, #tpu.memory_space<vmem>>, vector<143x128xf32>
    tpu.vector_store %arg13[%c0_254, %c0_255], %270 {strides = array<i32>} : memref<728x128xf32, #tpu.memory_space<vmem>>, vector<143x128xf32>,
    %272 = tpu.iota {dimensions = array<i32: 1>} : vector<5x11xi32>
    %273 = tpu.iota {dimensions = array<i32: 0>} : vector<5x11xi32>
    %c2_i32_256 = arith.constant 2 : i32
    %274 = vector.broadcast %c2_i32_256 : i32 to vector<5x11xi32>
    %275 = arith.muli %274, %273 : vector<5x11xi32>
    %276 = arith.cmpi eq, %272, %275 : vector<5x11xi32>
    %277 = arith.extui %276 : vector<5x11xi1> to vector<5x11xi32>
    %278 = arith.sitofp %277 : vector<5x11xi32> to vector<5x11xf32>
    %c2_i32_257 = arith.constant 2 : i32
    %279 = vector.broadcast %c2_i32_257 : i32 to vector<5x11xi32>
    %280 = arith.muli %279, %273 : vector<5x11xi32>
    %c1_i32_258 = arith.constant 1 : i32
    %281 = vector.broadcast %c1_i32_258 : i32 to vector<5x11xi32>
    %282 = arith.addi %280, %281 : vector<5x11xi32>
    %283 = arith.cmpi eq, %272, %282 : vector<5x11xi32>
    %284 = arith.extui %283 : vector<5x11xi1> to vector<5x11xi32>
    %285 = arith.sitofp %284 : vector<5x11xi32> to vector<5x11xf32>
    %c0_259 = arith.constant 0 : index
    %c0_260 = arith.constant 0 : index
    %286 = vector.load %arg13[%c0_259, %c0_260] : memref<728x128xf32, #tpu.memory_space<vmem>>, vector<11x128xf32>
    %c13_261 = arith.constant 13 : index
    %c0_262 = arith.constant 0 : index
    %287 = vector.load %arg13[%c13_261, %c0_262] : memref<728x128xf32, #tpu.memory_space<vmem>>, vector<11x128xf32>
    %288 = arith.maximumf %286, %287 : vector<11x128xf32>
    %cst_263 = arith.constant dense<0.000000e+00> : vector<5x128xf32>
    %289 = tpu.matmul %278, %288, %cst_263 {dimension_numbers = #tpu.dot_dimension_numbers<[1], [0], [0], [1], [0, 0, 1, 1], [], []>} : vector<5x11xf32>, vector<11x128xf32>, vector<5x128xf32> -> vector<5x128xf32>
    %cst_264 = arith.constant dense<0.000000e+00> : vector<5x128xf32>
    %290 = tpu.matmul %285, %288, %cst_264 {dimension_numbers = #tpu.dot_dimension_numbers<[1], [0], [0], [1], [0, 0, 1, 1], [], []>} : vector<5x11xf32>, vector<11x128xf32>, vector<5x128xf32> -> vector<5x128xf32>
    %291 = arith.maximumf %289, %290 : vector<5x128xf32>
    %c0_265 = arith.constant 0 : index
    %c0_266 = arith.constant 0 : index
    %292 = vector.load %arg15[%c0_265, %c0_266] : memref<32x128xf32, #tpu.memory_space<vmem>>, vector<5x128xf32>
    tpu.vector_store %arg15[%c0_265, %c0_266], %291 {strides = array<i32>} : memref<32x128xf32, #tpu.memory_space<vmem>>, vector<5x128xf32>,
    %c26_267 = arith.constant 26 : index
    %c0_268 = arith.constant 0 : index
    %293 = vector.load %arg13[%c26_267, %c0_268] : memref<728x128xf32, #tpu.memory_space<vmem>>, vector<11x128xf32>
    %c39_269 = arith.constant 39 : index
    %c0_270 = arith.constant 0 : index
    %294 = vector.load %arg13[%c39_269, %c0_270] : memref<728x128xf32, #tpu.memory_space<vmem>>, vector<11x128xf32>
    %295 = arith.maximumf %293, %294 : vector<11x128xf32>
    %cst_271 = arith.constant dense<0.000000e+00> : vector<5x128xf32>
    %296 = tpu.matmul %278, %295, %cst_271 {dimension_numbers = #tpu.dot_dimension_numbers<[1], [0], [0], [1], [0, 0, 1, 1], [], []>} : vector<5x11xf32>, vector<11x128xf32>, vector<5x128xf32> -> vector<5x128xf32>
    %cst_272 = arith.constant dense<0.000000e+00> : vector<5x128xf32>
    %297 = tpu.matmul %285, %295, %cst_272 {dimension_numbers = #tpu.dot_dimension_numbers<[1], [0], [0], [1], [0, 0, 1, 1], [], []>} : vector<5x11xf32>, vector<11x128xf32>, vector<5x128xf32> -> vector<5x128xf32>
    %298 = arith.maximumf %296, %297 : vector<5x128xf32>
    %c5_273 = arith.constant 5 : index
    %c0_274 = arith.constant 0 : index
    %299 = vector.load %arg15[%c5_273, %c0_274] : memref<32x128xf32, #tpu.memory_space<vmem>>, vector<5x128xf32>
    tpu.vector_store %arg15[%c5_273, %c0_274], %298 {strides = array<i32>} : memref<32x128xf32, #tpu.memory_space<vmem>>, vector<5x128xf32>,
    %c52_275 = arith.constant 52 : index
    %c0_276 = arith.constant 0 : index
    %300 = vector.load %arg13[%c52_275, %c0_276] : memref<728x128xf32, #tpu.memory_space<vmem>>, vector<11x128xf32>
    %c65_277 = arith.constant 65 : index
    %c0_278 = arith.constant 0 : index
    %301 = vector.load %arg13[%c65_277, %c0_278] : memref<728x128xf32, #tpu.memory_space<vmem>>, vector<11x128xf32>
    %302 = arith.maximumf %300, %301 : vector<11x128xf32>
    %cst_279 = arith.constant dense<0.000000e+00> : vector<5x128xf32>
    %303 = tpu.matmul %278, %302, %cst_279 {dimension_numbers = #tpu.dot_dimension_numbers<[1], [0], [0], [1], [0, 0, 1, 1], [], []>} : vector<5x11xf32>, vector<11x128xf32>, vector<5x128xf32> -> vector<5x128xf32>
    %cst_280 = arith.constant dense<0.000000e+00> : vector<5x128xf32>
    %304 = tpu.matmul %285, %302, %cst_280 {dimension_numbers = #tpu.dot_dimension_numbers<[1], [0], [0], [1], [0, 0, 1, 1], [], []>} : vector<5x11xf32>, vector<11x128xf32>, vector<5x128xf32> -> vector<5x128xf32>
    %305 = arith.maximumf %303, %304 : vector<5x128xf32>
    %c10 = arith.constant 10 : index
    %c0_281 = arith.constant 0 : index
    %306 = vector.load %arg15[%c10, %c0_281] : memref<32x128xf32, #tpu.memory_space<vmem>>, vector<5x128xf32>
    tpu.vector_store %arg15[%c10, %c0_281], %305 {strides = array<i32>} : memref<32x128xf32, #tpu.memory_space<vmem>>, vector<5x128xf32>,
    %c78_282 = arith.constant 78 : index
    %c0_283 = arith.constant 0 : index
    %307 = vector.load %arg13[%c78_282, %c0_283] : memref<728x128xf32, #tpu.memory_space<vmem>>, vector<11x128xf32>
    %c91_284 = arith.constant 91 : index
    %c0_285 = arith.constant 0 : index
    %308 = vector.load %arg13[%c91_284, %c0_285] : memref<728x128xf32, #tpu.memory_space<vmem>>, vector<11x128xf32>
    %309 = arith.maximumf %307, %308 : vector<11x128xf32>
    %cst_286 = arith.constant dense<0.000000e+00> : vector<5x128xf32>
    %310 = tpu.matmul %278, %309, %cst_286 {dimension_numbers = #tpu.dot_dimension_numbers<[1], [0], [0], [1], [0, 0, 1, 1], [], []>} : vector<5x11xf32>, vector<11x128xf32>, vector<5x128xf32> -> vector<5x128xf32>
    %cst_287 = arith.constant dense<0.000000e+00> : vector<5x128xf32>
    %311 = tpu.matmul %285, %309, %cst_287 {dimension_numbers = #tpu.dot_dimension_numbers<[1], [0], [0], [1], [0, 0, 1, 1], [], []>} : vector<5x11xf32>, vector<11x128xf32>, vector<5x128xf32> -> vector<5x128xf32>
    %312 = arith.maximumf %310, %311 : vector<5x128xf32>
    %c15_288 = arith.constant 15 : index
    %c0_289 = arith.constant 0 : index
    %313 = vector.load %arg15[%c15_288, %c0_289] : memref<32x128xf32, #tpu.memory_space<vmem>>, vector<5x128xf32>
    tpu.vector_store %arg15[%c15_288, %c0_289], %312 {strides = array<i32>} : memref<32x128xf32, #tpu.memory_space<vmem>>, vector<5x128xf32>,
    %c104_290 = arith.constant 104 : index
    %c0_291 = arith.constant 0 : index
    %314 = vector.load %arg13[%c104_290, %c0_291] : memref<728x128xf32, #tpu.memory_space<vmem>>, vector<11x128xf32>
    %c117_292 = arith.constant 117 : index
    %c0_293 = arith.constant 0 : index
    %315 = vector.load %arg13[%c117_292, %c0_293] : memref<728x128xf32, #tpu.memory_space<vmem>>, vector<11x128xf32>
    %316 = arith.maximumf %314, %315 : vector<11x128xf32>
    %cst_294 = arith.constant dense<0.000000e+00> : vector<5x128xf32>
    %317 = tpu.matmul %278, %316, %cst_294 {dimension_numbers = #tpu.dot_dimension_numbers<[1], [0], [0], [1], [0, 0, 1, 1], [], []>} : vector<5x11xf32>, vector<11x128xf32>, vector<5x128xf32> -> vector<5x128xf32>
    %cst_295 = arith.constant dense<0.000000e+00> : vector<5x128xf32>
    %318 = tpu.matmul %285, %316, %cst_295 {dimension_numbers = #tpu.dot_dimension_numbers<[1], [0], [0], [1], [0, 0, 1, 1], [], []>} : vector<5x11xf32>, vector<11x128xf32>, vector<5x128xf32> -> vector<5x128xf32>
    %319 = arith.maximumf %317, %318 : vector<5x128xf32>
    %c20 = arith.constant 20 : index
    %c0_296 = arith.constant 0 : index
    %320 = vector.load %arg15[%c20, %c0_296] : memref<32x128xf32, #tpu.memory_space<vmem>>, vector<5x128xf32>
    tpu.vector_store %arg15[%c20, %c0_296], %319 {strides = array<i32>} : memref<32x128xf32, #tpu.memory_space<vmem>>, vector<5x128xf32>,
    %c0_297 = arith.constant 0 : index
    %c0_298 = arith.constant 0 : index
    %321 = vector.load %arg15[%c0_297, %c0_298] : memref<32x128xf32, #tpu.memory_space<vmem>>, vector<15x128xf32>
    %322 = arith.truncf %321 : vector<15x128xf32> to vector<15x128xbf16>
    %c0_299 = arith.constant 0 : index
    %c0_300 = arith.constant 0 : index
    %c0_301 = arith.constant 0 : index
    %323 = vector.load %arg6[%c0_299, %c0_300, %c0_301] : memref<9x128x128xbf16, #tpu.memory_space<vmem>>, vector<1x128x128xbf16>
    %324 = vector.shape_cast %323 : vector<1x128x128xbf16> to vector<128x128xbf16>
    %cst_302 = arith.constant dense<0.000000e+00> : vector<15x128xf32>
    %325 = tpu.matmul %322, %324, %cst_302 {dimension_numbers = #tpu.dot_dimension_numbers<[1], [0], [0], [1], [0, 0, 1, 1], [], []>} : vector<15x128xbf16>, vector<128x128xbf16>, vector<15x128xf32> -> vector<15x128xf32>
    %c0_303 = arith.constant 0 : index
    %c0_304 = arith.constant 0 : index
    %326 = vector.load %arg13[%c0_303, %c0_304] : memref<728x128xf32, #tpu.memory_space<vmem>>, vector<15x128xf32>
    tpu.vector_store %arg13[%c0_303, %c0_304], %325 {strides = array<i32>} : memref<728x128xf32, #tpu.memory_space<vmem>>, vector<15x128xf32>,
    %c1_305 = arith.constant 1 : index
    %c0_306 = arith.constant 0 : index
    %327 = vector.load %arg15[%c1_305, %c0_306] : memref<32x128xf32, #tpu.memory_space<vmem>>, vector<15x128xf32>
    %328 = arith.truncf %327 : vector<15x128xf32> to vector<15x128xbf16>
    %c1_307 = arith.constant 1 : index
    %c0_308 = arith.constant 0 : index
    %c0_309 = arith.constant 0 : index
    %329 = vector.load %arg6[%c1_307, %c0_308, %c0_309] : memref<9x128x128xbf16, #tpu.memory_space<vmem>>, vector<1x128x128xbf16>
    %330 = vector.shape_cast %329 : vector<1x128x128xbf16> to vector<128x128xbf16>
    %cst_310 = arith.constant dense<0.000000e+00> : vector<15x128xf32>
    %331 = tpu.matmul %328, %330, %cst_310 {dimension_numbers = #tpu.dot_dimension_numbers<[1], [0], [0], [1], [0, 0, 1, 1], [], []>} : vector<15x128xbf16>, vector<128x128xbf16>, vector<15x128xf32> -> vector<15x128xf32>
    %c0_311 = arith.constant 0 : index
    %c0_312 = arith.constant 0 : index
    %332 = vector.load %arg13[%c0_311, %c0_312] : memref<728x128xf32, #tpu.memory_space<vmem>>, vector<15x128xf32>
    %333 = arith.addf %332, %331 : vector<15x128xf32>
    %c0_313 = arith.constant 0 : index
    %c0_314 = arith.constant 0 : index
    %334 = vector.load %arg13[%c0_313, %c0_314] : memref<728x128xf32, #tpu.memory_space<vmem>>, vector<15x128xf32>
    tpu.vector_store %arg13[%c0_313, %c0_314], %333 {strides = array<i32>} : memref<728x128xf32, #tpu.memory_space<vmem>>, vector<15x128xf32>,
    %c2_315 = arith.constant 2 : index
    %c0_316 = arith.constant 0 : index
    %335 = vector.load %arg15[%c2_315, %c0_316] : memref<32x128xf32, #tpu.memory_space<vmem>>, vector<15x128xf32>
    %336 = arith.truncf %335 : vector<15x128xf32> to vector<15x128xbf16>
    %c2_317 = arith.constant 2 : index
    %c0_318 = arith.constant 0 : index
    %c0_319 = arith.constant 0 : index
    %337 = vector.load %arg6[%c2_317, %c0_318, %c0_319] : memref<9x128x128xbf16, #tpu.memory_space<vmem>>, vector<1x128x128xbf16>
    %338 = vector.shape_cast %337 : vector<1x128x128xbf16> to vector<128x128xbf16>
    %cst_320 = arith.constant dense<0.000000e+00> : vector<15x128xf32>
    %339 = tpu.matmul %336, %338, %cst_320 {dimension_numbers = #tpu.dot_dimension_numbers<[1], [0], [0], [1], [0, 0, 1, 1], [], []>} : vector<15x128xbf16>, vector<128x128xbf16>, vector<15x128xf32> -> vector<15x128xf32>
    %c0_321 = arith.constant 0 : index
    %c0_322 = arith.constant 0 : index
    %340 = vector.load %arg13[%c0_321, %c0_322] : memref<728x128xf32, #tpu.memory_space<vmem>>, vector<15x128xf32>
    %341 = arith.addf %340, %339 : vector<15x128xf32>
    %c0_323 = arith.constant 0 : index
    %c0_324 = arith.constant 0 : index
    %342 = vector.load %arg13[%c0_323, %c0_324] : memref<728x128xf32, #tpu.memory_space<vmem>>, vector<15x128xf32>
    tpu.vector_store %arg13[%c0_323, %c0_324], %341 {strides = array<i32>} : memref<728x128xf32, #tpu.memory_space<vmem>>, vector<15x128xf32>,
    %c5_325 = arith.constant 5 : index
    %c0_326 = arith.constant 0 : index
    %343 = vector.load %arg15[%c5_325, %c0_326] : memref<32x128xf32, #tpu.memory_space<vmem>>, vector<15x128xf32>
    %344 = arith.truncf %343 : vector<15x128xf32> to vector<15x128xbf16>
    %c3_327 = arith.constant 3 : index
    %c0_328 = arith.constant 0 : index
    %c0_329 = arith.constant 0 : index
    %345 = vector.load %arg6[%c3_327, %c0_328, %c0_329] : memref<9x128x128xbf16, #tpu.memory_space<vmem>>, vector<1x128x128xbf16>
    %346 = vector.shape_cast %345 : vector<1x128x128xbf16> to vector<128x128xbf16>
    %cst_330 = arith.constant dense<0.000000e+00> : vector<15x128xf32>
    %347 = tpu.matmul %344, %346, %cst_330 {dimension_numbers = #tpu.dot_dimension_numbers<[1], [0], [0], [1], [0, 0, 1, 1], [], []>} : vector<15x128xbf16>, vector<128x128xbf16>, vector<15x128xf32> -> vector<15x128xf32>
    %c0_331 = arith.constant 0 : index
    %c0_332 = arith.constant 0 : index
    %348 = vector.load %arg13[%c0_331, %c0_332] : memref<728x128xf32, #tpu.memory_space<vmem>>, vector<15x128xf32>
    %349 = arith.addf %348, %347 : vector<15x128xf32>
    %c0_333 = arith.constant 0 : index
    %c0_334 = arith.constant 0 : index
    %350 = vector.load %arg13[%c0_333, %c0_334] : memref<728x128xf32, #tpu.memory_space<vmem>>, vector<15x128xf32>
    tpu.vector_store %arg13[%c0_333, %c0_334], %349 {strides = array<i32>} : memref<728x128xf32, #tpu.memory_space<vmem>>, vector<15x128xf32>,
    %c6_335 = arith.constant 6 : index
    %c0_336 = arith.constant 0 : index
    %351 = vector.load %arg15[%c6_335, %c0_336] : memref<32x128xf32, #tpu.memory_space<vmem>>, vector<15x128xf32>
    %352 = arith.truncf %351 : vector<15x128xf32> to vector<15x128xbf16>
    %c4_337 = arith.constant 4 : index
    %c0_338 = arith.constant 0 : index
    %c0_339 = arith.constant 0 : index
    %353 = vector.load %arg6[%c4_337, %c0_338, %c0_339] : memref<9x128x128xbf16, #tpu.memory_space<vmem>>, vector<1x128x128xbf16>
    %354 = vector.shape_cast %353 : vector<1x128x128xbf16> to vector<128x128xbf16>
    %cst_340 = arith.constant dense<0.000000e+00> : vector<15x128xf32>
    %355 = tpu.matmul %352, %354, %cst_340 {dimension_numbers = #tpu.dot_dimension_numbers<[1], [0], [0], [1], [0, 0, 1, 1], [], []>} : vector<15x128xbf16>, vector<128x128xbf16>, vector<15x128xf32> -> vector<15x128xf32>
    %c0_341 = arith.constant 0 : index
    %c0_342 = arith.constant 0 : index
    %356 = vector.load %arg13[%c0_341, %c0_342] : memref<728x128xf32, #tpu.memory_space<vmem>>, vector<15x128xf32>
    %357 = arith.addf %356, %355 : vector<15x128xf32>
    %c0_343 = arith.constant 0 : index
    %c0_344 = arith.constant 0 : index
    %358 = vector.load %arg13[%c0_343, %c0_344] : memref<728x128xf32, #tpu.memory_space<vmem>>, vector<15x128xf32>
    tpu.vector_store %arg13[%c0_343, %c0_344], %357 {strides = array<i32>} : memref<728x128xf32, #tpu.memory_space<vmem>>, vector<15x128xf32>,
    %c7_345 = arith.constant 7 : index
    %c0_346 = arith.constant 0 : index
    %359 = vector.load %arg15[%c7_345, %c0_346] : memref<32x128xf32, #tpu.memory_space<vmem>>, vector<15x128xf32>
    %360 = arith.truncf %359 : vector<15x128xf32> to vector<15x128xbf16>
    %c5_347 = arith.constant 5 : index
    %c0_348 = arith.constant 0 : index
    %c0_349 = arith.constant 0 : index
    %361 = vector.load %arg6[%c5_347, %c0_348, %c0_349] : memref<9x128x128xbf16, #tpu.memory_space<vmem>>, vector<1x128x128xbf16>
    %362 = vector.shape_cast %361 : vector<1x128x128xbf16> to vector<128x128xbf16>
    %cst_350 = arith.constant dense<0.000000e+00> : vector<15x128xf32>
    %363 = tpu.matmul %360, %362, %cst_350 {dimension_numbers = #tpu.dot_dimension_numbers<[1], [0], [0], [1], [0, 0, 1, 1], [], []>} : vector<15x128xbf16>, vector<128x128xbf16>, vector<15x128xf32> -> vector<15x128xf32>
    %c0_351 = arith.constant 0 : index
    %c0_352 = arith.constant 0 : index
    %364 = vector.load %arg13[%c0_351, %c0_352] : memref<728x128xf32, #tpu.memory_space<vmem>>, vector<15x128xf32>
    %365 = arith.addf %364, %363 : vector<15x128xf32>
    %c0_353 = arith.constant 0 : index
    %c0_354 = arith.constant 0 : index
    %366 = vector.load %arg13[%c0_353, %c0_354] : memref<728x128xf32, #tpu.memory_space<vmem>>, vector<15x128xf32>
    tpu.vector_store %arg13[%c0_353, %c0_354], %365 {strides = array<i32>} : memref<728x128xf32, #tpu.memory_space<vmem>>, vector<15x128xf32>,
    %c10_355 = arith.constant 10 : index
    %c0_356 = arith.constant 0 : index
    %367 = vector.load %arg15[%c10_355, %c0_356] : memref<32x128xf32, #tpu.memory_space<vmem>>, vector<15x128xf32>
    %368 = arith.truncf %367 : vector<15x128xf32> to vector<15x128xbf16>
    %c6_357 = arith.constant 6 : index
    %c0_358 = arith.constant 0 : index
    %c0_359 = arith.constant 0 : index
    %369 = vector.load %arg6[%c6_357, %c0_358, %c0_359] : memref<9x128x128xbf16, #tpu.memory_space<vmem>>, vector<1x128x128xbf16>
    %370 = vector.shape_cast %369 : vector<1x128x128xbf16> to vector<128x128xbf16>
    %cst_360 = arith.constant dense<0.000000e+00> : vector<15x128xf32>
    %371 = tpu.matmul %368, %370, %cst_360 {dimension_numbers = #tpu.dot_dimension_numbers<[1], [0], [0], [1], [0, 0, 1, 1], [], []>} : vector<15x128xbf16>, vector<128x128xbf16>, vector<15x128xf32> -> vector<15x128xf32>
    %c0_361 = arith.constant 0 : index
    %c0_362 = arith.constant 0 : index
    %372 = vector.load %arg13[%c0_361, %c0_362] : memref<728x128xf32, #tpu.memory_space<vmem>>, vector<15x128xf32>
    %373 = arith.addf %372, %371 : vector<15x128xf32>
    %c0_363 = arith.constant 0 : index
    %c0_364 = arith.constant 0 : index
    %374 = vector.load %arg13[%c0_363, %c0_364] : memref<728x128xf32, #tpu.memory_space<vmem>>, vector<15x128xf32>
    tpu.vector_store %arg13[%c0_363, %c0_364], %373 {strides = array<i32>} : memref<728x128xf32, #tpu.memory_space<vmem>>, vector<15x128xf32>,
    %c11 = arith.constant 11 : index
    %c0_365 = arith.constant 0 : index
    %375 = vector.load %arg15[%c11, %c0_365] : memref<32x128xf32, #tpu.memory_space<vmem>>, vector<15x128xf32>
    %376 = arith.truncf %375 : vector<15x128xf32> to vector<15x128xbf16>
    %c7_366 = arith.constant 7 : index
    %c0_367 = arith.constant 0 : index
    %c0_368 = arith.constant 0 : index
    %377 = vector.load %arg6[%c7_366, %c0_367, %c0_368] : memref<9x128x128xbf16, #tpu.memory_space<vmem>>, vector<1x128x128xbf16>
    %378 = vector.shape_cast %377 : vector<1x128x128xbf16> to vector<128x128xbf16>
    %cst_369 = arith.constant dense<0.000000e+00> : vector<15x128xf32>
    %379 = tpu.matmul %376, %378, %cst_369 {dimension_numbers = #tpu.dot_dimension_numbers<[1], [0], [0], [1], [0, 0, 1, 1], [], []>} : vector<15x128xbf16>, vector<128x128xbf16>, vector<15x128xf32> -> vector<15x128xf32>
    %c0_370 = arith.constant 0 : index
    %c0_371 = arith.constant 0 : index
    %380 = vector.load %arg13[%c0_370, %c0_371] : memref<728x128xf32, #tpu.memory_space<vmem>>, vector<15x128xf32>
    %381 = arith.addf %380, %379 : vector<15x128xf32>
    %c0_372 = arith.constant 0 : index
    %c0_373 = arith.constant 0 : index
    %382 = vector.load %arg13[%c0_372, %c0_373] : memref<728x128xf32, #tpu.memory_space<vmem>>, vector<15x128xf32>
    tpu.vector_store %arg13[%c0_372, %c0_373], %381 {strides = array<i32>} : memref<728x128xf32, #tpu.memory_space<vmem>>, vector<15x128xf32>,
    %c12 = arith.constant 12 : index
    %c0_374 = arith.constant 0 : index
    %383 = vector.load %arg15[%c12, %c0_374] : memref<32x128xf32, #tpu.memory_space<vmem>>, vector<15x128xf32>
    %384 = arith.truncf %383 : vector<15x128xf32> to vector<15x128xbf16>
    %c8_375 = arith.constant 8 : index
    %c0_376 = arith.constant 0 : index
    %c0_377 = arith.constant 0 : index
    %385 = vector.load %arg6[%c8_375, %c0_376, %c0_377] : memref<9x128x128xbf16, #tpu.memory_space<vmem>>, vector<1x128x128xbf16>
    %386 = vector.shape_cast %385 : vector<1x128x128xbf16> to vector<128x128xbf16>
    %cst_378 = arith.constant dense<0.000000e+00> : vector<15x128xf32>
    %387 = tpu.matmul %384, %386, %cst_378 {dimension_numbers = #tpu.dot_dimension_numbers<[1], [0], [0], [1], [0, 0, 1, 1], [], []>} : vector<15x128xbf16>, vector<128x128xbf16>, vector<15x128xf32> -> vector<15x128xf32>
    %c0_379 = arith.constant 0 : index
    %c0_380 = arith.constant 0 : index
    %388 = vector.load %arg13[%c0_379, %c0_380] : memref<728x128xf32, #tpu.memory_space<vmem>>, vector<15x128xf32>
    %389 = arith.addf %388, %387 : vector<15x128xf32>
    %c0_381 = arith.constant 0 : index
    %c0_382 = arith.constant 0 : index
    %390 = vector.load %arg13[%c0_381, %c0_382] : memref<728x128xf32, #tpu.memory_space<vmem>>, vector<15x128xf32>
    tpu.vector_store %arg13[%c0_381, %c0_382], %389 {strides = array<i32>} : memref<728x128xf32, #tpu.memory_space<vmem>>, vector<15x128xf32>,
    %c0_383 = arith.constant 0 : index
    %c0_384 = arith.constant 0 : index
    %391 = vector.load %arg13[%c0_383, %c0_384] : memref<728x128xf32, #tpu.memory_space<vmem>>, vector<15x128xf32>
    %c0_385 = arith.constant 0 : index
    %c0_386 = arith.constant 0 : index
    %392 = vector.load %arg7[%c0_385, %c0_386] : memref<1x128xf32, #tpu.memory_space<vmem>>, vector<1x128xf32>
    %393 = vector.broadcast %392 : vector<1x128xf32> to vector<15x128xf32>
    %394 = arith.addf %391, %393 : vector<15x128xf32>
    %cst_387 = arith.constant 0.000000e+00 : f32
    %395 = vector.broadcast %cst_387 : f32 to vector<15x128xf32>
    %396 = arith.maximumf %394, %395 : vector<15x128xf32>
    %c0_388 = arith.constant 0 : index
    %c0_389 = arith.constant 0 : index
    %397 = vector.load %arg13[%c0_388, %c0_389] : memref<728x128xf32, #tpu.memory_space<vmem>>, vector<15x128xf32>
    tpu.vector_store %arg13[%c0_388, %c0_389], %396 {strides = array<i32>} : memref<728x128xf32, #tpu.memory_space<vmem>>, vector<15x128xf32>,
    %cst_390 = arith.constant 0.000000e+00 : f32
    %398 = vector.broadcast %cst_390 : f32 to vector<1x128xf32>
    %c0_391 = arith.constant 0 : index
    %c0_392 = arith.constant 0 : index
    %399 = vector.load %arg13[%c0_391, %c0_392] : memref<728x128xf32, #tpu.memory_space<vmem>>, vector<1x128xf32>
    %400 = arith.truncf %399 : vector<1x128xf32> to vector<1x128xbf16>
    %c0_393 = arith.constant 0 : index
    %c0_394 = arith.constant 0 : index
    %c0_395 = arith.constant 0 : index
    %401 = vector.load %arg8[%c0_393, %c0_394, %c0_395] : memref<9x128x128xbf16, #tpu.memory_space<vmem>>, vector<1x128x128xbf16>
    %402 = vector.shape_cast %401 : vector<1x128x128xbf16> to vector<128x128xbf16>
    %cst_396 = arith.constant dense<0.000000e+00> : vector<1x128xf32>
    %403 = tpu.matmul %400, %402, %cst_396 {dimension_numbers = #tpu.dot_dimension_numbers<[1], [0], [0], [1], [0, 0, 1, 1], [], []>} : vector<1x128xbf16>, vector<128x128xbf16>, vector<1x128xf32> -> vector<1x128xf32>
    %404 = arith.addf %398, %403 : vector<1x128xf32>
    %c1_397 = arith.constant 1 : index
    %c0_398 = arith.constant 0 : index
    %405 = vector.load %arg13[%c1_397, %c0_398] : memref<728x128xf32, #tpu.memory_space<vmem>>, vector<1x128xf32>
    %406 = arith.truncf %405 : vector<1x128xf32> to vector<1x128xbf16>
    %c1_399 = arith.constant 1 : index
    %c0_400 = arith.constant 0 : index
    %c0_401 = arith.constant 0 : index
    %407 = vector.load %arg8[%c1_399, %c0_400, %c0_401] : memref<9x128x128xbf16, #tpu.memory_space<vmem>>, vector<1x128x128xbf16>
    %408 = vector.shape_cast %407 : vector<1x128x128xbf16> to vector<128x128xbf16>
    %cst_402 = arith.constant dense<0.000000e+00> : vector<1x128xf32>
    %409 = tpu.matmul %406, %408, %cst_402 {dimension_numbers = #tpu.dot_dimension_numbers<[1], [0], [0], [1], [0, 0, 1, 1], [], []>} : vector<1x128xbf16>, vector<128x128xbf16>, vector<1x128xf32> -> vector<1x128xf32>
    %410 = arith.addf %404, %409 : vector<1x128xf32>
    %c2_403 = arith.constant 2 : index
    %c0_404 = arith.constant 0 : index
    %411 = vector.load %arg13[%c2_403, %c0_404] : memref<728x128xf32, #tpu.memory_space<vmem>>, vector<1x128xf32>
    %412 = arith.truncf %411 : vector<1x128xf32> to vector<1x128xbf16>
    %c2_405 = arith.constant 2 : index
    %c0_406 = arith.constant 0 : index
    %c0_407 = arith.constant 0 : index
    %413 = vector.load %arg8[%c2_405, %c0_406, %c0_407] : memref<9x128x128xbf16, #tpu.memory_space<vmem>>, vector<1x128x128xbf16>
    %414 = vector.shape_cast %413 : vector<1x128x128xbf16> to vector<128x128xbf16>
    %cst_408 = arith.constant dense<0.000000e+00> : vector<1x128xf32>
    %415 = tpu.matmul %412, %414, %cst_408 {dimension_numbers = #tpu.dot_dimension_numbers<[1], [0], [0], [1], [0, 0, 1, 1], [], []>} : vector<1x128xbf16>, vector<128x128xbf16>, vector<1x128xf32> -> vector<1x128xf32>
    %416 = arith.addf %410, %415 : vector<1x128xf32>
    %c5_409 = arith.constant 5 : index
    %c0_410 = arith.constant 0 : index
    %417 = vector.load %arg13[%c5_409, %c0_410] : memref<728x128xf32, #tpu.memory_space<vmem>>, vector<1x128xf32>
    %418 = arith.truncf %417 : vector<1x128xf32> to vector<1x128xbf16>
    %c3_411 = arith.constant 3 : index
    %c0_412 = arith.constant 0 : index
    %c0_413 = arith.constant 0 : index
    %419 = vector.load %arg8[%c3_411, %c0_412, %c0_413] : memref<9x128x128xbf16, #tpu.memory_space<vmem>>, vector<1x128x128xbf16>
    %420 = vector.shape_cast %419 : vector<1x128x128xbf16> to vector<128x128xbf16>
    %cst_414 = arith.constant dense<0.000000e+00> : vector<1x128xf32>
    %421 = tpu.matmul %418, %420, %cst_414 {dimension_numbers = #tpu.dot_dimension_numbers<[1], [0], [0], [1], [0, 0, 1, 1], [], []>} : vector<1x128xbf16>, vector<128x128xbf16>, vector<1x128xf32> -> vector<1x128xf32>
    %422 = arith.addf %416, %421 : vector<1x128xf32>
    %c6_415 = arith.constant 6 : index
    %c0_416 = arith.constant 0 : index
    %423 = vector.load %arg13[%c6_415, %c0_416] : memref<728x128xf32, #tpu.memory_space<vmem>>, vector<1x128xf32>
    %424 = arith.truncf %423 : vector<1x128xf32> to vector<1x128xbf16>
    %c4_417 = arith.constant 4 : index
    %c0_418 = arith.constant 0 : index
    %c0_419 = arith.constant 0 : index
    %425 = vector.load %arg8[%c4_417, %c0_418, %c0_419] : memref<9x128x128xbf16, #tpu.memory_space<vmem>>, vector<1x128x128xbf16>
    %426 = vector.shape_cast %425 : vector<1x128x128xbf16> to vector<128x128xbf16>
    %cst_420 = arith.constant dense<0.000000e+00> : vector<1x128xf32>
    %427 = tpu.matmul %424, %426, %cst_420 {dimension_numbers = #tpu.dot_dimension_numbers<[1], [0], [0], [1], [0, 0, 1, 1], [], []>} : vector<1x128xbf16>, vector<128x128xbf16>, vector<1x128xf32> -> vector<1x128xf32>
    %428 = arith.addf %422, %427 : vector<1x128xf32>
    %c7_421 = arith.constant 7 : index
    %c0_422 = arith.constant 0 : index
    %429 = vector.load %arg13[%c7_421, %c0_422] : memref<728x128xf32, #tpu.memory_space<vmem>>, vector<1x128xf32>
    %430 = arith.truncf %429 : vector<1x128xf32> to vector<1x128xbf16>
    %c5_423 = arith.constant 5 : index
    %c0_424 = arith.constant 0 : index
    %c0_425 = arith.constant 0 : index
    %431 = vector.load %arg8[%c5_423, %c0_424, %c0_425] : memref<9x128x128xbf16, #tpu.memory_space<vmem>>, vector<1x128x128xbf16>
    %432 = vector.shape_cast %431 : vector<1x128x128xbf16> to vector<128x128xbf16>
    %cst_426 = arith.constant dense<0.000000e+00> : vector<1x128xf32>
    %433 = tpu.matmul %430, %432, %cst_426 {dimension_numbers = #tpu.dot_dimension_numbers<[1], [0], [0], [1], [0, 0, 1, 1], [], []>} : vector<1x128xbf16>, vector<128x128xbf16>, vector<1x128xf32> -> vector<1x128xf32>
    %434 = arith.addf %428, %433 : vector<1x128xf32>
    %c10_427 = arith.constant 10 : index
    %c0_428 = arith.constant 0 : index
    %435 = vector.load %arg13[%c10_427, %c0_428] : memref<728x128xf32, #tpu.memory_space<vmem>>, vector<1x128xf32>
    %436 = arith.truncf %435 : vector<1x128xf32> to vector<1x128xbf16>
    %c6_429 = arith.constant 6 : index
    %c0_430 = arith.constant 0 : index
    %c0_431 = arith.constant 0 : index
    %437 = vector.load %arg8[%c6_429, %c0_430, %c0_431] : memref<9x128x128xbf16, #tpu.memory_space<vmem>>, vector<1x128x128xbf16>
    %438 = vector.shape_cast %437 : vector<1x128x128xbf16> to vector<128x128xbf16>
    %cst_432 = arith.constant dense<0.000000e+00> : vector<1x128xf32>
    %439 = tpu.matmul %436, %438, %cst_432 {dimension_numbers = #tpu.dot_dimension_numbers<[1], [0], [0], [1], [0, 0, 1, 1], [], []>} : vector<1x128xbf16>, vector<128x128xbf16>, vector<1x128xf32> -> vector<1x128xf32>
    %440 = arith.addf %434, %439 : vector<1x128xf32>
    %c11_433 = arith.constant 11 : index
    %c0_434 = arith.constant 0 : index
    %441 = vector.load %arg13[%c11_433, %c0_434] : memref<728x128xf32, #tpu.memory_space<vmem>>, vector<1x128xf32>
    %442 = arith.truncf %441 : vector<1x128xf32> to vector<1x128xbf16>
    %c7_435 = arith.constant 7 : index
    %c0_436 = arith.constant 0 : index
    %c0_437 = arith.constant 0 : index
    %443 = vector.load %arg8[%c7_435, %c0_436, %c0_437] : memref<9x128x128xbf16, #tpu.memory_space<vmem>>, vector<1x128x128xbf16>
    %444 = vector.shape_cast %443 : vector<1x128x128xbf16> to vector<128x128xbf16>
    %cst_438 = arith.constant dense<0.000000e+00> : vector<1x128xf32>
    %445 = tpu.matmul %442, %444, %cst_438 {dimension_numbers = #tpu.dot_dimension_numbers<[1], [0], [0], [1], [0, 0, 1, 1], [], []>} : vector<1x128xbf16>, vector<128x128xbf16>, vector<1x128xf32> -> vector<1x128xf32>
    %446 = arith.addf %440, %445 : vector<1x128xf32>
    %c12_439 = arith.constant 12 : index
    %c0_440 = arith.constant 0 : index
    %447 = vector.load %arg13[%c12_439, %c0_440] : memref<728x128xf32, #tpu.memory_space<vmem>>, vector<1x128xf32>
    %448 = arith.truncf %447 : vector<1x128xf32> to vector<1x128xbf16>
    %c8_441 = arith.constant 8 : index
    %c0_442 = arith.constant 0 : index
    %c0_443 = arith.constant 0 : index
    %449 = vector.load %arg8[%c8_441, %c0_442, %c0_443] : memref<9x128x128xbf16, #tpu.memory_space<vmem>>, vector<1x128x128xbf16>
    %450 = vector.shape_cast %449 : vector<1x128x128xbf16> to vector<128x128xbf16>
    %cst_444 = arith.constant dense<0.000000e+00> : vector<1x128xf32>
    %451 = tpu.matmul %448, %450, %cst_444 {dimension_numbers = #tpu.dot_dimension_numbers<[1], [0], [0], [1], [0, 0, 1, 1], [], []>} : vector<1x128xbf16>, vector<128x128xbf16>, vector<1x128xf32> -> vector<1x128xf32>
    %452 = arith.addf %446, %451 : vector<1x128xf32>
    %c0_445 = arith.constant 0 : index
    %c0_446 = arith.constant 0 : index
    %453 = vector.load %arg9[%c0_445, %c0_446] : memref<1x128xf32, #tpu.memory_space<vmem>>, vector<1x128xf32>
    %454 = arith.addf %452, %453 : vector<1x128xf32>
    %cst_447 = arith.constant 0.000000e+00 : f32
    %455 = vector.broadcast %cst_447 : f32 to vector<1x128xf32>
    %456 = arith.maximumf %454, %455 : vector<1x128xf32>
    %457 = arith.truncf %456 : vector<1x128xf32> to vector<1x128xbf16>
    %c0_448 = arith.constant 0 : index
    %c0_449 = arith.constant 0 : index
    %458 = vector.load %arg10[%c0_448, %c0_449] : memref<128x128xbf16, #tpu.memory_space<vmem>>, vector<128x128xbf16>
    %cst_450 = arith.constant dense<0.000000e+00> : vector<1x128xf32>
    %459 = tpu.matmul %457, %458, %cst_450 {dimension_numbers = #tpu.dot_dimension_numbers<[1], [0], [0], [1], [0, 0, 1, 1], [], []>} : vector<1x128xbf16>, vector<128x128xbf16>, vector<1x128xf32> -> vector<1x128xf32>
    %c0_451 = arith.constant 0 : index
    %c0_452 = arith.constant 0 : index
    %460 = vector.load %arg11[%c0_451, %c0_452] : memref<1x128xf32, #tpu.memory_space<vmem>>, vector<1x128xf32>
    %461 = arith.addf %459, %460 : vector<1x128xf32>
    %462 = tpu.iota {dimensions = array<i32: 1>} : vector<1x128xi32>
    %c10_i32 = arith.constant 10 : i32
    %463 = vector.broadcast %c10_i32 : i32 to vector<1x128xi32>
    %464 = arith.cmpi slt, %462, %463 : vector<1x128xi32>
    %cst_453 = arith.constant -1.000000e+30 : f32
    %465 = vector.broadcast %cst_453 : f32 to vector<1x128xf32>
    %466 = arith.select %464, %461, %465 : vector<1x128xi1>, vector<1x128xf32>
    %cst_454 = arith.constant dense<0xFF800000> : vector<1xf32>
    %467 = vector.multi_reduction <maximumf>, %466, %cst_454 [1] : vector<1x128xf32> to vector<1xf32>
    %468 = vector.shape_cast %467 : vector<1xf32> to vector<1x1xf32>
    %469 = vector.broadcast %468 : vector<1x1xf32> to vector<1x128xf32>
    %470 = arith.subf %466, %469 : vector<1x128xf32>
    %471 = math.exp %470 : vector<1x128xf32>
    %cst_455 = arith.constant dense<0.000000e+00> : vector<1xf32>
    %472 = vector.multi_reduction <add>, %471, %cst_455 [1] : vector<1x128xf32> to vector<1xf32>
    %473 = vector.shape_cast %472 : vector<1xf32> to vector<1x1xf32>
    %474 = math.log %473 : vector<1x1xf32>
    %475 = vector.broadcast %474 : vector<1x1xf32> to vector<1x128xf32>
    %476 = arith.subf %470, %475 : vector<1x128xf32>
    %c0_456 = arith.constant 0 : index
    %c0_457 = arith.constant 0 : index
    %c0_458 = arith.constant 0 : index
    %477 = vector.load %arg12[%c0_456, %c0_457, %c0_458] : memref<1x1x128xf32, #tpu.memory_space<vmem>>, vector<1x1x128xf32>
    %478 = vector.shape_cast %477 : vector<1x1x128xf32> to vector<1x128xf32>
    %479 = vector.shape_cast %476 : vector<1x128xf32> to vector<1x1x128xf32>
    tpu.vector_store %arg12[%c0_456, %c0_457, %c0_458], %479 {strides = array<i32>} : memref<1x1x128xf32, #tpu.memory_space<vmem>>, vector<1x1x128xf32>,
    return
  }
  func.func @transform_0(%arg0: i32) -> (i32, i32, i32) {
    %c0_i32 = arith.constant 0 : i32
    %c0_i32_0 = arith.constant 0 : i32
    %c0_i32_1 = arith.constant 0 : i32
    return %arg0, %c0_i32, %c0_i32_0 : i32, i32, i32
  }
  func.func @transform_1(%arg0: i32) -> (i32, i32, i32) {
    %c0_i32 = arith.constant 0 : i32
    %c0_i32_0 = arith.constant 0 : i32
    %c0_i32_1 = arith.constant 0 : i32
    %c0_i32_2 = arith.constant 0 : i32
    return %c0_i32, %c0_i32_0, %c0_i32_1 : i32, i32, i32
  }
  func.func @transform_2(%arg0: i32) -> (i32, i32) {
    %c0_i32 = arith.constant 0 : i32
    %c0_i32_0 = arith.constant 0 : i32
    %c0_i32_1 = arith.constant 0 : i32
    return %c0_i32, %c0_i32_0 : i32, i32
  }
  func.func @transform_3(%arg0: i32) -> (i32, i32, i32) {
    %c0_i32 = arith.constant 0 : i32
    %c0_i32_0 = arith.constant 0 : i32
    %c0_i32_1 = arith.constant 0 : i32
    %c0_i32_2 = arith.constant 0 : i32
    return %c0_i32, %c0_i32_0, %c0_i32_1 : i32, i32, i32
  }
  func.func @transform_4(%arg0: i32) -> (i32, i32) {
    %c0_i32 = arith.constant 0 : i32
    %c0_i32_0 = arith.constant 0 : i32
    %c0_i32_1 = arith.constant 0 : i32
    return %c0_i32, %c0_i32_0 : i32, i32
  }
  func.func @transform_5(%arg0: i32) -> (i32, i32, i32) {
    %c0_i32 = arith.constant 0 : i32
    %c0_i32_0 = arith.constant 0 : i32
    %c0_i32_1 = arith.constant 0 : i32
    %c0_i32_2 = arith.constant 0 : i32
    return %c0_i32, %c0_i32_0, %c0_i32_1 : i32, i32, i32
  }
  func.func @transform_6(%arg0: i32) -> (i32, i32) {
    %c0_i32 = arith.constant 0 : i32
    %c0_i32_0 = arith.constant 0 : i32
    %c0_i32_1 = arith.constant 0 : i32
    return %c0_i32, %c0_i32_0 : i32, i32
  }
  func.func @transform_7(%arg0: i32) -> (i32, i32, i32) {
    %c0_i32 = arith.constant 0 : i32
    %c0_i32_0 = arith.constant 0 : i32
    %c0_i32_1 = arith.constant 0 : i32
    %c0_i32_2 = arith.constant 0 : i32
    return %c0_i32, %c0_i32_0, %c0_i32_1 : i32, i32, i32
  }
  func.func @transform_8(%arg0: i32) -> (i32, i32) {
    %c0_i32 = arith.constant 0 : i32
    %c0_i32_0 = arith.constant 0 : i32
    %c0_i32_1 = arith.constant 0 : i32
    return %c0_i32, %c0_i32_0 : i32, i32
  }
  func.func @transform_9(%arg0: i32) -> (i32, i32) {
    %c0_i32 = arith.constant 0 : i32
    %c0_i32_0 = arith.constant 0 : i32
    %c0_i32_1 = arith.constant 0 : i32
    return %c0_i32, %c0_i32_0 : i32, i32
  }
  func.func @transform_10(%arg0: i32) -> (i32, i32) {
    %c0_i32 = arith.constant 0 : i32
    %c0_i32_0 = arith.constant 0 : i32
    %c0_i32_1 = arith.constant 0 : i32
    return %c0_i32, %c0_i32_0 : i32, i32
  }
  func.func @transform_11(%arg0: i32) -> (i32, i32, i32) {
    %c0_i32 = arith.constant 0 : i32
    %c0_i32_0 = arith.constant 0 : i32
    %c0_i32_1 = arith.constant 0 : i32
    return %arg0, %c0_i32, %c0_i32_0 : i32, i32, i32
  }
}

</mosaic_0001>

<bundles_post_ra>
// kernel: cnn_forward.1
= control target key start
LH: loop header
LB: loop body
LE: loop exit
PB: predicated region body
PF: predicated region fallthrough
CT: control target
= control target key end

     0   :  { %s24969_s0 = inlined_call_operand.vmem [shape: f32[2,792,128], index: 0, kind: input, shape index: {}]   ;;  %s24970_s1 = inlined_call_operand.vmem [shape: bf16[9,128,128], index: 1, kind: input, shape index: {}]   ;;  %s24971_s2 = inlined_call_operand.vmem [shape: f32[1,128], index: 2, kind: input, shape index: {}]   ;;  %s24972_s3 = inlined_call_operand.vmem [shape: bf16[9,128,128], index: 3, kind: input, shape index: {}]   ;;  %s24973_s4 = inlined_call_operand.vmem [shape: f32[1,128], index: 4, kind: input, shape index: {}]   ;;  %s24974_s5 = inlined_call_operand.vmem [shape: bf16[9,128,128], index: 5, kind: input, shape index: {}]   ;;  %s24975_s6 = inlined_call_operand.vmem [shape: f32[1,128], index: 6, kind: input, shape index: {}]   ;;  %s24976_s7 = inlined_call_operand.vmem [shape: bf16[9,128,128], index: 7, kind: input, shape index: {}]   ;;  %s24977_s8 = inlined_call_operand.vmem [shape: f32[1,128], index: 8, kind: input, shape index: {}]   ;;  %s24978_s9 = inlined_call_operand.vmem [shape: bf16[128,128], index: 9, kind: input, shape index: {}]   ;;  %s24979_s10 = inlined_call_operand.vmem [shape: f32[1,128], index: 10, kind: input, shape index: {}]   ;;  %s24980_s11 = inlined_call_operand.hbm [shape: f32[2,1,128], index: 11, kind: output, shape index: {}]  }
   0x1   :  { %24981 = sst [smem:[#allocation8_spill]] %s24969_s0 }
   0x2   :  { %16 = vsyncpa [#allocation6], 0 }
   0x3   :  { %18 = vsyncpa [#allocation6 + $0x1], 0  ;;  %s21613_s17 = smov 0   ;;  %s21615_s18 = smov 0  }
   0x4   :  { %s21617_s19 = smov 0   ;;  %s21619_s20 = smov 0  }
   0x5 LB: > { %s21634_s21 = sadd.s32 4294967295, %s21546_s20   ;;  %s15975_s22 = sadd.s32 4294967294, %s21546_s20   ;;  %s21546_s20 = sphi %s21619_s20, %s24992_s20   ;;  %s21542_s19 = sphi %s21617_s19, %s24991_s19   ;;  %s21538_s18 = sphi %s21615_s18, %s24990_s18   ;;  %s21534_s17 = sphi %s21613_s17, %s24989_s17  }
   0x6   : > { %s21638_s23 = sadd.s32 1, %s21546_s20   ;;  %s267_s24 = sadd.s32 1, %s21542_s19 }
   0x7   : > { %s264_s25 = ssub.s32 %s21546_s20, %s21638_s23  ;;  %p277_p0 = scmp.ne.s32.totalorder %s21542_s19, %s21538_s18 }
   0x8   : > { %p265_p1 = scmp.eq.s32.totalorder %s264_s25, 0  ;;  %p278_p2 = scmp.eq.s32.totalorder %s21634_s21, 1 }
   0x9   : > { %p283_p3 = scmp.ne.s32.totalorder %s21538_s18, %s21534_s17  ;;  %p284_p4 = scmp.eq.s32.totalorder %s15975_s22, 1 }
   0xa   : > { %s21649_s26 = scalar_select %p265_p1, %s21542_s19, %s267_s24  }
   0xb   : > { %p21651_p5 = por %p278_p2, %p277_p0  ;;  %p21655_p6 = por %p284_p4, %p283_p3 }
   0xc   : > { %p15978_p7 = scmp.ge.s32.totalorder %s21546_s20, 1  ;;  %p340_p8 = scmp.lt.s32.totalorder %s21546_s20, 3 }
   0xe   : > { %p341_p9 = pnand %p15978_p7, %p340_p8 }
   0xf   : > { %v21180_v0 = vld [vmem:[%s24970_s1] sm:$0xff] (!%p341_p9)   ;;  %p379_p10 = scmp.lt.s32.totalorder (!%p341_p9), %s21634_s21, 1  ;;  %v21181_v1 = vld [vmem:[%s24970_s1 + $0x8] sm:$0xff] (!%p341_p9)   ;;  %v21182_v2 = vld [vmem:[%s24970_s1 + $0x10] sm:$0xff] (!%p341_p9)   ;;  %s24984_s0 = sld [smem:[#allocation8_spill]] (!%p341_p9)  ;;  %vm8507_vm1 = vcmask (!%p341_p9), 211968  }
  0x10   : > { %344 = sbr.rel (%p341_p9) target bundleno = 4616 (0x1208), region = 64  ;;  %17892 = vmatprep.subr.bf16.mxu0 (!%p341_p9), %v21180_v0  ;;  %20368 = vmatprep.subr.bf16.mxu1 (!%p341_p9), %v21180_v0  ;;  %v21183_v3 = vld [vmem:[%s24970_s1 + $0x18] sm:$0xff] (!%p341_p9)   ;;  %v21184_v7 = vld [vmem:[%s24970_s1 + $0x20] sm:$0xff] (!%p341_p9)   ;;  %v21185_v8 = vld [vmem:[%s24970_s1 + $0x28] sm:$0xff] (!%p341_p9)   ;;  %vm8514_vm2 = vcmask (!%p341_p9), 1041408   ;;  %vm21549_vm3 = vmmov (!%p341_p9), 1  }
  0x11   : > { %17893 = vmatpush3.bf16.msra.mxu0 (!%p341_p9), %v21180_v0  ;;  %20376 = vmatpush3.bf16.msra.mxu1 (!%p341_p9), %v21180_v0  ;;  %v21186_v9 = vld [vmem:[%s24970_s1 + $0x30] sm:$0xff] (!%p341_p9)   ;;  %v21187_v10 = vld [vmem:[%s24970_s1 + $0x38] sm:$0xff] (!%p341_p9)   ;;  %v21188_v15 = vld [vmem:[%s24970_s1 + $0x40] sm:$0xff] (!%p341_p9)   ;;  %vm21550_vm8 = vmmov (!%p341_p9), 0   ;;  %vm13016_vm9 = vcmask (!%p341_p9), 1042432   ;;  %vm13013_vm11 = vcmask (!%p341_p9), 89088  }
  0x12   : > { %17894 = vmatprep.subr.bf16.mxu0 (!%p341_p9), %v21181_v1  ;;  %20369 = vmatprep.subr.bf16.mxu1 (!%p341_p9), %v21181_v1  ;;  %v21189_v18 = vld [vmem:[%s24970_s1 + $0x48] sm:$0xff] (!%p341_p9)   ;;  %v21190_v23 = vld [vmem:[%s24970_s1 + $0x50] sm:$0xff] (!%p341_p9)   ;;  %v21191_v26 = vld [vmem:[%s24970_s1 + $0x58] sm:$0xff] (!%p341_p9)   ;;  %vm15893_vm13 = vcmask (!%p341_p9), 1040384   ;;  %s16893_s15 = sshll.u32 (!%p341_p9), %s21634_s21, 4 }
  0x13   : > { %v21192_v31 = vld [vmem:[%s24970_s1 + $0x60] sm:$0xff] (!%p341_p9)   ;;  %v21193_v33 = vld [vmem:[%s24970_s1 + $0x68] sm:$0xff] (!%p341_p9)   ;;  %v21194_v39 = vld [vmem:[%s24970_s1 + $0x70] sm:$0xff] (!%p341_p9)   ;;  %s24927_s25 = scalar_lea.hbm (!%p341_p9), %s24980_s11, %s16893_s15 }
  0x14   : > { %v21195_v41 = vld [vmem:[%s24970_s1 + $0x78] sm:$0xff] (!%p341_p9)   ;;  %vm22850_vm4 = vmpackc.low (!%p341_p9), %vm8514_vm2, %vm21549_vm3 }
  0x15   : > { %17895 = vmatpush3.bf16.msra.mxu0 (!%p341_p9), %v21181_v1  ;;  %20377 = vmatpush3.bf16.msra.mxu1 (!%p341_p9), %v21181_v1  ;;  %vm24174_vm10 = vmpackc.low (!%p341_p9), %vm13016_vm9, %vm21549_vm3 }
  0x16   : > { %17896 = vmatprep.subr.bf16.mxu0 (!%p341_p9), %v21182_v2  ;;  %20370 = vmatprep.subr.bf16.mxu1 (!%p341_p9), %v21182_v2 }
  0x17   : > { %s380_s14 = scalar_select %p379_p10, %s21634_s21, 1 }
  0x18   : > { %s21552_s21 = smov [#allocation5]  }
  0x19   : > { %s21136_s22 = smul.u32 792, %s380_s14  ;;  %17897 = vmatpush3.bf16.msra.mxu0 %v21182_v2  ;;  %20378 = vmatpush3.bf16.msra.mxu1 %v21182_v2  ;;  %s377_s14 = sand.u32 1, %s21538_s18  }
  0x1a   : > { %17898 = vmatprep.subr.bf16.mxu0 %v21183_v3  ;;  %20371 = vmatprep.subr.bf16.mxu1 %v21183_v3  ;;  %s15908_s30 = scalar_lea.sflag [#allocation6], %s377_s14  ;;  %s21488_s13 = sshll.u32 %s21552_s21, 4  ;;  %s21489_s13 = int_to_ptr.vmem [resolvable:$false] %s21488_s13 }
  0x1b   : > { %s21675_s29 = scalar_lea.vmem %s24984_s0, %s21136_s22  ;;  %s21490_s0 = scalar_lea.vmem %s21489_s13, 32 }
  0x1c   : > { %v411_v4 = vld [vmem:[%s21675_s29] sm:$0xff]  ;;  %v412_v5 = vld [vmem:[%s21675_s29 + $0x8] sm:$0xff]  ;;  %v413_v11 = vld [vmem:[%s21675_s29 + $0x10] sm:$0xff] }
  0x1d   : > { %v502_v6 = vpack.c.bf16 %v412_v5, %v411_v4  ;;  %17899 = vmatpush3.bf16.msra.mxu0 %v21183_v3  ;;  %20379 = vmatpush3.bf16.msra.mxu1 %v21183_v3  ;;  %v414_v12 = vld [vmem:[%s21675_s29 + $0x18] sm:$0xff]  ;;  %v415_v13 = vld [vmem:[%s21675_s29 + $0x20] sm:$0xff]  ;;  %v416_v14 = vld [vmem:[%s21675_s29 + $0x28] sm:$0xff] }
  0x1e   : > { %17900 = vmatprep.subr.bf16.mxu0 %v21184_v7  ;;  %20372 = vmatprep.subr.bf16.mxu1 %v21184_v7  ;;  %v503_v16 = vpack.c.bf16 %v414_v12, %v413_v11  ;;  %v504_v17 = vpack.c.bf16 %v416_v14, %v415_v13  ;;  %v417_v19 = vld [vmem:[%s21675_s29 + $0x30] sm:$0xff]  ;;  %v418_v20 = vld [vmem:[%s21675_s29 + $0x38] sm:$0xff]  ;;  %v419_v21 = vld [vmem:[%s21675_s29 + $0x40] sm:$0xff] }
  0x1f   : > { %17908 = vmatprep.mubr.bf16.mxu0 %v502_v6  ;;  %v420_v22 = vld [vmem:[%s21675_s29 + $0x48] sm:$0xff]  ;;  %v505_v24 = vpack.c.bf16 %v418_v20, %v417_v19  ;;  %v421_v27 = vld [vmem:[%s21675_s29 + $0x50] sm:$0xff]  ;;  %v422_v28 = vld [vmem:[%s21675_s29 + $0x58] sm:$0xff] }
  0x20   : > { %v506_v25 = vpack.c.bf16 %v420_v22, %v419_v21  ;;  %v423_v29 = vld [vmem:[%s21675_s29 + $0x60] sm:$0xff]  ;;  %v424_v30 = vld [vmem:[%s21675_s29 + $0x68] sm:$0xff]  ;;  %v507_v32 = vpack.c.bf16 %v422_v28, %v421_v27  ;;  %v425_v35 = vld [vmem:[%s21675_s29 + $0x70] sm:$0xff] }
  0x21   : > { %17901 = vmatpush3.bf16.msra.mxu0 %v21184_v7  ;;  %20380 = vmatpush3.bf16.msra.mxu1 %v21184_v7  ;;  %v508_v34 = vpack.c.bf16 %v424_v30, %v423_v29  ;;  %v426_v36 = vld [vmem:[%s21675_s29 + $0x78] sm:$0xff]  ;;  %v427_v37 = vld [vmem:[%s21675_s29 + $0x80] sm:$0xff]  ;;  %v428_v38 = vld [vmem:[%s21675_s29 + $0x88] sm:$0xff] }
  0x22   : > { %17902 = vmatprep.subr.bf16.mxu0 %v21185_v8  ;;  %20373 = vmatprep.subr.bf16.mxu1 %v21185_v8  ;;  %v509_v40 = vpack.c.bf16 %v426_v36, %v425_v35  ;;  %v510_v42 = vpack.c.bf16 %v428_v38, %v427_v37  ;;  %v429_v43 = vld [vmem:[%s21675_s29 + $0x90] sm:$0xff]  ;;  %v430_v44 = vld [vmem:[%s21675_s29 + $0x98] sm:$0xff]  ;;  %v431_v45 = vld [vmem:[%s21675_s29 + $0xa0] sm:$0xff] }
  0x23   : > { %v432_v46 = vld [vmem:[%s21675_s29 + $0xa8] sm:$0xff]  ;;  %v511_v47 = vpack.c.bf16 %v430_v44, %v429_v43  ;;  %v433_v49 = vld [vmem:[%s21675_s29 + $0xb0] sm:$0xff]  ;;  %v434_v50 = vld [vmem:[%s21675_s29 + $0xb8] sm:$0xff] }
  0x24   : > { %v512_v48 = vpack.c.bf16 %v432_v46, %v431_v45  ;;  %v435_v51 = vld [vmem:[%s21675_s29 + $0xc0] sm:$0xff]  ;;  %v436_v52 = vld [vmem:[%s21675_s29 + $0xc8] sm:$0xff]  ;;  %v513_v53 = vpack.c.bf16 %v434_v50, %v433_v49  ;;  %v437_v55 = vld [vmem:[%s21675_s29 + $0xd0] sm:$0xff] }
  0x25   : > { %17903 = vmatpush3.bf16.msra.mxu0 %v21185_v8  ;;  %20381 = vmatpush3.bf16.msra.mxu1 %v21185_v8  ;;  %v514_v54 = vpack.c.bf16 %v436_v52, %v435_v51  ;;  %v438_v56 = vld [vmem:[%s21675_s29 + $0xd8] sm:$0xff]  ;;  %v439_v57 = vld [vmem:[%s21675_s29 + $0xe0] sm:$0xff]  ;;  %v440_v58 = vld [vmem:[%s21675_s29 + $0xe8] sm:$0xff] }
  0x26   : > { %17904 = vmatprep.subr.bf16.mxu0 %v21186_v9  ;;  %20374 = vmatprep.subr.bf16.mxu1 %v21186_v9  ;;  %v515_v59 = vpack.c.bf16 %v438_v56, %v437_v55  ;;  %v516_v60 = vpack.c.bf16 %v440_v58, %v439_v57  ;;  %v441_v61 = vld [vmem:[%s21675_s29 + $0xf0] sm:$0xff]  ;;  %v442_v62 = vld [vmem:[%s21675_s29 + $0xf8] sm:$0xff]  ;;  %v443_v63 = vld [vmem:[%s21675_s29 + $0x100] sm:$0xff] }
  0x27   : > { %v444_v0 = vld [vmem:[%s21675_s29 + $0x108] sm:$0xff]  ;;  %v517_v1 = vpack.c.bf16 %v442_v62, %v441_v61  ;;  %v445_v3 = vld [vmem:[%s21675_s29 + $0x110] sm:$0xff]  ;;  %v446_v4 = vld [vmem:[%s21675_s29 + $0x118] sm:$0xff] }
  0x28   : > { %v518_v2 = vpack.c.bf16 %v444_v0, %v443_v63  ;;  %v21755_v5 = vld [vmem:[%s24970_s1 + $0x80] sm:$0xff]   ;;  %v448_v7 = vld [vmem:[%s21675_s29 + $0x128] sm:$0xff]  ;;  %v519_v8 = vpack.c.bf16 %v446_v4, %v445_v3  ;;  %v450_v11 = vld [vmem:[%s21675_s29 + $0x138] sm:$0xff] }
  0x29   : > { %17905 = vmatpush3.bf16.msra.mxu0 %v21186_v9  ;;  %20382 = vmatpush3.bf16.msra.mxu1 %v21186_v9  ;;  %v447_v6 = vld [vmem:[%s21675_s29 + $0x120] sm:$0xff]  ;;  %v452_v13 = vld [vmem:[%s21675_s29 + $0x148] sm:$0xff]  ;;  %v457_v22 = vld [vmem:[%s21675_s29 + $0x170] sm:$0xff] }
  0x2a   : > { %17906 = vmatprep.subr.bf16.mxu0 %v21187_v10  ;;  %20375 = vmatprep.subr.bf16.mxu1 %v21187_v10  ;;  %v520_v9 = vpack.c.bf16 %v448_v7, %v447_v6  ;;  %v451_v12 = vld [vmem:[%s21675_s29 + $0x140] sm:$0xff]  ;;  %v456_v19 = vld [vmem:[%s21675_s29 + $0x168] sm:$0xff]  ;;  %v461_v28 = vld [vmem:[%s21675_s29 + $0x190] sm:$0xff] }
  0x2b   : > { %v462_v29 = vld [vmem:[%s21675_s29 + $0x198] sm:$0xff]  ;;  %v463_v30 = vld [vmem:[%s21675_s29 + $0x1a0] sm:$0xff]  ;;  %v468_v37 = vld [vmem:[%s21675_s29 + $0x1c8] sm:$0xff] }
  0x2c   : > { %v466_v35 = vld [vmem:[%s21675_s29 + $0x1b8] sm:$0xff]  ;;  %v467_v36 = vld [vmem:[%s21675_s29 + $0x1c0] sm:$0xff]  ;;  %v472_v43 = vld [vmem:[%s21675_s29 + $0x1e8] sm:$0xff] }
  0x2d   : > { %17907 = vmatpush3.bf16.msra.mxu0 %v21187_v10  ;;  %20383 = vmatpush3.bf16.msra.mxu1 %v21187_v10  ;;  %v449_v10 = vld [vmem:[%s21675_s29 + $0x130] sm:$0xff]  ;;  %v474_v49 = vld [vmem:[%s21675_s29 + $0x1f8] sm:$0xff]  ;;  %v479_v58 = vld [vmem:[%s21675_s29 + $0x220] sm:$0xff] }
  0x2e   : > { %18000 = vmatprep.subr.bf16.mxu0 %v21188_v15  ;;  %v521_v14 = vpack.c.bf16 %v450_v11, %v449_v10  ;;  %v473_v46 = vld [vmem:[%s21675_s29 + $0x1f0] sm:$0xff]  ;;  %v478_v52 = vld [vmem:[%s21675_s29 + $0x218] sm:$0xff]  ;;  %v1107_v0 = vld [vmem:[%s21675_s29 + $0x21] sm:$0xff] }
  0x2f   : > { %v477_v51 = vld [vmem:[%s21675_s29 + $0x210] sm:$0xff]  ;;  %v533_v56 = vpack.c.bf16 %v474_v49, %v473_v46  ;;  %v1106_v61 = vld [vmem:[%s21675_s29 + $0x19] sm:$0xff]  ;;  %v21197_v6 = vld [vmem:[%s24970_s1 + $0x88] sm:$0xff]  }
  0x30   : > { %17909 = vmatmul.mubr.bf16.vlgmr.msra.gmra.mrb[0].mxu0 %v503_v16  ;;  %v453_v16 = vld [vmem:[%s21675_s29 + $0x150] sm:$0xff]  ;;  %v535_v55 = vpack.c.bf16 %v478_v52, %v477_v51  ;;  %v483_v10 = vld [vmem:[%s21675_s29 + $0x240] sm:$0xff]  ;;  %v484_v11 = vld [vmem:[%s21675_s29 + $0x248] sm:$0xff] }
  0x31   : > { %17912 = vmatprep.mubr.bf16.mxu0 %v504_v17  ;;  %18001 = vmatpush3.bf16.msra.mxu0 %v21188_v15  ;;  %v522_v15 = vpack.c.bf16 %v452_v13, %v451_v12  ;;  %v454_v17 = vld [vmem:[%s21675_s29 + $0x158] sm:$0xff]  ;;  %v481_v63 = vld [vmem:[%s21675_s29 + $0x230] sm:$0xff]  ;;  %v1111_v12 = vld [vmem:[%s21675_s29 + $0x41] sm:$0xff]  ;;  %v538_v13 = vpack.c.bf16 %v484_v11, %v483_v10 }
  0x32   : > { %18002 = vmatprep.subr.bf16.mxu0 %v21189_v18  ;;  %v523_v20 = vpack.c.bf16 %v454_v17, %v453_v16  ;;  %v1112_v16 = vld [vmem:[%s21675_s29 + $0x49] sm:$0xff]  ;;  %v1121_v46 = vld [vmem:[%s21675_s29 + $0x91] sm:$0xff]  ;;  %v1122_v49 = vld [vmem:[%s21675_s29 + $0x99] sm:$0xff] }
  0x33   : > { %v21198_v17 = vld [vmem:[%s24970_s1 + $0x90] sm:$0xff]   ;;  %v498_v52 = vld [vmem:[%s21675_s29 + $0x2b8] sm:$0xff] }
  0x34   : > { %v497_v51 = vld [vmem:[%s21675_s29 + $0x2b0] sm:$0xff] }
  0x35   : > { %18003 = vmatpush3.bf16.msra.mxu0 %v21189_v18  ;;  %v455_v18 = vld [vmem:[%s21675_s29 + $0x160] sm:$0xff]  ;;  %v1132_v10 = vld [vmem:[%s21675_s29 + $0xe9] sm:$0xff] }
  0x36   : > { %18004 = vmatprep.subr.bf16.mxu0 %v21190_v23  ;;  %v524_v21 = vpack.c.bf16 %v456_v19, %v455_v18 }
  0x38   : > { %17913 = vmatmul.mubr.bf16.gmra.mrb[4].mxu0 %v505_v24  ;;  %v459_v24 = vld [vmem:[%s21675_s29 + $0x180] sm:$0xff] }
  0x39   : > { %17916 = vmatprep.mubr.bf16.mxu0 %v506_v25  ;;  %18005 = vmatpush3.bf16.msra.mxu0 %v21190_v23  ;;  %v458_v23 = vld [vmem:[%s21675_s29 + $0x178] sm:$0xff]  ;;  %v460_v25 = vld [vmem:[%s21675_s29 + $0x188] sm:$0xff] }
  0x3a   : > { %18006 = vmatprep.subr.bf16.mxu0 %v21191_v26  ;;  %v526_v27 = vpack.c.bf16 %v460_v25, %v459_v24  ;;  %v1114_v24 = vld [vmem:[%s21675_s29 + $0x59] sm:$0xff] }
  0x3d   : > { %18007 = vmatpush3.bf16.msra.mxu0 %v21191_v26  ;;  %v525_v26 = vpack.c.bf16 %v458_v23, %v457_v22  ;;  %v487_v22 = vld [vmem:[%s21675_s29 + $0x260] sm:$0xff]  ;;  %v488_v23 = vld [vmem:[%s21675_s29 + $0x268] sm:$0xff] }
  0x3e   : > { %18008 = vmatprep.subr.bf16.mxu0 %v21192_v31  ;;  %v540_v25 = vpack.c.bf16 %v488_v23, %v487_v22  ;;  %v1139_v22 = vld [vmem:[%s21675_s29 + $0x121] sm:$0xff]  ;;  %v1140_v23 = vld [vmem:[%s21675_s29 + $0x129] sm:$0xff] }
  0x40   : > { %17917 = vmatmul.mubr.bf16.gmra.mrb[8].mxu0 %v507_v32  ;;  %v527_v32 = vpack.c.bf16 %v462_v29, %v461_v28  ;;  %v1115_v28 = vld [vmem:[%s21675_s29 + $0x61] sm:$0xff]  ;;  %v1116_v29 = vld [vmem:[%s21675_s29 + $0x69] sm:$0xff] }
  0x41   : > { %17920 = vmatprep.mubr.bf16.mxu0 %v508_v34  ;;  %18009 = vmatpush3.bf16.msra.mxu0 %v21192_v31  ;;  %v464_v31 = vld [vmem:[%s21675_s29 + $0x1a8] sm:$0xff]  ;;  %v465_v34 = vld [vmem:[%s21675_s29 + $0x1b0] sm:$0xff] }
  0x42   : > { %18010 = vmatprep.subr.bf16.mxu0 %v21193_v33  ;;  %v529_v38 = vpack.c.bf16 %v466_v35, %v465_v34  ;;  %v491_v34 = vld [vmem:[%s21675_s29 + $0x280] sm:$0xff]  ;;  %v492_v35 = vld [vmem:[%s21675_s29 + $0x288] sm:$0xff] }
  0x45   : > { %18011 = vmatpush3.bf16.msra.mxu0 %v21193_v33  ;;  %v528_v33 = vpack.c.bf16 %v464_v31, %v463_v30 }
  0x46   : > { %18012 = vmatprep.subr.bf16.mxu0 %v21194_v39 }
  0x48   : > { %17921 = vmatmul.mubr.bf16.gmra.mrb[12].mxu0 %v509_v40  ;;  %v469_v40 = vld [vmem:[%s21675_s29 + $0x1d0] sm:$0xff] }
  0x49   : > { %17924 = vmatprep.mubr.bf16.mxu0 %v510_v42  ;;  %18013 = vmatpush3.bf16.msra.mxu0 %v21194_v39  ;;  %v530_v39 = vpack.c.bf16 %v468_v37, %v467_v36  ;;  %v471_v42 = vld [vmem:[%s21675_s29 + $0x1e0] sm:$0xff]  ;;  %v1117_v36 = vld [vmem:[%s21675_s29 + $0x71] sm:$0xff] }
  0x4a   : > { %18014 = vmatprep.subr.bf16.mxu0 %v21195_v41  ;;  %v532_v45 = vpack.c.bf16 %v472_v43, %v471_v42  ;;  %v1118_v37 = vld [vmem:[%s21675_s29 + $0x79] sm:$0xff] }
  0x4b   : > { %v494_v42 = vld [vmem:[%s21675_s29 + $0x298] sm:$0xff] }
  0x4d   : > { %18015 = vmatpush3.bf16.msra.mxu0 %v21195_v41  ;;  %v470_v41 = vld [vmem:[%s21675_s29 + $0x1d8] sm:$0xff] }
  0x4e   : > { %18108 = vmatprep.subr.bf16.mxu0 %v21755_v5  ;;  %v531_v44 = vpack.c.bf16 %v470_v41, %v469_v40  ;;  %v1119_v40 = vld [vmem:[%s21675_s29 + $0x81] sm:$0xff]  ;;  %v1120_v41 = vld [vmem:[%s21675_s29 + $0x89] sm:$0xff] }
  0x50   : > { %17925 = vmatmul.mubr.bf16.gmra.mrb[16].mxu0 %v511_v47  ;;  %v475_v47 = vld [vmem:[%s21675_s29 + $0x200] sm:$0xff] }
  0x51   : > { %17928 = vmatprep.mubr.bf16.mxu0 %v512_v48  ;;  %v476_v48 = vld [vmem:[%s21675_s29 + $0x208] sm:$0xff] }
  0x52   : > { %v534_v50 = vpack.c.bf16 %v476_v48, %v475_v47  ;;  %v495_v47 = vld [vmem:[%s21675_s29 + $0x2a0] sm:$0xff]  ;;  %v496_v48 = vld [vmem:[%s21675_s29 + $0x2a8] sm:$0xff] }
  0x54   : > { %17972 = vmatprep.mubr.bf16.mxu1 %v534_v50  ;;  %v544_v50 = vpack.c.bf16 %v496_v48, %v495_v47  ;;  %v1156_v47 = vld [vmem:[%s21675_s29 + $0x1a9] sm:$0xff] }
  0x55   : > { %17973 = vmatmul.mubr.bf16.vlgmr.msra.gmra.mrb[0].mxu1 %v535_v55  ;;  %v545_v55 = vpack.c.bf16 %v498_v52, %v497_v51  ;;  %v1158_v51 = vld [vmem:[%s21675_s29 + $0x1b9] sm:$0xff]  ;;  %v1159_v52 = vld [vmem:[%s21675_s29 + $0x1c1] sm:$0xff] }
  0x58   : > { %17929 = vmatmul.mubr.bf16.gmra.mrb[20].mxu0 %v513_v53  ;;  %v1103_v53 = vld [vmem:[%s21675_s29 + $0x1] sm:$0xff] }
  0x59   : > { %17932 = vmatprep.mubr.bf16.mxu0 %v514_v54  ;;  %v1104_v54 = vld [vmem:[%s21675_s29 + $0x9] sm:$0xff] }
  0x5a   : > { %v1194_v57 = vpack.c.bf16 %v1104_v54, %v1103_v53  ;;  %v1123_v53 = vld [vmem:[%s21675_s29 + $0xa1] sm:$0xff]  ;;  %v1124_v54 = vld [vmem:[%s21675_s29 + $0xa9] sm:$0xff] }
  0x60   : > { %17933 = vmatmul.mubr.bf16.gmra.mrb[24].mxu0 %v515_v59  ;;  %v480_v59 = vld [vmem:[%s21675_s29 + $0x228] sm:$0xff] }
  0x61   : > { %17936 = vmatprep.mubr.bf16.mxu0 %v516_v60  ;;  %v1105_v60 = vld [vmem:[%s21675_s29 + $0x11] sm:$0xff]  ;;  %v536_v62 = vpack.c.bf16 %v480_v59, %v479_v58  ;;  %v499_v59 = vld [vmem:[%s21675_s29 + $0x2c0] sm:$0xff] }
  0x62   : > { %v1195_v4 = vpack.c.bf16 %v1106_v61, %v1105_v60  ;;  %v1125_v58 = vld [vmem:[%s21675_s29 + $0xb1] sm:$0xff]  ;;  %v500_v60 = vld [vmem:[%s21675_s29 + $0x2c8] sm:$0xff]  ;;  %v1126_v61 = vld [vmem:[%s21675_s29 + $0xb9] sm:$0xff] }
  0x63   : > { %17976 = vmatprep.mubr.bf16.mxu1 %v536_v62  ;;  %v1127_v62 = vld [vmem:[%s21675_s29 + $0xc1] sm:$0xff] }
  0x68   : > { %17937 = vmatmul.mubr.bf16.gmra.mrb[28].mxu0 %v517_v1  ;;  %v1108_v1 = vld [vmem:[%s21675_s29 + $0x29] sm:$0xff] }
  0x69   : > { %17940 = vmatprep.mubr.bf16.mxu0 %v518_v2  ;;  %v482_v2 = vld [vmem:[%s21675_s29 + $0x238] sm:$0xff]  ;;  %v1196_v7 = vpack.c.bf16 %v1108_v1, %v1107_v0  ;;  %v501_v0 = vld [vmem:[%s21675_s29 + $0x2d0] sm:$0xff] }
  0x6a   : > { %v537_v3 = vpack.c.bf16 %v482_v2, %v481_v63  ;;  %v546_v63 = vpack.c.bf16 %v500_v60, %v499_v59  ;;  %v1128_v1 = vld [vmem:[%s21675_s29 + $0xc9] sm:$0xff]  ;;  %v547_v2 = vpack.c.bf16 %v501_v0, %v501_v0  ;;  %v21902_v0 = vld [vmem:[%s24970_s1 + $0xc0] sm:$0xff]  }
  0x6b   : > { %v1164_v59 = vld [vmem:[%s21675_s29 + $0x1e9] sm:$0xff] }
  0x6c   : > { %17977 = vmatmul.mubr.bf16.gmra.mrb[4].mxu1 %v537_v3  ;;  %v1205_v3 = vpack.c.bf16 %v1126_v61, %v1125_v58  ;;  %v1163_v58 = vld [vmem:[%s21675_s29 + $0x1e1] sm:$0xff] }
  0x6d   : > { %17980 = vmatprep.mubr.bf16.mxu1 %v538_v13  ;;  %v21202_v13 = vld [vmem:[%s24970_s1 + $0xb0] sm:$0xff]   ;;  %v1224_v61 = vpack.c.bf16 %v1164_v59, %v1163_v58 }
  0x70   : > { %17941 = vmatmul.mubr.bf16.gmra.mrb[32].mxu0 %v519_v8  ;;  %v1109_v8 = vld [vmem:[%s21675_s29 + $0x31] sm:$0xff] }
  0x71   : > { %17944 = vmatprep.mubr.bf16.mxu0 %v520_v9  ;;  %v1110_v9 = vld [vmem:[%s21675_s29 + $0x39] sm:$0xff] }
  0x72   : > { %v1197_v19 = vpack.c.bf16 %v1110_v9, %v1109_v8  ;;  %v1131_v8 = vld [vmem:[%s21675_s29 + $0xe1] sm:$0xff] }
  0x73   : > { %v21201_v9 = vld [vmem:[%s24970_s1 + $0xa8] sm:$0xff]  }
  0x78   : > { %17945 = vmatmul.mubr.bf16.gmra.mrb[36].mxu0 %v521_v14  ;;  %v485_v14 = vld [vmem:[%s21675_s29 + $0x250] sm:$0xff] }
  0x79   : > { %17948 = vmatprep.mubr.bf16.mxu0 %v522_v15  ;;  %v486_v15 = vld [vmem:[%s21675_s29 + $0x258] sm:$0xff] }
  0x7a   : > { %v539_v18 = vpack.c.bf16 %v486_v15, %v485_v14  ;;  %v1133_v14 = vld [vmem:[%s21675_s29 + $0xf1] sm:$0xff]  ;;  %v1134_v15 = vld [vmem:[%s21675_s29 + $0xf9] sm:$0xff] }
  0x7c   : > { %17981 = vmatmul.mubr.bf16.gmra.mrb[8].mxu1 %v539_v18  ;;  %v1136_v18 = vld [vmem:[%s21675_s29 + $0x109] sm:$0xff] }
  0x7d   : > { %17984 = vmatprep.mubr.bf16.mxu1 %v540_v25  ;;  %v1212_v25 = vpack.c.bf16 %v1140_v23, %v1139_v22  ;;  %v1181_v23 = vld [vmem:[%s21675_s29 + $0x271] sm:$0xff] }
  0x80   : > { %17949 = vmatmul.mubr.bf16.gmra.mrb[40].mxu0 %v523_v20  ;;  %v1198_v20 = vpack.c.bf16 %v1112_v16, %v1111_v12  ;;  %v1208_v12 = vpack.c.bf16 %v1132_v10, %v1131_v8  ;;  %v21203_v16 = vld [vmem:[%s24970_s1 + $0xb8] sm:$0xff]   ;;  %v1171_v8 = vld [vmem:[%s21675_s29 + $0x221] sm:$0xff] }
  0x81   : > { %17952 = vmatprep.mubr.bf16.mxu0 %v524_v21  ;;  %v1113_v21 = vld [vmem:[%s21675_s29 + $0x51] sm:$0xff] }
  0x82   : > { %v1199_v31 = vpack.c.bf16 %v1114_v24, %v1113_v21  ;;  %v1138_v21 = vld [vmem:[%s21675_s29 + $0x119] sm:$0xff] }
  0x88   : > { %17953 = vmatmul.mubr.bf16.gmra.mrb[44].mxu0 %v525_v26  ;;  %v489_v26 = vld [vmem:[%s21675_s29 + $0x270] sm:$0xff] }
  0x89   : > { %17956 = vmatprep.mubr.bf16.mxu0 %v526_v27  ;;  %v490_v27 = vld [vmem:[%s21675_s29 + $0x278] sm:$0xff] }
  0x8a   : > { %v541_v30 = vpack.c.bf16 %v490_v27, %v489_v26  ;;  %v1141_v26 = vld [vmem:[%s21675_s29 + $0x131] sm:$0xff]  ;;  %v1142_v27 = vld [vmem:[%s21675_s29 + $0x139] sm:$0xff] }
  0x8c   : > { %17985 = vmatmul.mubr.bf16.gmra.mrb[12].mxu1 %v541_v30  ;;  %v1213_v30 = vpack.c.bf16 %v1142_v27, %v1141_v26  ;;  %v1184_v26 = vld [vmem:[%s21675_s29 + $0x289] sm:$0xff] }
  0x90   : > { %17957 = vmatmul.mubr.bf16.gmra.mrb[48].mxu0 %v527_v32  ;;  %v1200_v32 = vpack.c.bf16 %v1116_v29, %v1115_v28  ;;  %v1143_v28 = vld [vmem:[%s21675_s29 + $0x141] sm:$0xff]  ;;  %v1144_v29 = vld [vmem:[%s21675_s29 + $0x149] sm:$0xff] }
  0x91   : > { %17960 = vmatprep.mubr.bf16.mxu0 %v528_v33  ;;  %v21200_v33 = vld [vmem:[%s24970_s1 + $0xa0] sm:$0xff]  }
  0x98   : > { %17961 = vmatmul.mubr.bf16.gmra.mrb[52].mxu0 %v529_v38  ;;  %v542_v38 = vpack.c.bf16 %v492_v35, %v491_v34  ;;  %v1147_v34 = vld [vmem:[%s21675_s29 + $0x161] sm:$0xff]  ;;  %v1148_v35 = vld [vmem:[%s21675_s29 + $0x169] sm:$0xff] }
  0x99   : > { %17964 = vmatprep.mubr.bf16.mxu0 %v530_v39  ;;  %v493_v39 = vld [vmem:[%s21675_s29 + $0x290] sm:$0xff] }
  0x9a   : > { %17988 = vmatprep.mubr.bf16.mxu1 %v542_v38  ;;  %v543_v43 = vpack.c.bf16 %v494_v42, %v493_v39  ;;  %v1149_v38 = vld [vmem:[%s21675_s29 + $0x171] sm:$0xff]  ;;  %v1150_v39 = vld [vmem:[%s21675_s29 + $0x179] sm:$0xff] }
  0x9b   : > { %v1217_v42 = vpack.c.bf16 %v1150_v39, %v1149_v38  ;;  %v1192_v38 = vld [vmem:[%s21675_s29 + $0x2c9] sm:$0xff] }
  0x9c   : > { %17989 = vmatmul.mubr.bf16.gmra.mrb[16].mxu1 %v543_v43 }
  0x9d   : > { %17992 = vmatprep.mubr.bf16.mxu1 %v544_v50  ;;  %v1157_v50 = vld [vmem:[%s21675_s29 + $0x1b1] sm:$0xff] }
  0xa0   : > { %17965 = vmatmul.mubr.bf16.gmra.mrb[56].mxu0 %v531_v44  ;;  %v1201_v44 = vpack.c.bf16 %v1118_v37, %v1117_v36  ;;  %v1216_v37 = vpack.c.bf16 %v1148_v35, %v1147_v34  ;;  %v1189_v35 = vld [vmem:[%s21675_s29 + $0x2b1] sm:$0xff] }
  0xa1   : > { %17968 = vmatprep.mubr.bf16.mxu0 %v532_v45  ;;  %v1202_v45 = vpack.c.bf16 %v1120_v41, %v1119_v40  ;;  %v1151_v40 = vld [vmem:[%s21675_s29 + $0x181] sm:$0xff]  ;;  %v1152_v41 = vld [vmem:[%s21675_s29 + $0x189] sm:$0xff] }
  0xa2   : > { %v1218_v43 = vpack.c.bf16 %v1152_v41, %v1151_v40  ;;  %v1193_v41 = vld [vmem:[%s21675_s29 + $0x2d1] sm:$0xff] }
  0xa4   : > { %17993 = vmatmul.mubr.bf16.gmra.mrb[20].mxu1 %v545_v55 }
  0xa5   : > { %17996 = vmatprep.mubr.bf16.mxu1 %v546_v63  ;;  %v1166_v63 = vld [vmem:[%s21675_s29 + $0x1f9] sm:$0xff] }
  0xa8   : > { %17969 = vmatmul.mubr.bf16.gmra.mrb[60].mxu0 %v533_v56  ;;  %v1203_v56 = vpack.c.bf16 %v1122_v49, %v1121_v46  ;;  %v1155_v46 = vld [vmem:[%s21675_s29 + $0x1a1] sm:$0xff] }
  0xa9   : > { %18016 = vmatprep.mubr.bf16.mxu0 %v1194_v57  ;;  %v1204_v57 = vpack.c.bf16 %v1124_v54, %v1123_v53  ;;  %v1220_v49 = vpack.c.bf16 %v1156_v47, %v1155_v46  ;;  %v1160_v53 = vld [vmem:[%s21675_s29 + $0x1c9] sm:$0xff]  ;;  %v1221_v54 = vpack.c.bf16 %v1158_v51, %v1157_v50  ;;  %v1980_v46 = vld [vmem:[%s21675_s29 + $0x12] sm:$0xff]  ;;  %v1981_v47 = vld [vmem:[%s21675_s29 + $0x1a] sm:$0xff] }
  0xaa   : > { %v1222_v55 = vpack.c.bf16 %v1160_v53, %v1159_v52  ;;  %v2070_v50 = vpack.c.bf16 %v1981_v47, %v1980_v46  ;;  %v21205_v52 = vld [vmem:[%s24970_s1 + $0xc8] sm:$0xff]   ;;  %v1984_v53 = vld [vmem:[%s21675_s29 + $0x32] sm:$0xff] }
  0xac   : > { %17997 = vmatmul.mubr.bf16.gmra.mrb[24].mxu1 %v547_v2  ;;  %v1168_v2 = vld [vmem:[%s21675_s29 + $0x209] sm:$0xff] }
  0xb0   : > { %18017 = vmatmul.mubr.bf16.vlgmr.msra.gmra.mrb[0].mxu0 %v1195_v4  ;;  %v1206_v4 = vpack.c.bf16 %v1128_v1, %v1127_v62  ;;  %v1165_v62 = vld [vmem:[%s21675_s29 + $0x1f1] sm:$0xff]  ;;  %v1167_v1 = vld [vmem:[%s21675_s29 + $0x201] sm:$0xff] }
  0xb1   : > { %18020 = vmatprep.mubr.bf16.mxu0 %v1196_v7  ;;  %18109 = vmatpush3.bf16.msra.mxu0 %v21755_v5  ;;  %v21199_v5 = vld [vmem:[%s24970_s1 + $0x98] sm:$0xff]  }
  0xb2   : > { %18110 = vmatprep.subr.bf16.mxu0 %v21197_v6  ;;  %v1130_v7 = vld [vmem:[%s21675_s29 + $0xd9] sm:$0xff] }
  0xb5   : > { %18111 = vmatpush3.bf16.msra.mxu0 %v21197_v6  ;;  %v1129_v6 = vld [vmem:[%s21675_s29 + $0xd1] sm:$0xff] }
  0xb6   : > { %18112 = vmatprep.subr.bf16.mxu0 %v21198_v17  ;;  %v1207_v11 = vpack.c.bf16 %v1130_v7, %v1129_v6  ;;  %v1169_v6 = vld [vmem:[%s21675_s29 + $0x211] sm:$0xff]  ;;  %v1170_v7 = vld [vmem:[%s21675_s29 + $0x219] sm:$0xff] }
  0xb7   : > { %v1227_v10 = vpack.c.bf16 %v1170_v7, %v1169_v6  ;;  %v1993_v6 = vld [vmem:[%s21675_s29 + $0x7a] sm:$0xff]  ;;  %v1994_v7 = vld [vmem:[%s21675_s29 + $0x82] sm:$0xff] }
  0xb8   : > { %18021 = vmatmul.mubr.bf16.gmra.mrb[4].mxu0 %v1197_v19  ;;  %v1209_v19 = vpack.c.bf16 %v1134_v15, %v1133_v14  ;;  %v1175_v14 = vld [vmem:[%s21675_s29 + $0x241] sm:$0xff]  ;;  %v1176_v15 = vld [vmem:[%s21675_s29 + $0x249] sm:$0xff] }
  0xb9   : > { %18024 = vmatprep.mubr.bf16.mxu0 %v1198_v20  ;;  %18113 = vmatpush3.bf16.msra.mxu0 %v21198_v17  ;;  %v1135_v17 = vld [vmem:[%s21675_s29 + $0x101] sm:$0xff]  ;;  %v1137_v20 = vld [vmem:[%s21675_s29 + $0x111] sm:$0xff] }
  0xba   : > { %18114 = vmatprep.subr.bf16.mxu0 %v21199_v5  ;;  %v1211_v24 = vpack.c.bf16 %v1138_v21, %v1137_v20  ;;  %v1180_v20 = vld [vmem:[%s21675_s29 + $0x269] sm:$0xff] }
  0xbd   : > { %18115 = vmatpush3.bf16.msra.mxu0 %v21199_v5  ;;  %v1210_v5 = vpack.c.bf16 %v1136_v18, %v1135_v17  ;;  %v1230_v17 = vpack.c.bf16 %v1176_v15, %v1175_v14  ;;  %v1177_v18 = vld [vmem:[%s21675_s29 + $0x251] sm:$0xff] }
  0xbe   : > { %18116 = vmatprep.subr.bf16.mxu0 %v21200_v33  ;;  %v1999_v14 = vld [vmem:[%s21675_s29 + $0xaa] sm:$0xff] }
  0xc0   : > { %18025 = vmatmul.mubr.bf16.gmra.mrb[8].mxu0 %v1199_v31  ;;  %v1214_v31 = vpack.c.bf16 %v1144_v29, %v1143_v28  ;;  %v1185_v29 = vld [vmem:[%s21675_s29 + $0x291] sm:$0xff] }
  0xc1   : > { %18028 = vmatprep.mubr.bf16.mxu0 %v1200_v32  ;;  %18117 = vmatpush3.bf16.msra.mxu0 %v21200_v33  ;;  %v1145_v32 = vld [vmem:[%s21675_s29 + $0x151] sm:$0xff]  ;;  %v1146_v33 = vld [vmem:[%s21675_s29 + $0x159] sm:$0xff] }
  0xc2   : > { %18118 = vmatprep.subr.bf16.mxu0 %v21201_v9  ;;  %v1215_v36 = vpack.c.bf16 %v1146_v33, %v1145_v32  ;;  %v1188_v32 = vld [vmem:[%s21675_s29 + $0x2a9] sm:$0xff] }
  0xc5   : > { %18119 = vmatpush3.bf16.msra.mxu0 %v21201_v9  ;;  %v1172_v9 = vld [vmem:[%s21675_s29 + $0x229] sm:$0xff] }
  0xc6   : > { %18120 = vmatprep.subr.bf16.mxu0 %v21202_v13 }
  0xc8   : > { %18029 = vmatmul.mubr.bf16.gmra.mrb[12].mxu0 %v1201_v44  ;;  %v1153_v44 = vld [vmem:[%s21675_s29 + $0x191] sm:$0xff] }
  0xc9   : > { %18032 = vmatprep.mubr.bf16.mxu0 %v1202_v45  ;;  %18121 = vmatpush3.bf16.msra.mxu0 %v21202_v13  ;;  %v1154_v45 = vld [vmem:[%s21675_s29 + $0x199] sm:$0xff] }
  0xca   : > { %18122 = vmatprep.subr.bf16.mxu0 %v21203_v16  ;;  %v1219_v48 = vpack.c.bf16 %v1154_v45, %v1153_v44  ;;  %v1174_v13 = vld [vmem:[%s21675_s29 + $0x239] sm:$0xff]  ;;  %v1239_v44 = vpack.c.bf16 %v1193_v41, %v1193_v41  ;;  %v2010_v41 = vld [vmem:[%s21675_s29 + $0x102] sm:$0xff] }
  0xcd   : > { %18123 = vmatpush3.bf16.msra.mxu0 %v21203_v16 }
  0xce   : > { %18216 = vmatprep.subr.bf16.mxu0 %v21902_v0 }
  0xd0   : > { %18033 = vmatmul.mubr.bf16.gmra.mrb[16].mxu0 %v1203_v56  ;;  %v1161_v56 = vld [vmem:[%s21675_s29 + $0x1d1] sm:$0xff] }
  0xd1   : > { %18036 = vmatprep.mubr.bf16.mxu0 %v1204_v57  ;;  %v1162_v57 = vld [vmem:[%s21675_s29 + $0x1d9] sm:$0xff] }
  0xd2   : > { %v1223_v60 = vpack.c.bf16 %v1162_v57, %v1161_v56  ;;  %v1987_v56 = vld [vmem:[%s21675_s29 + $0x4a] sm:$0xff] }
  0xd3   : > { %v21206_v57 = vld [vmem:[%s24970_s1 + $0xd0] sm:$0xff]  }
  0xd8   : > { %18037 = vmatmul.mubr.bf16.gmra.mrb[20].mxu0 %v1205_v3  ;;  %v1225_v3 = vpack.c.bf16 %v1166_v63, %v1165_v62  ;;  %v1989_v62 = vld [vmem:[%s21675_s29 + $0x5a] sm:$0xff]  ;;  %v1990_v63 = vld [vmem:[%s21675_s29 + $0x62] sm:$0xff] }
  0xd9   : > { %18040 = vmatprep.mubr.bf16.mxu0 %v1206_v4  ;;  %v1226_v4 = vpack.c.bf16 %v1168_v2, %v1167_v1 }
  0xe0   : > { %18041 = vmatmul.mubr.bf16.gmra.mrb[24].mxu0 %v1207_v11  ;;  %v1228_v11 = vpack.c.bf16 %v1172_v9, %v1171_v8  ;;  %v1995_v8 = vld [vmem:[%s21675_s29 + $0x8a] sm:$0xff] }
  0xe1   : > { %18044 = vmatprep.mubr.bf16.mxu0 %v1208_v12  ;;  %v1173_v12 = vld [vmem:[%s21675_s29 + $0x231] sm:$0xff] }
  0xe2   : > { %v1229_v16 = vpack.c.bf16 %v1174_v13, %v1173_v12  ;;  %v1997_v12 = vld [vmem:[%s21675_s29 + $0x9a] sm:$0xff]  ;;  %v1998_v13 = vld [vmem:[%s21675_s29 + $0xa2] sm:$0xff] }
  0xe8   : > { %18045 = vmatmul.mubr.bf16.gmra.mrb[28].mxu0 %v1209_v19  ;;  %v1178_v19 = vld [vmem:[%s21675_s29 + $0x259] sm:$0xff] }
  0xe9   : > { %18048 = vmatprep.mubr.bf16.mxu0 %v1210_v5  ;;  %v1179_v5 = vld [vmem:[%s21675_s29 + $0x261] sm:$0xff]  ;;  %v1231_v21 = vpack.c.bf16 %v1178_v19, %v1177_v18 }
  0xea   : > { %v1232_v22 = vpack.c.bf16 %v1180_v20, %v1179_v5  ;;  %v2001_v18 = vld [vmem:[%s21675_s29 + $0xba] sm:$0xff]  ;;  %v2002_v19 = vld [vmem:[%s21675_s29 + $0xc2] sm:$0xff]  ;;  %v2003_v5 = vld [vmem:[%s21675_s29 + $0xca] sm:$0xff] }
  0xf0   : > { %18049 = vmatmul.mubr.bf16.gmra.mrb[32].mxu0 %v1211_v24  ;;  %v1182_v24 = vld [vmem:[%s21675_s29 + $0x279] sm:$0xff] }
  0xf1   : > { %18052 = vmatprep.mubr.bf16.mxu0 %v1212_v25  ;;  %v1183_v25 = vld [vmem:[%s21675_s29 + $0x281] sm:$0xff]  ;;  %v1233_v27 = vpack.c.bf16 %v1182_v24, %v1181_v23  ;;  %v2004_v24 = vld [vmem:[%s21675_s29 + $0xd2] sm:$0xff] }
  0xf2   : > { %v1234_v28 = vpack.c.bf16 %v1184_v26, %v1183_v25  ;;  %v21209_v23 = vld [vmem:[%s24970_s1 + $0xe8] sm:$0xff]   ;;  %v2005_v25 = vld [vmem:[%s21675_s29 + $0xda] sm:$0xff] }
  0xf8   : > { %18053 = vmatmul.mubr.bf16.gmra.mrb[36].mxu0 %v1213_v30  ;;  %v1186_v30 = vld [vmem:[%s21675_s29 + $0x299] sm:$0xff] }
  0xf9   : > { %18056 = vmatprep.mubr.bf16.mxu0 %v1214_v31  ;;  %v1187_v31 = vld [vmem:[%s21675_s29 + $0x2a1] sm:$0xff]  ;;  %v1235_v33 = vpack.c.bf16 %v1186_v30, %v1185_v29 }
  0xfa   : > { %v1236_v34 = vpack.c.bf16 %v1188_v32, %v1187_v31  ;;  %v2082_v31 = vpack.c.bf16 %v2005_v25, %v2004_v24  ;;  %v2028_v25 = vld [vmem:[%s21675_s29 + $0x192] sm:$0xff] }
 0x100   : > { %18057 = vmatmul.mubr.bf16.gmra.mrb[40].mxu0 %v1215_v36  ;;  %v1190_v36 = vld [vmem:[%s21675_s29 + $0x2b9] sm:$0xff] }
 0x101   : > { %18060 = vmatprep.mubr.bf16.mxu0 %v1216_v37  ;;  %v1191_v37 = vld [vmem:[%s21675_s29 + $0x2c1] sm:$0xff]  ;;  %v1237_v39 = vpack.c.bf16 %v1190_v36, %v1189_v35  ;;  %v21210_v35 = vld [vmem:[%s24970_s1 + $0xf0] sm:$0xff]  }
 0x102   : > { %v1238_v40 = vpack.c.bf16 %v1192_v38, %v1191_v37  ;;  %v21211_v37 = vld [vmem:[%s24970_s1 + $0xf8] sm:$0xff]  }
 0x103   : > { %v2008_v38 = vld [vmem:[%s21675_s29 + $0xf2] sm:$0xff] }
 0x108   : > { %18061 = vmatmul.mubr.bf16.gmra.mrb[44].mxu0 %v1217_v42  ;;  %v1978_v42 = vld [vmem:[%s21675_s29 + $0x2] sm:$0xff] }
 0x109   : > { %18064 = vmatprep.mubr.bf16.mxu0 %v1218_v43  ;;  %v1979_v43 = vld [vmem:[%s21675_s29 + $0xa] sm:$0xff] }
 0x10a   : > { %v2069_v45 = vpack.c.bf16 %v1979_v43, %v1978_v42  ;;  %v2011_v42 = vld [vmem:[%s21675_s29 + $0x10a] sm:$0xff] }
 0x10b   : > { %v2085_v47 = vpack.c.bf16 %v2011_v42, %v2010_v41 }
 0x110   : > { %18065 = vmatmul.mubr.bf16.gmra.mrb[48].mxu0 %v1219_v48  ;;  %v1982_v48 = vld [vmem:[%s21675_s29 + $0x22] sm:$0xff] }
 0x111   : > { %18068 = vmatprep.mubr.bf16.mxu0 %v1220_v49  ;;  %v1983_v49 = vld [vmem:[%s21675_s29 + $0x2a] sm:$0xff] }
 0x112   : > { %v2071_v51 = vpack.c.bf16 %v1983_v49, %v1982_v48 }
 0x118   : > { %18069 = vmatmul.mubr.bf16.gmra.mrb[52].mxu0 %v1221_v54  ;;  %v1985_v54 = vld [vmem:[%s21675_s29 + $0x3a] sm:$0xff] }
 0x119   : > { %18072 = vmatprep.mubr.bf16.mxu0 %v1222_v55  ;;  %v1986_v55 = vld [vmem:[%s21675_s29 + $0x42] sm:$0xff]  ;;  %v2072_v58 = vpack.c.bf16 %v1985_v54, %v1984_v53  ;;  %v2013_v53 = vld [vmem:[%s21675_s29 + $0x11a] sm:$0xff] }
 0x11a   : > { %v2073_v59 = vpack.c.bf16 %v1987_v56, %v1986_v55  ;;  %v2014_v55 = vld [vmem:[%s21675_s29 + $0x122] sm:$0xff]  ;;  %v2015_v56 = vld [vmem:[%s21675_s29 + $0x12a] sm:$0xff] }
 0x120   : > { %18073 = vmatmul.mubr.bf16.gmra.mrb[56].mxu0 %v1223_v60  ;;  %v21207_v60 = vld [vmem:[%s24970_s1 + $0xd8] sm:$0xff]  }
 0x121   : > { %18076 = vmatprep.mubr.bf16.mxu0 %v1224_v61  ;;  %v1988_v61 = vld [vmem:[%s21675_s29 + $0x52] sm:$0xff] }
 0x122   : > { %v2074_v1 = vpack.c.bf16 %v1989_v62, %v1988_v61  ;;  %v2087_v61 = vpack.c.bf16 %v2015_v56, %v2014_v55  ;;  %v2048_v56 = vld [vmem:[%s21675_s29 + $0x232] sm:$0xff] }
 0x128   : > { %18077 = vmatmul.mubr.bf16.gmra.mrb[60].mxu0 %v1225_v3  ;;  %v21208_v3 = vld [vmem:[%s24970_s1 + $0xe0] sm:$0xff]  }
 0x129   : > { %18080 = vmatprep.mubr.bf16.mxu0 %v1226_v4  ;;  %v1992_v4 = vld [vmem:[%s21675_s29 + $0x72] sm:$0xff] }
 0x12a   : > { %v2076_v9 = vpack.c.bf16 %v1993_v6, %v1992_v4  ;;  %v2018_v6 = vld [vmem:[%s21675_s29 + $0x142] sm:$0xff] }
 0x130   : > { %18081 = vmatmul.mubr.bf16.gmra.mrb[64].mxu0 %v1227_v10  ;;  %v2077_v10 = vpack.c.bf16 %v1995_v8, %v1994_v7  ;;  %v2019_v7 = vld [vmem:[%s21675_s29 + $0x14a] sm:$0xff] }
 0x131   : > { %18084 = vmatprep.mubr.bf16.mxu0 %v1228_v11  ;;  %v1996_v11 = vld [vmem:[%s21675_s29 + $0x92] sm:$0xff] }
 0x132   : > { %v2078_v15 = vpack.c.bf16 %v1997_v12, %v1996_v11  ;;  %v2089_v12 = vpack.c.bf16 %v2019_v7, %v2018_v6  ;;  %v2057_v6 = vld [vmem:[%s21675_s29 + $0x27a] sm:$0xff]  ;;  %v2058_v7 = vld [vmem:[%s21675_s29 + $0x282] sm:$0xff] }
 0x138   : > { %18085 = vmatmul.mubr.bf16.gmra.mrb[68].mxu0 %v1229_v16  ;;  %v2079_v16 = vpack.c.bf16 %v1999_v14, %v1998_v13  ;;  %v2020_v14 = vld [vmem:[%s21675_s29 + $0x152] sm:$0xff] }
 0x139   : > { %18088 = vmatprep.mubr.bf16.mxu0 %v1230_v17  ;;  %v2000_v17 = vld [vmem:[%s21675_s29 + $0xb2] sm:$0xff] }
 0x13a   : > { %v2080_v20 = vpack.c.bf16 %v2001_v18, %v2000_v17  ;;  %v2023_v17 = vld [vmem:[%s21675_s29 + $0x16a] sm:$0xff] }
 0x140   : > { %18089 = vmatmul.mubr.bf16.gmra.mrb[72].mxu0 %v1231_v21  ;;  %v2081_v21 = vpack.c.bf16 %v2003_v5, %v2002_v19  ;;  %v2024_v5 = vld [vmem:[%s21675_s29 + $0x172] sm:$0xff] }
 0x141   : > { %18092 = vmatprep.mubr.bf16.mxu0 %v1232_v22  ;;  %v17974_v22 = vpop.f32.mrb[0].mxu1 }
 0x142   : > { %20384 = vst [vmem:[#allocation2 + $0x210] sm:$0xff] %v17974_v22  ;;  %v902_v26 = vpop.f32.mrb[1].mxu1  ;;  %v2027_v22 = vld [vmem:[%s21675_s29 + $0x18a] sm:$0xff] }
 0x143   : > { %20387 = vst [vmem:[#allocation2 + $0x200] sm:$0xff] %v902_v26  ;;  %v17975_v29 = vpop.f32.mrb[2].mxu1  ;;  %v2029_v26 = vld [vmem:[%s21675_s29 + $0x19a] sm:$0xff] }
 0x144   : > { %20390 = vst [vmem:[#allocation2 + $0x218] sm:$0xff] %v17975_v29  ;;  %v905_v30 = vpop.f32.mrb[3].mxu1  ;;  %v2094_v29 = vpack.c.bf16 %v2029_v26, %v2028_v25  ;;  %v2068_v25 = vld [vmem:[%s21675_s29 + $0x2d2] sm:$0xff]  ;;  %v2853_v26 = vld [vmem:[%s21675_s29 + $0x1c] sm:$0xff] }
 0x145   : > { %20393 = vst [vmem:[#allocation2 + $0x208] sm:$0xff] %v905_v30  ;;  %v17978_v32 = vpop.f32.mrb[4].mxu1 }
 0x146   : > { %20396 = vst [vmem:[#allocation2 + $0x230] sm:$0xff] %v17978_v32  ;;  %v2033_v32 = vld [vmem:[%s21675_s29 + $0x1ba] sm:$0xff] }
 0x148   : > { %18093 = vmatmul.mubr.bf16.gmra.mrb[76].mxu0 %v1233_v27  ;;  %v2006_v27 = vld [vmem:[%s21675_s29 + $0xe2] sm:$0xff] }
 0x149   : > { %18096 = vmatprep.mubr.bf16.mxu0 %v1234_v28  ;;  %v2007_v28 = vld [vmem:[%s21675_s29 + $0xea] sm:$0xff] }
 0x150   : > { %18097 = vmatmul.mubr.bf16.gmra.mrb[80].mxu0 %v1235_v33  ;;  %v2083_v33 = vpack.c.bf16 %v2007_v28, %v2006_v27  ;;  %v2030_v27 = vld [vmem:[%s21675_s29 + $0x1a2] sm:$0xff]  ;;  %v2031_v28 = vld [vmem:[%s21675_s29 + $0x1aa] sm:$0xff] }
 0x151   : > { %18100 = vmatprep.mubr.bf16.mxu0 %v1236_v34  ;;  %v918_v34 = vpop.f32.mrb[5].mxu1  ;;  %v2095_v30 = vpack.c.bf16 %v2031_v28, %v2030_v27  ;;  %v2854_v27 = vld [vmem:[%s21675_s29 + $0x24] sm:$0xff]  ;;  %v2114_v28 = vpack.c.bf16 %v2068_v25, %v2068_v25 }
 0x152   : > { %20399 = vst [vmem:[#allocation2 + $0x220] sm:$0xff] %v918_v34  ;;  %v17979_v36 = vpop.f32.mrb[6].mxu1  ;;  %v2035_v34 = vld [vmem:[%s21675_s29 + $0x1ca] sm:$0xff] }
 0x153   : > { %20402 = vst [vmem:[#allocation2 + $0x238] sm:$0xff] %v17979_v36  ;;  %v2886_v25 = vld [vmem:[%s21675_s29 + $0x124] sm:$0xff] }
 0x158   : > { %18101 = vmatmul.mubr.bf16.gmra.mrb[84].mxu0 %v1237_v39  ;;  %v2009_v39 = vld [vmem:[%s21675_s29 + $0xfa] sm:$0xff] }
 0x159   : > { %18104 = vmatprep.mubr.bf16.mxu0 %v1238_v40  ;;  %v921_v40 = vpop.f32.mrb[7].mxu1 }
 0x15a   : > { %20405 = vst [vmem:[#allocation2 + $0x228] sm:$0xff] %v921_v40  ;;  %v17982_v43 = vpop.f32.mrb[8].mxu1  ;;  %v2039_v40 = vld [vmem:[%s21675_s29 + $0x1ea] sm:$0xff] }
 0x15b   : > { %20408 = vst [vmem:[#allocation2 + $0x250] sm:$0xff] %v17982_v43  ;;  %v22025_v43 = vld [vmem:[%s24970_s1 + $0x100] sm:$0xff]  }
 0x160   : > { %18105 = vmatmul.mubr.bf16.gmra.mrb[88].mxu0 %v1239_v44  ;;  %v934_v44 = vpop.f32.mrb[9].mxu1 }
 0x161   : > { %18124 = vmatprep.mubr.bf16.mxu0 %v2069_v45  ;;  %v2084_v45 = vpack.c.bf16 %v2009_v39, %v2008_v38  ;;  %20411 = vst [vmem:[#allocation2 + $0x240] sm:$0xff] %v934_v44  ;;  %v17983_v46 = vpop.f32.mrb[10].mxu1  ;;  %v2037_v38 = vld [vmem:[%s21675_s29 + $0x1da] sm:$0xff]  ;;  %v2038_v39 = vld [vmem:[%s21675_s29 + $0x1e2] sm:$0xff]  ;;  %v2040_v44 = vld [vmem:[%s21675_s29 + $0x1f2] sm:$0xff] }
 0x162   : > { %20414 = vst [vmem:[#allocation2 + $0x258] sm:$0xff] %v17983_v46  ;;  %v937_v48 = vpop.f32.mrb[11].mxu1  ;;  %v2099_v42 = vpack.c.bf16 %v2039_v40, %v2038_v39  ;;  %v2042_v46 = vld [vmem:[%s21675_s29 + $0x202] sm:$0xff] }
 0x163   : > { %20417 = vst [vmem:[#allocation2 + $0x248] sm:$0xff] %v937_v48  ;;  %v17986_v49 = vpop.f32.mrb[12].mxu1  ;;  %v2861_v39 = vld [vmem:[%s21675_s29 + $0x5c] sm:$0xff]  ;;  %v2862_v40 = vld [vmem:[%s21675_s29 + $0x64] sm:$0xff] }
 0x164   : > { %20420 = vst [vmem:[#allocation2 + $0x270] sm:$0xff] %v17986_v49 }
 0x168   : > { %18125 = vmatmul.mubr.bf16.vlgmr.msra.gmra.mrb[0].mxu0 %v2070_v50  ;;  %v950_v50 = vpop.f32.mrb[13].mxu1 }
 0x169   : > { %18128 = vmatprep.mubr.bf16.mxu0 %v2071_v51  ;;  %18217 = vmatpush3.bf16.msra.mxu0 %v21902_v0  ;;  %v1991_v0 = vld [vmem:[%s21675_s29 + $0x6a] sm:$0xff]  ;;  %20423 = vst [vmem:[#allocation2 + $0x260] sm:$0xff] %v950_v50  ;;  %v17987_v51 = vpop.f32.mrb[14].mxu1  ;;  %v2044_v50 = vld [vmem:[%s21675_s29 + $0x212] sm:$0xff] }
 0x16a   : > { %18218 = vmatprep.subr.bf16.mxu0 %v21205_v52  ;;  %v2075_v2 = vpack.c.bf16 %v1991_v0, %v1990_v63  ;;  %20426 = vst [vmem:[#allocation2 + $0x278] sm:$0xff] %v17987_v51  ;;  %v953_v54 = vpop.f32.mrb[15].mxu1  ;;  %v2045_v51 = vld [vmem:[%s21675_s29 + $0x21a] sm:$0xff] }
 0x16b   : > { %20429 = vst [vmem:[#allocation2 + $0x268] sm:$0xff] %v953_v54  ;;  %v2102_v54 = vpack.c.bf16 %v2045_v51, %v2044_v50  ;;  %v21216_v51 = vld [vmem:[%s24970_s1 + $0x120] sm:$0xff]  }
 0x16d   : > { %18219 = vmatpush3.bf16.msra.mxu0 %v21205_v52  ;;  %v2012_v52 = vld [vmem:[%s21675_s29 + $0x112] sm:$0xff] }
 0x16e   : > { %18220 = vmatprep.subr.bf16.mxu0 %v21206_v57 }
 0x170   : > { %18129 = vmatmul.mubr.bf16.gmra.mrb[4].mxu0 %v2072_v58 }
 0x171   : > { %18132 = vmatprep.mubr.bf16.mxu0 %v2073_v59  ;;  %18221 = vmatpush3.bf16.msra.mxu0 %v21206_v57  ;;  %v17990_v57 = vpop.f32.mrb[16].mxu1  ;;  %v2086_v59 = vpack.c.bf16 %v2013_v53, %v2012_v52  ;;  %v2046_v52 = vld [vmem:[%s21675_s29 + $0x222] sm:$0xff]  ;;  %v2047_v53 = vld [vmem:[%s21675_s29 + $0x22a] sm:$0xff] }
 0x172   : > { %18222 = vmatprep.subr.bf16.mxu0 %v21207_v60  ;;  %20432 = vst [vmem:[#allocation2 + $0x290] sm:$0xff] %v17990_v57  ;;  %v966_v58 = vpop.f32.mrb[17].mxu1  ;;  %v2103_v55 = vpack.c.bf16 %v2047_v53, %v2046_v52  ;;  %v2049_v57 = vld [vmem:[%s21675_s29 + $0x23a] sm:$0xff]  ;;  %v2867_v52 = vld [vmem:[%s21675_s29 + $0x8c] sm:$0xff] }
 0x173   : > { %20435 = vst [vmem:[#allocation2 + $0x280] sm:$0xff] %v966_v58  ;;  %v2050_v58 = vld [vmem:[%s21675_s29 + $0x242] sm:$0xff]  ;;  %v2868_v53 = vld [vmem:[%s21675_s29 + $0x94] sm:$0xff] }
 0x175   : > { %18223 = vmatpush3.bf16.msra.mxu0 %v21207_v60  ;;  %v17991_v60 = vpop.f32.mrb[18].mxu1 }
 0x176   : > { %18224 = vmatprep.subr.bf16.mxu0 %v21208_v3  ;;  %20438 = vst [vmem:[#allocation2 + $0x298] sm:$0xff] %v17991_v60  ;;  %v969_v62 = vpop.f32.mrb[19].mxu1  ;;  %v2104_v60 = vpack.c.bf16 %v2049_v57, %v2048_v56 }
 0x177   : > { %20441 = vst [vmem:[#allocation2 + $0x288] sm:$0xff] %v969_v62  ;;  %v17994_v63 = vpop.f32.mrb[20].mxu1  ;;  %v2052_v62 = vld [vmem:[%s21675_s29 + $0x252] sm:$0xff] }
 0x178   : > { %18133 = vmatmul.mubr.bf16.gmra.mrb[8].mxu0 %v2074_v1  ;;  %20444 = vst [vmem:[#allocation2 + $0x2b0] sm:$0xff] %v17994_v63  ;;  %v982_v0 = vpop.f32.mrb[21].mxu1  ;;  %v2053_v63 = vld [vmem:[%s21675_s29 + $0x25a] sm:$0xff] }
 0x179   : > { %18136 = vmatprep.mubr.bf16.mxu0 %v2075_v2  ;;  %18225 = vmatpush3.bf16.msra.mxu0 %v21208_v3  ;;  %20447 = vst [vmem:[#allocation2 + $0x2a0] sm:$0xff] %v982_v0  ;;  %v17995_v1 = vpop.f32.mrb[22].mxu1  ;;  %v2016_v2 = vld [vmem:[%s21675_s29 + $0x132] sm:$0xff]  ;;  %v2017_v3 = vld [vmem:[%s21675_s29 + $0x13a] sm:$0xff]  ;;  %v2054_v0 = vld [vmem:[%s21675_s29 + $0x262] sm:$0xff] }
 0x17a   : > { %18226 = vmatprep.subr.bf16.mxu0 %v21209_v23  ;;  %20450 = vst [vmem:[#allocation2 + $0x2b8] sm:$0xff] %v17995_v1  ;;  %v985_v4 = vpop.f32.mrb[23].mxu1  ;;  %v2055_v1 = vld [vmem:[%s21675_s29 + $0x26a] sm:$0xff] }
 0x17b   : > { %20453 = vst [vmem:[#allocation2 + $0x2a8] sm:$0xff] %v985_v4  ;;  %v2056_v4 = vld [vmem:[%s21675_s29 + $0x272] sm:$0xff] }
 0x17d   : > { %18227 = vmatpush3.bf16.msra.mxu0 %v21209_v23 }
 0x17e   : > { %18228 = vmatprep.subr.bf16.mxu0 %v21210_v35 }
 0x17f   : > { %v21996_v8 = vpop.f32.mrb[24].mxu1 }
 0x180   : > { %18137 = vmatmul.mubr.bf16.gmra.mrb[12].mxu0 %v2076_v9  ;;  %v21998_v9 = vpop.f32.mrb[25].mxu1 }
 0x181   : > { %18140 = vmatprep.mubr.bf16.mxu0 %v2077_v10  ;;  %18229 = vmatpush3.bf16.msra.mxu0 %v21210_v35  ;;  %v2088_v10 = vpack.c.bf16 %v2017_v3, %v2016_v2  ;;  %v17999_v11 = vpop.f32.mrb[26].mxu1  ;;  %v2106_v2 = vpack.c.bf16 %v2053_v63, %v2052_v62  ;;  %v2107_v3 = vpack.c.bf16 %v2055_v1, %v2054_v0  ;;  %v2871_v1 = vld [vmem:[%s21675_s29 + $0xac] sm:$0xff] }
 0x182   : > { %18230 = vmatprep.subr.bf16.mxu0 %v21211_v37  ;;  %v22000_v13 = vpop.f32.mrb[27].mxu1  ;;  %v2108_v11 = vpack.c.bf16 %v2057_v6, %v2056_v4  ;;  %v2875_v6 = vld [vmem:[%s21675_s29 + $0xcc] sm:$0xff] }
 0x185   : > { %18231 = vmatpush3.bf16.msra.mxu0 %v21211_v37  ;;  %v2036_v37 = vld [vmem:[%s21675_s29 + $0x1d2] sm:$0xff] }
 0x186   : > { %v2098_v41 = vpack.c.bf16 %v2037_v38, %v2036_v37  ;;  %18324 = vmatprep.subr.bf16.mxu0 %v22025_v43  ;;  %v2859_v37 = vld [vmem:[%s21675_s29 + $0x4c] sm:$0xff]  ;;  %v2860_v38 = vld [vmem:[%s21675_s29 + $0x54] sm:$0xff] }
 0x188   : > { %18141 = vmatmul.mubr.bf16.gmra.mrb[16].mxu0 %v2078_v15  ;;  %v2021_v15 = vld [vmem:[%s21675_s29 + $0x15a] sm:$0xff] }
 0x189   : > { %18144 = vmatprep.mubr.bf16.mxu0 %v2079_v16  ;;  %v2022_v16 = vld [vmem:[%s21675_s29 + $0x162] sm:$0xff]  ;;  %v2090_v18 = vpack.c.bf16 %v2021_v15, %v2020_v14  ;;  %v2060_v14 = vld [vmem:[%s21675_s29 + $0x292] sm:$0xff]  ;;  %v2061_v15 = vld [vmem:[%s21675_s29 + $0x29a] sm:$0xff] }
 0x18a   : > { %v2091_v19 = vpack.c.bf16 %v2023_v17, %v2022_v16  ;;  %v2062_v16 = vld [vmem:[%s21675_s29 + $0x2a2] sm:$0xff]  ;;  %v2063_v17 = vld [vmem:[%s21675_s29 + $0x2aa] sm:$0xff] }
 0x190   : > { %18145 = vmatmul.mubr.bf16.gmra.mrb[20].mxu0 %v2080_v20  ;;  %v2025_v20 = vld [vmem:[%s21675_s29 + $0x17a] sm:$0xff] }
 0x191   : > { %18148 = vmatprep.mubr.bf16.mxu0 %v2081_v21  ;;  %v2026_v21 = vld [vmem:[%s21675_s29 + $0x182] sm:$0xff]  ;;  %v2092_v23 = vpack.c.bf16 %v2025_v20, %v2024_v5  ;;  %v2064_v5 = vld [vmem:[%s21675_s29 + $0x2b2] sm:$0xff]  ;;  %v2065_v20 = vld [vmem:[%s21675_s29 + $0x2ba] sm:$0xff] }
 0x192   : > { %v2093_v24 = vpack.c.bf16 %v2027_v22, %v2026_v21  ;;  %v2066_v21 = vld [vmem:[%s21675_s29 + $0x2c2] sm:$0xff]  ;;  %v2067_v22 = vld [vmem:[%s21675_s29 + $0x2ca] sm:$0xff] }
 0x198   : > { %18149 = vmatmul.mubr.bf16.gmra.mrb[24].mxu0 %v2082_v31  ;;  %v2032_v31 = vld [vmem:[%s21675_s29 + $0x1b2] sm:$0xff] }
 0x199   : > { %18152 = vmatprep.mubr.bf16.mxu0 %v2083_v33  ;;  %v2034_v33 = vld [vmem:[%s21675_s29 + $0x1c2] sm:$0xff]  ;;  %v2096_v35 = vpack.c.bf16 %v2033_v32, %v2032_v31  ;;  %v2856_v31 = vld [vmem:[%s21675_s29 + $0x34] sm:$0xff] }
 0x19a   : > { %v2097_v36 = vpack.c.bf16 %v2035_v34, %v2034_v33  ;;  %v2857_v32 = vld [vmem:[%s21675_s29 + $0x3c] sm:$0xff]  ;;  %v2858_v33 = vld [vmem:[%s21675_s29 + $0x44] sm:$0xff] }
 0x1a0   : > { %18153 = vmatmul.mubr.bf16.gmra.mrb[28].mxu0 %v2084_v45  ;;  %v2041_v45 = vld [vmem:[%s21675_s29 + $0x1fa] sm:$0xff] }
 0x1a1   : > { %18156 = vmatprep.mubr.bf16.mxu0 %v2085_v47  ;;  %v2043_v47 = vld [vmem:[%s21675_s29 + $0x20a] sm:$0xff]  ;;  %v2100_v48 = vpack.c.bf16 %v2041_v45, %v2040_v44  ;;  %v2948_v44 = vpack.c.bf16 %v2862_v40, %v2861_v39  ;;  %v21215_v45 = vld [vmem:[%s24970_s1 + $0x118] sm:$0xff]  }
 0x1a2   : > { %v2101_v49 = vpack.c.bf16 %v2043_v47, %v2042_v46  ;;  %v2864_v46 = vld [vmem:[%s21675_s29 + $0x74] sm:$0xff]  ;;  %v2865_v47 = vld [vmem:[%s21675_s29 + $0x7c] sm:$0xff]  ;;  %v2895_v40 = vld [vmem:[%s21675_s29 + $0x16c] sm:$0xff] }
 0x1a8   : > { %18157 = vmatmul.mubr.bf16.gmra.mrb[32].mxu0 %v2086_v59  ;;  %v2051_v59 = vld [vmem:[%s21675_s29 + $0x24a] sm:$0xff] }
 0x1a9   : > { %18160 = vmatprep.mubr.bf16.mxu0 %v2087_v61  ;;  %v2105_v61 = vpack.c.bf16 %v2051_v59, %v2050_v58  ;;  %v2951_v59 = vpack.c.bf16 %v2868_v53, %v2867_v52  ;;  %v2903_v52 = vld [vmem:[%s21675_s29 + $0x1ac] sm:$0xff]  ;;  %v2904_v53 = vld [vmem:[%s21675_s29 + $0x1b4] sm:$0xff] }
 0x1b0   : > { %18161 = vmatmul.mubr.bf16.gmra.mrb[36].mxu0 %v2088_v10  ;;  %v2059_v10 = vld [vmem:[%s21675_s29 + $0x28a] sm:$0xff] }
 0x1b1   : > { %18164 = vmatprep.mubr.bf16.mxu0 %v2089_v12  ;;  %v2109_v12 = vpack.c.bf16 %v2059_v10, %v2058_v7  ;;  %v2876_v7 = vld [vmem:[%s21675_s29 + $0xd4] sm:$0xff]  ;;  %v2877_v10 = vld [vmem:[%s21675_s29 + $0xdc] sm:$0xff] }
 0x1b8   : > { %18165 = vmatmul.mubr.bf16.gmra.mrb[40].mxu0 %v2090_v18  ;;  %v2110_v18 = vpack.c.bf16 %v2061_v15, %v2060_v14  ;;  %v21217_v14 = vld [vmem:[%s24970_s1 + $0x128] sm:$0xff]  }
 0x1b9   : > { %18168 = vmatprep.mubr.bf16.mxu0 %v2091_v19  ;;  %v2111_v19 = vpack.c.bf16 %v2063_v17, %v2062_v16  ;;  %v2879_v15 = vld [vmem:[%s21675_s29 + $0xec] sm:$0xff]  ;;  %v2880_v16 = vld [vmem:[%s21675_s29 + $0xf4] sm:$0xff]  ;;  %v2881_v17 = vld [vmem:[%s21675_s29 + $0xfc] sm:$0xff] }
 0x1c0   : > { %18169 = vmatmul.mubr.bf16.gmra.mrb[44].mxu0 %v2092_v23  ;;  %v2112_v23 = vpack.c.bf16 %v2065_v20, %v2064_v5  ;;  %v21218_v20 = vld [vmem:[%s24970_s1 + $0x130] sm:$0xff]  }
 0x1c1   : > { %18172 = vmatprep.mubr.bf16.mxu0 %v2093_v24  ;;  %v2113_v24 = vpack.c.bf16 %v2067_v22, %v2066_v21  ;;  %v21219_v21 = vld [vmem:[%s24970_s1 + $0x138] sm:$0xff]   ;;  %v2883_v22 = vld [vmem:[%s21675_s29 + $0x10c] sm:$0xff] }
 0x1c8   : > { %18173 = vmatmul.mubr.bf16.gmra.mrb[48].mxu0 %v2094_v29  ;;  %v2944_v29 = vpack.c.bf16 %v2854_v27, %v2853_v26 }
 0x1c9   : > { %18176 = vmatprep.mubr.bf16.mxu0 %v2095_v30  ;;  %v2855_v30 = vld [vmem:[%s21675_s29 + $0x2c] sm:$0xff] }
 0x1ca   : > { %v2945_v34 = vpack.c.bf16 %v2856_v31, %v2855_v30  ;;  %v2889_v30 = vld [vmem:[%s21675_s29 + $0x13c] sm:$0xff]  ;;  %v2890_v31 = vld [vmem:[%s21675_s29 + $0x144] sm:$0xff] }
 0x1d0   : > { %18177 = vmatmul.mubr.bf16.gmra.mrb[52].mxu0 %v2096_v35  ;;  %v2946_v35 = vpack.c.bf16 %v2858_v33, %v2857_v32  ;;  %v2962_v33 = vpack.c.bf16 %v2890_v31, %v2889_v30  ;;  %v2929_v30 = vld [vmem:[%s21675_s29 + $0x27c] sm:$0xff]  ;;  %v2930_v31 = vld [vmem:[%s21675_s29 + $0x284] sm:$0xff] }
 0x1d1   : > { %18180 = vmatprep.mubr.bf16.mxu0 %v2097_v36  ;;  %v21213_v36 = vld [vmem:[%s24970_s1 + $0x108] sm:$0xff]  }
 0x1d8   : > { %18181 = vmatmul.mubr.bf16.gmra.mrb[56].mxu0 %v2098_v41  ;;  %v21214_v41 = vld [vmem:[%s24970_s1 + $0x110] sm:$0xff]  }
 0x1d9   : > { %18184 = vmatprep.mubr.bf16.mxu0 %v2099_v42  ;;  %v2947_v42 = vpack.c.bf16 %v2860_v38, %v2859_v37  ;;  %v2894_v37 = vld [vmem:[%s21675_s29 + $0x164] sm:$0xff] }
 0x1e0   : > { %18185 = vmatmul.mubr.bf16.gmra.mrb[60].mxu0 %v2100_v48  ;;  %v2866_v48 = vld [vmem:[%s21675_s29 + $0x84] sm:$0xff] }
 0x1e1   : > { %18188 = vmatprep.mubr.bf16.mxu0 %v2101_v49  ;;  %v2950_v50 = vpack.c.bf16 %v2866_v48, %v2865_v47  ;;  %v2900_v47 = vld [vmem:[%s21675_s29 + $0x194] sm:$0xff]  ;;  %v2901_v48 = vld [vmem:[%s21675_s29 + $0x19c] sm:$0xff] }
 0x1e8   : > { %18189 = vmatmul.mubr.bf16.gmra.mrb[64].mxu0 %v2102_v54  ;;  %v2869_v54 = vld [vmem:[%s21675_s29 + $0x9c] sm:$0xff] }
 0x1e9   : > { %18192 = vmatprep.mubr.bf16.mxu0 %v2103_v55  ;;  %v2870_v55 = vld [vmem:[%s21675_s29 + $0xa4] sm:$0xff] }
 0x1ea   : > { %v2952_v62 = vpack.c.bf16 %v2870_v55, %v2869_v54  ;;  %v2905_v54 = vld [vmem:[%s21675_s29 + $0x1bc] sm:$0xff]  ;;  %v2906_v55 = vld [vmem:[%s21675_s29 + $0x1c4] sm:$0xff] }
 0x1f0   : > { %18193 = vmatmul.mubr.bf16.gmra.mrb[68].mxu0 %v2104_v60 }
 0x1f1   : > { %18196 = vmatprep.mubr.bf16.mxu0 %v2105_v61 }
 0x1f8   : > { %18197 = vmatmul.mubr.bf16.gmra.mrb[72].mxu0 %v2106_v2  ;;  %v2873_v2 = vld [vmem:[%s21675_s29 + $0xbc] sm:$0xff] }
 0x1f9   : > { %18200 = vmatprep.mubr.bf16.mxu0 %v2107_v3  ;;  %v2874_v3 = vld [vmem:[%s21675_s29 + $0xc4] sm:$0xff] }
 0x1fa   : > { %v2954_v4 = vpack.c.bf16 %v2874_v3, %v2873_v2  ;;  %v2911_v2 = vld [vmem:[%s21675_s29 + $0x1ec] sm:$0xff]  ;;  %v2912_v3 = vld [vmem:[%s21675_s29 + $0x1f4] sm:$0xff] }
 0x200   : > { %18201 = vmatmul.mubr.bf16.gmra.mrb[76].mxu0 %v2108_v11  ;;  %v2878_v11 = vld [vmem:[%s21675_s29 + $0xe4] sm:$0xff] }
 0x201   : > { %18204 = vmatprep.mubr.bf16.mxu0 %v2109_v12  ;;  %v2956_v12 = vpack.c.bf16 %v2878_v11, %v2877_v10  ;;  %v22153_v10 = vld [vmem:[%s24970_s1 + $0x140] sm:$0xff]   ;;  %v2915_v11 = vld [vmem:[%s21675_s29 + $0x20c] sm:$0xff] }
 0x208   : > { %18205 = vmatmul.mubr.bf16.gmra.mrb[80].mxu0 %v2110_v18  ;;  %v2882_v18 = vld [vmem:[%s21675_s29 + $0x104] sm:$0xff] }
 0x209   : > { %18208 = vmatprep.mubr.bf16.mxu0 %v2111_v19  ;;  %v2957_v19 = vpack.c.bf16 %v2880_v16, %v2879_v15  ;;  %v2958_v5 = vpack.c.bf16 %v2882_v18, %v2881_v17  ;;  %v2919_v17 = vld [vmem:[%s21675_s29 + $0x22c] sm:$0xff]  ;;  %v2920_v18 = vld [vmem:[%s21675_s29 + $0x234] sm:$0xff] }
 0x210   : > { %18209 = vmatmul.mubr.bf16.gmra.mrb[84].mxu0 %v2112_v23  ;;  %v2884_v23 = vld [vmem:[%s21675_s29 + $0x114] sm:$0xff] }
 0x211   : > { %18212 = vmatprep.mubr.bf16.mxu0 %v2113_v24  ;;  %v2885_v24 = vld [vmem:[%s21675_s29 + $0x11c] sm:$0xff]  ;;  %v2959_v26 = vpack.c.bf16 %v2884_v23, %v2883_v22  ;;  %v2923_v22 = vld [vmem:[%s21675_s29 + $0x24c] sm:$0xff]  ;;  %v2924_v23 = vld [vmem:[%s21675_s29 + $0x254] sm:$0xff] }
 0x212   : > { %v2960_v27 = vpack.c.bf16 %v2886_v25, %v2885_v24  ;;  %v2925_v24 = vld [vmem:[%s21675_s29 + $0x25c] sm:$0xff]  ;;  %v2926_v25 = vld [vmem:[%s21675_s29 + $0x264] sm:$0xff] }
 0x218   : > { %18213 = vmatmul.mubr.bf16.gmra.mrb[92].mxu0 %v2114_v28  ;;  %v2887_v28 = vld [vmem:[%s21675_s29 + $0x12c] sm:$0xff] }
 0x219   : > { %18232 = vmatprep.mubr.bf16.mxu0 %v2944_v29  ;;  %v2888_v29 = vld [vmem:[%s21675_s29 + $0x134] sm:$0xff] }
 0x21a   : > { %v2961_v32 = vpack.c.bf16 %v2888_v29, %v2887_v28  ;;  %v2927_v28 = vld [vmem:[%s21675_s29 + $0x26c] sm:$0xff]  ;;  %v2928_v29 = vld [vmem:[%s21675_s29 + $0x274] sm:$0xff] }
 0x220   : > { %18233 = vmatmul.mubr.bf16.vlgmr.msra.gmra.mrb[0].mxu0 %v2945_v34  ;;  %v2891_v34 = vld [vmem:[%s21675_s29 + $0x14c] sm:$0xff] }
 0x221   : > { %18236 = vmatprep.mubr.bf16.mxu0 %v2946_v35  ;;  %18325 = vmatpush3.bf16.msra.mxu0 %v22025_v43  ;;  %v2863_v43 = vld [vmem:[%s21675_s29 + $0x6c] sm:$0xff]  ;;  %v2892_v35 = vld [vmem:[%s21675_s29 + $0x154] sm:$0xff] }
 0x222   : > { %18326 = vmatprep.subr.bf16.mxu0 %v21213_v36  ;;  %v2949_v49 = vpack.c.bf16 %v2864_v46, %v2863_v43  ;;  %v2963_v38 = vpack.c.bf16 %v2892_v35, %v2891_v34  ;;  %v2899_v46 = vld [vmem:[%s21675_s29 + $0x18c] sm:$0xff]  ;;  %v2932_v35 = vld [vmem:[%s21675_s29 + $0x294] sm:$0xff] }
 0x223   : > { %v2931_v34 = vld [vmem:[%s21675_s29 + $0x28c] sm:$0xff] }
 0x225   : > { %18327 = vmatpush3.bf16.msra.mxu0 %v21213_v36  ;;  %v2893_v36 = vld [vmem:[%s21675_s29 + $0x15c] sm:$0xff] }
 0x226   : > { %18328 = vmatprep.subr.bf16.mxu0 %v21214_v41  ;;  %v2964_v39 = vpack.c.bf16 %v2894_v37, %v2893_v36  ;;  %v2933_v36 = vld [vmem:[%s21675_s29 + $0x29c] sm:$0xff]  ;;  %v2934_v37 = vld [vmem:[%s21675_s29 + $0x2a4] sm:$0xff] }
 0x228   : > { %18237 = vmatmul.mubr.bf16.gmra.mrb[4].mxu0 %v2947_v42  ;;  %v2897_v42 = vld [vmem:[%s21675_s29 + $0x17c] sm:$0xff] }
 0x229   : > { %18240 = vmatprep.mubr.bf16.mxu0 %v2948_v44  ;;  %18329 = vmatpush3.bf16.msra.mxu0 %v21214_v41  ;;  %v2896_v41 = vld [vmem:[%s21675_s29 + $0x174] sm:$0xff]  ;;  %v2898_v44 = vld [vmem:[%s21675_s29 + $0x184] sm:$0xff] }
 0x22a   : > { %18330 = vmatprep.subr.bf16.mxu0 %v21215_v45  ;;  %v2966_v43 = vpack.c.bf16 %v2898_v44, %v2897_v42  ;;  %v2937_v42 = vld [vmem:[%s21675_s29 + $0x2bc] sm:$0xff]  ;;  %v2938_v44 = vld [vmem:[%s21675_s29 + $0x2c4] sm:$0xff] }
 0x22d   : > { %18331 = vmatpush3.bf16.msra.mxu0 %v21215_v45  ;;  %v2965_v45 = vpack.c.bf16 %v2896_v41, %v2895_v40  ;;  %v2935_v40 = vld [vmem:[%s21675_s29 + $0x2ac] sm:$0xff]  ;;  %v2936_v41 = vld [vmem:[%s21675_s29 + $0x2b4] sm:$0xff] }
 0x22e   : > { %18332 = vmatprep.subr.bf16.mxu0 %v21216_v51 }
 0x230   : > { %18241 = vmatmul.mubr.bf16.gmra.mrb[8].mxu0 %v2949_v49  ;;  %v2902_v49 = vld [vmem:[%s21675_s29 + $0x1a4] sm:$0xff] }
 0x231   : > { %18244 = vmatprep.mubr.bf16.mxu0 %v2950_v50  ;;  %18333 = vmatpush3.bf16.msra.mxu0 %v21216_v51  ;;  %v2967_v50 = vpack.c.bf16 %v2900_v47, %v2899_v46  ;;  %v2968_v51 = vpack.c.bf16 %v2902_v49, %v2901_v48  ;;  %v2939_v46 = vld [vmem:[%s21675_s29 + $0x2cc] sm:$0xff]  ;;  %v2940_v47 = vld [vmem:[%s21675_s29 + $0x2d4] sm:$0xff]  ;;  %v2941_v48 = vld [vmem:[%s21675_s29 + $0x2dc] sm:$0xff] }
 0x232   : > { %18334 = vmatprep.subr.bf16.mxu0 %v21217_v14  ;;  %v2942_v49 = vld [vmem:[%s21675_s29 + $0x2e4] sm:$0xff] }
 0x233   : > { %v18106_v56 = vpop.f32.mrb[88].mxu0 }
 0x234   : > { %v22089_v57 = vadd.f32 %v18106_v56, %v21996_v8  ;;  %v1691_v58 = vpop.f32.mrb[89].mxu0  ;;  %v2872_v8 = vld [vmem:[%s21675_s29 + $0xb4] sm:$0xff]  ;;  %v2969_v56 = vpack.c.bf16 %v2904_v53, %v2903_v52  ;;  %v2943_v52 = vld [vmem:[%s21675_s29 + $0x2ec] sm:$0xff]  ;;  %v3728_v53 = vld [vmem:[%s21675_s29 + $0x1d] sm:$0xff] }
 0x235   : > { %v22092_v60 = vadd.f32 %v1691_v58, %v21998_v9  ;;  %v18107_v61 = vpop.f32.mrb[90].mxu0  ;;  %v2953_v9 = vpack.c.bf16 %v2872_v8, %v2871_v1  ;;  %18335 = vmatpush3.bf16.msra.mxu0 %v21217_v14  ;;  %v2970_v58 = vpack.c.bf16 %v2906_v55, %v2905_v54  ;;  %v2918_v14 = vld [vmem:[%s21675_s29 + $0x224] sm:$0xff]  ;;  %v2989_v55 = vpack.c.bf16 %v2943_v52, %v2943_v52 }
 0x236   : > { %v1694_v63 = vpop.f32.mrb[91].mxu0  ;;  %18336 = vmatprep.subr.bf16.mxu0 %v21218_v20  ;;  %v2908_v61 = vld [vmem:[%s21675_s29 + $0x1d4] sm:$0xff]  ;;  %v3729_v54 = vld [vmem:[%s21675_s29 + $0x25] sm:$0xff] }
 0x237   : > { %v22095_v0 = vadd.f32 %v1694_v63, %v22000_v13  ;;  %v2955_v13 = vpack.c.bf16 %v2876_v7, %v2875_v6  ;;  %v2910_v63 = vld [vmem:[%s21675_s29 + $0x1e4] sm:$0xff]  ;;  %v2973_v6 = vpack.c.bf16 %v2912_v3, %v2911_v2  ;;  %v3734_v2 = vld [vmem:[%s21675_s29 + $0x4d] sm:$0xff]  ;;  %v3735_v3 = vld [vmem:[%s21675_s29 + $0x55] sm:$0xff] }
 0x238   : > { %18245 = vmatmul.mubr.bf16.gmra.mrb[12].mxu0 %v2951_v59  ;;  %v2907_v59 = vld [vmem:[%s21675_s29 + $0x1cc] sm:$0xff] }
 0x239   : > { %18248 = vmatprep.mubr.bf16.mxu0 %v2952_v62  ;;  %18337 = vmatpush3.bf16.msra.mxu0 %v21218_v20  ;;  %v2909_v62 = vld [vmem:[%s21675_s29 + $0x1dc] sm:$0xff]  ;;  %v2971_v1 = vpack.c.bf16 %v2908_v61, %v2907_v59  ;;  %v2977_v20 = vpack.c.bf16 %v2920_v18, %v2919_v17  ;;  %v3761_v52 = vld [vmem:[%s21675_s29 + $0x125] sm:$0xff] }
 0x23a   : > { %18338 = vmatprep.subr.bf16.mxu0 %v21219_v21  ;;  %v2972_v8 = vpack.c.bf16 %v2910_v63, %v2909_v62  ;;  %v3731_v59 = vld [vmem:[%s21675_s29 + $0x35] sm:$0xff]  ;;  %v3732_v61 = vld [vmem:[%s21675_s29 + $0x3d] sm:$0xff]  ;;  %v3733_v62 = vld [vmem:[%s21675_s29 + $0x45] sm:$0xff] }
 0x23b   : > { %v21224_v18 = vld [vmem:[%s24970_s1 + $0x160] sm:$0xff]  }
 0x23d   : > { %18339 = vmatpush3.bf16.msra.mxu0 %v21219_v21 }
 0x23e   : > { %18432 = vmatprep.subr.bf16.mxu0 %v22153_v10 }
 0x240   : > { %18249 = vmatmul.mubr.bf16.gmra.mrb[16].mxu0 %v2953_v9  ;;  %v2913_v9 = vld [vmem:[%s21675_s29 + $0x1fc] sm:$0xff] }
 0x241   : > { %18252 = vmatprep.mubr.bf16.mxu0 %v2954_v4  ;;  %v2914_v4 = vld [vmem:[%s21675_s29 + $0x204] sm:$0xff] }
 0x242   : > { %v2974_v7 = vpack.c.bf16 %v2914_v4, %v2913_v9  ;;  %v3736_v9 = vld [vmem:[%s21675_s29 + $0x5d] sm:$0xff]  ;;  %v3737_v4 = vld [vmem:[%s21675_s29 + $0x65] sm:$0xff] }
 0x248   : > { %18253 = vmatmul.mubr.bf16.gmra.mrb[20].mxu0 %v2955_v13  ;;  %v2916_v13 = vld [vmem:[%s21675_s29 + $0x214] sm:$0xff] }
 0x249   : > { %18256 = vmatprep.mubr.bf16.mxu0 %v2956_v12  ;;  %v2917_v12 = vld [vmem:[%s21675_s29 + $0x21c] sm:$0xff]  ;;  %v2975_v15 = vpack.c.bf16 %v2916_v13, %v2915_v11  ;;  %v3823_v11 = vpack.c.bf16 %v3737_v4, %v3736_v9  ;;  %v3770_v4 = vld [vmem:[%s21675_s29 + $0x16d] sm:$0xff] }
 0x24a   : > { %v2976_v16 = vpack.c.bf16 %v2918_v14, %v2917_v12  ;;  %v21223_v13 = vld [vmem:[%s24970_s1 + $0x158] sm:$0xff]  }
 0x24b   : > { %v3739_v12 = vld [vmem:[%s21675_s29 + $0x75] sm:$0xff]  ;;  %v3740_v14 = vld [vmem:[%s21675_s29 + $0x7d] sm:$0xff] }
 0x250   : > { %18257 = vmatmul.mubr.bf16.gmra.mrb[24].mxu0 %v2957_v19  ;;  %v2921_v19 = vld [vmem:[%s21675_s29 + $0x23c] sm:$0xff] }
 0x251   : > { %18260 = vmatprep.mubr.bf16.mxu0 %v2958_v5  ;;  %v2922_v5 = vld [vmem:[%s21675_s29 + $0x244] sm:$0xff] }
 0x252   : > { %v2978_v21 = vpack.c.bf16 %v2922_v5, %v2921_v19  ;;  %v3742_v19 = vld [vmem:[%s21675_s29 + $0x8d] sm:$0xff]  ;;  %v3743_v5 = vld [vmem:[%s21675_s29 + $0x95] sm:$0xff] }
 0x258   : > { %18261 = vmatmul.mubr.bf16.gmra.mrb[28].mxu0 %v2959_v26  ;;  %v2979_v26 = vpack.c.bf16 %v2924_v23, %v2923_v22 }
 0x259   : > { %18264 = vmatprep.mubr.bf16.mxu0 %v2960_v27  ;;  %v2980_v27 = vpack.c.bf16 %v2926_v25, %v2925_v24  ;;  %v3826_v25 = vpack.c.bf16 %v3743_v5, %v3742_v19  ;;  %v3778_v19 = vld [vmem:[%s21675_s29 + $0x1ad] sm:$0xff]  ;;  %v3779_v5 = vld [vmem:[%s21675_s29 + $0x1b5] sm:$0xff] }
 0x260   : > { %18265 = vmatmul.mubr.bf16.gmra.mrb[32].mxu0 %v2961_v32  ;;  %v2981_v32 = vpack.c.bf16 %v2928_v29, %v2927_v28 }
 0x261   : > { %18268 = vmatprep.mubr.bf16.mxu0 %v2962_v33  ;;  %v2982_v33 = vpack.c.bf16 %v2930_v31, %v2929_v30  ;;  %v3746_v31 = vld [vmem:[%s21675_s29 + $0xad] sm:$0xff] }
 0x268   : > { %18269 = vmatmul.mubr.bf16.gmra.mrb[36].mxu0 %v2963_v38  ;;  %v2983_v38 = vpack.c.bf16 %v2932_v35, %v2931_v34  ;;  %v3750_v35 = vld [vmem:[%s21675_s29 + $0xcd] sm:$0xff] }
 0x269   : > { %18272 = vmatprep.mubr.bf16.mxu0 %v2964_v39  ;;  %v2984_v39 = vpack.c.bf16 %v2934_v37, %v2933_v36  ;;  %v3751_v36 = vld [vmem:[%s21675_s29 + $0xd5] sm:$0xff]  ;;  %v3752_v37 = vld [vmem:[%s21675_s29 + $0xdd] sm:$0xff] }
 0x270   : > { %18273 = vmatmul.mubr.bf16.gmra.mrb[40].mxu0 %v2965_v45  ;;  %v2985_v45 = vpack.c.bf16 %v2936_v41, %v2935_v40  ;;  %v21225_v40 = vld [vmem:[%s24970_s1 + $0x168] sm:$0xff]  }
 0x271   : > { %18276 = vmatprep.mubr.bf16.mxu0 %v2966_v43  ;;  %v2986_v43 = vpack.c.bf16 %v2938_v44, %v2937_v42  ;;  %v3754_v41 = vld [vmem:[%s21675_s29 + $0xed] sm:$0xff]  ;;  %v3755_v42 = vld [vmem:[%s21675_s29 + $0xf5] sm:$0xff]  ;;  %v3756_v44 = vld [vmem:[%s21675_s29 + $0xfd] sm:$0xff] }
 0x278   : > { %18277 = vmatmul.mubr.bf16.gmra.mrb[44].mxu0 %v2967_v50  ;;  %v2987_v50 = vpack.c.bf16 %v2940_v47, %v2939_v46  ;;  %v21226_v47 = vld [vmem:[%s24970_s1 + $0x170] sm:$0xff]  }
 0x279   : > { %18280 = vmatprep.mubr.bf16.mxu0 %v2968_v51  ;;  %v2988_v51 = vpack.c.bf16 %v2942_v49, %v2941_v48  ;;  %v21227_v48 = vld [vmem:[%s24970_s1 + $0x178] sm:$0xff]   ;;  %v3758_v49 = vld [vmem:[%s21675_s29 + $0x10d] sm:$0xff] }
 0x280   : > { %18281 = vmatmul.mubr.bf16.gmra.mrb[48].mxu0 %v2969_v56  ;;  %v3819_v56 = vpack.c.bf16 %v3729_v54, %v3728_v53 }
 0x281   : > { %18284 = vmatprep.mubr.bf16.mxu0 %v2970_v58  ;;  %v3730_v58 = vld [vmem:[%s21675_s29 + $0x2d] sm:$0xff] }
 0x282   : > { %v3820_v63 = vpack.c.bf16 %v3731_v59, %v3730_v58  ;;  %v3764_v58 = vld [vmem:[%s21675_s29 + $0x13d] sm:$0xff]  ;;  %v3765_v59 = vld [vmem:[%s21675_s29 + $0x145] sm:$0xff] }
 0x288   : > { %18285 = vmatmul.mubr.bf16.gmra.mrb[52].mxu0 %v2971_v1  ;;  %v3821_v1 = vpack.c.bf16 %v3733_v62, %v3732_v61  ;;  %v3837_v62 = vpack.c.bf16 %v3765_v59, %v3764_v58  ;;  %v3804_v58 = vld [vmem:[%s21675_s29 + $0x27d] sm:$0xff]  ;;  %v3805_v59 = vld [vmem:[%s21675_s29 + $0x285] sm:$0xff] }
 0x289   : > { %18288 = vmatprep.mubr.bf16.mxu0 %v2972_v8  ;;  %v21221_v8 = vld [vmem:[%s24970_s1 + $0x148] sm:$0xff]  }
 0x290   : > { %18289 = vmatmul.mubr.bf16.gmra.mrb[56].mxu0 %v2973_v6  ;;  %v21222_v6 = vld [vmem:[%s24970_s1 + $0x150] sm:$0xff]  }
 0x291   : > { %18292 = vmatprep.mubr.bf16.mxu0 %v2974_v7  ;;  %v3822_v7 = vpack.c.bf16 %v3735_v3, %v3734_v2  ;;  %v3769_v2 = vld [vmem:[%s21675_s29 + $0x165] sm:$0xff] }
 0x298   : > { %18293 = vmatmul.mubr.bf16.gmra.mrb[60].mxu0 %v2975_v15  ;;  %v3741_v15 = vld [vmem:[%s21675_s29 + $0x85] sm:$0xff] }
 0x299   : > { %18296 = vmatprep.mubr.bf16.mxu0 %v2976_v16  ;;  %v3825_v17 = vpack.c.bf16 %v3741_v15, %v3740_v14  ;;  %v3775_v14 = vld [vmem:[%s21675_s29 + $0x195] sm:$0xff]  ;;  %v3776_v15 = vld [vmem:[%s21675_s29 + $0x19d] sm:$0xff] }
 0x2a0   : > { %18297 = vmatmul.mubr.bf16.gmra.mrb[64].mxu0 %v2977_v20  ;;  %v3744_v20 = vld [vmem:[%s21675_s29 + $0x9d] sm:$0xff] }
 0x2a1   : > { %18300 = vmatprep.mubr.bf16.mxu0 %v2978_v21  ;;  %v3745_v21 = vld [vmem:[%s21675_s29 + $0xa5] sm:$0xff] }
 0x2a2   : > { %v3827_v28 = vpack.c.bf16 %v3745_v21, %v3744_v20  ;;  %v3780_v20 = vld [vmem:[%s21675_s29 + $0x1bd] sm:$0xff]  ;;  %v3781_v21 = vld [vmem:[%s21675_s29 + $0x1c5] sm:$0xff] }
 0x2a8   : > { %18301 = vmatmul.mubr.bf16.gmra.mrb[68].mxu0 %v2979_v26 }
 0x2a9   : > { %18304 = vmatprep.mubr.bf16.mxu0 %v2980_v27 }
 0x2b0   : > { %18305 = vmatmul.mubr.bf16.gmra.mrb[72].mxu0 %v2981_v32  ;;  %v3748_v32 = vld [vmem:[%s21675_s29 + $0xbd] sm:$0xff] }
 0x2b1   : > { %18308 = vmatprep.mubr.bf16.mxu0 %v2982_v33  ;;  %v3749_v33 = vld [vmem:[%s21675_s29 + $0xc5] sm:$0xff] }
 0x2b2   : > { %v3829_v34 = vpack.c.bf16 %v3749_v33, %v3748_v32  ;;  %v3786_v32 = vld [vmem:[%s21675_s29 + $0x1ed] sm:$0xff]  ;;  %v3787_v33 = vld [vmem:[%s21675_s29 + $0x1f5] sm:$0xff] }
 0x2b8   : > { %18309 = vmatmul.mubr.bf16.gmra.mrb[76].mxu0 %v2983_v38  ;;  %v3753_v38 = vld [vmem:[%s21675_s29 + $0xe5] sm:$0xff] }
 0x2b9   : > { %18312 = vmatprep.mubr.bf16.mxu0 %v2984_v39  ;;  %v3831_v39 = vpack.c.bf16 %v3753_v38, %v3752_v37  ;;  %v22281_v37 = vld [vmem:[%s24970_s1 + $0x180] sm:$0xff]   ;;  %v3790_v38 = vld [vmem:[%s21675_s29 + $0x20d] sm:$0xff] }
 0x2c0   : > { %18313 = vmatmul.mubr.bf16.gmra.mrb[80].mxu0 %v2985_v45  ;;  %v3757_v45 = vld [vmem:[%s21675_s29 + $0x105] sm:$0xff] }
 0x2c1   : > { %18316 = vmatprep.mubr.bf16.mxu0 %v2986_v43  ;;  %v3832_v43 = vpack.c.bf16 %v3755_v42, %v3754_v41  ;;  %v3833_v46 = vpack.c.bf16 %v3757_v45, %v3756_v44  ;;  %v3794_v44 = vld [vmem:[%s21675_s29 + $0x22d] sm:$0xff]  ;;  %v3795_v45 = vld [vmem:[%s21675_s29 + $0x235] sm:$0xff] }
 0x2c8   : > { %18317 = vmatmul.mubr.bf16.gmra.mrb[84].mxu0 %v2987_v50  ;;  %v3759_v50 = vld [vmem:[%s21675_s29 + $0x115] sm:$0xff] }
 0x2c9   : > { %18320 = vmatprep.mubr.bf16.mxu0 %v2988_v51  ;;  %v3760_v51 = vld [vmem:[%s21675_s29 + $0x11d] sm:$0xff]  ;;  %v3834_v53 = vpack.c.bf16 %v3759_v50, %v3758_v49  ;;  %v3798_v49 = vld [vmem:[%s21675_s29 + $0x24d] sm:$0xff]  ;;  %v3799_v50 = vld [vmem:[%s21675_s29 + $0x255] sm:$0xff] }
 0x2ca   : > { %v3835_v54 = vpack.c.bf16 %v3761_v52, %v3760_v51  ;;  %v3800_v51 = vld [vmem:[%s21675_s29 + $0x25d] sm:$0xff]  ;;  %v3801_v52 = vld [vmem:[%s21675_s29 + $0x265] sm:$0xff] }
 0x2d0   : > { %18321 = vmatmul.mubr.bf16.gmra.mrb[96].mxu0 %v2989_v55  ;;  %v3762_v55 = vld [vmem:[%s21675_s29 + $0x12d] sm:$0xff] }
 0x2d1   : > { %18340 = vmatprep.mubr.bf16.mxu0 %v3819_v56  ;;  %v3763_v56 = vld [vmem:[%s21675_s29 + $0x135] sm:$0xff] }
 0x2d2   : > { %v3836_v61 = vpack.c.bf16 %v3763_v56, %v3762_v55  ;;  %v3802_v55 = vld [vmem:[%s21675_s29 + $0x26d] sm:$0xff]  ;;  %v3803_v56 = vld [vmem:[%s21675_s29 + $0x275] sm:$0xff] }
 0x2d8   : > { %18341 = vmatmul.mubr.bf16.vlgmr.msra.gmra.mrb[0].mxu0 %v3820_v63  ;;  %v3766_v63 = vld [vmem:[%s21675_s29 + $0x14d] sm:$0xff] }
 0x2d9   : > { %18344 = vmatprep.mubr.bf16.mxu0 %v3821_v1  ;;  %18433 = vmatpush3.bf16.msra.mxu0 %v22153_v10  ;;  %v3738_v10 = vld [vmem:[%s21675_s29 + $0x6d] sm:$0xff]  ;;  %v3767_v1 = vld [vmem:[%s21675_s29 + $0x155] sm:$0xff] }
 0x2da   : > { %18434 = vmatprep.subr.bf16.mxu0 %v21221_v8  ;;  %v3824_v16 = vpack.c.bf16 %v3739_v12, %v3738_v10  ;;  %v3838_v3 = vpack.c.bf16 %v3767_v1, %v3766_v63  ;;  %v3774_v12 = vld [vmem:[%s21675_s29 + $0x18d] sm:$0xff]  ;;  %v3807_v1 = vld [vmem:[%s21675_s29 + $0x295] sm:$0xff] }
 0x2db   : > { %v3806_v63 = vld [vmem:[%s21675_s29 + $0x28d] sm:$0xff] }
 0x2dd   : > { %18435 = vmatpush3.bf16.msra.mxu0 %v21221_v8  ;;  %v3768_v8 = vld [vmem:[%s21675_s29 + $0x15d] sm:$0xff] }
 0x2de   : > { %18436 = vmatprep.subr.bf16.mxu0 %v21222_v6  ;;  %v3839_v9 = vpack.c.bf16 %v3769_v2, %v3768_v8  ;;  %v3808_v8 = vld [vmem:[%s21675_s29 + $0x29d] sm:$0xff]  ;;  %v3809_v2 = vld [vmem:[%s21675_s29 + $0x2a5] sm:$0xff] }
 0x2e0   : > { %18345 = vmatmul.mubr.bf16.gmra.mrb[4].mxu0 %v3822_v7  ;;  %v3772_v7 = vld [vmem:[%s21675_s29 + $0x17d] sm:$0xff] }
 0x2e1   : > { %18348 = vmatprep.mubr.bf16.mxu0 %v3823_v11  ;;  %18437 = vmatpush3.bf16.msra.mxu0 %v21222_v6  ;;  %v3771_v6 = vld [vmem:[%s21675_s29 + $0x175] sm:$0xff]  ;;  %v3773_v11 = vld [vmem:[%s21675_s29 + $0x185] sm:$0xff] }
 0x2e2   : > { %18438 = vmatprep.subr.bf16.mxu0 %v21223_v13  ;;  %v3841_v10 = vpack.c.bf16 %v3773_v11, %v3772_v7  ;;  %v3812_v7 = vld [vmem:[%s21675_s29 + $0x2bd] sm:$0xff]  ;;  %v3813_v11 = vld [vmem:[%s21675_s29 + $0x2c5] sm:$0xff] }
 0x2e5   : > { %18439 = vmatpush3.bf16.msra.mxu0 %v21223_v13  ;;  %v3840_v13 = vpack.c.bf16 %v3771_v6, %v3770_v4  ;;  %v3810_v4 = vld [vmem:[%s21675_s29 + $0x2ad] sm:$0xff]  ;;  %v3811_v6 = vld [vmem:[%s21675_s29 + $0x2b5] sm:$0xff] }
 0x2e6   : > { %18440 = vmatprep.subr.bf16.mxu0 %v21224_v18 }
 0x2e8   : > { %18349 = vmatmul.mubr.bf16.gmra.mrb[8].mxu0 %v3824_v16  ;;  %v3777_v16 = vld [vmem:[%s21675_s29 + $0x1a5] sm:$0xff] }
 0x2e9   : > { %18352 = vmatprep.mubr.bf16.mxu0 %v3825_v17  ;;  %18441 = vmatpush3.bf16.msra.mxu0 %v21224_v18  ;;  %v3842_v17 = vpack.c.bf16 %v3775_v14, %v3774_v12  ;;  %v3843_v18 = vpack.c.bf16 %v3777_v16, %v3776_v15  ;;  %v3814_v12 = vld [vmem:[%s21675_s29 + $0x2cd] sm:$0xff]  ;;  %v3815_v14 = vld [vmem:[%s21675_s29 + $0x2d5] sm:$0xff]  ;;  %v3816_v15 = vld [vmem:[%s21675_s29 + $0x2dd] sm:$0xff] }
 0x2ea   : > { %18442 = vmatprep.subr.bf16.mxu0 %v21225_v40  ;;  %v3817_v16 = vld [vmem:[%s21675_s29 + $0x2e5] sm:$0xff] }
 0x2eb   : > { %v18214_v22 = vpop.f32.mrb[92].mxu0 }
 0x2ec   : > { %v22217_v23 = vadd.f32 %v18214_v22, %v22089_v57  ;;  %v2566_v24 = vpop.f32.mrb[93].mxu0  ;;  %v3747_v57 = vld [vmem:[%s21675_s29 + $0xb5] sm:$0xff]  ;;  %v3844_v22 = vpack.c.bf16 %v3779_v5, %v3778_v19  ;;  %v3818_v19 = vld [vmem:[%s21675_s29 + $0x2ed] sm:$0xff]  ;;  %v4603_v5 = vld [vmem:[%s21675_s29 + $0x1e] sm:$0xff] }
 0x2ed   : > { %v22220_v26 = vadd.f32 %v2566_v24, %v22092_v60  ;;  %v18215_v27 = vpop.f32.mrb[94].mxu0  ;;  %v3828_v60 = vpack.c.bf16 %v3747_v57, %v3746_v31  ;;  %18443 = vmatpush3.bf16.msra.mxu0 %v21225_v40  ;;  %v3845_v24 = vpack.c.bf16 %v3781_v21, %v3780_v20  ;;  %v3793_v40 = vld [vmem:[%s21675_s29 + $0x225] sm:$0xff]  ;;  %v3864_v21 = vpack.c.bf16 %v3818_v19, %v3818_v19 }
 0x2ee   : > { %v2569_v29 = vpop.f32.mrb[95].mxu0  ;;  %18444 = vmatprep.subr.bf16.mxu0 %v21226_v47  ;;  %v3783_v27 = vld [vmem:[%s21675_s29 + $0x1d5] sm:$0xff]  ;;  %v4604_v20 = vld [vmem:[%s21675_s29 + $0x26] sm:$0xff] }
 0x2ef   : > { %v22223_v30 = vadd.f32 %v2569_v29, %v22095_v0  ;;  %v3830_v0 = vpack.c.bf16 %v3751_v36, %v3750_v35  ;;  %v3785_v29 = vld [vmem:[%s21675_s29 + $0x1e5] sm:$0xff]  ;;  %v3848_v35 = vpack.c.bf16 %v3787_v33, %v3786_v32  ;;  %v4609_v32 = vld [vmem:[%s21675_s29 + $0x4e] sm:$0xff]  ;;  %v4610_v33 = vld [vmem:[%s21675_s29 + $0x56] sm:$0xff] }
 0x2f0   : > { %18353 = vmatmul.mubr.bf16.gmra.mrb[12].mxu0 %v3826_v25  ;;  %v3782_v25 = vld [vmem:[%s21675_s29 + $0x1cd] sm:$0xff] }
 0x2f1   : > { %18356 = vmatprep.mubr.bf16.mxu0 %v3827_v28  ;;  %18445 = vmatpush3.bf16.msra.mxu0 %v21226_v47  ;;  %v3784_v28 = vld [vmem:[%s21675_s29 + $0x1dd] sm:$0xff]  ;;  %v3846_v31 = vpack.c.bf16 %v3783_v27, %v3782_v25  ;;  %v3852_v47 = vpack.c.bf16 %v3795_v45, %v3794_v44  ;;  %v4636_v19 = vld [vmem:[%s21675_s29 + $0x126] sm:$0xff] }
 0x2f2   : > { %18446 = vmatprep.subr.bf16.mxu0 %v21227_v48  ;;  %v3847_v57 = vpack.c.bf16 %v3785_v29, %v3784_v28  ;;  %v4606_v25 = vld [vmem:[%s21675_s29 + $0x36] sm:$0xff]  ;;  %v4607_v27 = vld [vmem:[%s21675_s29 + $0x3e] sm:$0xff]  ;;  %v4608_v28 = vld [vmem:[%s21675_s29 + $0x46] sm:$0xff] }
 0x2f3   : > { %v21232_v45 = vld [vmem:[%s24970_s1 + $0x1a0] sm:$0xff]  }
 0x2f5   : > { %18447 = vmatpush3.bf16.msra.mxu0 %v21227_v48 }
 0x2f6   : > { %18540 = vmatprep.subr.bf16.mxu0 %v22281_v37 }
 0x2f8   : > { %18357 = vmatmul.mubr.bf16.gmra.mrb[16].mxu0 %v3828_v60  ;;  %v3788_v60 = vld [vmem:[%s21675_s29 + $0x1fd] sm:$0xff] }
 0x2f9   : > { %18360 = vmatprep.mubr.bf16.mxu0 %v3829_v34  ;;  %v3789_v34 = vld [vmem:[%s21675_s29 + $0x205] sm:$0xff] }
 0x2fa   : > { %v3849_v36 = vpack.c.bf16 %v3789_v34, %v3788_v60  ;;  %v4611_v60 = vld [vmem:[%s21675_s29 + $0x5e] sm:$0xff]  ;;  %v4612_v34 = vld [vmem:[%s21675_s29 + $0x66] sm:$0xff] }
 0x300   : > { %18361 = vmatmul.mubr.bf16.gmra.mrb[20].mxu0 %v3830_v0  ;;  %v3791_v0 = vld [vmem:[%s21675_s29 + $0x215] sm:$0xff] }
 0x301   : > { %18364 = vmatprep.mubr.bf16.mxu0 %v3831_v39  ;;  %v3792_v39 = vld [vmem:[%s21675_s29 + $0x21d] sm:$0xff]  ;;  %v3850_v41 = vpack.c.bf16 %v3791_v0, %v3790_v38  ;;  %v4698_v38 = vpack.c.bf16 %v4612_v34, %v4611_v60  ;;  %v4645_v34 = vld [vmem:[%s21675_s29 + $0x16e] sm:$0xff] }
 0x302   : > { %v3851_v42 = vpack.c.bf16 %v3793_v40, %v3792_v39  ;;  %v21231_v0 = vld [vmem:[%s24970_s1 + $0x198] sm:$0xff]  }
 0x303   : > { %v4614_v39 = vld [vmem:[%s21675_s29 + $0x76] sm:$0xff]  ;;  %v4615_v40 = vld [vmem:[%s21675_s29 + $0x7e] sm:$0xff] }
 0x308   : > { %18365 = vmatmul.mubr.bf16.gmra.mrb[24].mxu0 %v3832_v43  ;;  %v3796_v43 = vld [vmem:[%s21675_s29 + $0x23d] sm:$0xff] }
 0x309   : > { %18368 = vmatprep.mubr.bf16.mxu0 %v3833_v46  ;;  %v3797_v46 = vld [vmem:[%s21675_s29 + $0x245] sm:$0xff] }
 0x30a   : > { %v3853_v48 = vpack.c.bf16 %v3797_v46, %v3796_v43  ;;  %v4617_v43 = vld [vmem:[%s21675_s29 + $0x8e] sm:$0xff]  ;;  %v4618_v46 = vld [vmem:[%s21675_s29 + $0x96] sm:$0xff] }
 0x310   : > { %18369 = vmatmul.mubr.bf16.gmra.mrb[28].mxu0 %v3834_v53  ;;  %v3854_v53 = vpack.c.bf16 %v3799_v50, %v3798_v49 }
 0x311   : > { %18372 = vmatprep.mubr.bf16.mxu0 %v3835_v54  ;;  %v3855_v54 = vpack.c.bf16 %v3801_v52, %v3800_v51  ;;  %v4701_v52 = vpack.c.bf16 %v4618_v46, %v4617_v43  ;;  %v4653_v43 = vld [vmem:[%s21675_s29 + $0x1ae] sm:$0xff]  ;;  %v4654_v46 = vld [vmem:[%s21675_s29 + $0x1b6] sm:$0xff] }
 0x318   : > { %18373 = vmatmul.mubr.bf16.gmra.mrb[32].mxu0 %v3836_v61  ;;  %v3856_v61 = vpack.c.bf16 %v3803_v56, %v3802_v55 }
 0x319   : > { %18376 = vmatprep.mubr.bf16.mxu0 %v3837_v62  ;;  %v3857_v62 = vpack.c.bf16 %v3805_v59, %v3804_v58  ;;  %v4621_v59 = vld [vmem:[%s21675_s29 + $0xae] sm:$0xff] }
 0x320   : > { %18377 = vmatmul.mubr.bf16.gmra.mrb[36].mxu0 %v3838_v3  ;;  %v3858_v3 = vpack.c.bf16 %v3807_v1, %v3806_v63  ;;  %v4625_v1 = vld [vmem:[%s21675_s29 + $0xce] sm:$0xff] }
 0x321   : > { %18380 = vmatprep.mubr.bf16.mxu0 %v3839_v9  ;;  %v3859_v9 = vpack.c.bf16 %v3809_v2, %v3808_v8  ;;  %v4626_v8 = vld [vmem:[%s21675_s29 + $0xd6] sm:$0xff]  ;;  %v4627_v2 = vld [vmem:[%s21675_s29 + $0xde] sm:$0xff] }
 0x328   : > { %18381 = vmatmul.mubr.bf16.gmra.mrb[40].mxu0 %v3840_v13  ;;  %v3860_v13 = vpack.c.bf16 %v3811_v6, %v3810_v4  ;;  %v21233_v4 = vld [vmem:[%s24970_s1 + $0x1a8] sm:$0xff]  }
 0x329   : > { %18384 = vmatprep.mubr.bf16.mxu0 %v3841_v10  ;;  %v3861_v10 = vpack.c.bf16 %v3813_v11, %v3812_v7  ;;  %v4629_v6 = vld [vmem:[%s21675_s29 + $0xee] sm:$0xff]  ;;  %v4630_v7 = vld [vmem:[%s21675_s29 + $0xf6] sm:$0xff]  ;;  %v4631_v11 = vld [vmem:[%s21675_s29 + $0xfe] sm:$0xff] }
 0x330   : > { %18385 = vmatmul.mubr.bf16.gmra.mrb[44].mxu0 %v3842_v17  ;;  %v3862_v17 = vpack.c.bf16 %v3815_v14, %v3814_v12  ;;  %v21234_v14 = vld [vmem:[%s24970_s1 + $0x1b0] sm:$0xff]  }
 0x331   : > { %18388 = vmatprep.mubr.bf16.mxu0 %v3843_v18  ;;  %v3863_v18 = vpack.c.bf16 %v3817_v16, %v3816_v15  ;;  %v21235_v15 = vld [vmem:[%s24970_s1 + $0x1b8] sm:$0xff]   ;;  %v4633_v16 = vld [vmem:[%s21675_s29 + $0x10e] sm:$0xff] }
 0x338   : > { %18389 = vmatmul.mubr.bf16.gmra.mrb[48].mxu0 %v3844_v22  ;;  %v4694_v22 = vpack.c.bf16 %v4604_v20, %v4603_v5 }
 0x339   : > { %18392 = vmatprep.mubr.bf16.mxu0 %v3845_v24  ;;  %v4605_v24 = vld [vmem:[%s21675_s29 + $0x2e] sm:$0xff] }
 0x33a   : > { %v4695_v29 = vpack.c.bf16 %v4606_v25, %v4605_v24  ;;  %v4639_v24 = vld [vmem:[%s21675_s29 + $0x13e] sm:$0xff]  ;;  %v4640_v25 = vld [vmem:[%s21675_s29 + $0x146] sm:$0xff] }
 0x340   : > { %18393 = vmatmul.mubr.bf16.gmra.mrb[52].mxu0 %v3846_v31  ;;  %v4696_v31 = vpack.c.bf16 %v4608_v28, %v4607_v27  ;;  %v4712_v28 = vpack.c.bf16 %v4640_v25, %v4639_v24  ;;  %v4679_v24 = vld [vmem:[%s21675_s29 + $0x27e] sm:$0xff]  ;;  %v4680_v25 = vld [vmem:[%s21675_s29 + $0x286] sm:$0xff] }
 0x341   : > { %18396 = vmatprep.mubr.bf16.mxu0 %v3847_v57  ;;  %v21229_v57 = vld [vmem:[%s24970_s1 + $0x188] sm:$0xff]  }
 0x348   : > { %18397 = vmatmul.mubr.bf16.gmra.mrb[56].mxu0 %v3848_v35  ;;  %v21230_v35 = vld [vmem:[%s24970_s1 + $0x190] sm:$0xff]  }
 0x349   : > { %18400 = vmatprep.mubr.bf16.mxu0 %v3849_v36  ;;  %v4697_v36 = vpack.c.bf16 %v4610_v33, %v4609_v32  ;;  %v4644_v32 = vld [vmem:[%s21675_s29 + $0x166] sm:$0xff] }
 0x350   : > { %18401 = vmatmul.mubr.bf16.gmra.mrb[60].mxu0 %v3850_v41  ;;  %v4616_v41 = vld [vmem:[%s21675_s29 + $0x86] sm:$0xff] }
 0x351   : > { %18404 = vmatprep.mubr.bf16.mxu0 %v3851_v42  ;;  %v4700_v44 = vpack.c.bf16 %v4616_v41, %v4615_v40  ;;  %v4650_v40 = vld [vmem:[%s21675_s29 + $0x196] sm:$0xff]  ;;  %v4651_v41 = vld [vmem:[%s21675_s29 + $0x19e] sm:$0xff] }
 0x358   : > { %18405 = vmatmul.mubr.bf16.gmra.mrb[64].mxu0 %v3852_v47  ;;  %v4619_v47 = vld [vmem:[%s21675_s29 + $0x9e] sm:$0xff] }
 0x359   : > { %18408 = vmatprep.mubr.bf16.mxu0 %v3853_v48  ;;  %v4620_v48 = vld [vmem:[%s21675_s29 + $0xa6] sm:$0xff] }
 0x35a   : > { %v4702_v55 = vpack.c.bf16 %v4620_v48, %v4619_v47  ;;  %v4655_v47 = vld [vmem:[%s21675_s29 + $0x1be] sm:$0xff]  ;;  %v4656_v48 = vld [vmem:[%s21675_s29 + $0x1c6] sm:$0xff] }
 0x360   : > { %18409 = vmatmul.mubr.bf16.gmra.mrb[68].mxu0 %v3854_v53 }
 0x361   : > { %18412 = vmatprep.mubr.bf16.mxu0 %v3855_v54 }
 0x368   : > { %18413 = vmatmul.mubr.bf16.gmra.mrb[72].mxu0 %v3856_v61  ;;  %v4623_v61 = vld [vmem:[%s21675_s29 + $0xbe] sm:$0xff] }
 0x369   : > { %18416 = vmatprep.mubr.bf16.mxu0 %v3857_v62  ;;  %v4624_v62 = vld [vmem:[%s21675_s29 + $0xc6] sm:$0xff] }
 0x36a   : > { %v4704_v63 = vpack.c.bf16 %v4624_v62, %v4623_v61  ;;  %v4661_v61 = vld [vmem:[%s21675_s29 + $0x1ee] sm:$0xff]  ;;  %v4662_v62 = vld [vmem:[%s21675_s29 + $0x1f6] sm:$0xff] }
 0x370   : > { %18417 = vmatmul.mubr.bf16.gmra.mrb[76].mxu0 %v3858_v3  ;;  %v4628_v3 = vld [vmem:[%s21675_s29 + $0xe6] sm:$0xff] }
 0x371   : > { %18420 = vmatprep.mubr.bf16.mxu0 %v3859_v9  ;;  %v4706_v9 = vpack.c.bf16 %v4628_v3, %v4627_v2  ;;  %v22409_v2 = vld [vmem:[%s24970_s1 + $0x1c0] sm:$0xff]   ;;  %v4665_v3 = vld [vmem:[%s21675_s29 + $0x20e] sm:$0xff] }
 0x378   : > { %18421 = vmatmul.mubr.bf16.gmra.mrb[80].mxu0 %v3860_v13  ;;  %v4632_v13 = vld [vmem:[%s21675_s29 + $0x106] sm:$0xff] }
 0x379   : > { %18424 = vmatprep.mubr.bf16.mxu0 %v3861_v10  ;;  %v4707_v10 = vpack.c.bf16 %v4630_v7, %v4629_v6  ;;  %v4708_v12 = vpack.c.bf16 %v4632_v13, %v4631_v11  ;;  %v4669_v11 = vld [vmem:[%s21675_s29 + $0x22e] sm:$0xff]  ;;  %v4670_v13 = vld [vmem:[%s21675_s29 + $0x236] sm:$0xff] }
 0x380   : > { %18425 = vmatmul.mubr.bf16.gmra.mrb[84].mxu0 %v3862_v17  ;;  %v4634_v17 = vld [vmem:[%s21675_s29 + $0x116] sm:$0xff] }
 0x381   : > { %18428 = vmatprep.mubr.bf16.mxu0 %v3863_v18  ;;  %v4635_v18 = vld [vmem:[%s21675_s29 + $0x11e] sm:$0xff]  ;;  %v4709_v5 = vpack.c.bf16 %v4634_v17, %v4633_v16  ;;  %v4673_v16 = vld [vmem:[%s21675_s29 + $0x24e] sm:$0xff]  ;;  %v4674_v17 = vld [vmem:[%s21675_s29 + $0x256] sm:$0xff] }
 0x382   : > { %v4710_v20 = vpack.c.bf16 %v4636_v19, %v4635_v18  ;;  %v4675_v18 = vld [vmem:[%s21675_s29 + $0x25e] sm:$0xff]  ;;  %v4676_v19 = vld [vmem:[%s21675_s29 + $0x266] sm:$0xff] }
 0x388   : > { %18429 = vmatmul.mubr.bf16.gmra.mrb[100].mxu0 %v3864_v21  ;;  %v4637_v21 = vld [vmem:[%s21675_s29 + $0x12e] sm:$0xff] }
 0x389   : > { %18448 = vmatprep.mubr.bf16.mxu0 %v4694_v22  ;;  %v4638_v22 = vld [vmem:[%s21675_s29 + $0x136] sm:$0xff] }
 0x38a   : > { %v4711_v27 = vpack.c.bf16 %v4638_v22, %v4637_v21  ;;  %v4677_v21 = vld [vmem:[%s21675_s29 + $0x26e] sm:$0xff]  ;;  %v4678_v22 = vld [vmem:[%s21675_s29 + $0x276] sm:$0xff] }
 0x390   : > { %18449 = vmatmul.mubr.bf16.vlgmr.msra.gmra.mrb[0].mxu0 %v4695_v29  ;;  %v4641_v29 = vld [vmem:[%s21675_s29 + $0x14e] sm:$0xff] }
 0x391   : > { %18452 = vmatprep.mubr.bf16.mxu0 %v4696_v31  ;;  %18541 = vmatpush3.bf16.msra.mxu0 %v22281_v37  ;;  %v4613_v37 = vld [vmem:[%s21675_s29 + $0x6e] sm:$0xff]  ;;  %v4642_v31 = vld [vmem:[%s21675_s29 + $0x156] sm:$0xff] }
 0x392   : > { %18542 = vmatprep.subr.bf16.mxu0 %v21229_v57  ;;  %v4699_v42 = vpack.c.bf16 %v4614_v39, %v4613_v37  ;;  %v4713_v33 = vpack.c.bf16 %v4642_v31, %v4641_v29  ;;  %v4649_v39 = vld [vmem:[%s21675_s29 + $0x18e] sm:$0xff]  ;;  %v4682_v31 = vld [vmem:[%s21675_s29 + $0x296] sm:$0xff] }
 0x393   : > { %v4681_v29 = vld [vmem:[%s21675_s29 + $0x28e] sm:$0xff] }
 0x395   : > { %18543 = vmatpush3.bf16.msra.mxu0 %v21229_v57  ;;  %v4643_v57 = vld [vmem:[%s21675_s29 + $0x15e] sm:$0xff] }
 0x396   : > { %18544 = vmatprep.subr.bf16.mxu0 %v21230_v35  ;;  %v4714_v60 = vpack.c.bf16 %v4644_v32, %v4643_v57  ;;  %v4683_v57 = vld [vmem:[%s21675_s29 + $0x29e] sm:$0xff]  ;;  %v4684_v32 = vld [vmem:[%s21675_s29 + $0x2a6] sm:$0xff] }
 0x398   : > { %18453 = vmatmul.mubr.bf16.gmra.mrb[4].mxu0 %v4697_v36  ;;  %v4647_v36 = vld [vmem:[%s21675_s29 + $0x17e] sm:$0xff] }
 0x399   : > { %18456 = vmatprep.mubr.bf16.mxu0 %v4698_v38  ;;  %18545 = vmatpush3.bf16.msra.mxu0 %v21230_v35  ;;  %v4646_v35 = vld [vmem:[%s21675_s29 + $0x176] sm:$0xff]  ;;  %v4648_v38 = vld [vmem:[%s21675_s29 + $0x186] sm:$0xff] }
 0x39a   : > { %18546 = vmatprep.subr.bf16.mxu0 %v21231_v0  ;;  %v4716_v37 = vpack.c.bf16 %v4648_v38, %v4647_v36  ;;  %v4687_v36 = vld [vmem:[%s21675_s29 + $0x2be] sm:$0xff]  ;;  %v4688_v38 = vld [vmem:[%s21675_s29 + $0x2c6] sm:$0xff] }
 0x39d   : > { %18547 = vmatpush3.bf16.msra.mxu0 %v21231_v0  ;;  %v4715_v0 = vpack.c.bf16 %v4646_v35, %v4645_v34  ;;  %v4685_v34 = vld [vmem:[%s21675_s29 + $0x2ae] sm:$0xff]  ;;  %v4686_v35 = vld [vmem:[%s21675_s29 + $0x2b6] sm:$0xff] }
 0x39e   : > { %18548 = vmatprep.subr.bf16.mxu0 %v21232_v45 }
 0x3a0   : > { %18457 = vmatmul.mubr.bf16.gmra.mrb[8].mxu0 %v4699_v42  ;;  %v4652_v42 = vld [vmem:[%s21675_s29 + $0x1a6] sm:$0xff] }
 0x3a1   : > { %18460 = vmatprep.mubr.bf16.mxu0 %v4700_v44  ;;  %18549 = vmatpush3.bf16.msra.mxu0 %v21232_v45  ;;  %v4717_v44 = vpack.c.bf16 %v4650_v40, %v4649_v39  ;;  %v4718_v45 = vpack.c.bf16 %v4652_v42, %v4651_v41  ;;  %v4689_v39 = vld [vmem:[%s21675_s29 + $0x2ce] sm:$0xff]  ;;  %v4690_v40 = vld [vmem:[%s21675_s29 + $0x2d6] sm:$0xff]  ;;  %v4691_v41 = vld [vmem:[%s21675_s29 + $0x2de] sm:$0xff] }
 0x3a2   : > { %18550 = vmatprep.subr.bf16.mxu0 %v21233_v4  ;;  %v4692_v42 = vld [vmem:[%s21675_s29 + $0x2e6] sm:$0xff] }
 0x3a3   : > { %v18322_v49 = vpop.f32.mrb[96].mxu0 }
 0x3a4   : > { %v22345_v50 = vadd.f32 %v18322_v49, %v22217_v23  ;;  %v3441_v51 = vpop.f32.mrb[97].mxu0  ;;  %v4622_v23 = vld [vmem:[%s21675_s29 + $0xb6] sm:$0xff]  ;;  %v4719_v49 = vpack.c.bf16 %v4654_v46, %v4653_v43  ;;  %v4693_v43 = vld [vmem:[%s21675_s29 + $0x2ee] sm:$0xff] }
 0x3a5   : > { %v22348_v53 = vadd.f32 %v3441_v51, %v22220_v26  ;;  %v18323_v54 = vpop.f32.mrb[98].mxu0  ;;  %v4703_v26 = vpack.c.bf16 %v4622_v23, %v4621_v59  ;;  %18551 = vmatpush3.bf16.msra.mxu0 %v21233_v4  ;;  %v4720_v51 = vpack.c.bf16 %v4656_v48, %v4655_v47  ;;  %v4668_v4 = vld [vmem:[%s21675_s29 + $0x226] sm:$0xff]  ;;  %v5478_v46 = vld [vmem:[%s21675_s29 + $0x38] sm:$0xff]  ;;  %v4739_v48 = vpack.c.bf16 %v4693_v43, %v4693_v43 }
 0x3a6   : > { %v3444_v56 = vpop.f32.mrb[99].mxu0  ;;  %18552 = vmatprep.subr.bf16.mxu0 %v21234_v14  ;;  %v4658_v54 = vld [vmem:[%s21675_s29 + $0x1d6] sm:$0xff]  ;;  %v5479_v47 = vld [vmem:[%s21675_s29 + $0x40] sm:$0xff] }
 0x3a7   : > { %v22351_v58 = vadd.f32 %v3444_v56, %v22223_v30  ;;  %v4705_v30 = vpack.c.bf16 %v4626_v8, %v4625_v1  ;;  %v4660_v56 = vld [vmem:[%s21675_s29 + $0x1e6] sm:$0xff]  ;;  %v4723_v1 = vpack.c.bf16 %v4662_v62, %v4661_v61  ;;  %v5485_v62 = vld [vmem:[%s21675_s29 + $0x70] sm:$0xff] }
 0x3a8   : > { %18461 = vmatmul.mubr.bf16.gmra.mrb[12].mxu0 %v4701_v52  ;;  %v4657_v52 = vld [vmem:[%s21675_s29 + $0x1ce] sm:$0xff]  ;;  %v5511_v43 = vld [vmem:[%s21675_s29 + $0x140] sm:$0xff] }
 0x3a9   : > { %18464 = vmatprep.mubr.bf16.mxu0 %v4702_v55  ;;  %18553 = vmatpush3.bf16.msra.mxu0 %v21234_v14  ;;  %v4659_v55 = vld [vmem:[%s21675_s29 + $0x1de] sm:$0xff]  ;;  %v4721_v59 = vpack.c.bf16 %v4658_v54, %v4657_v52  ;;  %v4727_v14 = vpack.c.bf16 %v4670_v13, %v4669_v11  ;;  %v5481_v52 = vld [vmem:[%s21675_s29 + $0x50] sm:$0xff]  ;;  %v5484_v61 = vld [vmem:[%s21675_s29 + $0x68] sm:$0xff] }
 0x3aa   : > { %18554 = vmatprep.subr.bf16.mxu0 %v21235_v15  ;;  %v4722_v23 = vpack.c.bf16 %v4660_v56, %v4659_v55  ;;  %v5482_v54 = vld [vmem:[%s21675_s29 + $0x58] sm:$0xff]  ;;  %v5483_v55 = vld [vmem:[%s21675_s29 + $0x60] sm:$0xff] }
 0x3ab   : > { %v21240_v13 = vld [vmem:[%s24970_s1 + $0x1e0] sm:$0xff]  }
 0x3ad   : > { %18555 = vmatpush3.bf16.msra.mxu0 %v21235_v15 }
 0x3ae   : > { %18648 = vmatprep.subr.bf16.mxu0 %v22409_v2 }
 0x3b0   : > { %18465 = vmatmul.mubr.bf16.gmra.mrb[16].mxu0 %v4703_v26  ;;  %v4663_v26 = vld [vmem:[%s21675_s29 + $0x1fe] sm:$0xff] }
 0x3b1   : > { %18468 = vmatprep.mubr.bf16.mxu0 %v4704_v63  ;;  %v4664_v63 = vld [vmem:[%s21675_s29 + $0x206] sm:$0xff] }
 0x3b2   : > { %v4724_v8 = vpack.c.bf16 %v4664_v63, %v4663_v26  ;;  %v5486_v26 = vld [vmem:[%s21675_s29 + $0x78] sm:$0xff]  ;;  %v5487_v63 = vld [vmem:[%s21675_s29 + $0x80] sm:$0xff] }
 0x3b8   : > { %18469 = vmatmul.mubr.bf16.gmra.mrb[20].mxu0 %v4705_v30  ;;  %v4666_v30 = vld [vmem:[%s21675_s29 + $0x216] sm:$0xff] }
 0x3b9   : > { %18472 = vmatprep.mubr.bf16.mxu0 %v4706_v9  ;;  %v4667_v9 = vld [vmem:[%s21675_s29 + $0x21e] sm:$0xff]  ;;  %v4725_v6 = vpack.c.bf16 %v4666_v30, %v4665_v3  ;;  %v5573_v3 = vpack.c.bf16 %v5487_v63, %v5486_v26  ;;  %v5520_v63 = vld [vmem:[%s21675_s29 + $0x188] sm:$0xff] }
 0x3ba   : > { %v4726_v7 = vpack.c.bf16 %v4668_v4, %v4667_v9  ;;  %v21239_v30 = vld [vmem:[%s24970_s1 + $0x1d8] sm:$0xff]   ;;  %v5489_v9 = vld [vmem:[%s21675_s29 + $0x90] sm:$0xff] }
 0x3bb   : > { %v5490_v4 = vld [vmem:[%s21675_s29 + $0x98] sm:$0xff] }
 0x3c0   : > { %18473 = vmatmul.mubr.bf16.gmra.mrb[24].mxu0 %v4707_v10  ;;  %v4671_v10 = vld [vmem:[%s21675_s29 + $0x23e] sm:$0xff] }
 0x3c1   : > { %18476 = vmatprep.mubr.bf16.mxu0 %v4708_v12  ;;  %v4672_v12 = vld [vmem:[%s21675_s29 + $0x246] sm:$0xff] }
 0x3c2   : > { %v4728_v15 = vpack.c.bf16 %v4672_v12, %v4671_v10  ;;  %v5492_v10 = vld [vmem:[%s21675_s29 + $0xa8] sm:$0xff]  ;;  %v5493_v12 = vld [vmem:[%s21675_s29 + $0xb0] sm:$0xff] }
 0x3c8   : > { %18477 = vmatmul.mubr.bf16.gmra.mrb[28].mxu0 %v4709_v5  ;;  %v4729_v5 = vpack.c.bf16 %v4674_v17, %v4673_v16 }
 0x3c9   : > { %18480 = vmatprep.mubr.bf16.mxu0 %v4710_v20  ;;  %v4730_v20 = vpack.c.bf16 %v4676_v19, %v4675_v18  ;;  %v5576_v19 = vpack.c.bf16 %v5493_v12, %v5492_v10  ;;  %v5528_v10 = vld [vmem:[%s21675_s29 + $0x1c8] sm:$0xff]  ;;  %v5529_v12 = vld [vmem:[%s21675_s29 + $0x1d0] sm:$0xff] }
 0x3d0   : > { %18481 = vmatmul.mubr.bf16.gmra.mrb[32].mxu0 %v4711_v27  ;;  %v4731_v27 = vpack.c.bf16 %v4678_v22, %v4677_v21 }
 0x3d1   : > { %18484 = vmatprep.mubr.bf16.mxu0 %v4712_v28  ;;  %v4732_v28 = vpack.c.bf16 %v4680_v25, %v4679_v24  ;;  %v5496_v25 = vld [vmem:[%s21675_s29 + $0xc8] sm:$0xff] }
 0x3d8   : > { %18485 = vmatmul.mubr.bf16.gmra.mrb[36].mxu0 %v4713_v33  ;;  %v4733_v33 = vpack.c.bf16 %v4682_v31, %v4681_v29  ;;  %v5500_v31 = vld [vmem:[%s21675_s29 + $0xe8] sm:$0xff] }
 0x3d9   : > { %18488 = vmatprep.mubr.bf16.mxu0 %v4714_v60  ;;  %v4734_v60 = vpack.c.bf16 %v4684_v32, %v4683_v57  ;;  %v5501_v57 = vld [vmem:[%s21675_s29 + $0xf0] sm:$0xff]  ;;  %v5502_v32 = vld [vmem:[%s21675_s29 + $0xf8] sm:$0xff] }
 0x3e0   : > { %18489 = vmatmul.mubr.bf16.gmra.mrb[40].mxu0 %v4715_v0  ;;  %v4735_v0 = vpack.c.bf16 %v4686_v35, %v4685_v34  ;;  %v21241_v34 = vld [vmem:[%s24970_s1 + $0x1e8] sm:$0xff]  }
 0x3e1   : > { %18492 = vmatprep.mubr.bf16.mxu0 %v4716_v37  ;;  %v4736_v37 = vpack.c.bf16 %v4688_v38, %v4687_v36  ;;  %v5504_v35 = vld [vmem:[%s21675_s29 + $0x108] sm:$0xff]  ;;  %v5505_v36 = vld [vmem:[%s21675_s29 + $0x110] sm:$0xff]  ;;  %v5506_v38 = vld [vmem:[%s21675_s29 + $0x118] sm:$0xff] }
 0x3e8   : > { %18493 = vmatmul.mubr.bf16.gmra.mrb[44].mxu0 %v4717_v44  ;;  %v4737_v44 = vpack.c.bf16 %v4690_v40, %v4689_v39  ;;  %v21242_v40 = vld [vmem:[%s24970_s1 + $0x1f0] sm:$0xff]  }
 0x3e9   : > { %18496 = vmatprep.mubr.bf16.mxu0 %v4718_v45  ;;  %v4738_v45 = vpack.c.bf16 %v4692_v42, %v4691_v41  ;;  %v21243_v41 = vld [vmem:[%s24970_s1 + $0x1f8] sm:$0xff]   ;;  %v5508_v42 = vld [vmem:[%s21675_s29 + $0x128] sm:$0xff] }
 0x3f0   : > { %18497 = vmatmul.mubr.bf16.gmra.mrb[48].mxu0 %v4719_v49  ;;  %v5569_v49 = vpack.c.bf16 %v5479_v47, %v5478_v46 }
 0x3f1   : > { %18500 = vmatprep.mubr.bf16.mxu0 %v4720_v51  ;;  %v5480_v51 = vld [vmem:[%s21675_s29 + $0x48] sm:$0xff] }
 0x3f2   : > { %v5570_v56 = vpack.c.bf16 %v5481_v52, %v5480_v51  ;;  %v5514_v51 = vld [vmem:[%s21675_s29 + $0x158] sm:$0xff]  ;;  %v5515_v52 = vld [vmem:[%s21675_s29 + $0x160] sm:$0xff] }
 0x3f8   : > { %18501 = vmatmul.mubr.bf16.gmra.mrb[52].mxu0 %v4721_v59  ;;  %v5571_v59 = vpack.c.bf16 %v5483_v55, %v5482_v54  ;;  %v5587_v55 = vpack.c.bf16 %v5515_v52, %v5514_v51  ;;  %v5554_v51 = vld [vmem:[%s21675_s29 + $0x298] sm:$0xff]  ;;  %v5555_v52 = vld [vmem:[%s21675_s29 + $0x2a0] sm:$0xff] }
 0x3f9   : > { %18504 = vmatprep.mubr.bf16.mxu0 %v4722_v23  ;;  %v21237_v23 = vld [vmem:[%s24970_s1 + $0x1c8] sm:$0xff]  }
 0x400   : > { %18505 = vmatmul.mubr.bf16.gmra.mrb[56].mxu0 %v4723_v1  ;;  %v21238_v1 = vld [vmem:[%s24970_s1 + $0x1d0] sm:$0xff]  }
 0x401   : > { %18508 = vmatprep.mubr.bf16.mxu0 %v4724_v8  ;;  %v5572_v8 = vpack.c.bf16 %v5485_v62, %v5484_v61  ;;  %v5519_v61 = vld [vmem:[%s21675_s29 + $0x180] sm:$0xff] }
 0x408   : > { %18509 = vmatmul.mubr.bf16.gmra.mrb[60].mxu0 %v4725_v6  ;;  %v5491_v6 = vld [vmem:[%s21675_s29 + $0xa0] sm:$0xff] }
 0x409   : > { %18512 = vmatprep.mubr.bf16.mxu0 %v4726_v7  ;;  %v5575_v11 = vpack.c.bf16 %v5491_v6, %v5490_v4  ;;  %v5525_v4 = vld [vmem:[%s21675_s29 + $0x1b0] sm:$0xff]  ;;  %v5526_v6 = vld [vmem:[%s21675_s29 + $0x1b8] sm:$0xff] }
 0x410   : > { %18513 = vmatmul.mubr.bf16.gmra.mrb[64].mxu0 %v4727_v14  ;;  %v5494_v14 = vld [vmem:[%s21675_s29 + $0xb8] sm:$0xff] }
 0x411   : > { %18516 = vmatprep.mubr.bf16.mxu0 %v4728_v15  ;;  %v5495_v15 = vld [vmem:[%s21675_s29 + $0xc0] sm:$0xff] }
 0x412   : > { %v5577_v21 = vpack.c.bf16 %v5495_v15, %v5494_v14  ;;  %v5530_v14 = vld [vmem:[%s21675_s29 + $0x1d8] sm:$0xff]  ;;  %v5531_v15 = vld [vmem:[%s21675_s29 + $0x1e0] sm:$0xff] }
 0x418   : > { %18517 = vmatmul.mubr.bf16.gmra.mrb[68].mxu0 %v4729_v5 }
 0x419   : > { %18520 = vmatprep.mubr.bf16.mxu0 %v4730_v20 }
 0x420   : > { %18521 = vmatmul.mubr.bf16.gmra.mrb[72].mxu0 %v4731_v27  ;;  %v5498_v27 = vld [vmem:[%s21675_s29 + $0xd8] sm:$0xff] }
 0x421   : > { %18524 = vmatprep.mubr.bf16.mxu0 %v4732_v28  ;;  %v5499_v28 = vld [vmem:[%s21675_s29 + $0xe0] sm:$0xff] }
 0x422   : > { %v5579_v29 = vpack.c.bf16 %v5499_v28, %v5498_v27  ;;  %v5536_v27 = vld [vmem:[%s21675_s29 + $0x208] sm:$0xff]  ;;  %v5537_v28 = vld [vmem:[%s21675_s29 + $0x210] sm:$0xff] }
 0x428   : > { %18525 = vmatmul.mubr.bf16.gmra.mrb[76].mxu0 %v4733_v33  ;;  %v5503_v33 = vld [vmem:[%s21675_s29 + $0x100] sm:$0xff] }
 0x429   : > { %18528 = vmatprep.mubr.bf16.mxu0 %v4734_v60  ;;  %v5581_v60 = vpack.c.bf16 %v5503_v33, %v5502_v32  ;;  %v22537_v32 = vld [vmem:[%s24970_s1 + $0x200] sm:$0xff]   ;;  %v5540_v33 = vld [vmem:[%s21675_s29 + $0x228] sm:$0xff] }
 0x430   : > { %18529 = vmatmul.mubr.bf16.gmra.mrb[80].mxu0 %v4735_v0  ;;  %v5507_v0 = vld [vmem:[%s21675_s29 + $0x120] sm:$0xff] }
 0x431   : > { %18532 = vmatprep.mubr.bf16.mxu0 %v4736_v37  ;;  %v5582_v37 = vpack.c.bf16 %v5505_v36, %v5504_v35  ;;  %v5583_v39 = vpack.c.bf16 %v5507_v0, %v5506_v38  ;;  %v5544_v38 = vld [vmem:[%s21675_s29 + $0x248] sm:$0xff]  ;;  %v5545_v0 = vld [vmem:[%s21675_s29 + $0x250] sm:$0xff] }
 0x438   : > { %18533 = vmatmul.mubr.bf16.gmra.mrb[84].mxu0 %v4737_v44  ;;  %v5509_v44 = vld [vmem:[%s21675_s29 + $0x130] sm:$0xff] }
 0x439   : > { %18536 = vmatprep.mubr.bf16.mxu0 %v4738_v45  ;;  %v5510_v45 = vld [vmem:[%s21675_s29 + $0x138] sm:$0xff]  ;;  %v5584_v46 = vpack.c.bf16 %v5509_v44, %v5508_v42  ;;  %v5548_v42 = vld [vmem:[%s21675_s29 + $0x268] sm:$0xff]  ;;  %v5549_v44 = vld [vmem:[%s21675_s29 + $0x270] sm:$0xff] }
 0x43a   : > { %v5585_v47 = vpack.c.bf16 %v5511_v43, %v5510_v45  ;;  %v5550_v45 = vld [vmem:[%s21675_s29 + $0x278] sm:$0xff]  ;;  %v5551_v43 = vld [vmem:[%s21675_s29 + $0x280] sm:$0xff] }
 0x440   : > { %18537 = vmatmul.mubr.bf16.gmra.mrb[104].mxu0 %v4739_v48  ;;  %v5512_v48 = vld [vmem:[%s21675_s29 + $0x148] sm:$0xff] }
 0x441   : > { %18556 = vmatprep.mubr.bf16.mxu0 %v5569_v49  ;;  %v5513_v49 = vld [vmem:[%s21675_s29 + $0x150] sm:$0xff] }
 0x442   : > { %v5586_v54 = vpack.c.bf16 %v5513_v49, %v5512_v48  ;;  %v5552_v48 = vld [vmem:[%s21675_s29 + $0x288] sm:$0xff]  ;;  %v5553_v49 = vld [vmem:[%s21675_s29 + $0x290] sm:$0xff] }
 0x448   : > { %18557 = vmatmul.mubr.bf16.vlgmr.msra.gmra.mrb[0].mxu0 %v5570_v56  ;;  %v5516_v56 = vld [vmem:[%s21675_s29 + $0x168] sm:$0xff] }
 0x449   : > { %18560 = vmatprep.mubr.bf16.mxu0 %v5571_v59  ;;  %18649 = vmatpush3.bf16.msra.mxu0 %v22409_v2  ;;  %v5488_v2 = vld [vmem:[%s21675_s29 + $0x88] sm:$0xff]  ;;  %v5517_v59 = vld [vmem:[%s21675_s29 + $0x170] sm:$0xff] }
 0x44a   : > { %18650 = vmatprep.subr.bf16.mxu0 %v21237_v23  ;;  %v5574_v7 = vpack.c.bf16 %v5489_v9, %v5488_v2  ;;  %v5588_v62 = vpack.c.bf16 %v5517_v59, %v5516_v56  ;;  %v5524_v9 = vld [vmem:[%s21675_s29 + $0x1a8] sm:$0xff]  ;;  %v5557_v59 = vld [vmem:[%s21675_s29 + $0x2b0] sm:$0xff] }
 0x44b   : > { %v5556_v56 = vld [vmem:[%s21675_s29 + $0x2a8] sm:$0xff] }
 0x44d   : > { %18651 = vmatpush3.bf16.msra.mxu0 %v21237_v23  ;;  %v5518_v23 = vld [vmem:[%s21675_s29 + $0x178] sm:$0xff] }
 0x44e   : > { %18652 = vmatprep.subr.bf16.mxu0 %v21238_v1  ;;  %v5589_v26 = vpack.c.bf16 %v5519_v61, %v5518_v23  ;;  %v5558_v23 = vld [vmem:[%s21675_s29 + $0x2b8] sm:$0xff]  ;;  %v5559_v61 = vld [vmem:[%s21675_s29 + $0x2c0] sm:$0xff] }
 0x450   : > { %18561 = vmatmul.mubr.bf16.gmra.mrb[4].mxu0 %v5572_v8  ;;  %v5522_v8 = vld [vmem:[%s21675_s29 + $0x198] sm:$0xff] }
 0x451   : > { %18564 = vmatprep.mubr.bf16.mxu0 %v5573_v3  ;;  %18653 = vmatpush3.bf16.msra.mxu0 %v21238_v1  ;;  %v5521_v1 = vld [vmem:[%s21675_s29 + $0x190] sm:$0xff]  ;;  %v5523_v3 = vld [vmem:[%s21675_s29 + $0x1a0] sm:$0xff] }
 0x452   : > { %18654 = vmatprep.subr.bf16.mxu0 %v21239_v30  ;;  %v5591_v2 = vpack.c.bf16 %v5523_v3, %v5522_v8  ;;  %v5562_v8 = vld [vmem:[%s21675_s29 + $0x2d8] sm:$0xff]  ;;  %v5563_v3 = vld [vmem:[%s21675_s29 + $0x2e0] sm:$0xff] }
 0x455   : > { %18655 = vmatpush3.bf16.msra.mxu0 %v21239_v30  ;;  %v5590_v30 = vpack.c.bf16 %v5521_v1, %v5520_v63  ;;  %v5560_v63 = vld [vmem:[%s21675_s29 + $0x2c8] sm:$0xff]  ;;  %v5561_v1 = vld [vmem:[%s21675_s29 + $0x2d0] sm:$0xff] }
 0x456   : > { %18656 = vmatprep.subr.bf16.mxu0 %v21240_v13 }
 0x458   : > { %18565 = vmatmul.mubr.bf16.gmra.mrb[8].mxu0 %v5574_v7  ;;  %v5527_v7 = vld [vmem:[%s21675_s29 + $0x1c0] sm:$0xff] }
 0x459   : > { %18568 = vmatprep.mubr.bf16.mxu0 %v5575_v11  ;;  %18657 = vmatpush3.bf16.msra.mxu0 %v21240_v13  ;;  %v5592_v11 = vpack.c.bf16 %v5525_v4, %v5524_v9  ;;  %v5593_v13 = vpack.c.bf16 %v5527_v7, %v5526_v6  ;;  %v5564_v9 = vld [vmem:[%s21675_s29 + $0x2e8] sm:$0xff]  ;;  %v5565_v4 = vld [vmem:[%s21675_s29 + $0x2f0] sm:$0xff]  ;;  %v5566_v6 = vld [vmem:[%s21675_s29 + $0x2f8] sm:$0xff] }
 0x45a   : > { %18658 = vmatprep.subr.bf16.mxu0 %v21241_v34  ;;  %v5567_v7 = vld [vmem:[%s21675_s29 + $0x300] sm:$0xff] }
 0x45b   : > { %v18430_v16 = vpop.f32.mrb[100].mxu0 }
 0x45c   : > { %v22473_v17 = vadd.f32 %v18430_v16, %v22345_v50  ;;  %v4316_v18 = vpop.f32.mrb[101].mxu0  ;;  %v5497_v50 = vld [vmem:[%s21675_s29 + $0xd0] sm:$0xff]  ;;  %v5594_v16 = vpack.c.bf16 %v5529_v12, %v5528_v10  ;;  %v5568_v10 = vld [vmem:[%s21675_s29 + $0x308] sm:$0xff]  ;;  %v6353_v12 = vld [vmem:[%s21675_s29 + $0x39] sm:$0xff] }
 0x45d   : > { %v22476_v5 = vadd.f32 %v4316_v18, %v22348_v53  ;;  %v18431_v20 = vpop.f32.mrb[102].mxu0  ;;  %v5578_v53 = vpack.c.bf16 %v5497_v50, %v5496_v25  ;;  %18659 = vmatpush3.bf16.msra.mxu0 %v21241_v34  ;;  %v5595_v18 = vpack.c.bf16 %v5531_v15, %v5530_v14  ;;  %v5543_v34 = vld [vmem:[%s21675_s29 + $0x240] sm:$0xff]  ;;  %v5614_v15 = vpack.c.bf16 %v5568_v10, %v5568_v10 }
 0x45e   : > { %v4319_v22 = vpop.f32.mrb[103].mxu0  ;;  %18660 = vmatprep.subr.bf16.mxu0 %v21242_v40  ;;  %v5533_v20 = vld [vmem:[%s21675_s29 + $0x1f0] sm:$0xff]  ;;  %v6354_v14 = vld [vmem:[%s21675_s29 + $0x41] sm:$0xff] }
 0x45f   : > { %v22479_v24 = vadd.f32 %v4319_v22, %v22351_v58  ;;  %v5580_v58 = vpack.c.bf16 %v5501_v57, %v5500_v31  ;;  %v5535_v22 = vld [vmem:[%s21675_s29 + $0x200] sm:$0xff]  ;;  %v5598_v31 = vpack.c.bf16 %v5537_v28, %v5536_v27  ;;  %v6359_v27 = vld [vmem:[%s21675_s29 + $0x69] sm:$0xff]  ;;  %v6360_v28 = vld [vmem:[%s21675_s29 + $0x71] sm:$0xff] }
 0x460   : > { %18569 = vmatmul.mubr.bf16.gmra.mrb[12].mxu0 %v5576_v19  ;;  %v5532_v19 = vld [vmem:[%s21675_s29 + $0x1e8] sm:$0xff] }
 0x461   : > { %18572 = vmatprep.mubr.bf16.mxu0 %v5577_v21  ;;  %18661 = vmatpush3.bf16.msra.mxu0 %v21242_v40  ;;  %v5534_v21 = vld [vmem:[%s21675_s29 + $0x1f8] sm:$0xff]  ;;  %v5596_v25 = vpack.c.bf16 %v5533_v20, %v5532_v19  ;;  %v5602_v40 = vpack.c.bf16 %v5545_v0, %v5544_v38  ;;  %v21248_v0 = vld [vmem:[%s24970_s1 + $0x220] sm:$0xff]  }
 0x462   : > { %18662 = vmatprep.subr.bf16.mxu0 %v21243_v41  ;;  %v5597_v50 = vpack.c.bf16 %v5535_v22, %v5534_v21  ;;  %v6356_v19 = vld [vmem:[%s21675_s29 + $0x51] sm:$0xff]  ;;  %v6357_v20 = vld [vmem:[%s21675_s29 + $0x59] sm:$0xff]  ;;  %v6358_v21 = vld [vmem:[%s21675_s29 + $0x61] sm:$0xff] }
 0x463   : > { %v6386_v10 = vld [vmem:[%s21675_s29 + $0x141] sm:$0xff] }
 0x465   : > { %18663 = vmatpush3.bf16.msra.mxu0 %v21243_v41 }
 0x466   : > { %18756 = vmatprep.subr.bf16.mxu0 %v22537_v32 }
 0x468   : > { %18573 = vmatmul.mubr.bf16.gmra.mrb[16].mxu0 %v5578_v53  ;;  %v5538_v53 = vld [vmem:[%s21675_s29 + $0x218] sm:$0xff] }
 0x469   : > { %18576 = vmatprep.mubr.bf16.mxu0 %v5579_v29  ;;  %v5539_v29 = vld [vmem:[%s21675_s29 + $0x220] sm:$0xff] }
 0x46a   : > { %v5599_v57 = vpack.c.bf16 %v5539_v29, %v5538_v53  ;;  %v6361_v53 = vld [vmem:[%s21675_s29 + $0x79] sm:$0xff]  ;;  %v6362_v29 = vld [vmem:[%s21675_s29 + $0x81] sm:$0xff] }
 0x470   : > { %18577 = vmatmul.mubr.bf16.gmra.mrb[20].mxu0 %v5580_v58  ;;  %v5541_v58 = vld [vmem:[%s21675_s29 + $0x230] sm:$0xff] }
 0x471   : > { %18580 = vmatprep.mubr.bf16.mxu0 %v5581_v60  ;;  %v5542_v60 = vld [vmem:[%s21675_s29 + $0x238] sm:$0xff]  ;;  %v5600_v35 = vpack.c.bf16 %v5541_v58, %v5540_v33  ;;  %v6448_v33 = vpack.c.bf16 %v6362_v29, %v6361_v53  ;;  %v6395_v29 = vld [vmem:[%s21675_s29 + $0x189] sm:$0xff] }
 0x472   : > { %v5601_v36 = vpack.c.bf16 %v5543_v34, %v5542_v60  ;;  %v21247_v58 = vld [vmem:[%s24970_s1 + $0x218] sm:$0xff]  }
 0x473   : > { %v6364_v60 = vld [vmem:[%s21675_s29 + $0x91] sm:$0xff]  ;;  %v6365_v34 = vld [vmem:[%s21675_s29 + $0x99] sm:$0xff] }
 0x478   : > { %18581 = vmatmul.mubr.bf16.gmra.mrb[24].mxu0 %v5582_v37  ;;  %v5546_v37 = vld [vmem:[%s21675_s29 + $0x258] sm:$0xff] }
 0x479   : > { %18584 = vmatprep.mubr.bf16.mxu0 %v5583_v39  ;;  %v5547_v39 = vld [vmem:[%s21675_s29 + $0x260] sm:$0xff] }
 0x47a   : > { %v5603_v41 = vpack.c.bf16 %v5547_v39, %v5546_v37  ;;  %v6367_v37 = vld [vmem:[%s21675_s29 + $0xa9] sm:$0xff]  ;;  %v6368_v39 = vld [vmem:[%s21675_s29 + $0xb1] sm:$0xff] }
 0x480   : > { %18585 = vmatmul.mubr.bf16.gmra.mrb[28].mxu0 %v5584_v46  ;;  %v5604_v46 = vpack.c.bf16 %v5549_v44, %v5548_v42 }
 0x481   : > { %18588 = vmatprep.mubr.bf16.mxu0 %v5585_v47  ;;  %v5605_v47 = vpack.c.bf16 %v5551_v43, %v5550_v45  ;;  %v6451_v43 = vpack.c.bf16 %v6368_v39, %v6367_v37  ;;  %v6403_v37 = vld [vmem:[%s21675_s29 + $0x1c9] sm:$0xff]  ;;  %v6404_v39 = vld [vmem:[%s21675_s29 + $0x1d1] sm:$0xff] }
 0x488   : > { %18589 = vmatmul.mubr.bf16.gmra.mrb[32].mxu0 %v5586_v54  ;;  %v5606_v54 = vpack.c.bf16 %v5553_v49, %v5552_v48 }
 0x489   : > { %18592 = vmatprep.mubr.bf16.mxu0 %v5587_v55  ;;  %v5607_v55 = vpack.c.bf16 %v5555_v52, %v5554_v51  ;;  %v6371_v52 = vld [vmem:[%s21675_s29 + $0xc9] sm:$0xff] }
 0x490   : > { %18593 = vmatmul.mubr.bf16.gmra.mrb[36].mxu0 %v5588_v62  ;;  %v5608_v62 = vpack.c.bf16 %v5557_v59, %v5556_v56  ;;  %v6375_v59 = vld [vmem:[%s21675_s29 + $0xe9] sm:$0xff] }
 0x491   : > { %18596 = vmatprep.mubr.bf16.mxu0 %v5589_v26  ;;  %v5609_v26 = vpack.c.bf16 %v5559_v61, %v5558_v23  ;;  %v6376_v23 = vld [vmem:[%s21675_s29 + $0xf1] sm:$0xff]  ;;  %v6377_v61 = vld [vmem:[%s21675_s29 + $0xf9] sm:$0xff] }
 0x498   : > { %18597 = vmatmul.mubr.bf16.gmra.mrb[40].mxu0 %v5590_v30  ;;  %v5610_v30 = vpack.c.bf16 %v5561_v1, %v5560_v63  ;;  %v21249_v63 = vld [vmem:[%s24970_s1 + $0x228] sm:$0xff]  }
 0x499   : > { %18600 = vmatprep.mubr.bf16.mxu0 %v5591_v2  ;;  %v5611_v2 = vpack.c.bf16 %v5563_v3, %v5562_v8  ;;  %v6379_v1 = vld [vmem:[%s21675_s29 + $0x109] sm:$0xff]  ;;  %v6380_v8 = vld [vmem:[%s21675_s29 + $0x111] sm:$0xff]  ;;  %v6381_v3 = vld [vmem:[%s21675_s29 + $0x119] sm:$0xff] }
 0x4a0   : > { %18601 = vmatmul.mubr.bf16.gmra.mrb[44].mxu0 %v5592_v11  ;;  %v5612_v11 = vpack.c.bf16 %v5565_v4, %v5564_v9  ;;  %v21250_v4 = vld [vmem:[%s24970_s1 + $0x230] sm:$0xff]  }
 0x4a1   : > { %18604 = vmatprep.mubr.bf16.mxu0 %v5593_v13  ;;  %v5613_v13 = vpack.c.bf16 %v5567_v7, %v5566_v6  ;;  %v21251_v6 = vld [vmem:[%s24970_s1 + $0x238] sm:$0xff]   ;;  %v6383_v7 = vld [vmem:[%s21675_s29 + $0x129] sm:$0xff] }
 0x4a8   : > { %18605 = vmatmul.mubr.bf16.gmra.mrb[48].mxu0 %v5594_v16  ;;  %v6444_v16 = vpack.c.bf16 %v6354_v14, %v6353_v12 }
 0x4a9   : > { %18608 = vmatprep.mubr.bf16.mxu0 %v5595_v18  ;;  %v6355_v18 = vld [vmem:[%s21675_s29 + $0x49] sm:$0xff] }
 0x4aa   : > { %v6445_v22 = vpack.c.bf16 %v6356_v19, %v6355_v18  ;;  %v6389_v18 = vld [vmem:[%s21675_s29 + $0x159] sm:$0xff]  ;;  %v6390_v19 = vld [vmem:[%s21675_s29 + $0x161] sm:$0xff] }
 0x4b0   : > { %18609 = vmatmul.mubr.bf16.gmra.mrb[52].mxu0 %v5596_v25  ;;  %v6446_v25 = vpack.c.bf16 %v6358_v21, %v6357_v20  ;;  %v6462_v21 = vpack.c.bf16 %v6390_v19, %v6389_v18  ;;  %v6430_v18 = vld [vmem:[%s21675_s29 + $0x2a1] sm:$0xff] }
 0x4b1   : > { %18612 = vmatprep.mubr.bf16.mxu0 %v5597_v50  ;;  %v21245_v50 = vld [vmem:[%s24970_s1 + $0x208] sm:$0xff]  }
 0x4b8   : > { %18613 = vmatmul.mubr.bf16.gmra.mrb[56].mxu0 %v5598_v31  ;;  %v21246_v31 = vld [vmem:[%s24970_s1 + $0x210] sm:$0xff]  }
 0x4b9   : > { %18616 = vmatprep.mubr.bf16.mxu0 %v5599_v57  ;;  %v6447_v57 = vpack.c.bf16 %v6360_v28, %v6359_v27  ;;  %v6394_v27 = vld [vmem:[%s21675_s29 + $0x181] sm:$0xff] }
 0x4c0   : > { %18617 = vmatmul.mubr.bf16.gmra.mrb[60].mxu0 %v5600_v35  ;;  %v6366_v35 = vld [vmem:[%s21675_s29 + $0xa1] sm:$0xff] }
 0x4c1   : > { %18620 = vmatprep.mubr.bf16.mxu0 %v5601_v36  ;;  %v6450_v38 = vpack.c.bf16 %v6366_v35, %v6365_v34  ;;  %v6400_v34 = vld [vmem:[%s21675_s29 + $0x1b1] sm:$0xff]  ;;  %v6401_v35 = vld [vmem:[%s21675_s29 + $0x1b9] sm:$0xff] }
 0x4c8   : > { %18621 = vmatmul.mubr.bf16.gmra.mrb[64].mxu0 %v5602_v40  ;;  %v6369_v40 = vld [vmem:[%s21675_s29 + $0xb9] sm:$0xff] }
 0x4c9   : > { %18624 = vmatprep.mubr.bf16.mxu0 %v5603_v41  ;;  %v6370_v41 = vld [vmem:[%s21675_s29 + $0xc1] sm:$0xff] }
 0x4ca   : > { %v6452_v48 = vpack.c.bf16 %v6370_v41, %v6369_v40  ;;  %v6405_v40 = vld [vmem:[%s21675_s29 + $0x1d9] sm:$0xff]  ;;  %v6406_v41 = vld [vmem:[%s21675_s29 + $0x1e1] sm:$0xff] }
 0x4d0   : > { %18625 = vmatmul.mubr.bf16.gmra.mrb[68].mxu0 %v5604_v46 }
 0x4d1   : > { %18628 = vmatprep.mubr.bf16.mxu0 %v5605_v47 }
 0x4d8   : > { %18629 = vmatmul.mubr.bf16.gmra.mrb[72].mxu0 %v5606_v54  ;;  %v6373_v54 = vld [vmem:[%s21675_s29 + $0xd9] sm:$0xff] }
 0x4d9   : > { %18632 = vmatprep.mubr.bf16.mxu0 %v5607_v55  ;;  %v6374_v55 = vld [vmem:[%s21675_s29 + $0xe1] sm:$0xff] }
 0x4da   : > { %v6454_v56 = vpack.c.bf16 %v6374_v55, %v6373_v54  ;;  %v6411_v54 = vld [vmem:[%s21675_s29 + $0x209] sm:$0xff]  ;;  %v6412_v55 = vld [vmem:[%s21675_s29 + $0x211] sm:$0xff] }
 0x4e0   : > { %18633 = vmatmul.mubr.bf16.gmra.mrb[76].mxu0 %v5608_v62  ;;  %v6378_v62 = vld [vmem:[%s21675_s29 + $0x101] sm:$0xff] }
 0x4e1   : > { %18636 = vmatprep.mubr.bf16.mxu0 %v5609_v26  ;;  %v6456_v26 = vpack.c.bf16 %v6378_v62, %v6377_v61  ;;  %v6415_v61 = vld [vmem:[%s21675_s29 + $0x229] sm:$0xff]  ;;  %v6416_v62 = vld [vmem:[%s21675_s29 + $0x231] sm:$0xff] }
 0x4e8   : > { %18637 = vmatmul.mubr.bf16.gmra.mrb[80].mxu0 %v5610_v30  ;;  %v6382_v30 = vld [vmem:[%s21675_s29 + $0x121] sm:$0xff] }
 0x4e9   : > { %18640 = vmatprep.mubr.bf16.mxu0 %v5611_v2  ;;  %v6457_v2 = vpack.c.bf16 %v6380_v8, %v6379_v1  ;;  %v6458_v9 = vpack.c.bf16 %v6382_v30, %v6381_v3  ;;  %v6419_v8 = vld [vmem:[%s21675_s29 + $0x249] sm:$0xff]  ;;  %v6420_v3 = vld [vmem:[%s21675_s29 + $0x251] sm:$0xff]  ;;  %v6421_v30 = vld [vmem:[%s21675_s29 + $0x259] sm:$0xff] }
 0x4f0   : > { %18641 = vmatmul.mubr.bf16.gmra.mrb[84].mxu0 %v5612_v11  ;;  %v6384_v11 = vld [vmem:[%s21675_s29 + $0x131] sm:$0xff] }
 0x4f1   : > { %18644 = vmatprep.mubr.bf16.mxu0 %v5613_v13  ;;  %v6385_v13 = vld [vmem:[%s21675_s29 + $0x139] sm:$0xff]  ;;  %v6459_v12 = vpack.c.bf16 %v6384_v11, %v6383_v7  ;;  %v6424_v7 = vld [vmem:[%s21675_s29 + $0x271] sm:$0xff] }
 0x4f2   : > { %v6460_v14 = vpack.c.bf16 %v6386_v10, %v6385_v13  ;;  %v6425_v11 = vld [vmem:[%s21675_s29 + $0x279] sm:$0xff]  ;;  %v6426_v13 = vld [vmem:[%s21675_s29 + $0x281] sm:$0xff] }
 0x4f8   : > { %18645 = vmatmul.mubr.bf16.gmra.mrb[108].mxu0 %v5614_v15  ;;  %v6387_v15 = vld [vmem:[%s21675_s29 + $0x149] sm:$0xff] }
 0x4f9   : > { %18664 = vmatprep.mubr.bf16.mxu0 %v6444_v16  ;;  %v6388_v16 = vld [vmem:[%s21675_s29 + $0x151] sm:$0xff] }
 0x4fa   : > { %v6461_v20 = vpack.c.bf16 %v6388_v16, %v6387_v15  ;;  %v6428_v15 = vld [vmem:[%s21675_s29 + $0x291] sm:$0xff]  ;;  %v6429_v16 = vld [vmem:[%s21675_s29 + $0x299] sm:$0xff] }
 0x500   : > { %18665 = vmatmul.mubr.bf16.vlgmr.msra.gmra.mrb[0].mxu0 %v6445_v22  ;;  %v6391_v22 = vld [vmem:[%s21675_s29 + $0x169] sm:$0xff] }
 0x501   : > { %18668 = vmatprep.mubr.bf16.mxu0 %v6446_v25  ;;  %18757 = vmatpush3.bf16.msra.mxu0 %v22537_v32  ;;  %v6363_v32 = vld [vmem:[%s21675_s29 + $0x89] sm:$0xff]  ;;  %v6392_v25 = vld [vmem:[%s21675_s29 + $0x171] sm:$0xff] }
 0x502   : > { %18758 = vmatprep.subr.bf16.mxu0 %v21245_v50  ;;  %v6449_v36 = vpack.c.bf16 %v6364_v60, %v6363_v32  ;;  %v6463_v28 = vpack.c.bf16 %v6392_v25, %v6391_v22  ;;  %v6399_v60 = vld [vmem:[%s21675_s29 + $0x1a9] sm:$0xff]  ;;  %v6432_v22 = vld [vmem:[%s21675_s29 + $0x2b1] sm:$0xff]  ;;  %v6433_v25 = vld [vmem:[%s21675_s29 + $0x2b9] sm:$0xff] }
 0x505   : > { %18759 = vmatpush3.bf16.msra.mxu0 %v21245_v50  ;;  %v6393_v50 = vld [vmem:[%s21675_s29 + $0x179] sm:$0xff] }
 0x506   : > { %18760 = vmatprep.subr.bf16.mxu0 %v21246_v31  ;;  %v6464_v53 = vpack.c.bf16 %v6394_v27, %v6393_v50  ;;  %v6434_v50 = vld [vmem:[%s21675_s29 + $0x2c1] sm:$0xff] }
 0x508   : > { %18669 = vmatmul.mubr.bf16.gmra.mrb[4].mxu0 %v6447_v57  ;;  %v6397_v57 = vld [vmem:[%s21675_s29 + $0x199] sm:$0xff] }
 0x509   : > { %18672 = vmatprep.mubr.bf16.mxu0 %v6448_v33  ;;  %18761 = vmatpush3.bf16.msra.mxu0 %v21246_v31  ;;  %v6396_v31 = vld [vmem:[%s21675_s29 + $0x191] sm:$0xff]  ;;  %v6398_v33 = vld [vmem:[%s21675_s29 + $0x1a1] sm:$0xff] }
 0x50a   : > { %18762 = vmatprep.subr.bf16.mxu0 %v21247_v58  ;;  %v6466_v32 = vpack.c.bf16 %v6398_v33, %v6397_v57  ;;  %v6438_v57 = vld [vmem:[%s21675_s29 + $0x2e1] sm:$0xff] }
 0x50d   : > { %18763 = vmatpush3.bf16.msra.mxu0 %v21247_v58  ;;  %v6465_v58 = vpack.c.bf16 %v6396_v31, %v6395_v29  ;;  %v6436_v29 = vld [vmem:[%s21675_s29 + $0x2d1] sm:$0xff]  ;;  %v6437_v31 = vld [vmem:[%s21675_s29 + $0x2d9] sm:$0xff] }
 0x50e   : > { %18764 = vmatprep.subr.bf16.mxu0 %v21248_v0 }
 0x510   : > { %18673 = vmatmul.mubr.bf16.gmra.mrb[8].mxu0 %v6449_v36  ;;  %v6402_v36 = vld [vmem:[%s21675_s29 + $0x1c1] sm:$0xff] }
 0x511   : > { %18676 = vmatprep.mubr.bf16.mxu0 %v6450_v38  ;;  %18765 = vmatpush3.bf16.msra.mxu0 %v21248_v0  ;;  %v6467_v38 = vpack.c.bf16 %v6400_v34, %v6399_v60  ;;  %v6468_v0 = vpack.c.bf16 %v6402_v36, %v6401_v35  ;;  %v6440_v60 = vld [vmem:[%s21675_s29 + $0x2f1] sm:$0xff]  ;;  %v6441_v34 = vld [vmem:[%s21675_s29 + $0x2f9] sm:$0xff]  ;;  %v6442_v35 = vld [vmem:[%s21675_s29 + $0x301] sm:$0xff] }
 0x512   : > { %18766 = vmatprep.subr.bf16.mxu0 %v21249_v63 }
 0x513   : > { %v18538_v42 = vpop.f32.mrb[104].mxu0 }
 0x514   : > { %v22601_v44 = vadd.f32 %v18538_v42, %v22473_v17  ;;  %v5191_v45 = vpop.f32.mrb[105].mxu0  ;;  %v6372_v17 = vld [vmem:[%s21675_s29 + $0xd1] sm:$0xff]  ;;  %v6469_v42 = vpack.c.bf16 %v6404_v39, %v6403_v37  ;;  %v7228_v37 = vld [vmem:[%s21675_s29 + $0x3a] sm:$0xff]  ;;  %v7229_v39 = vld [vmem:[%s21675_s29 + $0x42] sm:$0xff] }
 0x515   : > { %v22604_v46 = vadd.f32 %v5191_v45, %v22476_v5  ;;  %v18539_v47 = vpop.f32.mrb[106].mxu0  ;;  %v6453_v5 = vpack.c.bf16 %v6372_v17, %v6371_v52  ;;  %18767 = vmatpush3.bf16.msra.mxu0 %v21249_v63  ;;  %v6470_v45 = vpack.c.bf16 %v6406_v41, %v6405_v40  ;;  %v6475_v63 = vpack.c.bf16 %v6416_v62, %v6415_v61  ;;  %v7240_v61 = vld [vmem:[%s21675_s29 + $0x9a] sm:$0xff]  ;;  %v7241_v62 = vld [vmem:[%s21675_s29 + $0xa2] sm:$0xff] }
 0x516   : > { %v5194_v49 = vpop.f32.mrb[107].mxu0  ;;  %18768 = vmatprep.subr.bf16.mxu0 %v21250_v4  ;;  %v6408_v47 = vld [vmem:[%s21675_s29 + $0x1f1] sm:$0xff]  ;;  %v7319_v41 = vpack.c.bf16 %v7229_v39, %v7228_v37 }
 0x517   : > { %v22607_v51 = vadd.f32 %v5194_v49, %v22479_v24  ;;  %v6455_v24 = vpack.c.bf16 %v6376_v23, %v6375_v59  ;;  %v6410_v49 = vld [vmem:[%s21675_s29 + $0x201] sm:$0xff]  ;;  %v6473_v59 = vpack.c.bf16 %v6412_v55, %v6411_v54  ;;  %v7266_v39 = vld [vmem:[%s21675_s29 + $0x16a] sm:$0xff] }
 0x518   : > { %18677 = vmatmul.mubr.bf16.gmra.mrb[12].mxu0 %v6451_v43  ;;  %v6407_v43 = vld [vmem:[%s21675_s29 + $0x1e9] sm:$0xff]  ;;  %v7236_v54 = vld [vmem:[%s21675_s29 + $0x7a] sm:$0xff] }
 0x519   : > { %18680 = vmatprep.mubr.bf16.mxu0 %v6452_v48  ;;  %18769 = vmatpush3.bf16.msra.mxu0 %v21250_v4  ;;  %v6409_v48 = vld [vmem:[%s21675_s29 + $0x1f9] sm:$0xff]  ;;  %v6471_v52 = vpack.c.bf16 %v6408_v47, %v6407_v43  ;;  %v7233_v47 = vld [vmem:[%s21675_s29 + $0x62] sm:$0xff] }
 0x51a   : > { %18770 = vmatprep.subr.bf16.mxu0 %v21251_v6  ;;  %v6472_v17 = vpack.c.bf16 %v6410_v49, %v6409_v48  ;;  %v7232_v43 = vld [vmem:[%s21675_s29 + $0x5a] sm:$0xff]  ;;  %v7237_v55 = vld [vmem:[%s21675_s29 + $0x82] sm:$0xff] }
 0x51b   : > { %v7321_v49 = vpack.c.bf16 %v7233_v47, %v7232_v43  ;;  %v7270_v47 = vld [vmem:[%s21675_s29 + $0x18a] sm:$0xff] }
 0x51d   : > { %18771 = vmatpush3.bf16.msra.mxu0 %v21251_v6  ;;  %v6423_v6 = vld [vmem:[%s21675_s29 + $0x269] sm:$0xff] }
 0x51e   : > { %v6479_v10 = vpack.c.bf16 %v6424_v7, %v6423_v6 }
 0x520   : > { %18681 = vmatmul.mubr.bf16.gmra.mrb[16].mxu0 %v6453_v5  ;;  %v6413_v5 = vld [vmem:[%s21675_s29 + $0x219] sm:$0xff] }
 0x521   : > { %18684 = vmatprep.mubr.bf16.mxu0 %v6454_v56  ;;  %v6414_v56 = vld [vmem:[%s21675_s29 + $0x221] sm:$0xff] }
 0x522   : > { %v6474_v23 = vpack.c.bf16 %v6414_v56, %v6413_v5  ;;  %v7323_v56 = vpack.c.bf16 %v7237_v55, %v7236_v54  ;;  %v7274_v55 = vld [vmem:[%s21675_s29 + $0x1aa] sm:$0xff] }
 0x528   : > { %18685 = vmatmul.mubr.bf16.gmra.mrb[20].mxu0 %v6455_v24  ;;  %v6417_v24 = vld [vmem:[%s21675_s29 + $0x239] sm:$0xff] }
 0x529   : > { %18688 = vmatprep.mubr.bf16.mxu0 %v6456_v26  ;;  %v6418_v26 = vld [vmem:[%s21675_s29 + $0x241] sm:$0xff] }
 0x52a   : > { %v6476_v1 = vpack.c.bf16 %v6418_v26, %v6417_v24  ;;  %v7325_v26 = vpack.c.bf16 %v7241_v62, %v7240_v61  ;;  %v7278_v62 = vld [vmem:[%s21675_s29 + $0x1ca] sm:$0xff] }
 0x530   : > { %18689 = vmatmul.mubr.bf16.gmra.mrb[24].mxu0 %v6457_v2  ;;  %v6422_v2 = vld [vmem:[%s21675_s29 + $0x261] sm:$0xff] }
 0x531   : > { %18692 = vmatprep.mubr.bf16.mxu0 %v6458_v9  ;;  %v6477_v9 = vpack.c.bf16 %v6420_v3, %v6419_v8  ;;  %v6478_v4 = vpack.c.bf16 %v6422_v2, %v6421_v30  ;;  %v7244_v8 = vld [vmem:[%s21675_s29 + $0xba] sm:$0xff]  ;;  %v7245_v3 = vld [vmem:[%s21675_s29 + $0xc2] sm:$0xff] }
 0x538   : > { %18693 = vmatmul.mubr.bf16.gmra.mrb[28].mxu0 %v6459_v12  ;;  %v6480_v12 = vpack.c.bf16 %v6426_v13, %v6425_v11  ;;  %v7327_v11 = vpack.c.bf16 %v7245_v3, %v7244_v8  ;;  %v7282_v3 = vld [vmem:[%s21675_s29 + $0x1ea] sm:$0xff] }
 0x539   : > { %18696 = vmatprep.mubr.bf16.mxu0 %v6460_v14  ;;  %v6427_v14 = vld [vmem:[%s21675_s29 + $0x289] sm:$0xff] }
 0x53a   : > { %v6481_v19 = vpack.c.bf16 %v6428_v15, %v6427_v14  ;;  %v7248_v14 = vld [vmem:[%s21675_s29 + $0xda] sm:$0xff]  ;;  %v7249_v15 = vld [vmem:[%s21675_s29 + $0xe2] sm:$0xff] }
 0x540   : > { %18697 = vmatmul.mubr.bf16.gmra.mrb[32].mxu0 %v6461_v20  ;;  %v6482_v20 = vpack.c.bf16 %v6430_v18, %v6429_v16  ;;  %v7329_v16 = vpack.c.bf16 %v7249_v15, %v7248_v14  ;;  %v7250_v18 = vld [vmem:[%s21675_s29 + $0xea] sm:$0xff]  ;;  %v7289_v14 = vld [vmem:[%s21675_s29 + $0x222] sm:$0xff] }
 0x541   : > { %18700 = vmatprep.mubr.bf16.mxu0 %v6462_v21  ;;  %v6431_v21 = vld [vmem:[%s21675_s29 + $0x2a9] sm:$0xff] }
 0x542   : > { %v6483_v27 = vpack.c.bf16 %v6432_v22, %v6431_v21 }
 0x548   : > { %18701 = vmatmul.mubr.bf16.gmra.mrb[36].mxu0 %v6463_v28  ;;  %v6484_v28 = vpack.c.bf16 %v6434_v50, %v6433_v25  ;;  %v7254_v25 = vld [vmem:[%s21675_s29 + $0x10a] sm:$0xff]  ;;  %v7255_v50 = vld [vmem:[%s21675_s29 + $0x112] sm:$0xff] }
 0x549   : > { %18704 = vmatprep.mubr.bf16.mxu0 %v6464_v53  ;;  %v6435_v53 = vld [vmem:[%s21675_s29 + $0x2c9] sm:$0xff] }
 0x54a   : > { %v6485_v33 = vpack.c.bf16 %v6436_v29, %v6435_v53  ;;  %v7332_v53 = vpack.c.bf16 %v7255_v50, %v7254_v25 }
 0x550   : > { %18705 = vmatmul.mubr.bf16.gmra.mrb[40].mxu0 %v6465_v58  ;;  %v6486_v58 = vpack.c.bf16 %v6438_v57, %v6437_v31  ;;  %v7258_v31 = vld [vmem:[%s21675_s29 + $0x12a] sm:$0xff]  ;;  %v7259_v57 = vld [vmem:[%s21675_s29 + $0x132] sm:$0xff] }
 0x551   : > { %18708 = vmatprep.mubr.bf16.mxu0 %v6466_v32  ;;  %v6439_v32 = vld [vmem:[%s21675_s29 + $0x2e9] sm:$0xff] }
 0x552   : > { %v6487_v36 = vpack.c.bf16 %v6440_v60, %v6439_v32  ;;  %v7334_v32 = vpack.c.bf16 %v7259_v57, %v7258_v31  ;;  %v7295_v31 = vld [vmem:[%s21675_s29 + $0x252] sm:$0xff]  ;;  %v7296_v57 = vld [vmem:[%s21675_s29 + $0x25a] sm:$0xff] }
 0x558   : > { %18709 = vmatmul.mubr.bf16.gmra.mrb[44].mxu0 %v6467_v38  ;;  %v6488_v38 = vpack.c.bf16 %v6442_v35, %v6441_v34  ;;  %v7262_v34 = vld [vmem:[%s21675_s29 + $0x14a] sm:$0xff]  ;;  %v7263_v35 = vld [vmem:[%s21675_s29 + $0x152] sm:$0xff] }
 0x559   : > { %18712 = vmatprep.mubr.bf16.mxu0 %v6468_v0  ;;  %v6443_v0 = vld [vmem:[%s21675_s29 + $0x309] sm:$0xff] }
 0x55a   : > { %v6489_v40 = vpack.c.bf16 %v6443_v0, %v6443_v0  ;;  %v7336_v0 = vpack.c.bf16 %v7263_v35, %v7262_v34  ;;  %v7299_v34 = vld [vmem:[%s21675_s29 + $0x272] sm:$0xff]  ;;  %v7300_v35 = vld [vmem:[%s21675_s29 + $0x27a] sm:$0xff] }
 0x560   : > { %18713 = vmatmul.mubr.bf16.gmra.mrb[48].mxu0 %v6469_v42  ;;  %v7230_v42 = vld [vmem:[%s21675_s29 + $0x4a] sm:$0xff] }
 0x561   : > { %18716 = vmatprep.mubr.bf16.mxu0 %v6470_v45  ;;  %v7231_v45 = vld [vmem:[%s21675_s29 + $0x52] sm:$0xff] }
 0x562   : > { %v7320_v48 = vpack.c.bf16 %v7231_v45, %v7230_v42  ;;  %v7269_v42 = vld [vmem:[%s21675_s29 + $0x182] sm:$0xff] }
 0x568   : > { %18717 = vmatmul.mubr.bf16.gmra.mrb[52].mxu0 %v6471_v52  ;;  %v7234_v52 = vld [vmem:[%s21675_s29 + $0x6a] sm:$0xff] }
 0x569   : > { %18720 = vmatprep.mubr.bf16.mxu0 %v6472_v17  ;;  %v7235_v17 = vld [vmem:[%s21675_s29 + $0x72] sm:$0xff] }
 0x56a   : > { %v7322_v5 = vpack.c.bf16 %v7235_v17, %v7234_v52  ;;  %v7273_v52 = vld [vmem:[%s21675_s29 + $0x1a2] sm:$0xff] }
 0x570   : > { %18721 = vmatmul.mubr.bf16.gmra.mrb[56].mxu0 %v6473_v59  ;;  %v7238_v59 = vld [vmem:[%s21675_s29 + $0x8a] sm:$0xff] }
 0x571   : > { %18724 = vmatprep.mubr.bf16.mxu0 %v6474_v23  ;;  %v7239_v23 = vld [vmem:[%s21675_s29 + $0x92] sm:$0xff] }
 0x572   : > { %v7324_v24 = vpack.c.bf16 %v7239_v23, %v7238_v59  ;;  %v7277_v59 = vld [vmem:[%s21675_s29 + $0x1c2] sm:$0xff] }
 0x578   : > { %18725 = vmatmul.mubr.bf16.gmra.mrb[60].mxu0 %v6475_v63  ;;  %v7242_v63 = vld [vmem:[%s21675_s29 + $0xaa] sm:$0xff] }
 0x579   : > { %18728 = vmatprep.mubr.bf16.mxu0 %v6476_v1  ;;  %v7243_v1 = vld [vmem:[%s21675_s29 + $0xb2] sm:$0xff] }
 0x580   : > { %18729 = vmatmul.mubr.bf16.gmra.mrb[64].mxu0 %v6477_v9 }
 0x581   : > { %18732 = vmatprep.mubr.bf16.mxu0 %v6478_v4  ;;  %v7326_v4 = vpack.c.bf16 %v7243_v1, %v7242_v63  ;;  %v7281_v63 = vld [vmem:[%s21675_s29 + $0x1e2] sm:$0xff] }
 0x588   : > { %18733 = vmatmul.mubr.bf16.gmra.mrb[68].mxu0 %v6479_v10 }
 0x589   : > { %18736 = vmatprep.mubr.bf16.mxu0 %v6480_v12  ;;  %v7246_v12 = vld [vmem:[%s21675_s29 + $0xca] sm:$0xff] }
 0x590   : > { %18737 = vmatmul.mubr.bf16.gmra.mrb[72].mxu0 %v6481_v19  ;;  %v7251_v19 = vld [vmem:[%s21675_s29 + $0xf2] sm:$0xff] }
 0x591   : > { %18740 = vmatprep.mubr.bf16.mxu0 %v6482_v20  ;;  %v7253_v20 = vld [vmem:[%s21675_s29 + $0x102] sm:$0xff]  ;;  %v7330_v21 = vpack.c.bf16 %v7251_v19, %v7250_v18  ;;  %v7290_v19 = vld [vmem:[%s21675_s29 + $0x22a] sm:$0xff] }
 0x598   : > { %18741 = vmatmul.mubr.bf16.gmra.mrb[76].mxu0 %v6483_v27  ;;  %v7256_v27 = vld [vmem:[%s21675_s29 + $0x11a] sm:$0xff] }
 0x599   : > { %18744 = vmatprep.mubr.bf16.mxu0 %v6484_v28  ;;  %v7257_v28 = vld [vmem:[%s21675_s29 + $0x122] sm:$0xff] }
 0x59a   : > { %v7333_v29 = vpack.c.bf16 %v7257_v28, %v7256_v27  ;;  %v21548_v28 = vmov 0.0  }
 0x59b   : > { %386 = vst [vmem:[#allocation3 + $0x8] sm:$0xff] %v21548_v28  ;;  %387 = vst [vmem:[#allocation3 + $0x10] sm:$0xff] %v21548_v28 }
 0x59c   : > { %388 = vst [vmem:[#allocation3 + $0x18] sm:$0xff] %v21548_v28  ;;  %389 = vst [vmem:[#allocation3 + $0x20] sm:$0xff] %v21548_v28 }
 0x59d   : > { %390 = vst [vmem:[#allocation3 + $0x28] sm:$0xff] %v21548_v28  ;;  %391 = vst [vmem:[#allocation3 + $0x30] sm:$0xff] %v21548_v28 }
 0x59e   : > { %392 = vst [vmem:[#allocation3 + $0x38] sm:$0xff] %v21548_v28  ;;  %393 = vst [vmem:[#allocation3 + $0x40] sm:$0xff] %v21548_v28 }
 0x59f   : > { %394 = vst [vmem:[#allocation3 + $0x48] sm:$0xff] %v21548_v28  ;;  %395 = vst [vmem:[#allocation3 + $0x50] sm:$0xff] %v21548_v28 }
 0x5a0   : > { %18745 = vmatmul.mubr.bf16.gmra.mrb[80].mxu0 %v6485_v33  ;;  %v7260_v33 = vld [vmem:[%s21675_s29 + $0x13a] sm:$0xff]  ;;  %396 = vst [vmem:[#allocation3 + $0x58] sm:$0xff] %v21548_v28  ;;  %397 = vst [vmem:[#allocation3 + $0x60] sm:$0xff] %v21548_v28 }
 0x5a1   : > { %18748 = vmatprep.mubr.bf16.mxu0 %v6486_v58  ;;  %v7261_v58 = vld [vmem:[%s21675_s29 + $0x142] sm:$0xff]  ;;  %399 = vst [vmem:[#allocation3 + $0x70] sm:$0xff] %v21548_v28  ;;  %400 = vst [vmem:[#allocation3 + $0x78] sm:$0xff] %v21548_v28 }
 0x5a2   : > { %v7335_v60 = vpack.c.bf16 %v7261_v58, %v7260_v33  ;;  %401 = vst [vmem:[#allocation3 + $0x80] sm:$0xff] %v21548_v28  ;;  %402 = vst [vmem:[#allocation3 + $0x88] sm:$0xff] %v21548_v28  ;;  %v7297_v33 = vld [vmem:[%s21675_s29 + $0x262] sm:$0xff] }
 0x5a3   : > { %403 = vst [vmem:[#allocation3 + $0x90] sm:$0xff] %v21548_v28  ;;  %404 = vst [vmem:[#allocation3 + $0x98] sm:$0xff] %v21548_v28 }
 0x5a4   : > { %405 = vst [vmem:[#allocation3 + $0xa0] sm:$0xff] %v21548_v28  ;;  %406 = vst [vmem:[#allocation3 + $0xa8] sm:$0xff] %v21548_v28 }
 0x5a5   : > { %407 = vst [vmem:[#allocation4] sm:$0xff] %v21548_v28  ;;  %408 = vst [vmem:[#allocation4 + $0x8] sm:$0xff] %v21548_v28 }
 0x5a6   : > { %409 = vst [vmem:[#allocation4 + $0x10] sm:$0xff] %v21548_v28  ;;  %410 = vst [vmem:[#allocation4 + $0x18] sm:$0xff] %v21548_v28 }
 0x5a8   : > { %18749 = vmatmul.mubr.bf16.gmra.mrb[84].mxu0 %v6487_v36  ;;  %v7264_v36 = vld [vmem:[%s21675_s29 + $0x15a] sm:$0xff] }
 0x5a9   : > { %18752 = vmatprep.mubr.bf16.mxu0 %v6488_v38  ;;  %v7265_v38 = vld [vmem:[%s21675_s29 + $0x162] sm:$0xff] }
 0x5aa   : > { %v7337_v37 = vpack.c.bf16 %v7265_v38, %v7264_v36  ;;  %v7301_v36 = vld [vmem:[%s21675_s29 + $0x282] sm:$0xff] }
 0x5b0   : > { %18753 = vmatmul.mubr.bf16.gmra.mrb[112].mxu0 %v6489_v40  ;;  %v7267_v40 = vld [vmem:[%s21675_s29 + $0x172] sm:$0xff] }
 0x5b1   : > { %18772 = vmatprep.mubr.bf16.mxu0 %v7319_v41  ;;  %v7268_v41 = vld [vmem:[%s21675_s29 + $0x17a] sm:$0xff]  ;;  %v7338_v45 = vpack.c.bf16 %v7267_v40, %v7266_v39  ;;  %v7303_v39 = vld [vmem:[%s21675_s29 + $0x292] sm:$0xff] }
 0x5b2   : > { %v7339_v43 = vpack.c.bf16 %v7269_v42, %v7268_v41  ;;  %v7304_v40 = vld [vmem:[%s21675_s29 + $0x29a] sm:$0xff]  ;;  %v7305_v41 = vld [vmem:[%s21675_s29 + $0x2a2] sm:$0xff] }
 0x5b8   : > { %18773 = vmatmul.mubr.bf16.vlgmr.msra.gmra.mrb[0].mxu0 %v7320_v48  ;;  %v7271_v48 = vld [vmem:[%s21675_s29 + $0x192] sm:$0xff] }
 0x5b9   : > { %18776 = vmatprep.mubr.bf16.mxu0 %v7321_v49  ;;  %v7272_v49 = vld [vmem:[%s21675_s29 + $0x19a] sm:$0xff]  ;;  %v7340_v17 = vpack.c.bf16 %v7271_v48, %v7270_v47  ;;  %v7307_v47 = vld [vmem:[%s21675_s29 + $0x2b2] sm:$0xff] }
 0x5ba   : > { %v7341_v54 = vpack.c.bf16 %v7273_v52, %v7272_v49  ;;  %v7308_v48 = vld [vmem:[%s21675_s29 + $0x2ba] sm:$0xff]  ;;  %v7309_v49 = vld [vmem:[%s21675_s29 + $0x2c2] sm:$0xff] }
 0x5c0   : > { %18777 = vmatmul.mubr.bf16.gmra.mrb[4].mxu0 %v7322_v5  ;;  %v7275_v5 = vld [vmem:[%s21675_s29 + $0x1b2] sm:$0xff] }
 0x5c1   : > { %18780 = vmatprep.mubr.bf16.mxu0 %v7323_v56  ;;  %v7276_v56 = vld [vmem:[%s21675_s29 + $0x1ba] sm:$0xff]  ;;  %v7342_v23 = vpack.c.bf16 %v7275_v5, %v7274_v55  ;;  %v7311_v55 = vld [vmem:[%s21675_s29 + $0x2d2] sm:$0xff] }
 0x5c2   : > { %v7343_v61 = vpack.c.bf16 %v7277_v59, %v7276_v56  ;;  %v7312_v5 = vld [vmem:[%s21675_s29 + $0x2da] sm:$0xff]  ;;  %v7313_v56 = vld [vmem:[%s21675_s29 + $0x2e2] sm:$0xff] }
 0x5c8   : > { %18781 = vmatmul.mubr.bf16.gmra.mrb[8].mxu0 %v7324_v24  ;;  %v7279_v24 = vld [vmem:[%s21675_s29 + $0x1d2] sm:$0xff] }
 0x5c9   : > { %18784 = vmatprep.mubr.bf16.mxu0 %v7325_v26  ;;  %v7280_v26 = vld [vmem:[%s21675_s29 + $0x1da] sm:$0xff]  ;;  %v7344_v1 = vpack.c.bf16 %v7279_v24, %v7278_v62  ;;  %v7315_v62 = vld [vmem:[%s21675_s29 + $0x2f2] sm:$0xff] }
 0x5ca   : > { %v7345_v8 = vpack.c.bf16 %v7281_v63, %v7280_v26  ;;  %v7316_v24 = vld [vmem:[%s21675_s29 + $0x2fa] sm:$0xff]  ;;  %v7317_v26 = vld [vmem:[%s21675_s29 + $0x302] sm:$0xff] }
 0x5cb   : > { %v18646_v30 = vpop.f32.mrb[108].mxu0 }
 0x5cc   : > { %v22710_v2 = vadd.f32 %v18646_v30, %v22601_v44  ;;  %v6066_v9 = vpop.f32.mrb[109].mxu0  ;;  %v7247_v44 = vld [vmem:[%s21675_s29 + $0xd2] sm:$0xff] }
 0x5cd   : > { %v22713_v6 = vadd.f32 %v6066_v9, %v22604_v46  ;;  %v18647_v7 = vpop.f32.mrb[110].mxu0  ;;  %v7328_v46 = vpack.c.bf16 %v7247_v44, %v7246_v12  ;;  %v7283_v30 = vld [vmem:[%s21675_s29 + $0x1f2] sm:$0xff]  ;;  %v7284_v9 = vld [vmem:[%s21675_s29 + $0x1fa] sm:$0xff] }
 0x5ce   : > { %v6069_v13 = vpop.f32.mrb[111].mxu0  ;;  %v7346_v7 = vpack.c.bf16 %v7283_v30, %v7282_v3  ;;  %v7287_v12 = vld [vmem:[%s21675_s29 + $0x212] sm:$0xff]  ;;  %v7288_v44 = vld [vmem:[%s21675_s29 + $0x21a] sm:$0xff] }
 0x5cf   : > { %v22716_v10 = vadd.f32 %v6069_v13, %v22607_v51  ;;  %v7252_v51 = vld [vmem:[%s21675_s29 + $0xfa] sm:$0xff]  ;;  %v7286_v13 = vld [vmem:[%s21675_s29 + $0x20a] sm:$0xff] }
 0x5d0   : > { %18785 = vmatmul.mubr.bf16.gmra.mrb[12].mxu0 %v7326_v4  ;;  %v7331_v22 = vpack.c.bf16 %v7253_v20, %v7252_v51  ;;  %v7285_v4 = vld [vmem:[%s21675_s29 + $0x202] sm:$0xff]  ;;  %v7348_v15 = vpack.c.bf16 %v7287_v12, %v7286_v13  ;;  %v7291_v51 = vld [vmem:[%s21675_s29 + $0x232] sm:$0xff]  ;;  %v7292_v20 = vld [vmem:[%s21675_s29 + $0x23a] sm:$0xff] }
 0x5d1   : > { %18788 = vmatprep.mubr.bf16.mxu0 %v7327_v11  ;;  %v7347_v11 = vpack.c.bf16 %v7285_v4, %v7284_v9  ;;  %v7350_v50 = vpack.c.bf16 %v7291_v51, %v7290_v19 }
 0x5d8   : > { %18789 = vmatmul.mubr.bf16.gmra.mrb[16].mxu0 %v7328_v46  ;;  %v7349_v46 = vpack.c.bf16 %v7289_v14, %v7288_v44 }
 0x5d9   : > { %18792 = vmatprep.mubr.bf16.mxu0 %v7329_v16  ;;  %v8474_v16 = vlaneseq }
 0x5db   : > { %v22762_v18 = vshrl.u32 %v8474_v16, 7 }
 0x5dd   : > { %v8479_v25 = vmul.u32 2, %v22762_v18 }
 0x5e0   : > { %18793 = vmatmul.mubr.bf16.gmra.mrb[20].mxu0 %v7330_v21  ;;  %v7293_v21 = vld [vmem:[%s21675_s29 + $0x242] sm:$0xff] }
 0x5e1   : > { %18796 = vmatprep.mubr.bf16.mxu0 %v7331_v22  ;;  %v22768_v22 = vand.u32 127, %v8474_v16  ;;  %v7351_v27 = vpack.c.bf16 %v7293_v21, %v7292_v20 }
 0x5e3   : > { %vm8481_vm0 = vcmp.eq.s32.totalorder %v22768_v22, %v8479_v25  ;;  %vm15891_vm12 = vcmp.lt.s32.totalorder %v22768_v22, 10 }
 0x5e8   : > { %18797 = vmatmul.mubr.bf16.gmra.mrb[24].mxu0 %v7332_v53  ;;  %v22775_v53 = vsel %vm8481_vm0, 1.0, %v21548_v28 }
 0x5e9   : > { %18800 = vmatprep.mubr.bf16.mxu0 %v7333_v29  ;;  %18872 = vmatprep.mubr.msk.f32.mxu1 %vm8507_vm1, %v22775_v53  ;;  %v7294_v29 = vld [vmem:[%s21675_s29 + $0x24a] sm:$0xff] }
 0x5ea   : > { %v7352_v58 = vpack.c.bf16 %v7295_v31, %v7294_v29 }
 0x5f0   : > { %18801 = vmatmul.mubr.bf16.gmra.mrb[28].mxu0 %v7334_v32  ;;  %v7353_v32 = vpack.c.bf16 %v7297_v33, %v7296_v57 }
 0x5f1   : > { %18804 = vmatprep.mubr.bf16.mxu0 %v7335_v60  ;;  %v7298_v60 = vld [vmem:[%s21675_s29 + $0x26a] sm:$0xff] }
 0x5f2   : > { %v7354_v38 = vpack.c.bf16 %v7299_v34, %v7298_v60 }
 0x5f8   : > { %18805 = vmatmul.mubr.bf16.gmra.mrb[32].mxu0 %v7336_v0  ;;  %v7355_v0 = vpack.c.bf16 %v7301_v36, %v7300_v35 }
 0x5f9   : > { %18808 = vmatprep.mubr.bf16.mxu0 %v7337_v37  ;;  %v7302_v37 = vld [vmem:[%s21675_s29 + $0x28a] sm:$0xff] }
 0x5fa   : > { %v7356_v42 = vpack.c.bf16 %v7303_v39, %v7302_v37 }
 0x600   : > { %18809 = vmatmul.mubr.bf16.gmra.mrb[36].mxu0 %v7338_v45  ;;  %v7357_v45 = vpack.c.bf16 %v7305_v41, %v7304_v40 }
 0x601   : > { %18812 = vmatprep.mubr.bf16.mxu0 %v7339_v43  ;;  %v7306_v43 = vld [vmem:[%s21675_s29 + $0x2aa] sm:$0xff] }
 0x602   : > { %v7358_v52 = vpack.c.bf16 %v7307_v47, %v7306_v43  ;;  %v8478_v43 = vadd.s32 8, %v22762_v18 }
 0x608   : > { %18813 = vmatmul.mubr.bf16.gmra.mrb[40].mxu0 %v7340_v17  ;;  %v7359_v17 = vpack.c.bf16 %v7309_v49, %v7308_v48 }
 0x609   : > { %18816 = vmatprep.mubr.bf16.mxu0 %v7341_v54  ;;  %v7310_v54 = vld [vmem:[%s21675_s29 + $0x2ca] sm:$0xff] }
 0x60a   : > { %v7360_v59 = vpack.c.bf16 %v7311_v55, %v7310_v54 }
 0x610   : > { %18817 = vmatmul.mubr.bf16.gmra.mrb[44].mxu0 %v7342_v23  ;;  %v7361_v23 = vpack.c.bf16 %v7313_v56, %v7312_v5 }
 0x611   : > { %18820 = vmatprep.mubr.bf16.mxu0 %v7343_v61  ;;  %v7314_v61 = vld [vmem:[%s21675_s29 + $0x2ea] sm:$0xff] }
 0x612   : > { %v7362_v63 = vpack.c.bf16 %v7315_v62, %v7314_v61 }
 0x618   : > { %18821 = vmatmul.mubr.bf16.gmra.mrb[48].mxu0 %v7344_v1  ;;  %v7363_v1 = vpack.c.bf16 %v7317_v26, %v7316_v24  ;;  %v8480_v24 = vmul.u32 2, %v8478_v43 }
 0x619   : > { %18824 = vmatprep.mubr.bf16.mxu0 %v7345_v8  ;;  %v7318_v8 = vld [vmem:[%s21675_s29 + $0x30a] sm:$0xff]  ;;  %s378_s29 = scalar_lea.vmem [#allocation5], %s377_s14 }
 0x61a   : > { %v7364_v3 = vpack.c.bf16 %v7318_v8, %v7318_v8  ;;  %vm8482_vm5 = vcmp.eq.s32.totalorder %v22768_v22, %v8480_v24  ;;  %s15920_s16 = sshll.u32 %s378_s29, 4  ;;  %s24929_s16 = int_to_ptr.vmem [resolvable:$true] %s15920_s16 }
 0x61b   : > { %s21484_s12 = scalar_lea.vmem %s24929_s16, 16  ;;  %p21491_p0 = scmp.lt.s32.totalorder %s24929_s16, %s21489_s13 }
 0x61c   : > { %p21485_p11 = scmp.ne.s32.totalorder %s24929_s16, %s21484_s12  ;;  %p21492_p1 = scmp.lt.s32.totalorder %s21490_s0, %s21484_s12 }
 0x61e   : > { %p21486_p12 = pnand %p21485_p11, %p21651_p5  ;;  %p21493_p2 = por %p21492_p1, %p21491_p0 }
 0x620   : > { %18825 = vmatmul.mubr.bf16.gmra.mrb[52].mxu0 %v7346_v7  ;;  %p21487_p13 = pneg %p21486_p12 }
 0x621   : > { %18828 = vmatprep.mubr.bf16.mxu0 %v7347_v11 }
 0x622   : > { %p21494_p3 = pnand %p21493_p2, %p21487_p13 }
 0x628   : > { %18829 = vmatmul.mubr.bf16.gmra.mrb[56].mxu0 %v7348_v15  ;;  %v22834_v15 = vld [vmem:[%s24971_s2] ss:$0 sm:$0xff] }
 0x629   : > { %18832 = vmatprep.mubr.bf16.mxu0 %v7349_v46 }
 0x630   : > { %18833 = vmatmul.mubr.bf16.gmra.mrb[60].mxu0 %v7350_v50 }
 0x631   : > { %18836 = vmatprep.mubr.bf16.mxu0 %v7351_v27 }
 0x638   : > { %18837 = vmatmul.mubr.bf16.gmra.mrb[64].mxu0 %v7352_v58 }
 0x639   : > { %18840 = vmatprep.mubr.bf16.mxu0 %v7353_v32 }
 0x640   : > { %18841 = vmatmul.mubr.bf16.gmra.mrb[68].mxu0 %v7354_v38 }
 0x641   : > { %18844 = vmatprep.mubr.bf16.mxu0 %v7355_v0 }
 0x648   : > { %18845 = vmatmul.mubr.bf16.gmra.mrb[72].mxu0 %v7356_v42 }
 0x649   : > { %18848 = vmatprep.mubr.bf16.mxu0 %v7357_v45 }
 0x650   : > { %18849 = vmatmul.mubr.bf16.gmra.mrb[76].mxu0 %v7358_v52 }
 0x651   : > { %18852 = vmatprep.mubr.bf16.mxu0 %v7359_v17 }
 0x658   : > { %18853 = vmatmul.mubr.bf16.gmra.mrb[80].mxu0 %v7360_v59 }
 0x659   : > { %18856 = vmatprep.mubr.bf16.mxu0 %v7361_v23 }
 0x660   : > { %18857 = vmatmul.mubr.bf16.gmra.mrb[84].mxu0 %v7362_v63  ;;  %v21254_v63 = vld [vmem:[%s24972_s3 + $0x10] sm:$0xff]  }
 0x661   : > { %18860 = vmatprep.mubr.bf16.mxu0 %v7363_v1  ;;  %v8487_v1 = vadd.s32 1, %v8479_v25 }
 0x663   : > { %vm8489_vm6 = vcmp.eq.s32.totalorder %v22768_v22, %v8487_v1 }
 0x668   : > { %18861 = vmatmul.mubr.bf16.gmra.mrb[116].mxu0 %v7364_v3 }
 0x683   : > { %v18754_v30 = vpop.f32.mrb[112].mxu0 }
 0x684   : > { %v7136_v9 = vadd.f32 %v18754_v30, %v22710_v2  ;;  %v6941_v4 = vpop.f32.mrb[113].mxu0 }
 0x685   : > { %v7134_v7 = vadd.f32 %v6941_v4, %v22713_v6  ;;  %v18755_v11 = vpop.f32.mrb[114].mxu0 }
 0x686   : > { %7227 = vst [vmem:[#allocation2 + $0x2d0] sm:$0xff] %v7136_v9  ;;  %v6944_v13 = vpop.f32.mrb[115].mxu0 }
 0x687   : > { %7225 = vst [vmem:[#allocation2 + $0x2c0] sm:$0xff] %v7134_v7  ;;  %v7135_v12 = vadd.f32 %v6944_v13, %v22716_v10  ;;  %v22869_v13 = vsel %vm8482_vm5, 1.0, %v21548_v28 }
 0x689   : > { %7226 = vst [vmem:[#allocation2 + $0x2c8] sm:$0xff] %v7135_v12  ;;  %v8488_v12 = vadd.s32 1, %v8480_v24 }
 0x68b   : > { %v18774_v44 = vpop.f32.mrb[0].mxu0  ;;  %vm8490_vm7 = vcmp.eq.s32.totalorder %v22768_v22, %v8488_v12 }
 0x68c   : > { %v7464_v14 = vpop.f32.mrb[1].mxu0  ;;  %v8203_v60 = vadd.f32 %v18774_v44, %v22834_v15 }
 0x68d   : > { %v18775_v46 = vpop.f32.mrb[2].mxu0  ;;  %v8201_v34 = vadd.f32 %v22834_v15, %v7464_v14 }
 0x68e   : > { %v8204_v2 = vadd.f32 %v18775_v46, %v22834_v15  ;;  %v7467_v16 = vpop.f32.mrb[3].mxu0  ;;  %v8294_v41 = vmax.f32 %v8203_v60, 0.0  ;;  %v22873_v46 = vsel %vm8489_vm6, 1.0, %v21548_v28 }
 0x68f   : > { %v8202_v35 = vadd.f32 %v22834_v15, %v7467_v16  ;;  %v8292_v42 = vmax.f32 %v8201_v34, 0.0 }
 0x690   : > { %v8295_v19 = vmax.f32 %v8204_v2, 0.0 }
 0x691   : > { %v8293_v45 = vmax.f32 %v8202_v35, 0.0 }
 0x692   : > { %8386 = vst [vmem:[#allocation2 + $0x18] sm:$0xff] %v8295_v19 }
 0x693   : > { %v18778_v6 = vpop.f32.mrb[4].mxu0 }
 0x694   : > { %v8207_v51 = vadd.f32 %v18778_v6, %v22834_v15  ;;  %v7480_v20 = vpop.f32.mrb[5].mxu0 }
 0x695   : > { %v8205_v10 = vadd.f32 %v22834_v15, %v7480_v20  ;;  %v18779_v21 = vpop.f32.mrb[6].mxu0 }
 0x696   : > { %v8298_v50 = vmax.f32 %v8207_v51, 0.0  ;;  %v7483_v27 = vpop.f32.mrb[7].mxu0  ;;  %v8208_v4 = vadd.f32 %v18779_v21, %v22834_v15 }
 0x697   : > { %v8296_v29 = vmax.f32 %v8205_v10, 0.0  ;;  %v8206_v31 = vadd.f32 %v22834_v15, %v7483_v27 }
 0x698   : > { %8389 = vst [vmem:[#allocation2 + $0x30] sm:$0xff] %v8298_v50  ;;  %v8299_v51 = vmax.f32 %v8208_v4, 0.0 }
 0x699   : > { %8387 = vst [vmem:[#allocation2 + $0x20] sm:$0xff] %v8296_v29  ;;  %v8297_v57 = vmax.f32 %v8206_v31, 0.0  ;;  %v8498_v56 = vld [vmem:[#allocation2 + $0x18] sm:$0x3] }
 0x69b   : > { %8388 = vst [vmem:[#allocation2 + $0x28] sm:$0xff] %v8297_v57  ;;  %v18782_v33 = vpop.f32.mrb[8].mxu0 }
 0x69c   : > { %v8211_v58 = vadd.f32 %v18782_v33, %v22834_v15  ;;  %v7496_v32 = vpop.f32.mrb[9].mxu0 }
 0x69d   : > { %v18783_v36 = vpop.f32.mrb[10].mxu0  ;;  %v8209_v18 = vadd.f32 %v22834_v15, %v7496_v32 }
 0x69e   : > { %v8302_v38 = vmax.f32 %v8211_v58, 0.0  ;;  %v8212_v0 = vadd.f32 %v18783_v36, %v22834_v15  ;;  %v7499_v37 = vpop.f32.mrb[11].mxu0 }
 0x69f   : > { %v8502_v47 = vld [vmem:[#allocation2 + $0x34] sm:$0x3]  ;;  %v8210_v44 = vadd.f32 %v22834_v15, %v7499_v37  ;;  %v8300_v20 = vmax.f32 %v8209_v18, 0.0 }
 0x6a0   : > { %v8499_v39 = vld [vmem:[#allocation2 + $0x1c] sm:$0xff]  ;;  %8393 = vst [vmem:[#allocation2 + $0x50] sm:$0xff] %v8302_v38  ;;  %v8303_v40 = vmax.f32 %v8212_v0, 0.0  ;;  %v8506_v62 = vmax.f32 %v8498_v56, %v8502_v47 }
 0x6a1   : > { %v8503_v17 = vmax.f32 %v8292_v42, %v8499_v39  ;;  %v8301_v27 = vmax.f32 %v8210_v44, 0.0  ;;  %v22893_v39 = vsel %vm8490_vm7, 1.0, %v21548_v28 }
 0x6a2   : > { %v8500_v48 = vld [vmem:[#allocation2 + $0x24] sm:$0xff]  ;;  %v8501_v49 = vld [vmem:[#allocation2 + $0x2c] sm:$0xff]  ;;  %8394 = vst [vmem:[#allocation2 + $0x58] sm:$0xff] %v8303_v40 }
 0x6a3   : > { %v22846_v52 = vpop.f32.mrb[12].mxu0  ;;  %v8504_v54 = vmax.f32 %v8293_v45, %v8500_v48  ;;  %v8505_v55 = vmax.f32 %v8294_v41, %v8501_v49 }
 0x6a4   : > { %v7512_v5 = vpop.f32.mrb[13].mxu0  ;;  %v8215_v40 = vadd.f32 %v22846_v52, %v22834_v15 }
 0x6a5   : > { %v8213_v59 = vadd.f32 %v22834_v15, %v7512_v5  ;;  %v18787_v23 = vpop.f32.mrb[14].mxu0  ;;  %v20068_v61 = vpack.c.bf16 %v8504_v54, %v8503_v17  ;;  %v20072_v30 = vpack.c.bf16 %v8506_v62, %v8505_v55 }
 0x6a6   : > { %v7515_v26 = vpop.f32.mrb[15].mxu0  ;;  %v8216_v38 = vadd.f32 %v18787_v23, %v22834_v15  ;;  %v8306_v54 = vmax.f32 %v8215_v40, 0.0 }
 0x6a7   : > { %v8304_v8 = vmax.f32 %v8213_v59, 0.0  ;;  %v8214_v3 = vadd.f32 %v22834_v15, %v7515_v26  ;;  %20069 = vmatprep.subr.bf16.mxu1 %v20068_v61  ;;  %v8681_v32 = vld [vmem:[#allocation2 + $0x50] sm:$0x3] }
 0x6a8   : > { %20071 = vmatpush3.bf16.msra.mxu1 %v20068_v61  ;;  %v8307_v17 = vmax.f32 %v8216_v38, 0.0 }
 0x6a9   : > { %8395 = vst [vmem:[#allocation2 + $0x60] sm:$0xff] %v8304_v8  ;;  %v8305_v9 = vmax.f32 %v8214_v3, 0.0  ;;  %20074 = vmatprep.subr.msk.bf16.mxu1 %vm22850_vm4, %v20072_v30  ;;  %v8682_v2 = vld [vmem:[#allocation2 + $0x54] sm:$0xff] }
 0x6aa   : > { %v8686_v31 = vmax.f32 %v8299_v51, %v8682_v2 }
 0x6ab   : > { %8396 = vst [vmem:[#allocation2 + $0x68] sm:$0xff] %v8305_v9  ;;  %v18790_v25 = vpop.f32.mrb[16].mxu0 }
 0x6ac   : > { %v8219_v7 = vadd.f32 %v18790_v25, %v22834_v15  ;;  %v22864_v11 = vpop.f32.mrb[17].mxu0  ;;  %20077 = vmatpush3.bf16.msk.msra.mxu1 %vm22850_vm4, %v20072_v30 }
 0x6ad   : > { %v18791_v14 = vpop.f32.mrb[18].mxu0  ;;  %20079 = vmatprep.subr.bf16.mxu1 %v20068_v61  ;;  %v8217_v26 = vadd.f32 %v22834_v15, %v22864_v11 }
 0x6ae   : > { %v8310_v16 = vmax.f32 %v8219_v7, 0.0  ;;  %v8220_v19 = vadd.f32 %v18791_v14, %v22834_v15  ;;  %v7531_v6 = vpop.f32.mrb[19].mxu0 }
 0x6af   : > { %v8218_v10 = vadd.f32 %v22834_v15, %v7531_v6  ;;  %18873 = vmatmul.mubr.msk.f32.vlgmr.msra.gmra.mrb[28].mxu1 %vm8507_vm1, %v22869_v13  ;;  %v8308_v44 = vmax.f32 %v8217_v26, 0.0 }
 0x6b0   : > { %v8683_v21 = vld [vmem:[#allocation2 + $0x5c] sm:$0xff]  ;;  %8401 = vst [vmem:[#allocation2 + $0x90] sm:$0xff] %v8310_v16  ;;  %v8311_v50 = vmax.f32 %v8220_v19, 0.0  ;;  %20081 = vmatpush3.bf16.msra.mxu1 %v20068_v61  ;;  %18883 = vmatprep.mubr.msk.f32.mxu1 %vm8507_vm1, %v22873_v46 }
 0x6b1   : > { %v8309_v29 = vmax.f32 %v8218_v10, 0.0  ;;  %20084 = vmatprep.subr.msk.bf16.mxu1 %vm22850_vm4, %v20072_v30  ;;  %v8687_v57 = vmax.f32 %v8300_v20, %v8683_v21 }
 0x6b2   : > { %v8684_v33 = vld [vmem:[#allocation2 + $0x64] sm:$0xff]  ;;  %v8685_v58 = vld [vmem:[#allocation2 + $0x6c] sm:$0x3]  ;;  %8402 = vst [vmem:[#allocation2 + $0x98] sm:$0xff] %v8311_v50 }
 0x6b3   : > { %8400 = vst [vmem:[#allocation2 + $0x88] sm:$0xff] %v8309_v29  ;;  %v18794_v60 = vpop.f32.mrb[20].mxu0  ;;  %v20088_v34 = vpack.c.bf16 %v8687_v57, %v8686_v31  ;;  %v8688_v35 = vmax.f32 %v8301_v27, %v8684_v33  ;;  %v8689_v36 = vmax.f32 %v8681_v32, %v8685_v58 }
 0x6b4   : > { %v22886_v0 = vadd.f32 %v18794_v60, %v22834_v15  ;;  %v7544_v37 = vpop.f32.mrb[21].mxu0  ;;  %20087 = vmatpush3.bf16.msk.msra.mxu1 %vm22850_vm4, %v20072_v30 }
 0x6b5   : > { %v8221_v41 = vadd.f32 %v22834_v15, %v7544_v37  ;;  %v18795_v42 = vpop.f32.mrb[22].mxu0  ;;  %20089 = vmatprep.subr.bf16.mxu1 %v20088_v34  ;;  %v20092_v28 = vpack.c.bf16 %v8689_v36, %v8688_v35 }
 0x6b6   : > { %v8314_v45 = vmax.f32 %v22886_v0, 0.0  ;;  %v22900_v43 = vadd.f32 %v18795_v42, %v22834_v15  ;;  %v7547_v47 = vpop.f32.mrb[23].mxu0 }
 0x6b7   : > { %v8312_v48 = vmax.f32 %v8221_v41, 0.0  ;;  %v22903_v49 = vadd.f32 %v22834_v15, %v7547_v47  ;;  %18884 = vmatmul.mubr.msk.f32.vlgmr.msra.gmra.mrb[30].mxu1 %vm8507_vm1, %v22893_v39 }
 0x6b8   : > { %v8315_v52 = vmax.f32 %v22900_v43, 0.0  ;;  %20091 = vmatpush3.bf16.msra.mxu1 %v20088_v34  ;;  %18894 = vmatprep.mubr.msk.f32.mxu1 %vm8507_vm1, %v22775_v53 }
 0x6b9   : > { %8403 = vst [vmem:[#allocation2 + $0xa0] sm:$0xff] %v8312_v48  ;;  %v8313_v55 = vmax.f32 %v22903_v49, 0.0  ;;  %20094 = vmatprep.subr.msk.bf16.mxu1 %vm22850_vm4, %v20092_v28  ;;  %v8852_v5 = vld [vmem:[#allocation2 + $0x94] sm:$0xff] }
 0x6ba   : > { %v8851_v56 = vld [vmem:[#allocation2 + $0x8c] sm:$0xff]  ;;  %v8856_v59 = vmax.f32 %v8307_v17, %v8852_v5  ;;  %v8850_v2 = vld [vmem:[#allocation2 + $0x88] sm:$0x3] }
 0x6bb   : > { %v18798_v23 = vpop.f32.mrb[24].mxu0  ;;  %v8855_v61 = vmax.f32 %v8306_v54, %v8851_v56 }
 0x6bc   : > { %v8227_v62 = vadd.f32 %v18798_v23, %v22834_v15  ;;  %v7560_v24 = vpop.f32.mrb[25].mxu0  ;;  %20097 = vmatpush3.bf16.msk.msra.mxu1 %vm22850_vm4, %v20092_v28 }
 0x6bd   : > { %v8225_v1 = vadd.f32 %v22834_v15, %v7560_v24  ;;  %v18799_v8 = vpop.f32.mrb[26].mxu0  ;;  %20099 = vmatprep.subr.bf16.mxu1 %v20088_v34  ;;  %v20108_v3 = vpack.c.bf16 %v8856_v59, %v8855_v61 }
 0x6be   : > { %v8318_v30 = vmax.f32 %v8227_v62, 0.0  ;;  %v8228_v9 = vadd.f32 %v18799_v8, %v22834_v15  ;;  %v7563_v4 = vpop.f32.mrb[27].mxu0 }
 0x6bf   : > { %v8316_v18 = vmax.f32 %v8225_v1, 0.0  ;;  %v8226_v25 = vadd.f32 %v22834_v15, %v7563_v4  ;;  %18895 = vmatmul.mubr.msk.f32.vlgmr.msra.gmra.mrb[32].mxu1 %vm8507_vm1, %v22869_v13 }
 0x6c0   : > { %8409 = vst [vmem:[#allocation2 + $0xd0] sm:$0xff] %v8318_v30  ;;  %v8319_v7 = vmax.f32 %v8228_v9, 0.0  ;;  %20101 = vmatpush3.bf16.msra.mxu1 %v20088_v34  ;;  %18905 = vmatprep.mubr.msk.f32.mxu1 %vm8507_vm1, %v22873_v46  ;;  %v8853_v11 = vld [vmem:[#allocation2 + $0x9c] sm:$0xff]  ;;  %v8854_v12 = vld [vmem:[#allocation2 + $0xa4] sm:$0x3] }
 0x6c1   : > { %8407 = vst [vmem:[#allocation2 + $0xc0] sm:$0xff] %v8316_v18  ;;  %v8317_v14 = vmax.f32 %v8226_v25, 0.0  ;;  %20104 = vmatprep.subr.msk.bf16.mxu1 %vm22850_vm4, %v20092_v28  ;;  %v8857_v19 = vmax.f32 %v8308_v44, %v8853_v11  ;;  %v8858_v6 = vmax.f32 %v8850_v2, %v8854_v12 }
 0x6c2   : > { %8410 = vst [vmem:[#allocation2 + $0xd8] sm:$0xff] %v8319_v7 }
 0x6c3   : > { %8408 = vst [vmem:[#allocation2 + $0xc8] sm:$0xff] %v8317_v14  ;;  %v18802_v16 = vpop.f32.mrb[28].mxu0  ;;  %v20112_v33 = vpack.c.bf16 %v8858_v6, %v8857_v19 }
 0x6c4   : > { %v22928_v51 = vadd.f32 %v18802_v16, %v22834_v15  ;;  %v7576_v20 = vpop.f32.mrb[29].mxu0  ;;  %20107 = vmatpush3.bf16.msk.msra.mxu1 %vm22850_vm4, %v20092_v28 }
 0x6c5   : > { %v22933_v10 = vadd.f32 %v22834_v15, %v7576_v20  ;;  %v18803_v21 = vpop.f32.mrb[30].mxu0  ;;  %20109 = vmatprep.subr.bf16.mxu1 %v20108_v3 }
 0x6c6   : > { %v8322_v50 = vmax.f32 %v22928_v51, 0.0  ;;  %v8232_v27 = vadd.f32 %v18803_v21, %v22834_v15  ;;  %v7579_v29 = vpop.f32.mrb[31].mxu0 }
 0x6c7   : > { %v8320_v31 = vmax.f32 %v22933_v10, 0.0  ;;  %v22939_v57 = vadd.f32 %v22834_v15, %v7579_v29  ;;  %18906 = vmatmul.mubr.msk.f32.vlgmr.msra.gmra.mrb[34].mxu1 %vm8507_vm1, %v22893_v39 }
 0x6c8   : > { %v8323_v58 = vmax.f32 %v8232_v27, 0.0  ;;  %20111 = vmatpush3.bf16.msra.mxu1 %v20108_v3  ;;  %18916 = vmatprep.mubr.msk.f32.mxu1 %vm8507_vm1, %v22775_v53  ;;  %v9019_v54 = vld [vmem:[#allocation2 + $0xc0] sm:$0x3] }
 0x6c9   : > { %v8321_v32 = vmax.f32 %v22939_v57, 0.0  ;;  %20114 = vmatprep.subr.msk.bf16.mxu1 %vm22850_vm4, %v20112_v33  ;;  %v9023_v5 = vld [vmem:[#allocation2 + $0xdc] sm:$0x3] }
 0x6ca   : > { %8414 = vst [vmem:[#allocation2 + $0xf8] sm:$0xff] %v8323_v58  ;;  %v9020_v60 = vld [vmem:[#allocation2 + $0xc4] sm:$0xff]  ;;  %v9021_v34 = vld [vmem:[#allocation2 + $0xcc] sm:$0xff]  ;;  %v9027_v61 = vmax.f32 %v9019_v54, %v9023_v5 }
 0x6cb   : > { %v18806_v35 = vpop.f32.mrb[32].mxu0  ;;  %v9024_v36 = vmax.f32 %v8313_v55, %v9020_v60  ;;  %v9025_v38 = vmax.f32 %v8314_v45, %v9021_v34  ;;  %v9022_v55 = vld [vmem:[#allocation2 + $0xd4] sm:$0xff] }
 0x6cc   : > { %v8235_v37 = vadd.f32 %v18806_v35, %v22834_v15  ;;  %v7592_v40 = vpop.f32.mrb[33].mxu0  ;;  %20117 = vmatpush3.bf16.msk.msra.mxu1 %vm22850_vm4, %v20112_v33  ;;  %v9026_v23 = vmax.f32 %v8315_v52, %v9022_v55 }
 0x6cd   : > { %v8233_v41 = vadd.f32 %v22834_v15, %v7592_v40  ;;  %v18807_v42 = vpop.f32.mrb[34].mxu0  ;;  %20119 = vmatprep.subr.bf16.mxu1 %v20108_v3  ;;  %v20128_v47 = vpack.c.bf16 %v9025_v38, %v9024_v36 }
 0x6ce   : > { %v8326_v48 = vmax.f32 %v8235_v37, 0.0  ;;  %v22955_v49 = vadd.f32 %v18807_v42, %v22834_v15  ;;  %v7595_v28 = vpop.f32.mrb[35].mxu0  ;;  %v20132_v52 = vpack.c.bf16 %v9027_v61, %v9026_v23 }
 0x6cf   : > { %v8324_v17 = vmax.f32 %v8233_v41, 0.0  ;;  %v8234_v0 = vadd.f32 %v22834_v15, %v7595_v28  ;;  %18917 = vmatmul.mubr.msk.f32.vlgmr.msra.gmra.mrb[36].mxu1 %vm8507_vm1, %v22869_v13 }
 0x6d0   : > { %8417 = vst [vmem:[#allocation2 + $0x110] sm:$0xff] %v8326_v48  ;;  %v8327_v45 = vmax.f32 %v22955_v49, 0.0  ;;  %20121 = vmatpush3.bf16.msra.mxu1 %v20108_v3  ;;  %18927 = vmatprep.mubr.msk.f32.mxu1 %vm8507_vm1, %v22873_v46 }
 0x6d1   : > { %8415 = vst [vmem:[#allocation2 + $0x100] sm:$0xff] %v8324_v17  ;;  %v8325_v56 = vmax.f32 %v8234_v0, 0.0  ;;  %20124 = vmatprep.subr.msk.bf16.mxu1 %vm22850_vm4, %v20112_v33  ;;  %v9188_v36 = vld [vmem:[#allocation2 + $0xf8] sm:$0x3] }
 0x6d3   : > { %8416 = vst [vmem:[#allocation2 + $0x108] sm:$0xff] %v8325_v56  ;;  %v18810_v59 = vpop.f32.mrb[36].mxu0 }
 0x6d4   : > { %v8239_v62 = vadd.f32 %v18810_v59, %v22834_v15  ;;  %v7608_v24 = vpop.f32.mrb[37].mxu0  ;;  %20127 = vmatpush3.bf16.msk.msra.mxu1 %vm22850_vm4, %v20112_v33 }
 0x6d5   : > { %v22971_v26 = vadd.f32 %v22834_v15, %v7608_v24  ;;  %v18811_v1 = vpop.f32.mrb[38].mxu0  ;;  %20129 = vmatprep.subr.bf16.mxu1 %v20128_v47 }
 0x6d6   : > { %v8330_v8 = vmax.f32 %v8239_v62, 0.0  ;;  %v8240_v3 = vadd.f32 %v18811_v1, %v22834_v15  ;;  %v7611_v30 = vpop.f32.mrb[39].mxu0 }
 0x6d7   : > { %v8328_v9 = vmax.f32 %v22971_v26, 0.0  ;;  %v22976_v43 = vadd.f32 %v22834_v15, %v7611_v30  ;;  %18928 = vmatmul.mubr.msk.f32.vlgmr.msra.gmra.mrb[38].mxu1 %vm8507_vm1, %v22893_v39  ;;  %v9192_v58 = vld [vmem:[#allocation2 + $0x114] sm:$0x3] }
 0x6d8   : > { %8421 = vst [vmem:[#allocation2 + $0x130] sm:$0xff] %v8330_v8  ;;  %v8331_v4 = vmax.f32 %v8240_v3, 0.0  ;;  %20131 = vmatpush3.bf16.msra.mxu1 %v20128_v47  ;;  %18938 = vmatprep.mubr.msk.f32.mxu1 %vm8507_vm1, %v22775_v53  ;;  %v9189_v18 = vld [vmem:[#allocation2 + $0xfc] sm:$0xff]  ;;  %v9196_v40 = vmax.f32 %v9188_v36, %v9192_v58 }
 0x6d9   : > { %v8329_v25 = vmax.f32 %v22976_v43, 0.0  ;;  %20134 = vmatprep.subr.msk.bf16.mxu1 %vm22850_vm4, %v20132_v52  ;;  %v9193_v12 = vmax.f32 %v8320_v31, %v9189_v18 }
 0x6da   : > { %8422 = vst [vmem:[#allocation2 + $0x138] sm:$0xff] %v8331_v4  ;;  %v9190_v7 = vld [vmem:[#allocation2 + $0x104] sm:$0xff]  ;;  %v9191_v57 = vld [vmem:[#allocation2 + $0x10c] sm:$0xff] }
 0x6db   : > { %v18814_v11 = vpop.f32.mrb[40].mxu0  ;;  %v9194_v44 = vmax.f32 %v8321_v32, %v9190_v7  ;;  %v9195_v60 = vmax.f32 %v8322_v50, %v9191_v57 }
 0x6dc   : > { %v22988_v14 = vadd.f32 %v18814_v11, %v22834_v15  ;;  %v7624_v2 = vpop.f32.mrb[41].mxu0  ;;  %20137 = vmatpush3.bf16.msk.msra.mxu1 %vm22850_vm4, %v20132_v52 }
 0x6dd   : > { %v8241_v16 = vadd.f32 %v22834_v15, %v7624_v2  ;;  %v18815_v19 = vpop.f32.mrb[42].mxu0  ;;  %20139 = vmatprep.subr.bf16.mxu1 %v20128_v47  ;;  %v20148_v6 = vpack.c.bf16 %v9194_v44, %v9193_v12  ;;  %v20152_v28 = vpack.c.bf16 %v9196_v40, %v9195_v60 }
 0x6de   : > { %v8334_v20 = vmax.f32 %v22988_v14, 0.0  ;;  %v22995_v21 = vadd.f32 %v18815_v19, %v22834_v15  ;;  %v7627_v10 = vpop.f32.mrb[43].mxu0 }
 0x6df   : > { %v8332_v27 = vmax.f32 %v8241_v16, 0.0  ;;  %v8242_v29 = vadd.f32 %v22834_v15, %v7627_v10  ;;  %18939 = vmatmul.mubr.msk.f32.vlgmr.msra.gmra.mrb[40].mxu1 %vm8507_vm1, %v22869_v13  ;;  %v9357_v18 = vld [vmem:[#allocation2 + $0x130] sm:$0x3] }
 0x6e0   : > { %v8335_v31 = vmax.f32 %v22995_v21, 0.0  ;;  %20141 = vmatpush3.bf16.msra.mxu1 %v20128_v47  ;;  %18949 = vmatprep.mubr.msk.f32.mxu1 %vm8507_vm1, %v22873_v46 }
 0x6e1   : > { %8423 = vst [vmem:[#allocation2 + $0x140] sm:$0xff] %v8332_v27  ;;  %v8333_v33 = vmax.f32 %v8242_v29, 0.0  ;;  %20144 = vmatprep.subr.msk.bf16.mxu1 %vm22850_vm4, %v20132_v52  ;;  %v9358_v48 = vld [vmem:[#allocation2 + $0x134] sm:$0xff] }
 0x6e2   : > { %v9362_v55 = vmax.f32 %v8327_v45, %v9358_v48 }
 0x6e3   : > { %8424 = vst [vmem:[#allocation2 + $0x148] sm:$0xff] %v8333_v33  ;;  %v18818_v32 = vpop.f32.mrb[44].mxu0 }
 0x6e4   : > { %v8247_v34 = vadd.f32 %v18818_v32, %v22834_v15  ;;  %v7640_v35 = vpop.f32.mrb[45].mxu0  ;;  %20147 = vmatpush3.bf16.msk.msra.mxu1 %vm22850_vm4, %v20132_v52 }
 0x6e5   : > { %v23011_v38 = vadd.f32 %v22834_v15, %v7640_v35  ;;  %v18819_v37 = vpop.f32.mrb[46].mxu0  ;;  %20149 = vmatprep.subr.bf16.mxu1 %v20148_v6 }
 0x6e6   : > { %v8338_v41 = vmax.f32 %v8247_v34, 0.0  ;;  %v8248_v42 = vadd.f32 %v18819_v37, %v22834_v15  ;;  %v7643_v47 = vpop.f32.mrb[47].mxu0 }
 0x6e7   : > { %v8336_v51 = vmax.f32 %v23011_v38, 0.0  ;;  %v8246_v50 = vadd.f32 %v22834_v15, %v7643_v47  ;;  %18950 = vmatmul.mubr.msk.f32.vlgmr.msra.gmra.mrb[42].mxu1 %vm8507_vm1, %v22893_v39 }
 0x6e8   : > { %8429 = vst [vmem:[#allocation2 + $0x170] sm:$0xff] %v8338_v41  ;;  %v8339_v17 = vmax.f32 %v8248_v42, 0.0  ;;  %20151 = vmatpush3.bf16.msra.mxu1 %v20148_v6  ;;  %18960 = vmatprep.mubr.msk.f32.mxu1 %vm8507_vm1, %v22775_v53  ;;  %v9359_v0 = vld [vmem:[#allocation2 + $0x13c] sm:$0xff] }
 0x6e9   : > { %v8337_v54 = vmax.f32 %v8246_v50, 0.0  ;;  %20154 = vmatprep.subr.msk.bf16.mxu1 %vm22850_vm4, %v20152_v28  ;;  %v9363_v5 = vmax.f32 %v8328_v9, %v9359_v0 }
 0x6ea   : > { %8430 = vst [vmem:[#allocation2 + $0x178] sm:$0xff] %v8339_v17  ;;  %v9360_v30 = vld [vmem:[#allocation2 + $0x144] sm:$0xff]  ;;  %v9361_v9 = vld [vmem:[#allocation2 + $0x14c] sm:$0x3] }
 0x6eb   : > { %8428 = vst [vmem:[#allocation2 + $0x168] sm:$0xff] %v8337_v54  ;;  %v18822_v56 = vpop.f32.mrb[48].mxu0  ;;  %v23026_v59 = vpack.c.bf16 %v9363_v5, %v9362_v55  ;;  %v9364_v44 = vmax.f32 %v8329_v25, %v9360_v30  ;;  %v9365_v2 = vmax.f32 %v9357_v18, %v9361_v9  ;;  %v20385_v18 = vld [vmem:[#allocation2 + $0x210] sm:$0xff] }
 0x6ec   : > { %v23029_v23 = vadd.f32 %v18822_v56, %v22834_v15  ;;  %v7656_v61 = vpop.f32.mrb[49].mxu0  ;;  %20157 = vmatpush3.bf16.msk.msra.mxu1 %vm22850_vm4, %v20152_v28 }
 0x6ed   : > { %v8249_v62 = vadd.f32 %v22834_v15, %v7656_v61  ;;  %v18823_v24 = vpop.f32.mrb[50].mxu0  ;;  %20159 = vmatprep.subr.bf16.mxu1 %v20148_v6 }
 0x6ee   : > { %v8342_v49 = vmax.f32 %v23029_v23, 0.0  ;;  %v23036_v45 = vadd.f32 %v18823_v24, %v22834_v15  ;;  %v7659_v26 = vpop.f32.mrb[51].mxu0 }
 0x6ef   : > { %v8340_v1 = vmax.f32 %v8249_v62, 0.0  ;;  %v23039_v8 = vadd.f32 %v22834_v15, %v7659_v26  ;;  %18961 = vmatmul.mubr.msk.f32.vlgmr.msra.gmra.mrb[44].mxu1 %vm8507_vm1, %v22869_v13 }
 0x6f0   : > { %v8343_v3 = vmax.f32 %v23036_v45, 0.0  ;;  %20161 = vmatpush3.bf16.msra.mxu1 %v20148_v6  ;;  %18971 = vmatprep.mubr.msk.f32.mxu1 %vm8507_vm1, %v22873_v46  ;;  %v20406_v45 = vld [vmem:[#allocation2 + $0x228] sm:$0xff] }
 0x6f1   : > { %8431 = vst [vmem:[#allocation2 + $0x180] sm:$0xff] %v8340_v1  ;;  %v8341_v52 = vmax.f32 %v23039_v8, 0.0  ;;  %20164 = vmatprep.subr.msk.bf16.mxu1 %vm22850_vm4, %v20152_v28  ;;  %v9528_v4 = vld [vmem:[#allocation2 + $0x174] sm:$0xff] }
 0x6f2   : > { %v9527_v7 = vld [vmem:[#allocation2 + $0x16c] sm:$0xff]  ;;  %v9532_v11 = vmax.f32 %v8335_v31, %v9528_v4  ;;  %v9526_v17 = vld [vmem:[#allocation2 + $0x168] sm:$0x3] }
 0x6f3   : > { %v18826_v12 = vpop.f32.mrb[52].mxu0  ;;  %v9531_v16 = vmax.f32 %v8334_v20, %v9527_v7  ;;  %v20172_v20 = vpack.c.bf16 %v9365_v2, %v9364_v44  ;;  %v20388_v7 = vld [vmem:[#allocation2 + $0x200] sm:$0xff] }
 0x6f4   : > { %v8255_v19 = vadd.f32 %v18826_v12, %v22834_v15  ;;  %v7672_v6 = vpop.f32.mrb[53].mxu0  ;;  %20167 = vmatpush3.bf16.msk.msra.mxu1 %vm22850_vm4, %v20152_v28  ;;  %v20391_v12 = vld [vmem:[#allocation2 + $0x218] sm:$0xff] }
 0x6f5   : > { %v8253_v10 = vadd.f32 %v22834_v15, %v7672_v6  ;;  %v18827_v27 = vpop.f32.mrb[54].mxu0  ;;  %20169 = vmatprep.subr.bf16.mxu1 %v23026_v59  ;;  %v23060_v21 = vpack.c.bf16 %v9532_v11, %v9531_v16  ;;  %v20394_v16 = vld [vmem:[#allocation2 + $0x208] sm:$0xff] }
 0x6f6   : > { %v8346_v29 = vmax.f32 %v8255_v19, 0.0  ;;  %v8256_v43 = vadd.f32 %v18827_v27, %v22834_v15  ;;  %v7675_v25 = vpop.f32.mrb[55].mxu0 }
 0x6f7   : > { %v8344_v31 = vmax.f32 %v8253_v10, 0.0  ;;  %v8254_v14 = vadd.f32 %v22834_v15, %v7675_v25  ;;  %18972 = vmatmul.mubr.msk.f32.vlgmr.msra.gmra.mrb[46].mxu1 %vm8507_vm1, %v22893_v39 }
 0x6f8   : > { %8437 = vst [vmem:[#allocation2 + $0x1b0] sm:$0xff] %v8346_v29  ;;  %v8347_v57 = vmax.f32 %v8256_v43, 0.0  ;;  %20171 = vmatpush3.bf16.msra.mxu1 %v23026_v59  ;;  %18982 = vmatprep.mubr.msk.f32.mxu1 %vm8507_vm1, %v22775_v53  ;;  %v9529_v48 = vld [vmem:[#allocation2 + $0x17c] sm:$0xff]  ;;  %v9530_v50 = vld [vmem:[#allocation2 + $0x184] sm:$0x3] }
 0x6f9   : > { %8435 = vst [vmem:[#allocation2 + $0x1a0] sm:$0xff] %v8344_v31  ;;  %v8345_v33 = vmax.f32 %v8254_v14, 0.0  ;;  %20174 = vmatprep.subr.msk.bf16.mxu1 %vm22850_vm4, %v20172_v20  ;;  %v9533_v5 = vmax.f32 %v8336_v51, %v9529_v48  ;;  %v9534_v56 = vmax.f32 %v9526_v17, %v9530_v50 }
 0x6fa   : > { %8438 = vst [vmem:[#allocation2 + $0x1b8] sm:$0xff] %v8347_v57 }
 0x6fb   : > { %8436 = vst [vmem:[#allocation2 + $0x1a8] sm:$0xff] %v8345_v33  ;;  %v18830_v58 = vpop.f32.mrb[56].mxu0  ;;  %v20192_v9 = vpack.c.bf16 %v9534_v56, %v9533_v5 }
 0x6fc   : > { %v23072_v32 = vadd.f32 %v18830_v58, %v22834_v15  ;;  %v7688_v60 = vpop.f32.mrb[57].mxu0  ;;  %20177 = vmatpush3.bf16.msk.msra.mxu1 %vm22850_vm4, %v20172_v20 }
 0x6fd   : > { %v23077_v34 = vadd.f32 %v22834_v15, %v7688_v60  ;;  %v18831_v35 = vpop.f32.mrb[58].mxu0  ;;  %20179 = vmatprep.subr.bf16.mxu1 %v23026_v59 }
 0x6fe   : > { %v8350_v36 = vmax.f32 %v23072_v32, 0.0  ;;  %v8260_v37 = vadd.f32 %v18831_v35, %v22834_v15  ;;  %v7691_v40 = vpop.f32.mrb[59].mxu0 }
 0x6ff   : > { %v8348_v41 = vmax.f32 %v23077_v34, 0.0  ;;  %v23084_v42 = vadd.f32 %v22834_v15, %v7691_v40  ;;  %18983 = vmatmul.mubr.msk.f32.vlgmr.msra.gmra.mrb[48].mxu1 %vm8507_vm1, %v22869_v13 }
 0x700   : > { %v8351_v47 = vmax.f32 %v8260_v37, 0.0  ;;  %20181 = vmatpush3.bf16.msra.mxu1 %v23026_v59  ;;  %18993 = vmatprep.mubr.msk.f32.mxu1 %vm8507_vm1, %v22873_v46  ;;  %v9695_v57 = vld [vmem:[#allocation2 + $0x1a0] sm:$0x3]  ;;  %v20397_v37 = vld [vmem:[#allocation2 + $0x230] sm:$0xff] }
 0x701   : > { %v8349_v28 = vmax.f32 %v23084_v42, 0.0  ;;  %20184 = vmatprep.subr.msk.bf16.mxu1 %vm22850_vm4, %v20172_v20  ;;  %v9698_v31 = vld [vmem:[#allocation2 + $0x1b4] sm:$0xff]  ;;  %v9699_v33 = vld [vmem:[#allocation2 + $0x1bc] sm:$0x3] }
 0x702   : > { %8442 = vst [vmem:[#allocation2 + $0x1d8] sm:$0xff] %v8351_v47  ;;  %v9696_v0 = vld [vmem:[#allocation2 + $0x1a4] sm:$0xff]  ;;  %v9697_v54 = vld [vmem:[#allocation2 + $0x1ac] sm:$0xff] }
 0x703   : > { %v18834_v55 = vpop.f32.mrb[60].mxu0  ;;  %v9700_v59 = vmax.f32 %v8341_v52, %v9696_v0  ;;  %v9701_v61 = vmax.f32 %v8342_v49, %v9697_v54  ;;  %v20400_v47 = vld [vmem:[#allocation2 + $0x220] sm:$0xff]  ;;  %v20403_v0 = vld [vmem:[#allocation2 + $0x238] sm:$0xff]  ;;  %v9703_v54 = vmax.f32 %v9695_v57, %v9699_v33 }
 0x704   : > { %v8263_v62 = vadd.f32 %v18834_v55, %v22834_v15  ;;  %v7704_v24 = vpop.f32.mrb[61].mxu0  ;;  %20187 = vmatpush3.bf16.msk.msra.mxu1 %vm22850_vm4, %v20172_v20 }
 0x705   : > { %v8261_v26 = vadd.f32 %v22834_v15, %v7704_v24  ;;  %v18835_v1 = vpop.f32.mrb[62].mxu0  ;;  %20189 = vmatprep.subr.bf16.mxu1 %v23060_v21  ;;  %v23103_v8 = vpack.c.bf16 %v9701_v61, %v9700_v59 }
 0x706   : > { %v8354_v38 = vmax.f32 %v8263_v62, 0.0  ;;  %v23106_v51 = vadd.f32 %v18835_v1, %v22834_v15  ;;  %v7707_v30 = vpop.f32.mrb[63].mxu0 }
 0x707   : > { %v8352_v23 = vmax.f32 %v8261_v26, 0.0  ;;  %v8262_v49 = vadd.f32 %v22834_v15, %v7707_v30  ;;  %18994 = vmatmul.mubr.msk.f32.vlgmr.msra.gmra.mrb[50].mxu1 %vm8507_vm1, %v22893_v39 }
 0x708   : > { %8445 = vst [vmem:[#allocation2 + $0x1f0] sm:$0xff] %v8354_v38  ;;  %v8355_v52 = vmax.f32 %v23106_v51, 0.0  ;;  %20191 = vmatpush3.bf16.msra.mxu1 %v23060_v21  ;;  %19004 = vmatprep.mubr.msk.f32.mxu1 %vm8507_vm1, %v22775_v53  ;;  %v23206_v51 = vld [vmem:[%s24971_s2] ss:$0 sm:$0xff] }
 0x709   : > { %8443 = vst [vmem:[#allocation2 + $0x1e0] sm:$0xff] %v8352_v23  ;;  %v8353_v4 = vmax.f32 %v8262_v49, 0.0  ;;  %20194 = vmatprep.subr.msk.bf16.mxu1 %vm22850_vm4, %v20192_v9  ;;  %v20409_v49 = vld [vmem:[#allocation2 + $0x250] sm:$0xff] }
 0x70b   : > { %8444 = vst [vmem:[#allocation2 + $0x1e8] sm:$0xff] %v8353_v4  ;;  %v18838_v11 = vpop.f32.mrb[64].mxu0  ;;  %v20412_v4 = vld [vmem:[#allocation2 + $0x240] sm:$0xff] }
 0x70c   : > { %v20386_v44 = vadd.f32 %v20385_v18, %v18838_v11  ;;  %v7720_v2 = vpop.f32.mrb[65].mxu0  ;;  %20197 = vmatpush3.bf16.msk.msra.mxu1 %vm22850_vm4, %v20192_v9  ;;  %v20415_v11 = vld [vmem:[#allocation2 + $0x258] sm:$0xff] }
 0x70d   : > { %v20389_v19 = vadd.f32 %v20388_v7, %v7720_v2  ;;  %v18839_v6 = vpop.f32.mrb[66].mxu0  ;;  %20199 = vmatprep.subr.bf16.mxu1 %v23060_v21  ;;  %v20418_v2 = vld [vmem:[#allocation2 + $0x248] sm:$0xff] }
 0x70e   : > { %v8267_v10 = vadd.f32 %v20386_v44, %v22834_v15  ;;  %v20392_v27 = vadd.f32 %v20391_v12, %v18839_v6  ;;  %v7723_v29 = vpop.f32.mrb[67].mxu0 }
 0x70f   : > { %v23122_v43 = vadd.f32 %v20389_v19, %v22834_v15  ;;  %v20395_v25 = vadd.f32 %v20394_v16, %v7723_v29  ;;  %19005 = vmatmul.mubr.msk.f32.vlgmr.msra.gmra.mrb[52].mxu1 %vm8507_vm1, %v22869_v13 }
 0x710   : > { %v8358_v14 = vmax.f32 %v8267_v10, 0.0  ;;  %v8268_v20 = vadd.f32 %v20392_v27, %v22834_v15  ;;  %20201 = vmatpush3.bf16.msra.mxu1 %v23060_v21  ;;  %19015 = vmatprep.mubr.msk.f32.mxu1 %vm8507_vm1, %v22873_v46  ;;  %v9865_v58 = vld [vmem:[#allocation2 + $0x1dc] sm:$0xff]  ;;  %v9702_v21 = vmax.f32 %v8343_v3, %v9698_v31 }
 0x711   : > { %v8356_v60 = vmax.f32 %v23122_v43, 0.0  ;;  %v23132_v35 = vadd.f32 %v20395_v25, %v22834_v15  ;;  %20204 = vmatprep.subr.msk.bf16.mxu1 %vm22850_vm4, %v20192_v9  ;;  %v9869_v55 = vmax.f32 %v8348_v41, %v9865_v58 }
 0x712   : > { %8449 = vst [vmem:[#allocation2 + $0x210] sm:$0xff] %v8358_v14  ;;  %v8359_v40 = vmax.f32 %v8268_v20, 0.0  ;;  %v9866_v48 = vld [vmem:[#allocation2 + $0x1e4] sm:$0xff]  ;;  %v20212_v26 = vpack.c.bf16 %v9703_v54, %v9702_v21  ;;  %v9867_v20 = vld [vmem:[#allocation2 + $0x1ec] sm:$0xff]  ;;  %v9868_v21 = vld [vmem:[#allocation2 + $0x1f4] sm:$0x3] }
 0x713   : > { %8447 = vst [vmem:[#allocation2 + $0x200] sm:$0xff] %v8356_v60  ;;  %v8357_v50 = vmax.f32 %v23132_v35, 0.0  ;;  %v18842_v17 = vpop.f32.mrb[68].mxu0  ;;  %v9870_v5 = vmax.f32 %v8349_v28, %v9866_v48  ;;  %v9871_v54 = vmax.f32 %v8350_v36, %v9867_v20 }
 0x714   : > { %8450 = vst [vmem:[#allocation2 + $0x218] sm:$0xff] %v8359_v40  ;;  %v20398_v56 = vadd.f32 %v20397_v37, %v18842_v17  ;;  %v7736_v59 = vpop.f32.mrb[69].mxu0  ;;  %20207 = vmatpush3.bf16.msk.msra.mxu1 %vm22850_vm4, %v20192_v9  ;;  %v20421_v37 = vld [vmem:[#allocation2 + $0x270] sm:$0xff] }
 0x715   : > { %8448 = vst [vmem:[#allocation2 + $0x208] sm:$0xff] %v8357_v50  ;;  %v20401_v3 = vadd.f32 %v20400_v47, %v7736_v59  ;;  %v18843_v61 = vpop.f32.mrb[70].mxu0  ;;  %20209 = vmatprep.subr.bf16.mxu1 %v23103_v8  ;;  %v23150_v62 = vpack.c.bf16 %v9870_v5, %v9869_v55  ;;  %v20424_v47 = vld [vmem:[#allocation2 + $0x260] sm:$0xff]  ;;  %v20430_v59 = vld [vmem:[#allocation2 + $0x268] sm:$0xff] }
 0x716   : > { %v23153_v34 = vadd.f32 %v20398_v56, %v22834_v15  ;;  %v20404_v41 = vadd.f32 %v20403_v0, %v18843_v61  ;;  %v7739_v42 = vpop.f32.mrb[71].mxu0  ;;  %v20427_v0 = vld [vmem:[#allocation2 + $0x278] sm:$0xff] }
 0x717   : > { %v8269_v28 = vadd.f32 %v20401_v3, %v22834_v15  ;;  %v20407_v24 = vadd.f32 %v20406_v45, %v7739_v42  ;;  %19016 = vmatmul.mubr.msk.f32.vlgmr.msra.gmra.mrb[54].mxu1 %vm8507_vm1, %v22893_v39  ;;  %v9864_v45 = vld [vmem:[#allocation2 + $0x1d8] sm:$0x3] }
 0x718   : > { %v8362_v1 = vmax.f32 %v23153_v34, 0.0  ;;  %v23160_v38 = vadd.f32 %v20404_v41, %v22834_v15  ;;  %20211 = vmatpush3.bf16.msra.mxu1 %v23103_v8  ;;  %19026 = vmatprep.mubr.msk.f32.mxu1 %vm8507_vm1, %v22775_v53  ;;  %v9872_v32 = vmax.f32 %v9864_v45, %v9868_v21  ;;  %v20454_v45 = vld [vmem:[#allocation2 + $0x2a8] sm:$0xff] }
 0x719   : > { %v8360_v30 = vmax.f32 %v8269_v28, 0.0  ;;  %v8270_v23 = vadd.f32 %v20407_v24, %v22834_v15  ;;  %20214 = vmatprep.subr.msk.bf16.mxu1 %vm22850_vm4, %v20212_v26 }
 0x71a   : > { %8453 = vst [vmem:[#allocation2 + $0x230] sm:$0xff] %v8362_v1  ;;  %v8363_v9 = vmax.f32 %v23160_v38, 0.0  ;;  %v20232_v28 = vpack.c.bf16 %v9872_v32, %v9871_v54 }
 0x71b   : > { %8451 = vst [vmem:[#allocation2 + $0x220] sm:$0xff] %v8360_v30  ;;  %v8361_v18 = vmax.f32 %v8270_v23, 0.0  ;;  %v18846_v7 = vpop.f32.mrb[72].mxu0  ;;  %v10034_v57 = vld [vmem:[#allocation2 + $0x214] sm:$0xff] }
 0x71c   : > { %8454 = vst [vmem:[#allocation2 + $0x238] sm:$0xff] %v8363_v9  ;;  %v20410_v12 = vadd.f32 %v20409_v49, %v18846_v7  ;;  %v7752_v44 = vpop.f32.mrb[73].mxu0  ;;  %20217 = vmatpush3.bf16.msk.msra.mxu1 %vm22850_vm4, %v20212_v26  ;;  %v20433_v49 = vld [vmem:[#allocation2 + $0x290] sm:$0xff] }
 0x71d   : > { %8452 = vst [vmem:[#allocation2 + $0x228] sm:$0xff] %v8361_v18  ;;  %v20413_v16 = vadd.f32 %v20412_v4, %v7752_v44  ;;  %v18847_v19 = vpop.f32.mrb[74].mxu0  ;;  %20219 = vmatprep.subr.bf16.mxu1 %v23103_v8  ;;  %v20436_v18 = vld [vmem:[#allocation2 + $0x280] sm:$0xff] }
 0x71e   : > { %v8275_v6 = vadd.f32 %v20410_v12, %v22834_v15  ;;  %v20416_v10 = vadd.f32 %v20415_v11, %v18847_v19  ;;  %v7755_v27 = vpop.f32.mrb[75].mxu0  ;;  %v20439_v12 = vld [vmem:[#allocation2 + $0x298] sm:$0xff]  ;;  %v20442_v19 = vld [vmem:[#allocation2 + $0x288] sm:$0xff] }
 0x71f   : > { %v23178_v29 = vadd.f32 %v20413_v16, %v22834_v15  ;;  %v20419_v25 = vadd.f32 %v20418_v2, %v7755_v27  ;;  %19027 = vmatmul.mubr.msk.f32.vlgmr.msra.gmra.mrb[56].mxu1 %vm8507_vm1, %v22869_v13 }
 0x720   : > { %v8366_v31 = vmax.f32 %v8275_v6, 0.0  ;;  %v8276_v14 = vadd.f32 %v20416_v10, %v22834_v15  ;;  %20221 = vmatpush3.bf16.msra.mxu1 %v23103_v8  ;;  %19037 = vmatprep.mubr.msk.f32.mxu1 %vm8507_vm1, %v22873_v46 }
 0x721   : > { %v8364_v33 = vmax.f32 %v23178_v29, 0.0  ;;  %v8274_v58 = vadd.f32 %v20419_v25, %v22834_v15  ;;  %20224 = vmatprep.subr.msk.bf16.mxu1 %vm22850_vm4, %v20212_v26  ;;  %v10038_v15 = vmax.f32 %v8355_v52, %v10034_v57 }
 0x722   : > { %8457 = vst [vmem:[#allocation2 + $0x250] sm:$0xff] %v8366_v31  ;;  %v8367_v40 = vmax.f32 %v8276_v14, 0.0  ;;  %v10035_v48 = vld [vmem:[#allocation2 + $0x21c] sm:$0xff] }
 0x723   : > { %8455 = vst [vmem:[#allocation2 + $0x240] sm:$0xff] %v8364_v33  ;;  %v8365_v8 = vmax.f32 %v8274_v58, 0.0  ;;  %v18850_v17 = vpop.f32.mrb[76].mxu0  ;;  %v10039_v55 = vmax.f32 %v8356_v60, %v10035_v48  ;;  %v20445_v48 = vld [vmem:[#allocation2 + $0x2b0] sm:$0xff] }
 0x724   : > { %8458 = vst [vmem:[#allocation2 + $0x258] sm:$0xff] %v8367_v40  ;;  %v20422_v5 = vadd.f32 %v20421_v37, %v18850_v17  ;;  %v7768_v56 = vpop.f32.mrb[77].mxu0  ;;  %20227 = vmatpush3.bf16.msk.msra.mxu1 %vm22850_vm4, %v20212_v26  ;;  %v10036_v34 = vld [vmem:[#allocation2 + $0x224] sm:$0xff] }
 0x725   : > { %8456 = vst [vmem:[#allocation2 + $0x248] sm:$0xff] %v8365_v8  ;;  %v20425_v3 = vadd.f32 %v20424_v47, %v7768_v56  ;;  %v18851_v61 = vpop.f32.mrb[78].mxu0  ;;  %20229 = vmatprep.subr.bf16.mxu1 %v23150_v62  ;;  %v23201_v36 = vpack.c.bf16 %v10039_v55, %v10038_v15  ;;  %v20448_v17 = vld [vmem:[#allocation2 + $0x2a0] sm:$0xff]  ;;  %v10040_v55 = vmax.f32 %v8357_v50, %v10036_v34 }
 0x726   : > { %v23209_v52 = vadd.f32 %v23206_v51, %v20422_v5  ;;  %v20428_v43 = vadd.f32 %v20427_v0, %v18851_v61  ;;  %v7771_v60 = vpop.f32.mrb[79].mxu0  ;;  %v10033_v0 = vld [vmem:[#allocation2 + $0x210] sm:$0x3] }
 0x727   : > { %v8277_v41 = vadd.f32 %v23206_v51, %v20425_v3  ;;  %v20431_v42 = vadd.f32 %v20430_v59, %v7771_v60  ;;  %19038 = vmatmul.mubr.msk.f32.vlgmr.msra.gmra.mrb[58].mxu1 %vm8507_vm1, %v22893_v39 }
 0x728   : > { %v8370_v24 = vmax.f32 %v23209_v52, 0.0  ;;  %v23216_v26 = vadd.f32 %v23206_v51, %v20428_v43  ;;  %20231 = vmatpush3.bf16.msra.mxu1 %v23150_v62  ;;  %19048 = vmatprep.mubr.msk.f32.mxu1 %vm8507_vm1, %v22775_v53 }
 0x729   : > { %v8368_v30 = vmax.f32 %v8277_v41, 0.0  ;;  %v23222_v23 = vadd.f32 %v23206_v51, %v20431_v42  ;;  %20234 = vmatprep.subr.msk.bf16.mxu1 %vm22850_vm4, %v20232_v28 }
 0x72a   : > { %8461 = vst [vmem:[#allocation2 + $0x270] sm:$0xff] %v8370_v24  ;;  %v8371_v4 = vmax.f32 %v23216_v26, 0.0 }
 0x72b   : > { %8459 = vst [vmem:[#allocation2 + $0x260] sm:$0xff] %v8368_v30  ;;  %v8369_v7 = vmax.f32 %v23222_v23, 0.0  ;;  %v18854_v11 = vpop.f32.mrb[80].mxu0  ;;  %v10204_v44 = vld [vmem:[#allocation2 + $0x254] sm:$0xff] }
 0x72c   : > { %8462 = vst [vmem:[#allocation2 + $0x278] sm:$0xff] %v8371_v4  ;;  %v20434_v2 = vadd.f32 %v20433_v49, %v18854_v11  ;;  %v7784_v16 = vpop.f32.mrb[81].mxu0  ;;  %20237 = vmatpush3.bf16.msk.msra.mxu1 %vm22850_vm4, %v20232_v28  ;;  %v10203_v6 = vld [vmem:[#allocation2 + $0x24c] sm:$0xff]  ;;  %v10208_v10 = vmax.f32 %v8363_v9, %v10204_v44 }
 0x72d   : > { %8460 = vst [vmem:[#allocation2 + $0x268] sm:$0xff] %v8369_v7  ;;  %v20437_v27 = vadd.f32 %v20436_v18, %v7784_v16  ;;  %v18855_v25 = vpop.f32.mrb[82].mxu0  ;;  %20239 = vmatprep.subr.bf16.mxu1 %v23150_v62  ;;  %v10207_v31 = vmax.f32 %v8362_v1, %v10203_v6  ;;  %v10037_v1 = vld [vmem:[#allocation2 + $0x22c] sm:$0x3]  ;;  %v7920_v44 = vld [vmem:[#allocation2 + $0x2d0] sm:$0xff] }
 0x72e   : > { %v8283_v14 = vadd.f32 %v23206_v51, %v20434_v2  ;;  %v20440_v20 = vadd.f32 %v20439_v12, %v18855_v25  ;;  %v7787_v57 = vpop.f32.mrb[83].mxu0  ;;  %v10041_v5 = vmax.f32 %v10033_v0, %v10037_v1  ;;  %v10202_v1 = vld [vmem:[#allocation2 + $0x248] sm:$0x3] }
 0x72f   : > { %v8281_v58 = vadd.f32 %v23206_v51, %v20437_v27  ;;  %v20443_v37 = vadd.f32 %v20442_v19, %v7787_v57  ;;  %19049 = vmatmul.mubr.msk.f32.vlgmr.msra.gmra.mrb[60].mxu1 %vm8507_vm1, %v22869_v13  ;;  %v23245_v38 = vpack.c.bf16 %v10208_v10, %v10207_v31  ;;  %v7918_v19 = vld [vmem:[#allocation2 + $0x2c0] sm:$0xff] }
 0x730   : > { %v8374_v9 = vmax.f32 %v8283_v14, 0.0  ;;  %v8284_v40 = vadd.f32 %v23206_v51, %v20440_v20  ;;  %20241 = vmatpush3.bf16.msra.mxu1 %v23150_v62  ;;  %19059 = vmatprep.mubr.msk.f32.mxu1 %vm8507_vm1, %v22873_v46  ;;  %v20451_v62 = vld [vmem:[#allocation2 + $0x2b8] sm:$0xff]  ;;  %v20252_v41 = vpack.c.bf16 %v10041_v5, %v10040_v55 }
 0x731   : > { %v8372_v47 = vmax.f32 %v8281_v58, 0.0  ;;  %v8282_v21 = vadd.f32 %v23206_v51, %v20443_v37  ;;  %20244 = vmatprep.subr.msk.bf16.mxu1 %vm22850_vm4, %v20232_v28  ;;  %v7919_v58 = vld [vmem:[#allocation2 + $0x2c8] sm:$0xff] }
 0x732   : > { %8465 = vst [vmem:[#allocation2 + $0x290] sm:$0xff] %v8374_v9  ;;  %v8375_v8 = vmax.f32 %v8284_v40, 0.0  ;;  %v10205_v23 = vld [vmem:[#allocation2 + $0x25c] sm:$0xff]  ;;  %v10206_v52 = vld [vmem:[#allocation2 + $0x264] sm:$0x3] }
 0x733   : > { %8463 = vst [vmem:[#allocation2 + $0x280] sm:$0xff] %v8372_v47  ;;  %v8373_v54 = vmax.f32 %v8282_v21, 0.0  ;;  %v18858_v15 = vpop.f32.mrb[84].mxu0  ;;  %v10209_v21 = vmax.f32 %v8364_v33, %v10205_v23 }
 0x734   : > { %8466 = vst [vmem:[#allocation2 + $0x298] sm:$0xff] %v8375_v8  ;;  %v20446_v56 = vadd.f32 %v20445_v48, %v18858_v15  ;;  %v7800_v59 = vpop.f32.mrb[85].mxu0  ;;  %20247 = vmatpush3.bf16.msk.msra.mxu1 %vm22850_vm4, %v20232_v28  ;;  %v10210_v48 = vmax.f32 %v10202_v1, %v10206_v52 }
 0x735   : > { %8464 = vst [vmem:[#allocation2 + $0x288] sm:$0xff] %v8373_v54  ;;  %v20449_v3 = vadd.f32 %v20448_v17, %v7800_v59  ;;  %v18859_v61 = vpop.f32.mrb[86].mxu0  ;;  %20249 = vmatprep.subr.bf16.mxu1 %v23201_v36 }
 0x736   : > { %v23260_v32 = vadd.f32 %v23206_v51, %v20446_v56  ;;  %v20452_v43 = vadd.f32 %v20451_v62, %v18859_v61  ;;  %v7803_v60 = vpop.f32.mrb[87].mxu0  ;;  %v23358_v61 = vld [vmem:[#allocation3 + $0x8] sm:$0xff] }
 0x737   : > { %v23263_v35 = vadd.f32 %v23206_v51, %v20449_v3  ;;  %v20455_v50 = vadd.f32 %v20454_v45, %v7803_v60  ;;  %19060 = vmatmul.mubr.msk.f32.vlgmr.msra.gmra.mrb[62].mxu1 %vm8507_vm1, %v22893_v39  ;;  %v21252_v3 = vld [vmem:[%s24972_s3] sm:$0xff]  }
 0x738   : > { %v8378_v42 = vmax.f32 %v23260_v32, 0.0  ;;  %v8288_v28 = vadd.f32 %v23206_v51, %v20452_v43  ;;  %20251 = vmatpush3.bf16.msra.mxu1 %v23201_v36  ;;  %19070 = vmatprep.mubr.msk.f32.mxu1 %vm8507_vm1, %v22775_v53  ;;  %v21256_v60 = vld [vmem:[%s24972_s3 + $0x20] sm:$0xff]  }
 0x739   : > { %v8376_v30 = vmax.f32 %v23263_v35, 0.0  ;;  %v8286_v49 = vadd.f32 %v23206_v51, %v20455_v50  ;;  %20254 = vmatprep.subr.msk.bf16.mxu1 %vm22850_vm4, %v20252_v41  ;;  %v21257_v35 = vld [vmem:[%s24972_s3 + $0x28] sm:$0xff]  }
 0x73a   : > { %8469 = vst [vmem:[#allocation2 + $0x2b0] sm:$0xff] %v8378_v42  ;;  %v8379_v18 = vmax.f32 %v8288_v28, 0.0  ;;  %v10371_v0 = vld [vmem:[#allocation2 + $0x280] sm:$0x3] }
 0x73b   : > { %8467 = vst [vmem:[#allocation2 + $0x2a0] sm:$0xff] %v8376_v30  ;;  %v8377_v11 = vmax.f32 %v8286_v49, 0.0  ;;  %v18862_v12 = vpop.f32.mrb[116].mxu0  ;;  %v10374_v54 = vld [vmem:[#allocation2 + $0x294] sm:$0xff]  ;;  %v10375_v15 = vld [vmem:[#allocation2 + $0x29c] sm:$0x3] }
 0x73c   : > { %8470 = vst [vmem:[#allocation2 + $0x2b8] sm:$0xff] %v8379_v18  ;;  %v8011_v2 = vadd.f32 %v18862_v12, %v7920_v44  ;;  %v7816_v16 = vpop.f32.mrb[117].mxu0  ;;  %20257 = vmatpush3.bf16.msk.msra.mxu1 %vm22850_vm4, %v20252_v41  ;;  %v10372_v6 = vld [vmem:[#allocation2 + $0x284] sm:$0xff]  ;;  %v10373_v10 = vld [vmem:[#allocation2 + $0x28c] sm:$0xff]  ;;  %v10378_v62 = vmax.f32 %v8371_v4, %v10374_v54  ;;  %v10379_v55 = vmax.f32 %v10371_v0, %v10375_v15  ;;  %v21259_v49 = vld [vmem:[%s24972_s3 + $0x38] sm:$0xff]  }
 0x73d   : > { %8468 = vst [vmem:[#allocation2 + $0x2a8] sm:$0xff] %v8377_v11  ;;  %v8009_v27 = vadd.f32 %v7918_v19, %v7816_v16  ;;  %v18863_v25 = vpop.f32.mrb[118].mxu0  ;;  %20259 = vmatprep.subr.bf16.mxu1 %v23201_v36  ;;  %v10376_v31 = vmax.f32 %v8369_v7, %v10372_v6  ;;  %v10377_v14 = vmax.f32 %v8370_v24, %v10373_v10 }
 0x73e   : > { %v8291_v20 = vadd.f32 %v23206_v51, %v8011_v2  ;;  %v7819_v57 = vpop.f32.mrb[119].mxu0 }
 0x73f   : > { %v8289_v37 = vadd.f32 %v23206_v51, %v8009_v27  ;;  %v8010_v9 = vadd.f32 %v7919_v58, %v7819_v57  ;;  %19071 = vmatmul.mubr.msk.f32.vlgmr.msra.gmra.mrb[64].mxu1 %vm8507_vm1, %v22869_v13  ;;  %v20288_v40 = vpack.c.bf16 %v10377_v14, %v10376_v31  ;;  %v21260_v27 = vld [vmem:[%s24972_s3 + $0x40] sm:$0xff]   ;;  %v21261_v31 = vld [vmem:[%s24972_s3 + $0x48] sm:$0xff]  }
 0x740   : > { %v8382_v34 = vmax.f32 %v8291_v20, 0.0  ;;  %20261 = vmatpush3.bf16.msra.mxu1 %v23201_v36  ;;  %19081 = vmatprep.mubr.msk.f32.mxu1 %vm8507_vm1, %v22873_v46  ;;  %v20272_v36 = vpack.c.bf16 %v10210_v48, %v10209_v21 }
 0x741   : > { %v8380_v24 = vmax.f32 %v8289_v37, 0.0  ;;  %v8290_v7 = vadd.f32 %v23206_v51, %v8010_v9  ;;  %20264 = vmatprep.subr.msk.bf16.mxu1 %vm22850_vm4, %v20252_v41  ;;  %v21262_v37 = vld [vmem:[%s24972_s3 + $0x50] sm:$0xff]   ;;  %v21263_v9 = vld [vmem:[%s24972_s3 + $0x58] sm:$0xff]  }
 0x742   : > { %8473 = vst [vmem:[#allocation2 + $0x2d0] sm:$0xff] %v8382_v34 }
 0x743   : > { %8471 = vst [vmem:[#allocation2 + $0x2c0] sm:$0xff] %v8380_v24  ;;  %v8381_v47 = vmax.f32 %v8290_v7, 0.0  ;;  %v10540_v56 = vld [vmem:[#allocation2 + $0x2b8] sm:$0x3]  ;;  %v21264_v24 = vld [vmem:[%s24972_s3 + $0x60] sm:$0xff]  }
 0x744   : > { %20267 = vmatpush3.bf16.msk.msra.mxu1 %vm22850_vm4, %v20252_v41 }
 0x745   : > { %8472 = vst [vmem:[#allocation2 + $0x2c8] sm:$0xff] %v8381_v47  ;;  %20269 = vmatprep.subr.bf16.mxu1 %v23245_v38  ;;  %v21265_v47 = vld [vmem:[%s24972_s3 + $0x68] sm:$0xff]  }
 0x747   : > { %19082 = vmatmul.mubr.msk.f32.vlgmr.msra.gmra.mrb[66].mxu1 %vm8507_vm1, %v22893_v39 }
 0x748   : > { %20271 = vmatpush3.bf16.msra.mxu1 %v23245_v38  ;;  %19092 = vmatprep.mubr.msk.f32.mxu1 %vm8507_vm1, %v22775_v53 }
 0x749   : > { %20274 = vmatprep.subr.msk.bf16.mxu1 %vm22850_vm4, %v20272_v36  ;;  %v10544_v4 = vld [vmem:[#allocation2 + $0x2d4] sm:$0x3] }
 0x74a   : > { %v10541_v29 = vld [vmem:[#allocation2 + $0x2bc] sm:$0xff]  ;;  %v10548_v59 = vmax.f32 %v10540_v56, %v10544_v4 }
 0x74b   : > { %v10545_v51 = vmax.f32 %v8376_v30, %v10541_v29  ;;  %v21258_v30 = vld [vmem:[%s24972_s3 + $0x30] sm:$0xff]  }
 0x74c   : > { %20277 = vmatpush3.bf16.msk.msra.mxu1 %vm22850_vm4, %v20272_v36  ;;  %v10542_v33 = vld [vmem:[#allocation2 + $0x2c4] sm:$0xff]  ;;  %v10543_v26 = vld [vmem:[#allocation2 + $0x2cc] sm:$0xff] }
 0x74d   : > { %20279 = vmatprep.subr.bf16.mxu1 %v23245_v38  ;;  %v10546_v8 = vmax.f32 %v8377_v11, %v10542_v33  ;;  %v10547_v5 = vmax.f32 %v8378_v42, %v10543_v26  ;;  %v21266_v29 = vld [vmem:[%s24972_s3 + $0x70] sm:$0xff]  }
 0x74f   : > { %19093 = vmatmul.mubr.msk.f32.vlgmr.msra.gmra.mrb[68].mxu1 %vm8507_vm1, %v22869_v13  ;;  %v20308_v17 = vpack.c.bf16 %v10546_v8, %v10545_v51  ;;  %v20312_v45 = vpack.c.bf16 %v10548_v59, %v10547_v5  ;;  %v21267_v51 = vld [vmem:[%s24972_s3 + $0x78] sm:$0xff]  }
 0x750   : > { %20281 = vmatpush3.bf16.msra.mxu1 %v23245_v38  ;;  %19103 = vmatprep.mubr.msk.f32.mxu1 %vm8507_vm1, %v22873_v46  ;;  %v20292_v38 = vpack.c.bf16 %v10379_v55, %v10378_v62 }
 0x751   : > { %20284 = vmatprep.subr.msk.bf16.mxu1 %vm22850_vm4, %v20272_v36 }
 0x754   : > { %20287 = vmatpush3.bf16.msk.msra.mxu1 %vm22850_vm4, %v20272_v36 }
 0x755   : > { %20289 = vmatprep.subr.bf16.mxu1 %v20288_v40 }
 0x757   : > { %19104 = vmatmul.mubr.msk.f32.vlgmr.msra.gmra.mrb[70].mxu1 %vm8507_vm1, %v22893_v39 }
 0x758   : > { %20291 = vmatpush3.bf16.msra.mxu1 %v20288_v40  ;;  %19114 = vmatprep.mubr.msk.f32.mxu1 %vm8507_vm1, %v22775_v53 }
 0x759   : > { %20294 = vmatprep.subr.msk.bf16.mxu1 %vm22850_vm4, %v20292_v38 }
 0x75c   : > { %20297 = vmatpush3.bf16.msk.msra.mxu1 %vm22850_vm4, %v20292_v38 }
 0x75d   : > { %20299 = vmatprep.subr.bf16.mxu1 %v20288_v40 }
 0x75f   : > { %19115 = vmatmul.mubr.msk.f32.vlgmr.msra.gmra.mrb[72].mxu1 %vm8507_vm1, %v22869_v13 }
 0x760   : > { %20301 = vmatpush3.bf16.msra.mxu1 %v20288_v40  ;;  %19125 = vmatprep.mubr.msk.f32.mxu1 %vm8507_vm1, %v22873_v46 }
 0x761   : > { %20304 = vmatprep.subr.msk.bf16.mxu1 %vm22850_vm4, %v20292_v38 }
 0x764   : > { %20307 = vmatpush3.bf16.msk.msra.mxu1 %vm22850_vm4, %v20292_v38 }
 0x765   : > { %20309 = vmatprep.subr.bf16.mxu1 %v20308_v17 }
 0x767   : > { %19126 = vmatmul.mubr.msk.f32.vlgmr.msra.gmra.mrb[74].mxu1 %vm8507_vm1, %v22893_v39 }
 0x768   : > { %20311 = vmatpush3.bf16.msra.mxu1 %v20308_v17  ;;  %19136 = vmatprep.mubr.msk.f32.mxu1 %vm8507_vm1, %v22775_v53 }
 0x769   : > { %20314 = vmatprep.subr.msk.bf16.mxu1 %vm22850_vm4, %v20312_v45 }
 0x76c   : > { %20317 = vmatpush3.bf16.msk.msra.mxu1 %vm22850_vm4, %v20312_v45 }
 0x76d   : > { %20319 = vmatprep.subr.bf16.mxu1 %v20308_v17 }
 0x76f   : > { %19137 = vmatmul.mubr.msk.f32.vlgmr.msra.gmra.mrb[76].mxu1 %vm8507_vm1, %v22869_v13  ;;  %v21253_v13 = vld [vmem:[%s24972_s3 + $0x8] sm:$0xff]  }
 0x770   : > { %20321 = vmatpush3.bf16.msra.mxu1 %v20308_v17  ;;  %19147 = vmatprep.mubr.msk.f32.mxu1 %vm8507_vm1, %v22873_v46 }
 0x771   : > { %20324 = vmatprep.subr.msk.bf16.mxu1 %vm22850_vm4, %v20312_v45 }
 0x774   : > { %20327 = vmatpush3.bf16.msk.msra.mxu1 %vm22850_vm4, %v20312_v45 }
 0x775   : > { %19150 = vmatprep.subr.bf16.mxu1 %v23358_v61 }
 0x777   : > { %19148 = vmatmul.mubr.msk.f32.vlgmr.msra.gmra.mrb[78].mxu1 %vm8507_vm1, %v22893_v39  ;;  %v21255_v39 = vld [vmem:[%s24972_s3 + $0x18] sm:$0xff]  }
 0x778   : > { %19151 = vmatpush3.bf16.msra.mxu1 %v21252_v3  ;;  %19166 = vmatprep.mubr.msk.bf16.mxu1 %vm21550_vm8, %v23358_v61 }
 0x779   : > { %19152 = vmatprep.subr.bf16.mxu1 %v23358_v61 }
 0x77c   : > { %19153 = vmatpush3.bf16.msra.mxu1 %v21253_v13 }
 0x77d   : > { %19154 = vmatprep.subr.bf16.mxu1 %v23358_v61 }
 0x780   : > { %19155 = vmatpush3.bf16.msra.mxu1 %v21254_v63 }
 0x781   : > { %19156 = vmatprep.subr.bf16.mxu1 %v23358_v61 }
 0x782   : > { %v18874_v32 = vpop.f32.mrb[28].mxu1 }
 0x783   : > { %v8584_v43 = vpop.f32.mrb[29].mxu1 }
 0x784   : > { %19157 = vmatpush3.bf16.msra.mxu1 %v21255_v39 }
 0x785   : > { %19158 = vmatprep.subr.bf16.mxu1 %v23358_v61 }
 0x788   : > { %19159 = vmatpush3.bf16.msra.mxu1 %v21256_v60 }
 0x789   : > { %19160 = vmatprep.subr.bf16.mxu1 %v23358_v61 }
 0x78a   : > { %v18885_v50 = vpop.f32.mrb[30].mxu1 }
 0x78b   : > { %v8675_v41 = vmax.f32 %v18874_v32, %v18885_v50  ;;  %v8665_v42 = vpop.f32.mrb[31].mxu1 }
 0x78c   : > { %v8674_v28 = vmax.f32 %v8584_v43, %v8665_v42  ;;  %19161 = vmatpush3.bf16.msra.mxu1 %v21257_v35 }
 0x78d   : > { %8677 = vst [vmem:[#allocation3 + $0x8] sm:$0x1f] %v8675_v41  ;;  %19162 = vmatprep.subr.bf16.mxu1 %v23358_v61 }
 0x78e   : > { %8676 = vst [vmem:[#allocation3] sm:$0xff] %v8674_v28 }
 0x790   : > { %19163 = vmatpush3.bf16.msra.mxu1 %v21258_v30 }
 0x791   : > { %19164 = vmatprep.subr.bf16.mxu1 %v23358_v61 }
 0x792   : > { %v18896_v18 = vpop.f32.mrb[32].mxu1 }
 0x793   : > { %v8759_v11 = vpop.f32.mrb[33].mxu1 }
 0x794   : > { %19165 = vmatpush3.bf16.msra.mxu1 %v21259_v49 }
 0x795   : > { %19202 = vmatprep.subr.bf16.mxu1 %v23358_v61 }
 0x79a   : > { %v18907_v12 = vpop.f32.mrb[34].mxu1 }
 0x79b   : > { %v8844_v44 = vmax.f32 %v18896_v18, %v18907_v12  ;;  %v8834_v2 = vpop.f32.mrb[35].mxu1 }
 0x79c   : > { %v23394_v16 = vmax.f32 %v8759_v11, %v8834_v2 }
 0x79d   : > { %8846 = vst [vmem:[#allocation3 + $0x15] sm:$0x1f] %v8844_v44 }
 0x79e   : > { %8845 = vst [vmem:[#allocation3 + $0xd] sm:$0xff] %v23394_v16 }
 0x7a2   : > { %v18918_v19 = vpop.f32.mrb[36].mxu1 }
 0x7a3   : > { %v8928_v6 = vpop.f32.mrb[37].mxu1 }
 0x7a5   : > { %v10707_v10 = vld [vmem:[#allocation3 + $0x8] sm:$0xff]  ;;  %v10708_v23 = vld [vmem:[#allocation3 + $0x10] sm:$0xff] }
 0x7a6   : > { %v10724_v25 = vpack.c.bf16 %v10707_v10, %v8674_v28 }
 0x7a8   : > { %19167 = vmatmul.mubr.bf16.vlgmr.msra.gmra.mrb[80].mxu1 %v10724_v25 }
 0x7a9   : > { %19170 = vmatprep.mubr.msk.bf16.mxu1 %vm21550_vm8, %v23358_v61  ;;  %19203 = vmatpush3.bf16.msra.mxu1 %v21260_v27 }
 0x7aa   : > { %v18929_v14 = vpop.f32.mrb[38].mxu1  ;;  %19204 = vmatprep.subr.bf16.mxu1 %v23358_v61 }
 0x7ab   : > { %v9013_v20 = vmax.f32 %v18918_v19, %v18929_v14  ;;  %v9003_v57 = vpop.f32.mrb[39].mxu1 }
 0x7ac   : > { %v23406_v58 = vmax.f32 %v8928_v6, %v9003_v57 }
 0x7ad   : > { %9015 = vst [vmem:[#allocation3 + $0x22] sm:$0x1f] %v9013_v20  ;;  %19205 = vmatpush3.bf16.msra.mxu1 %v21261_v31 }
 0x7ae   : > { %9014 = vst [vmem:[#allocation3 + $0x1a] sm:$0xff] %v23406_v58  ;;  %19206 = vmatprep.subr.bf16.mxu1 %v23358_v61 }
 0x7b1   : > { %19207 = vmatpush3.bf16.msra.mxu1 %v21262_v37 }
 0x7b2   : > { %v18940_v40 = vpop.f32.mrb[40].mxu1  ;;  %19208 = vmatprep.subr.bf16.mxu1 %v23358_v61 }
 0x7b3   : > { %v9097_v34 = vpop.f32.mrb[41].mxu1 }
 0x7b5   : > { %19209 = vmatpush3.bf16.msra.mxu1 %v21263_v9  ;;  %v10709_v52 = vld [vmem:[#allocation3 + $0x18] sm:$0xff] }
 0x7b6   : > { %19210 = vmatprep.subr.bf16.mxu1 %v23358_v61  ;;  %v10725_v7 = vpack.c.bf16 %v10709_v52, %v10708_v23 }
 0x7b8   : > { %19171 = vmatmul.mubr.bf16.gmra.mrb[84].mxu1 %v10725_v7 }
 0x7b9   : > { %19174 = vmatprep.mubr.msk.bf16.mxu1 %vm21550_vm8, %v23358_v61  ;;  %19211 = vmatpush3.bf16.msra.mxu1 %v21264_v24 }
 0x7ba   : > { %v18951_v1 = vpop.f32.mrb[42].mxu1  ;;  %19212 = vmatprep.subr.bf16.mxu1 %v23358_v61 }
 0x7bb   : > { %v9182_v21 = vmax.f32 %v18940_v40, %v18951_v1  ;;  %v9172_v48 = vpop.f32.mrb[43].mxu1 }
 0x7bc   : > { %v9181_v36 = vmax.f32 %v9097_v34, %v9172_v48 }
 0x7bd   : > { %9184 = vst [vmem:[#allocation3 + $0x2f] sm:$0x1f] %v9182_v21  ;;  %19213 = vmatpush3.bf16.msra.mxu1 %v21265_v47 }
 0x7be   : > { %9183 = vst [vmem:[#allocation3 + $0x27] sm:$0xff] %v9181_v36  ;;  %19214 = vmatprep.subr.bf16.mxu1 %v23358_v61 }
 0x7c1   : > { %19215 = vmatpush3.bf16.msra.mxu1 %v21266_v29 }
 0x7c2   : > { %v18962_v33 = vpop.f32.mrb[44].mxu1  ;;  %19216 = vmatprep.subr.bf16.mxu1 %v23358_v61 }
 0x7c3   : > { %v9266_v8 = vpop.f32.mrb[45].mxu1 }
 0x7c5   : > { %v23435_v17 = vld [vmem:[#allocation3 + $0x22] sm:$0xff]  ;;  %19217 = vmatpush3.bf16.msra.mxu1 %v21267_v51 }
 0x7c6   : > { %v10710_v0 = vld [vmem:[#allocation3 + $0x20] sm:$0xff]  ;;  %v10711_v54 = vld [vmem:[#allocation3 + $0x28] sm:$0xff]  ;;  %v12193_v15 = vpack.c.bf16 %v23435_v17, %v23406_v58  ;;  %19254 = vmatprep.subr.bf16.mxu1 %v23358_v61 }
 0x7c7   : > { %v10726_v62 = vpack.c.bf16 %v10711_v54, %v10710_v0 }
 0x7c9   : > { %19175 = vmatmul.mubr.bf16.gmra.mrb[88].mxu1 %v10726_v62 }
 0x7ca   : > { %v18973_v55 = vpop.f32.mrb[46].mxu1  ;;  %19178 = vmatprep.mubr.msk.bf16.mxu1 %vm21550_vm8, %v23358_v61 }
 0x7cb   : > { %v9351_v38 = vmax.f32 %v18962_v33, %v18973_v55  ;;  %v9341_v26 = vpop.f32.mrb[47].mxu1 }
 0x7cc   : > { %v9350_v4 = vmax.f32 %v9266_v8, %v9341_v26 }
 0x7cd   : > { %9353 = vst [vmem:[#allocation3 + $0x3c] sm:$0x1f] %v9351_v38 }
 0x7ce   : > { %9352 = vst [vmem:[#allocation3 + $0x34] sm:$0xff] %v9350_v4 }
 0x7d2   : > { %v18984_v5 = vpop.f32.mrb[48].mxu1 }
 0x7d3   : > { %v9435_v56 = vpop.f32.mrb[49].mxu1 }
 0x7d5   : > { %v10712_v59 = vld [vmem:[#allocation3 + $0x30] sm:$0xff]  ;;  %v10713_v45 = vld [vmem:[#allocation3 + $0x38] sm:$0xff] }
 0x7d6   : > { %v10727_v3 = vpack.c.bf16 %v10713_v45, %v10712_v59  ;;  %v10921_v59 = vld [vmem:[#allocation3 + $0x9] sm:$0xff] }
 0x7d8   : > { %19179 = vmatmul.mubr.bf16.gmra.mrb[92].mxu1 %v10727_v3  ;;  %v10920_v3 = vld [vmem:[#allocation3 + $0x1] sm:$0xff] }
 0x7d9   : > { %19182 = vmatprep.mubr.msk.bf16.mxu1 %vm21550_vm8, %v23358_v61 }
 0x7da   : > { %v18995_v13 = vpop.f32.mrb[50].mxu1 }
 0x7db   : > { %v9520_v63 = vmax.f32 %v18984_v5, %v18995_v13  ;;  %v9510_v39 = vpop.f32.mrb[51].mxu1  ;;  %v21268_v13 = vld [vmem:[%s24972_s3 + $0x80] sm:$0xff]  }
 0x7dc   : > { %v23444_v32 = vmax.f32 %v9435_v56, %v9510_v39  ;;  %v21269_v39 = vld [vmem:[%s24972_s3 + $0x88] sm:$0xff]  }
 0x7dd   : > { %9522 = vst [vmem:[#allocation3 + $0x49] sm:$0x1f] %v9520_v63  ;;  %v10938_v63 = vpack.c.bf16 %v10921_v59, %v10920_v3  ;;  %v21278_v59 = vld [vmem:[%s24972_s3 + $0xd0] sm:$0xff]  }
 0x7de   : > { %9521 = vst [vmem:[#allocation3 + $0x41] sm:$0xff] %v23444_v32 }
 0x7e2   : > { %v19006_v43 = vpop.f32.mrb[52].mxu1 }
 0x7e3   : > { %v9604_v60 = vpop.f32.mrb[53].mxu1 }
 0x7e5   : > { %v10714_v49 = vld [vmem:[#allocation3 + $0x40] sm:$0xff] }
 0x7ea   : > { %v19017_v35 = vpop.f32.mrb[54].mxu1 }
 0x7eb   : > { %v9689_v50 = vmax.f32 %v19006_v43, %v19017_v35  ;;  %v9679_v41 = vpop.f32.mrb[55].mxu1 }
 0x7ec   : > { %v23447_v42 = vmax.f32 %v9604_v60, %v9679_v41  ;;  %v10923_v60 = vld [vmem:[#allocation3 + $0x19] sm:$0xff] }
 0x7ed   : > { %9691 = vst [vmem:[#allocation3 + $0x56] sm:$0x1f] %v9689_v50  ;;  %v10922_v50 = vld [vmem:[#allocation3 + $0x11] sm:$0xff] }
 0x7ee   : > { %9690 = vst [vmem:[#allocation3 + $0x4e] sm:$0xff] %v23447_v42  ;;  %v21270_v41 = vld [vmem:[%s24972_s3 + $0x90] sm:$0xff]  }
 0x7f2   : > { %v19028_v28 = vpop.f32.mrb[56].mxu1 }
 0x7f3   : > { %v9773_v30 = vpop.f32.mrb[57].mxu1 }
 0x7f5   : > { %v10715_v18 = vld [vmem:[#allocation3 + $0x48] sm:$0xff]  ;;  %v10716_v27 = vld [vmem:[#allocation3 + $0x50] sm:$0xff] }
 0x7f6   : > { %v10728_v11 = vpack.c.bf16 %v10715_v18, %v10714_v49 }
 0x7f8   : > { %19183 = vmatmul.mubr.bf16.gmra.mrb[96].mxu1 %v10728_v11 }
 0x7f9   : > { %19186 = vmatprep.mubr.msk.bf16.mxu1 %vm21550_vm8, %v23358_v61 }
 0x7fa   : > { %v19039_v12 = vpop.f32.mrb[58].mxu1 }
 0x7fb   : > { %v9858_v44 = vmax.f32 %v19028_v28, %v19039_v12  ;;  %v9848_v2 = vpop.f32.mrb[59].mxu1  ;;  %v10939_v28 = vpack.c.bf16 %v10923_v60, %v10922_v50  ;;  %v10924_v12 = vld [vmem:[#allocation3 + $0x21] sm:$0xff] }
 0x7fc   : > { %v9857_v19 = vmax.f32 %v9773_v30, %v9848_v2  ;;  %v21271_v30 = vld [vmem:[%s24972_s3 + $0x98] sm:$0xff]  }
 0x7fd   : > { %9860 = vst [vmem:[#allocation3 + $0x63] sm:$0x1f] %v9858_v44  ;;  %v10925_v44 = vld [vmem:[#allocation3 + $0x29] sm:$0xff]  ;;  %v11178_v50 = vld [vmem:[#allocation3 + $0x3a] sm:$0xff] }
 0x7fe   : > { %9859 = vst [vmem:[#allocation3 + $0x5b] sm:$0xff] %v9857_v19  ;;  %v21272_v19 = vld [vmem:[%s24972_s3 + $0xa0] sm:$0xff]  }
 0x802   : > { %v19050_v6 = vpop.f32.mrb[60].mxu1 }
 0x803   : > { %v9942_v10 = vpop.f32.mrb[61].mxu1 }
 0x805   : > { %v10717_v25 = vld [vmem:[#allocation3 + $0x58] sm:$0xff]  ;;  %v10718_v9 = vld [vmem:[#allocation3 + $0x60] sm:$0xff] }
 0x806   : > { %v10729_v31 = vpack.c.bf16 %v10717_v25, %v10716_v27  ;;  %v10926_v27 = vld [vmem:[#allocation3 + $0x31] sm:$0xff]  ;;  %v10927_v25 = vld [vmem:[#allocation3 + $0x39] sm:$0xff] }
 0x808   : > { %19187 = vmatmul.mubr.bf16.gmra.mrb[100].mxu1 %v10729_v31  ;;  %v21274_v31 = vld [vmem:[%s24972_s3 + $0xb0] sm:$0xff]  }
 0x809   : > { %19190 = vmatprep.mubr.msk.bf16.mxu1 %vm21550_vm8, %v23358_v61 }
 0x80a   : > { %v19061_v14 = vpop.f32.mrb[62].mxu1 }
 0x80b   : > { %v10027_v20 = vmax.f32 %v19050_v6, %v19061_v14  ;;  %v10017_v57 = vpop.f32.mrb[63].mxu1  ;;  %v10940_v6 = vpack.c.bf16 %v10925_v44, %v10924_v12  ;;  %v10941_v14 = vpack.c.bf16 %v10927_v25, %v10926_v27  ;;  %v21283_v44 = vld [vmem:[%s24972_s3 + $0xf8] sm:$0xff]  }
 0x80c   : > { %v10026_v37 = vmax.f32 %v9942_v10, %v10017_v57  ;;  %v21273_v10 = vld [vmem:[%s24972_s3 + $0xa8] sm:$0xff]   ;;  %v11182_v27 = vld [vmem:[#allocation3 + $0x5a] sm:$0xff] }
 0x80d   : > { %10029 = vst [vmem:[#allocation3 + $0x70] sm:$0x1f] %v10027_v20  ;;  %v21275_v20 = vld [vmem:[%s24972_s3 + $0xb8] sm:$0xff]   ;;  %v10929_v57 = vld [vmem:[#allocation3 + $0x49] sm:$0xff] }
 0x80e   : > { %10028 = vst [vmem:[#allocation3 + $0x68] sm:$0xff] %v10026_v37  ;;  %v10730_v40 = vpack.c.bf16 %v10026_v37, %v10718_v9  ;;  %v10942_v37 = vpack.c.bf16 %v10929_v57, %v23444_v32  ;;  %v10931_v9 = vld [vmem:[#allocation3 + $0x59] sm:$0xff] }
 0x810   : > { %19191 = vmatmul.mubr.bf16.gmra.mrb[104].mxu1 %v10730_v40  ;;  %v10930_v40 = vld [vmem:[#allocation3 + $0x51] sm:$0xff] }
 0x811   : > { %19194 = vmatprep.mubr.msk.bf16.mxu1 %vm21550_vm8, %v23358_v61 }
 0x812   : > { %v19072_v34 = vpop.f32.mrb[64].mxu1 }
 0x813   : > { %v10111_v23 = vpop.f32.mrb[65].mxu1 }
 0x81a   : > { %v19083_v52 = vpop.f32.mrb[66].mxu1 }
 0x81b   : > { %v10196_v24 = vmax.f32 %v19072_v34, %v19083_v52  ;;  %v10186_v7 = vpop.f32.mrb[67].mxu1  ;;  %v10943_v34 = vpack.c.bf16 %v10931_v9, %v10930_v40  ;;  %v10933_v52 = vld [vmem:[#allocation3 + $0x69] sm:$0xff] }
 0x81c   : > { %v23456_v1 = vmax.f32 %v10111_v23, %v10186_v7  ;;  %v10932_v23 = vld [vmem:[#allocation3 + $0x61] sm:$0xff]  ;;  %v11184_v9 = vld [vmem:[#allocation3 + $0x6a] sm:$0xff] }
 0x81d   : > { %10198 = vst [vmem:[#allocation3 + $0x7d] sm:$0x1f] %v10196_v24  ;;  %v10944_v24 = vpack.c.bf16 %v10933_v52, %v10932_v23 }
 0x81e   : > { %10197 = vst [vmem:[#allocation3 + $0x75] sm:$0xff] %v23456_v1 }
 0x822   : > { %v19094_v47 = vpop.f32.mrb[68].mxu1 }
 0x823   : > { %v10280_v21 = vpop.f32.mrb[69].mxu1 }
 0x825   : > { %v10720_v48 = vld [vmem:[#allocation3 + $0x70] sm:$0xff]  ;;  %v10721_v36 = vld [vmem:[#allocation3 + $0x78] sm:$0xff] }
 0x826   : > { %v10731_v29 = vpack.c.bf16 %v10721_v36, %v10720_v48  ;;  %v10934_v32 = vld [vmem:[#allocation3 + $0x71] sm:$0xff]  ;;  %v10935_v7 = vld [vmem:[#allocation3 + $0x79] sm:$0xff] }
 0x827   : > { %v11186_v23 = vld [vmem:[#allocation3 + $0x7a] sm:$0xff] }
 0x828   : > { %19195 = vmatmul.mubr.bf16.gmra.mrb[108].mxu1 %v10731_v29 }
 0x829   : > { %19198 = vmatprep.mubr.msk.bf16.mxu1 %vm21550_vm8, %v23358_v61 }
 0x82a   : > { %v19105_v33 = vpop.f32.mrb[70].mxu1 }
 0x82b   : > { %v10365_v51 = vmax.f32 %v19094_v47, %v19105_v33  ;;  %v10355_v8 = vpop.f32.mrb[71].mxu1  ;;  %v10945_v47 = vpack.c.bf16 %v10935_v7, %v10934_v32 }
 0x82c   : > { %v23461_v0 = vmax.f32 %v10280_v21, %v10355_v8 }
 0x82d   : > { %10367 = vst [vmem:[#allocation3 + $0x8a] sm:$0x1f] %v10365_v51 }
 0x82e   : > { %10366 = vst [vmem:[#allocation3 + $0x82] sm:$0xff] %v23461_v0 }
 0x832   : > { %v19116_v54 = vpop.f32.mrb[72].mxu1 }
 0x833   : > { %v10449_v62 = vpop.f32.mrb[73].mxu1 }
 0x835   : > { %v10722_v55 = vld [vmem:[#allocation3 + $0x80] sm:$0xff]  ;;  %v10723_v38 = vld [vmem:[#allocation3 + $0x88] sm:$0x7f] }
 0x836   : > { %v10732_v26 = vpack.c.bf16 %v10723_v38, %v10722_v55  ;;  %v10936_v33 = vld [vmem:[#allocation3 + $0x81] sm:$0xff] }
 0x837   : > { %v21276_v55 = vld [vmem:[%s24972_s3 + $0xc0] sm:$0xff]  }
 0x838   : > { %19199 = vmatmul.mubr.bf16.gmra.mrb[112].mxu1 %v10732_v26  ;;  %v21277_v26 = vld [vmem:[%s24972_s3 + $0xc8] sm:$0xff]  }
 0x839   : > { %19218 = vmatprep.mubr.msk.bf16.mxu1 %vm21550_vm8, %v23358_v61 }
 0x83a   : > { %v19127_v4 = vpop.f32.mrb[74].mxu1 }
 0x83b   : > { %v10534_v5 = vmax.f32 %v19116_v54, %v19127_v4  ;;  %v10524_v56 = vpop.f32.mrb[75].mxu1  ;;  %v11172_v54 = vld [vmem:[#allocation3 + $0xa] sm:$0xff] }
 0x83c   : > { %v10533_v45 = vmax.f32 %v10449_v62, %v10524_v56  ;;  %v11171_v62 = vld [vmem:[#allocation3 + $0x2] sm:$0xff]  ;;  %v11173_v56 = vld [vmem:[#allocation3 + $0x12] sm:$0xff] }
 0x83d   : > { %10536 = vst [vmem:[#allocation3 + $0x97] sm:$0x1f] %v10534_v5  ;;  %v11189_v38 = vpack.c.bf16 %v11172_v54, %v11171_v62  ;;  %v11190_v3 = vpack.c.bf16 %v23406_v58, %v11173_v56  ;;  %v11425_v54 = vld [vmem:[#allocation3 + $0x25] sm:$0xff]  ;;  %v11424_v62 = vld [vmem:[#allocation3 + $0x1d] sm:$0xff]  ;;  %v11427_v56 = vld [vmem:[#allocation3 + $0x35] sm:$0xff] }
 0x83e   : > { %10535 = vst [vmem:[#allocation3 + $0x8f] sm:$0xff] %v10533_v45  ;;  %v21310_v58 = vld [vmem:[%s24972_s3 + $0x1d0] sm:$0xff]  }
 0x840   : > { %19219 = vmatmul.mubr.bf16.vlgmr.msra.gmra.mrb[116].mxu1 %v10938_v63  ;;  %v21279_v63 = vld [vmem:[%s24972_s3 + $0xd8] sm:$0xff]  }
 0x841   : > { %19222 = vmatprep.mubr.msk.bf16.mxu1 %vm21550_vm8, %v23358_v61  ;;  %19255 = vmatpush3.bf16.msra.mxu1 %v21268_v13 }
 0x842   : > { %v19138_v43 = vpop.f32.mrb[76].mxu1  ;;  %19256 = vmatprep.subr.bf16.mxu1 %v23358_v61 }
 0x843   : > { %v10618_v35 = vpop.f32.mrb[77].mxu1 }
 0x845   : > { %19257 = vmatpush3.bf16.msra.mxu1 %v21269_v39  ;;  %v10937_v48 = vld [vmem:[#allocation3 + $0x89] sm:$0x7f] }
 0x846   : > { %19258 = vmatprep.subr.bf16.mxu1 %v23358_v61  ;;  %v10946_v8 = vpack.c.bf16 %v10937_v48, %v10936_v33  ;;  %v11176_v39 = vld [vmem:[#allocation3 + $0x2a] sm:$0xff] }
 0x847   : > { %v11191_v60 = vpack.c.bf16 %v11176_v39, %v23435_v17  ;;  %v21284_v33 = vld [vmem:[%s24972_s3 + $0x100] sm:$0xff]  }
 0x848   : > { %19223 = vmatmul.mubr.bf16.gmra.mrb[120].mxu1 %v10939_v28 }
 0x849   : > { %19226 = vmatprep.mubr.msk.bf16.mxu1 %vm21550_vm8, %v23358_v61  ;;  %19259 = vmatpush3.bf16.msra.mxu1 %v21270_v41 }
 0x84a   : > { %v19149_v49 = vpop.f32.mrb[78].mxu1  ;;  %19260 = vmatprep.subr.bf16.mxu1 %v23358_v61 }
 0x84b   : > { %v10703_v18 = vmax.f32 %v19138_v43, %v19149_v49  ;;  %v10693_v11 = vpop.f32.mrb[79].mxu1  ;;  %v21280_v43 = vld [vmem:[%s24972_s3 + $0xe0] sm:$0xff]   ;;  %v21282_v49 = vld [vmem:[%s24972_s3 + $0xf0] sm:$0xff]  }
 0x84c   : > { %v10702_v2 = vmax.f32 %v10618_v35, %v10693_v11  ;;  %v21281_v35 = vld [vmem:[%s24972_s3 + $0xe8] sm:$0xff]  }
 0x84d   : > { %10705 = vst [vmem:[#allocation3 + $0xa4] sm:$0x1f] %v10703_v18  ;;  %19261 = vmatpush3.bf16.msra.mxu1 %v21271_v30  ;;  %v11177_v30 = vld [vmem:[#allocation3 + $0x32] sm:$0xff] }
 0x84e   : > { %10704 = vst [vmem:[#allocation3 + $0x9c] sm:$0xff] %v10702_v2  ;;  %19262 = vmatprep.subr.bf16.mxu1 %v23358_v61  ;;  %v11192_v11 = vpack.c.bf16 %v11178_v50, %v11177_v30  ;;  %v11180_v2 = vld [vmem:[#allocation3 + $0x4a] sm:$0xff] }
 0x850   : > { %19227 = vmatmul.mubr.bf16.gmra.mrb[124].mxu1 %v10940_v6 }
 0x851   : > { %19230 = vmatprep.mubr.msk.bf16.mxu1 %vm21550_vm8, %v23358_v61  ;;  %19263 = vmatpush3.bf16.msra.mxu1 %v21272_v19  ;;  %v11179_v19 = vld [vmem:[#allocation3 + $0x42] sm:$0xff] }
 0x852   : > { %19264 = vmatprep.subr.bf16.mxu1 %v23358_v61  ;;  %v11193_v6 = vpack.c.bf16 %v11180_v2, %v11179_v19  ;;  %v11431_v2 = vld [vmem:[#allocation3 + $0x55] sm:$0xff]  ;;  %v11430_v19 = vld [vmem:[#allocation3 + $0x4d] sm:$0xff] }
 0x855   : > { %19265 = vmatpush3.bf16.msra.mxu1 %v21273_v10 }
 0x856   : > { %19266 = vmatprep.subr.bf16.mxu1 %v23358_v61 }
 0x858   : > { %19231 = vmatmul.mubr.bf16.gmra.mrb[128].mxu1 %v10941_v14  ;;  %v11181_v14 = vld [vmem:[#allocation3 + $0x52] sm:$0xff] }
 0x859   : > { %19234 = vmatprep.mubr.msk.bf16.mxu1 %vm21550_vm8, %v23358_v61  ;;  %19267 = vmatpush3.bf16.msra.mxu1 %v21274_v31  ;;  %v11194_v57 = vpack.c.bf16 %v11182_v27, %v11181_v14  ;;  %v11433_v27 = vld [vmem:[#allocation3 + $0x65] sm:$0xff] }
 0x85a   : > { %19268 = vmatprep.subr.bf16.mxu1 %v23358_v61 }
 0x85d   : > { %19269 = vmatpush3.bf16.msra.mxu1 %v21275_v20 }
 0x85e   : > { %19306 = vmatprep.subr.bf16.mxu1 %v23358_v61 }
 0x860   : > { %19235 = vmatmul.mubr.bf16.gmra.mrb[132].mxu1 %v10942_v37  ;;  %v11183_v37 = vld [vmem:[#allocation3 + $0x62] sm:$0xff] }
 0x861   : > { %19238 = vmatprep.mubr.msk.bf16.mxu1 %vm21550_vm8, %v23358_v61  ;;  %v11195_v40 = vpack.c.bf16 %v11184_v9, %v11183_v37  ;;  %v11434_v9 = vld [vmem:[#allocation3 + $0x6d] sm:$0xff] }
 0x868   : > { %19239 = vmatmul.mubr.bf16.gmra.mrb[136].mxu1 %v10943_v34  ;;  %v11185_v34 = vld [vmem:[#allocation3 + $0x72] sm:$0xff] }
 0x869   : > { %19242 = vmatprep.mubr.msk.bf16.mxu1 %vm21550_vm8, %v23358_v61  ;;  %v11196_v52 = vpack.c.bf16 %v11186_v23, %v11185_v34  ;;  %v11446_v34 = vpack.c.bf16 %v23456_v1, %v11434_v9  ;;  %v11436_v23 = vld [vmem:[#allocation3 + $0x7d] sm:$0xff] }
 0x870   : > { %19243 = vmatmul.mubr.bf16.gmra.mrb[140].mxu1 %v10944_v24  ;;  %v11188_v24 = vld [vmem:[#allocation3 + $0x8a] sm:$0x7f] }
 0x871   : > { %19246 = vmatprep.mubr.msk.bf16.mxu1 %vm21550_vm8, %v23358_v61  ;;  %v11197_v32 = vpack.c.bf16 %v11188_v24, %v23461_v0  ;;  %v21285_v0 = vld [vmem:[%s24972_s3 + $0x108] sm:$0xff]  }
 0x878   : > { %19247 = vmatmul.mubr.bf16.gmra.mrb[144].mxu1 %v10945_v47  ;;  %v11423_v47 = vld [vmem:[#allocation3 + $0x15] sm:$0xff] }
 0x879   : > { %19250 = vmatprep.mubr.msk.bf16.mxu1 %vm21550_vm8, %v23358_v61 }
 0x87b   : > { %v23515_v21 = vpop.f32.mrb[80].mxu1 }
 0x87c   : > { %v19168_v36 = vpop.f32.mrb[81].mxu1 }
 0x87d   : > { %v23517_v29 = vpop.f32.mrb[82].mxu1 }
 0x87e   : > { %v19169_v51 = vpop.f32.mrb[83].mxu1 }
 0x880   : > { %19251 = vmatmul.mubr.bf16.gmra.mrb[148].mxu1 %v10946_v8  ;;  %v11440_v8 = vpack.c.bf16 %v11423_v47, %v23394_v16  ;;  %v21287_v16 = vld [vmem:[%s24972_s3 + $0x118] sm:$0xff]   ;;  %v11438_v47 = vld [vmem:[#allocation3 + $0x8d] sm:$0xff] }
 0x881   : > { %19270 = vmatprep.mubr.msk.bf16.mxu1 %vm21550_vm8, %v23358_v61 }
 0x888   : > { %19271 = vmatmul.mubr.bf16.vlgmr.msra.gmra.mrb[152].mxu1 %v11189_v38  ;;  %v11441_v38 = vpack.c.bf16 %v11425_v54, %v11424_v62  ;;  %v11674_v54 = vld [vmem:[#allocation3 + $0x16] sm:$0xff] }
 0x889   : > { %19274 = vmatprep.mubr.msk.bf16.mxu1 %vm21550_vm8, %v23358_v61  ;;  %19307 = vmatpush3.bf16.msra.mxu1 %v21276_v55  ;;  %v21286_v55 = vld [vmem:[%s24972_s3 + $0x110] sm:$0xff]  }
 0x88a   : > { %19308 = vmatprep.subr.bf16.mxu1 %v23358_v61 }
 0x88b   : > { %v23530_v4 = vpop.f32.mrb[84].mxu1 }
 0x88c   : > { %v19172_v5 = vpop.f32.mrb[85].mxu1 }
 0x88d   : > { %19309 = vmatpush3.bf16.msra.mxu1 %v21277_v26  ;;  %v23535_v45 = vpop.f32.mrb[86].mxu1  ;;  %v11426_v5 = vld [vmem:[#allocation3 + $0x2d] sm:$0xff] }
 0x88e   : > { %19310 = vmatprep.subr.bf16.mxu1 %v23358_v61  ;;  %v19173_v13 = vpop.f32.mrb[87].mxu1  ;;  %v11442_v39 = vpack.c.bf16 %v11427_v56, %v11426_v5  ;;  %v21292_v5 = vld [vmem:[%s24972_s3 + $0x140] sm:$0xff]  }
 0x88f   : > { %v21288_v13 = vld [vmem:[%s24972_s3 + $0x120] sm:$0xff]  }
 0x890   : > { %19275 = vmatmul.mubr.bf16.gmra.mrb[156].mxu1 %v11190_v3 }
 0x891   : > { %19278 = vmatprep.mubr.msk.bf16.mxu1 %vm21550_vm8, %v23358_v61  ;;  %19311 = vmatpush3.bf16.msra.mxu1 %v21278_v59 }
 0x892   : > { %19312 = vmatprep.subr.bf16.mxu1 %v23358_v61 }
 0x895   : > { %19313 = vmatpush3.bf16.msra.mxu1 %v21279_v63 }
 0x896   : > { %19314 = vmatprep.subr.bf16.mxu1 %v23358_v61 }
 0x898   : > { %19279 = vmatmul.mubr.bf16.gmra.mrb[160].mxu1 %v11191_v60  ;;  %v11428_v60 = vld [vmem:[#allocation3 + $0x3d] sm:$0xff] }
 0x899   : > { %19282 = vmatprep.mubr.msk.bf16.mxu1 %vm21550_vm8, %v23358_v61  ;;  %19315 = vmatpush3.bf16.msra.mxu1 %v21280_v43  ;;  %v21289_v43 = vld [vmem:[%s24972_s3 + $0x128] sm:$0xff]  }
 0x89a   : > { %19316 = vmatprep.subr.bf16.mxu1 %v23358_v61 }
 0x89c   : > { %v23556_v41 = vpop.f32.mrb[88].mxu1 }
 0x89d   : > { %v19176_v28 = vpop.f32.mrb[89].mxu1  ;;  %19317 = vmatpush3.bf16.msra.mxu1 %v21281_v35  ;;  %v11429_v35 = vld [vmem:[#allocation3 + $0x45] sm:$0xff] }
 0x89e   : > { %v23561_v18 = vpop.f32.mrb[90].mxu1  ;;  %19318 = vmatprep.subr.bf16.mxu1 %v23358_v61 }
 0x89f   : > { %v19177_v12 = vpop.f32.mrb[91].mxu1 }
 0x8a0   : > { %19283 = vmatmul.mubr.bf16.gmra.mrb[164].mxu1 %v11192_v11  ;;  %v11443_v11 = vpack.c.bf16 %v11429_v35, %v11428_v60  ;;  %v11675_v35 = vld [vmem:[#allocation3 + $0x1e] sm:$0xff] }
 0x8a1   : > { %19286 = vmatprep.mubr.msk.bf16.mxu1 %vm21550_vm8, %v23358_v61  ;;  %19319 = vmatpush3.bf16.msra.mxu1 %v21282_v49  ;;  %v21290_v49 = vld [vmem:[%s24972_s3 + $0x130] sm:$0xff]  }
 0x8a2   : > { %19320 = vmatprep.subr.bf16.mxu1 %v23358_v61 }
 0x8a5   : > { %19321 = vmatpush3.bf16.msra.mxu1 %v21283_v44  ;;  %v21291_v44 = vld [vmem:[%s24972_s3 + $0x138] sm:$0xff]  }
 0x8a6   : > { %19358 = vmatprep.subr.bf16.mxu1 %v23358_v61 }
 0x8a8   : > { %19287 = vmatmul.mubr.bf16.gmra.mrb[168].mxu1 %v11193_v6  ;;  %v11444_v6 = vpack.c.bf16 %v11431_v2, %v11430_v19  ;;  %v11677_v2 = vld [vmem:[#allocation3 + $0x2e] sm:$0xff]  ;;  %v11678_v19 = vld [vmem:[#allocation3 + $0x36] sm:$0xff] }
 0x8a9   : > { %19290 = vmatprep.mubr.msk.bf16.mxu1 %vm21550_vm8, %v23358_v61  ;;  %v11693_v9 = vpack.c.bf16 %v11678_v19, %v11677_v2  ;;  %v11688_v2 = vld [vmem:[#allocation3 + $0x86] sm:$0xff] }
 0x8ab   : > { %v23573_v10 = vpop.f32.mrb[92].mxu1 }
 0x8ac   : > { %v19180_v25 = vpop.f32.mrb[93].mxu1 }
 0x8ad   : > { %v23575_v31 = vpop.f32.mrb[94].mxu1  ;;  %v11432_v25 = vld [vmem:[#allocation3 + $0x5d] sm:$0xff] }
 0x8ae   : > { %v19181_v20 = vpop.f32.mrb[95].mxu1  ;;  %v11445_v14 = vpack.c.bf16 %v11433_v27, %v11432_v25  ;;  %v21296_v25 = vld [vmem:[%s24972_s3 + $0x160] sm:$0xff]  }
 0x8b0   : > { %19291 = vmatmul.mubr.bf16.gmra.mrb[172].mxu1 %v11194_v57 }
 0x8b1   : > { %19294 = vmatprep.mubr.msk.bf16.mxu1 %vm21550_vm8, %v23358_v61 }
 0x8b8   : > { %19295 = vmatmul.mubr.bf16.gmra.mrb[176].mxu1 %v11195_v40 }
 0x8b9   : > { %19298 = vmatprep.mubr.msk.bf16.mxu1 %vm21550_vm8, %v23358_v61 }
 0x8c0   : > { %19299 = vmatmul.mubr.bf16.gmra.mrb[180].mxu1 %v11196_v52  ;;  %v11437_v52 = vld [vmem:[#allocation3 + $0x85] sm:$0xff] }
 0x8c1   : > { %19302 = vmatprep.mubr.msk.bf16.mxu1 %vm21550_vm8, %v23358_v61  ;;  %v11447_v24 = vpack.c.bf16 %v11437_v52, %v11436_v23  ;;  %v11680_v23 = vld [vmem:[#allocation3 + $0x46] sm:$0xff] }
 0x8c8   : > { %19303 = vmatmul.mubr.bf16.gmra.mrb[184].mxu1 %v11197_v32 }
 0x8c9   : > { %19322 = vmatprep.mubr.msk.bf16.mxu1 %vm21550_vm8, %v23358_v61 }
 0x8cb   : > { %v23586_v7 = vpop.f32.mrb[96].mxu1 }
 0x8cc   : > { %v19184_v48 = vpop.f32.mrb[97].mxu1 }
 0x8cd   : > { %v23588_v36 = vpop.f32.mrb[98].mxu1  ;;  %v11439_v48 = vld [vmem:[#allocation3 + $0x95] sm:$0x7f] }
 0x8ce   : > { %v19185_v51 = vpop.f32.mrb[99].mxu1 }
 0x8d0   : > { %19323 = vmatmul.mubr.bf16.vlgmr.msra.gmra.mrb[188].mxu1 %v11440_v8 }
 0x8d1   : > { %19326 = vmatprep.mubr.msk.bf16.mxu1 %vm21550_vm8, %v23358_v61  ;;  %19359 = vmatpush3.bf16.msra.mxu1 %v21284_v33 }
 0x8d2   : > { %19360 = vmatprep.subr.bf16.mxu1 %v23358_v61 }
 0x8d5   : > { %19361 = vmatpush3.bf16.msra.mxu1 %v21285_v0  ;;  %v11448_v0 = vpack.c.bf16 %v11439_v48, %v11438_v47 }
 0x8d6   : > { %19362 = vmatprep.subr.bf16.mxu1 %v23358_v61 }
 0x8d8   : > { %19327 = vmatmul.mubr.bf16.gmra.mrb[192].mxu1 %v11441_v38 }
 0x8d9   : > { %19330 = vmatprep.mubr.msk.bf16.mxu1 %vm21550_vm8, %v23358_v61  ;;  %19363 = vmatpush3.bf16.msra.mxu1 %v21286_v55 }
 0x8da   : > { %19364 = vmatprep.subr.bf16.mxu1 %v23358_v61 }
 0x8db   : > { %v23610_v26 = vpop.f32.mrb[100].mxu1 }
 0x8dc   : > { %v19188_v59 = vpop.f32.mrb[101].mxu1 }
 0x8dd   : > { %v23612_v3 = vpop.f32.mrb[102].mxu1  ;;  %19365 = vmatpush3.bf16.msra.mxu1 %v21287_v16  ;;  %v11673_v16 = vld [vmem:[#allocation3 + $0xe] sm:$0xff] }
 0x8de   : > { %v19189_v63 = vpop.f32.mrb[103].mxu1  ;;  %19366 = vmatprep.subr.bf16.mxu1 %v23358_v61 }
 0x8e0   : > { %19331 = vmatmul.mubr.bf16.gmra.mrb[196].mxu1 %v11442_v39  ;;  %v11676_v39 = vld [vmem:[#allocation3 + $0x26] sm:$0xff] }
 0x8e1   : > { %19334 = vmatprep.mubr.msk.bf16.mxu1 %vm21550_vm8, %v23358_v61  ;;  %19367 = vmatpush3.bf16.msra.mxu1 %v21288_v13  ;;  %v11691_v13 = vpack.c.bf16 %v11674_v54, %v11673_v16  ;;  %v23724_v16 = vld [vmem:[#allocation4] sm:$0xff] }
 0x8e2   : > { %19368 = vmatprep.subr.bf16.mxu1 %v23358_v61 }
 0x8e3   : > { %v23624_v50 = vpop.f32.mrb[104].mxu1 }
 0x8e4   : > { %v19192_v28 = vpop.f32.mrb[105].mxu1 }
 0x8e5   : > { %v23626_v30 = vpop.f32.mrb[106].mxu1  ;;  %19369 = vmatpush3.bf16.msra.mxu1 %v21289_v43  ;;  %v21294_v28 = vld [vmem:[%s24972_s3 + $0x150] sm:$0xff]  }
 0x8e6   : > { %v19193_v12 = vpop.f32.mrb[107].mxu1  ;;  %19370 = vmatprep.subr.bf16.mxu1 %v23358_v61 }
 0x8e7   : > { %v11692_v12 = vpack.c.bf16 %v11676_v39, %v11675_v35 }
 0x8e8   : > { %19335 = vmatmul.mubr.bf16.gmra.mrb[200].mxu1 %v11443_v11 }
 0x8e9   : > { %19338 = vmatprep.mubr.msk.bf16.mxu1 %vm21550_vm8, %v23358_v61  ;;  %19371 = vmatpush3.bf16.msra.mxu1 %v21290_v49 }
 0x8ea   : > { %19372 = vmatprep.subr.bf16.mxu1 %v23358_v61 }
 0x8ed   : > { %19373 = vmatpush3.bf16.msra.mxu1 %v21291_v44 }
 0x8ee   : > { %19410 = vmatprep.subr.bf16.mxu1 %v23358_v61 }
 0x8f0   : > { %19339 = vmatmul.mubr.bf16.gmra.mrb[204].mxu1 %v11444_v6 }
 0x8f1   : > { %19342 = vmatprep.mubr.msk.bf16.mxu1 %vm21550_vm8, %v23358_v61 }
 0x8f8   : > { %19343 = vmatmul.mubr.bf16.gmra.mrb[208].mxu1 %v11445_v14 }
 0x8f9   : > { %19346 = vmatprep.mubr.msk.bf16.mxu1 %vm21550_vm8, %v23358_v61 }
 0x8fb   : > { %v23643_v20 = vpop.f32.mrb[108].mxu1 }
 0x8fc   : > { %v19196_v57 = vpop.f32.mrb[109].mxu1 }
 0x8fd   : > { %v23645_v37 = vpop.f32.mrb[110].mxu1 }
 0x8fe   : > { %v19197_v40 = vpop.f32.mrb[111].mxu1 }
 0x900   : > { %19347 = vmatmul.mubr.bf16.gmra.mrb[212].mxu1 %v11446_v34  ;;  %v11679_v34 = vld [vmem:[#allocation3 + $0x3e] sm:$0xff] }
 0x901   : > { %19350 = vmatprep.mubr.msk.bf16.mxu1 %vm21550_vm8, %v23358_v61 }
 0x908   : > { %19351 = vmatmul.mubr.bf16.gmra.mrb[216].mxu1 %v11447_v24 }
 0x909   : > { %19354 = vmatprep.mubr.msk.bf16.mxu1 %vm21550_vm8, %v23358_v61 }
 0x90b   : > { %v10895_v32 = vpop.f32.mrb[112].mxu1 }
 0x90c   : > { %v19200_v33 = vpop.f32.mrb[113].mxu1  ;;  %v21298_v32 = vld [vmem:[%s24972_s3 + $0x170] sm:$0xff]  }
 0x90d   : > { %v10898_v51 = vpop.f32.mrb[114].mxu1  ;;  %v11694_v33 = vpack.c.bf16 %v11680_v23, %v11679_v34  ;;  %v11689_v23 = vld [vmem:[#allocation3 + $0x8e] sm:$0xff] }
 0x90e   : > { %10919 = vst [vmem:[#allocation2 + $0x88] sm:$0x7f] %v10898_v51  ;;  %v19201_v8 = vpop.f32.mrb[115].mxu1 }
 0x90f   : > { %v11682_v8 = vld [vmem:[#allocation3 + $0x56] sm:$0xff] }
 0x910   : > { %19355 = vmatmul.mubr.bf16.gmra.mrb[220].mxu1 %v11448_v0 }
 0x911   : > { %19374 = vmatprep.mubr.msk.bf16.mxu1 %vm21550_vm8, %v23358_v61 }
 0x913   : > { %v11046_v1 = vpop.f32.mrb[116].mxu1 }
 0x914   : > { %v23655_v62 = vadd.f32 %v11046_v1, %v23515_v21  ;;  %v19220_v55 = vpop.f32.mrb[117].mxu1  ;;  %v21293_v21 = vld [vmem:[%s24972_s3 + $0x148] sm:$0xff]  }
 0x915   : > { %v11049_v38 = vpop.f32.mrb[118].mxu1  ;;  %v11134_v34 = vld [vmem:[#allocation2 + $0x88] sm:$0x7f] }
 0x916   : > { %v23661_v56 = vadd.f32 %v11049_v38, %v23517_v29  ;;  %v19221_v59 = vpop.f32.mrb[119].mxu1  ;;  %v11695_v38 = vpack.c.bf16 %v11682_v8, %v23447_v42  ;;  %v21300_v8 = vld [vmem:[%s24972_s3 + $0x180] sm:$0xff]  }
 0x918   : > { %19375 = vmatmul.mubr.bf16.vlgmr.msra.gmra.mrb[224].mxu1 %v11691_v13 }
 0x919   : > { %19378 = vmatprep.mubr.msk.bf16.mxu1 %vm21550_vm8, %v23358_v61  ;;  %19411 = vmatpush3.bf16.msra.mxu1 %v21292_v5 }
 0x91a   : > { %19412 = vmatprep.subr.bf16.mxu1 %v23358_v61 }
 0x91b   : > { %v11054_v63 = vpop.f32.mrb[120].mxu1 }
 0x91c   : > { %v23670_v43 = vadd.f32 %v11054_v63, %v23530_v4  ;;  %v19224_v29 = vpop.f32.mrb[121].mxu1  ;;  %v21295_v4 = vld [vmem:[%s24972_s3 + $0x158] sm:$0xff]  }
 0x91d   : > { %v11057_v60 = vpop.f32.mrb[122].mxu1  ;;  %19413 = vmatpush3.bf16.msra.mxu1 %v21293_v21  ;;  %v11685_v29 = vld [vmem:[#allocation3 + $0x6e] sm:$0xff] }
 0x91e   : > { %v23676_v49 = vadd.f32 %v11057_v60, %v23535_v45  ;;  %v19225_v11 = vpop.f32.mrb[123].mxu1  ;;  %19414 = vmatprep.subr.bf16.mxu1 %v23358_v61  ;;  %v11686_v60 = vld [vmem:[#allocation3 + $0x76] sm:$0xff] }
 0x920   : > { %19379 = vmatmul.mubr.bf16.gmra.mrb[228].mxu1 %v11692_v12 }
 0x921   : > { %19382 = vmatprep.mubr.msk.bf16.mxu1 %vm21550_vm8, %v23358_v61  ;;  %19415 = vmatpush3.bf16.msra.mxu1 %v21294_v28 }
 0x922   : > { %19416 = vmatprep.subr.bf16.mxu1 %v23358_v61 }
 0x923   : > { %v11062_v44 = vpop.f32.mrb[124].mxu1 }
 0x924   : > { %v23686_v45 = vadd.f32 %v11062_v44, %v23556_v41  ;;  %v19228_v6 = vpop.f32.mrb[125].mxu1  ;;  %v21297_v41 = vld [vmem:[%s24972_s3 + $0x168] sm:$0xff]   ;;  %v11687_v44 = vld [vmem:[#allocation3 + $0x7e] sm:$0xff] }
 0x925   : > { %v11065_v27 = vpop.f32.mrb[126].mxu1  ;;  %19417 = vmatpush3.bf16.msra.mxu1 %v21295_v4 }
 0x926   : > { %v23692_v14 = vadd.f32 %v11065_v27, %v23561_v18  ;;  %v19229_v57 = vpop.f32.mrb[127].mxu1  ;;  %19418 = vmatprep.subr.bf16.mxu1 %v23358_v61 }
 0x928   : > { %19383 = vmatmul.mubr.bf16.gmra.mrb[232].mxu1 %v11693_v9  ;;  %v11690_v9 = vld [vmem:[#allocation3 + $0x96] sm:$0x7f] }
 0x929   : > { %19386 = vmatprep.mubr.msk.bf16.mxu1 %vm21550_vm8, %v23358_v61  ;;  %19419 = vmatpush3.bf16.msra.mxu1 %v21296_v25 }
 0x92a   : > { %19420 = vmatprep.subr.bf16.mxu1 %v23358_v61 }
 0x92b   : > { %v11070_v40 = vpop.f32.mrb[128].mxu1 }
 0x92c   : > { %v23702_v18 = vadd.f32 %v11070_v40, %v23573_v10  ;;  %v19232_v52 = vpop.f32.mrb[129].mxu1  ;;  %v21299_v10 = vld [vmem:[%s24972_s3 + $0x178] sm:$0xff]  }
 0x92d   : > { %v11073_v24 = vpop.f32.mrb[130].mxu1  ;;  %19421 = vmatpush3.bf16.msra.mxu1 %v21297_v41 }
 0x92e   : > { %v23708_v47 = vadd.f32 %v11073_v24, %v23575_v31  ;;  %v19233_v48 = vpop.f32.mrb[131].mxu1  ;;  %19422 = vmatprep.subr.bf16.mxu1 %v23358_v61  ;;  %v11699_v24 = vpack.c.bf16 %v11690_v9, %v11689_v23  ;;  %v21306_v9 = vld [vmem:[%s24972_s3 + $0x1b0] sm:$0xff]  }
 0x930   : > { %19387 = vmatmul.mubr.bf16.gmra.mrb[236].mxu1 %v11694_v33 }
 0x931   : > { %19390 = vmatprep.mubr.msk.bf16.mxu1 %vm21550_vm8, %v23358_v61  ;;  %19423 = vmatpush3.bf16.msra.mxu1 %v21298_v32 }
 0x932   : > { %19424 = vmatprep.subr.bf16.mxu1 %v23358_v61 }
 0x933   : > { %v11078_v51 = vpop.f32.mrb[132].mxu1 }
 0x934   : > { %v23718_v31 = vadd.f32 %v11078_v51, %v23586_v7  ;;  %v19236_v0 = vpop.f32.mrb[133].mxu1  ;;  %v11684_v7 = vld [vmem:[#allocation3 + $0x66] sm:$0xff] }
 0x935   : > { %v11081_v1 = vpop.f32.mrb[134].mxu1  ;;  %19425 = vmatpush3.bf16.msra.mxu1 %v21299_v10  ;;  %v11924_v10 = vld [vmem:[#allocation3 + $0xf] sm:$0xff] }
 0x936   : > { %v23721_v54 = vadd.f32 %v11081_v1, %v23588_v36  ;;  %v19237_v55 = vpop.f32.mrb[135].mxu1  ;;  %19462 = vmatprep.subr.bf16.mxu1 %v23724_v16  ;;  %v11683_v36 = vld [vmem:[#allocation3 + $0x5e] sm:$0xff] }
 0x937   : > { %v11696_v63 = vpack.c.bf16 %v11684_v7, %v11683_v36  ;;  %v21302_v36 = vld [vmem:[%s24972_s3 + $0x190] sm:$0xff]  }
 0x938   : > { %19391 = vmatmul.mubr.bf16.gmra.mrb[240].mxu1 %v11695_v38 }
 0x939   : > { %19394 = vmatprep.mubr.msk.bf16.mxu1 %vm21550_vm8, %v23724_v16 }
 0x93b   : > { %v11086_v61 = vpop.f32.mrb[136].mxu1 }
 0x93c   : > { %v23730_v5 = vadd.f32 %v11086_v61, %v23610_v26  ;;  %v19240_v59 = vpop.f32.mrb[137].mxu1  ;;  %v11927_v61 = vld [vmem:[#allocation3 + $0x27] sm:$0xff] }
 0x93d   : > { %v11089_v13 = vpop.f32.mrb[138].mxu1 }
 0x93e   : > { %v23733_v21 = vadd.f32 %v11089_v13, %v23612_v3  ;;  %v19241_v42 = vpop.f32.mrb[139].mxu1  ;;  %v11697_v3 = vpack.c.bf16 %v11686_v60, %v11685_v29  ;;  %v11926_v13 = vld [vmem:[#allocation3 + $0x1f] sm:$0xff]  ;;  %v11928_v60 = vld [vmem:[#allocation3 + $0x2f] sm:$0xff] }
 0x940   : > { %19395 = vmatmul.mubr.bf16.gmra.mrb[244].mxu1 %v11696_v63 }
 0x941   : > { %19398 = vmatprep.mubr.msk.bf16.mxu1 %vm21550_vm8, %v23724_v16 }
 0x943   : > { %v11094_v39 = vpop.f32.mrb[140].mxu1 }
 0x944   : > { %v23738_v35 = vadd.f32 %v11094_v39, %v23624_v50  ;;  %v19244_v26 = vpop.f32.mrb[141].mxu1  ;;  %v11943_v39 = vpack.c.bf16 %v11927_v61, %v11926_v13  ;;  %v11937_v13 = vld [vmem:[#allocation3 + $0x77] sm:$0xff] }
 0x945   : > { %v11097_v28 = vpop.f32.mrb[142].mxu1  ;;  %v11929_v26 = vld [vmem:[#allocation3 + $0x37] sm:$0xff] }
 0x946   : > { %v23741_v11 = vadd.f32 %v11097_v28, %v23626_v30  ;;  %v19245_v12 = vpop.f32.mrb[143].mxu1  ;;  %v11698_v30 = vpack.c.bf16 %v11688_v2, %v11687_v44  ;;  %v11944_v2 = vpack.c.bf16 %v11929_v26, %v11928_v60  ;;  %v11938_v60 = vld [vmem:[#allocation3 + $0x7f] sm:$0xff]  ;;  %v11939_v26 = vld [vmem:[#allocation3 + $0x87] sm:$0xff] }
 0x948   : > { %19399 = vmatmul.mubr.bf16.gmra.mrb[248].mxu1 %v11697_v3  ;;  %v21304_v3 = vld [vmem:[%s24972_s3 + $0x1a0] sm:$0xff]  }
 0x949   : > { %19402 = vmatprep.mubr.msk.bf16.mxu1 %vm21550_vm8, %v23724_v16 }
 0x94b   : > { %v11102_v4 = vpop.f32.mrb[144].mxu1 }
 0x94c   : > { %v23746_v19 = vadd.f32 %v11102_v4, %v23643_v20  ;;  %v19248_v6 = vpop.f32.mrb[145].mxu1 }
 0x94d   : > { %v11105_v50 = vpop.f32.mrb[146].mxu1 }
 0x94e   : > { %v23749_v27 = vadd.f32 %v11105_v50, %v23645_v37  ;;  %v19249_v25 = vpop.f32.mrb[147].mxu1  ;;  %v11925_v37 = vld [vmem:[#allocation3 + $0x17] sm:$0xff]  ;;  %v11931_v50 = vld [vmem:[#allocation3 + $0x47] sm:$0xff] }
 0x94f   : > { %v11942_v55 = vpack.c.bf16 %v11925_v37, %v11924_v10  ;;  %v11932_v37 = vld [vmem:[#allocation3 + $0x4f] sm:$0xff] }
 0x950   : > { %19403 = vmatmul.mubr.bf16.gmra.mrb[252].mxu1 %v11698_v30 }
 0x951   : > { %19406 = vmatprep.mubr.msk.bf16.mxu1 %vm21550_vm8, %v23724_v16 }
 0x953   : > { %v11110_v57 = vpop.f32.mrb[148].mxu1 }
 0x954   : > { %v19252_v41 = vpop.f32.mrb[149].mxu1  ;;  %v11930_v57 = vld [vmem:[#allocation3 + $0x3f] sm:$0xff] }
 0x955   : > { %v11113_v40 = vpop.f32.mrb[150].mxu1 }
 0x956   : > { %v11152_v52 = vadd.f32 %v11134_v34, %v11113_v40  ;;  %v19253_v20 = vpop.f32.mrb[151].mxu1  ;;  %v11945_v34 = vpack.c.bf16 %v11931_v50, %v11930_v57 }
 0x958   : > { %11170 = vst [vmem:[#allocation2 + $0x88] sm:$0x7f] %v11152_v52  ;;  %19407 = vmatmul.mubr.bf16.gmra.mrb[24].mxu1 %v11699_v24  ;;  %v11933_v52 = vld [vmem:[#allocation3 + $0x57] sm:$0xff] }
 0x959   : > { %19426 = vmatprep.mubr.msk.bf16.mxu1 %vm21550_vm8, %v23724_v16  ;;  %v11946_v10 = vpack.c.bf16 %v11933_v52, %v11932_v37  ;;  %v12178_v37 = vld [vmem:[#allocation3 + $0x32] sm:$0xff] }
 0x95b   : > { %v11297_v32 = vpop.f32.mrb[152].mxu1 }
 0x95c   : > { %v23756_v48 = vadd.f32 %v11297_v32, %v23655_v62  ;;  %v19272_v33 = vpop.f32.mrb[153].mxu1  ;;  %v21301_v62 = vld [vmem:[%s24972_s3 + $0x188] sm:$0xff]  }
 0x95d   : > { %v11300_v51 = vpop.f32.mrb[154].mxu1 }
 0x95e   : > { %v23762_v0 = vadd.f32 %v11300_v51, %v23661_v56  ;;  %v19273_v1 = vpop.f32.mrb[155].mxu1 }
 0x960   : > { %19427 = vmatmul.mubr.bf16.vlgmr.msra.gmra.mrb[0].mxu1 %v11942_v55 }
 0x961   : > { %19430 = vmatprep.mubr.msk.bf16.mxu1 %vm21550_vm8, %v23724_v16  ;;  %19463 = vmatpush3.bf16.msra.mxu1 %v21300_v8  ;;  %v11935_v8 = vld [vmem:[#allocation3 + $0x67] sm:$0xff] }
 0x962   : > { %19464 = vmatprep.subr.bf16.mxu1 %v23724_v16 }
 0x963   : > { %v11305_v38 = vpop.f32.mrb[156].mxu1 }
 0x964   : > { %v23771_v7 = vadd.f32 %v11305_v38, %v23670_v43  ;;  %v19276_v56 = vpop.f32.mrb[157].mxu1  ;;  %v21303_v43 = vld [vmem:[%s24972_s3 + $0x198] sm:$0xff]  }
 0x965   : > { %v11308_v59 = vpop.f32.mrb[158].mxu1  ;;  %19465 = vmatpush3.bf16.msra.mxu1 %v21301_v62  ;;  %v11934_v62 = vld [vmem:[#allocation3 + $0x5f] sm:$0xff] }
 0x966   : > { %v23777_v42 = vadd.f32 %v11308_v59, %v23676_v49  ;;  %v19277_v63 = vpop.f32.mrb[159].mxu1  ;;  %19466 = vmatprep.subr.bf16.mxu1 %v23724_v16  ;;  %v11947_v61 = vpack.c.bf16 %v11935_v8, %v11934_v62  ;;  %v11936_v59 = vld [vmem:[#allocation3 + $0x6f] sm:$0xff]  ;;  %v12180_v62 = vld [vmem:[#allocation3 + $0x42] sm:$0xff] }
 0x968   : > { %19431 = vmatmul.mubr.bf16.gmra.mrb[4].mxu1 %v11943_v39 }
 0x969   : > { %19434 = vmatprep.mubr.msk.bf16.mxu1 %vm21550_vm8, %v23724_v16  ;;  %19467 = vmatpush3.bf16.msra.mxu1 %v21302_v36 }
 0x96a   : > { %19468 = vmatprep.subr.bf16.mxu1 %v23724_v16 }
 0x96b   : > { %v11313_v29 = vpop.f32.mrb[160].mxu1 }
 0x96c   : > { %v23787_v49 = vadd.f32 %v11313_v29, %v23686_v45  ;;  %v19280_v28 = vpop.f32.mrb[161].mxu1  ;;  %v21305_v45 = vld [vmem:[%s24972_s3 + $0x1a8] sm:$0xff]  }
 0x96d   : > { %v11316_v12 = vpop.f32.mrb[162].mxu1  ;;  %19469 = vmatpush3.bf16.msra.mxu1 %v21303_v43 }
 0x96e   : > { %v23793_v4 = vadd.f32 %v11316_v12, %v23692_v14  ;;  %v19281_v44 = vpop.f32.mrb[163].mxu1  ;;  %19470 = vmatprep.subr.bf16.mxu1 %v23724_v16 }
 0x970   : > { %19435 = vmatmul.mubr.bf16.gmra.mrb[8].mxu1 %v11944_v2 }
 0x971   : > { %19438 = vmatprep.mubr.msk.bf16.mxu1 %vm21550_vm8, %v23724_v16  ;;  %19471 = vmatpush3.bf16.msra.mxu1 %v21304_v3 }
 0x972   : > { %19472 = vmatprep.subr.bf16.mxu1 %v23724_v16 }
 0x973   : > { %v11321_v6 = vpop.f32.mrb[164].mxu1 }
 0x974   : > { %v23803_v14 = vadd.f32 %v11321_v6, %v23702_v18  ;;  %v19284_v25 = vpop.f32.mrb[165].mxu1  ;;  %v21307_v18 = vld [vmem:[%s24972_s3 + $0x1b8] sm:$0xff]   ;;  %v11941_v6 = vld [vmem:[#allocation3 + $0x97] sm:$0x7f] }
 0x975   : > { %v11324_v30 = vpop.f32.mrb[166].mxu1  ;;  %19473 = vmatpush3.bf16.msra.mxu1 %v21305_v45  ;;  %v11940_v45 = vld [vmem:[#allocation3 + $0x8f] sm:$0xff] }
 0x976   : > { %v23809_v41 = vadd.f32 %v11324_v30, %v23708_v47  ;;  %v19285_v40 = vpop.f32.mrb[167].mxu1  ;;  %19474 = vmatprep.subr.bf16.mxu1 %v23724_v16  ;;  %v11385_v30 = vld [vmem:[#allocation2 + $0x88] sm:$0x7f] }
 0x978   : > { %19439 = vmatmul.mubr.bf16.gmra.mrb[12].mxu1 %v11945_v34 }
 0x979   : > { %19442 = vmatprep.mubr.msk.bf16.mxu1 %vm21550_vm8, %v23724_v16  ;;  %19475 = vmatpush3.bf16.msra.mxu1 %v21306_v9  ;;  %v11950_v9 = vpack.c.bf16 %v11941_v6, %v11940_v45 }
 0x97a   : > { %19476 = vmatprep.subr.bf16.mxu1 %v23724_v16 }
 0x97b   : > { %v11329_v23 = vpop.f32.mrb[168].mxu1 }
 0x97c   : > { %v23819_v47 = vadd.f32 %v11329_v23, %v23718_v31  ;;  %v19288_v20 = vpop.f32.mrb[169].mxu1  ;;  %v21308_v23 = vld [vmem:[%s24972_s3 + $0x1c0] sm:$0xff]  }
 0x97d   : > { %v11332_v24 = vpop.f32.mrb[170].mxu1  ;;  %19477 = vmatpush3.bf16.msra.mxu1 %v21307_v18 }
 0x97e   : > { %v23822_v32 = vadd.f32 %v11332_v24, %v23721_v54  ;;  %v19289_v33 = vpop.f32.mrb[171].mxu1  ;;  %19514 = vmatprep.subr.bf16.mxu1 %v23724_v16 }
 0x980   : > { %19443 = vmatmul.mubr.bf16.gmra.mrb[16].mxu1 %v11946_v10 }
 0x981   : > { %19446 = vmatprep.mubr.msk.bf16.mxu1 %vm21550_vm8, %v23724_v16 }
 0x983   : > { %v11337_v51 = vpop.f32.mrb[172].mxu1 }
 0x984   : > { %v23828_v31 = vadd.f32 %v11337_v51, %v23730_v5  ;;  %v19292_v1 = vpop.f32.mrb[173].mxu1  ;;  %v12177_v51 = vld [vmem:[#allocation3 + $0x2a] sm:$0xff] }
 0x985   : > { %v11340_v55 = vpop.f32.mrb[174].mxu1  ;;  %v12194_v8 = vpack.c.bf16 %v12178_v37, %v12177_v51 }
 0x986   : > { %v23831_v38 = vadd.f32 %v11340_v55, %v23733_v21  ;;  %v19293_v54 = vpop.f32.mrb[175].mxu1  ;;  %v11948_v21 = vpack.c.bf16 %v11937_v13, %v11936_v59  ;;  %v12179_v55 = vld [vmem:[#allocation3 + $0x3a] sm:$0xff] }
 0x988   : > { %19447 = vmatmul.mubr.bf16.gmra.mrb[20].mxu1 %v11947_v61 }
 0x989   : > { %19450 = vmatprep.mubr.msk.bf16.mxu1 %vm21550_vm8, %v23724_v16 }
 0x98b   : > { %v11345_v56 = vpop.f32.mrb[176].mxu1 }
 0x98c   : > { %v23836_v36 = vadd.f32 %v11345_v56, %v23738_v35  ;;  %v19296_v5 = vpop.f32.mrb[177].mxu1  ;;  %v21312_v56 = vld [vmem:[%s24972_s3 + $0x1e0] sm:$0xff]  }
 0x98d   : > { %v11348_v63 = vpop.f32.mrb[178].mxu1  ;;  %v12195_v5 = vpack.c.bf16 %v12180_v62, %v12179_v55 }
 0x98e   : > { %v23839_v39 = vadd.f32 %v11348_v63, %v23741_v11  ;;  %v19297_v43 = vpop.f32.mrb[179].mxu1  ;;  %v11949_v11 = vpack.c.bf16 %v11939_v26, %v11938_v60  ;;  %v21314_v26 = vld [vmem:[%s24972_s3 + $0x1f0] sm:$0xff]  }
 0x98f   : > { %v12181_v43 = vld [vmem:[#allocation3 + $0x4a] sm:$0xff] }
 0x990   : > { %19451 = vmatmul.mubr.bf16.gmra.mrb[28].mxu1 %v11948_v21  ;;  %v12182_v21 = vld [vmem:[#allocation3 + $0x52] sm:$0xff] }
 0x991   : > { %19454 = vmatprep.mubr.msk.bf16.mxu1 %vm21550_vm8, %v23724_v16 }
 0x993   : > { %v11353_v29 = vpop.f32.mrb[180].mxu1 }
 0x994   : > { %v23844_v28 = vadd.f32 %v11353_v29, %v23746_v19  ;;  %v19300_v12 = vpop.f32.mrb[181].mxu1 }
 0x995   : > { %v11356_v35 = vpop.f32.mrb[182].mxu1 }
 0x996   : > { %v23847_v3 = vadd.f32 %v11356_v35, %v23749_v27  ;;  %v19301_v44 = vpop.f32.mrb[183].mxu1 }
 0x997   : > { %v12196_v44 = vpack.c.bf16 %v12182_v21, %v12181_v43 }
 0x998   : > { %19455 = vmatmul.mubr.bf16.gmra.mrb[32].mxu1 %v11949_v11 }
 0x999   : > { %19458 = vmatprep.mubr.msk.bf16.mxu1 %vm21550_vm8, %v23724_v16 }
 0x99b   : > { %v11361_v2 = vpop.f32.mrb[184].mxu1 }
 0x99c   : > { %v19304_v50 = vpop.f32.mrb[185].mxu1  ;;  %v12184_v2 = vld [vmem:[#allocation3 + $0x62] sm:$0xff] }
 0x99d   : > { %v11364_v25 = vpop.f32.mrb[186].mxu1  ;;  %v12183_v50 = vld [vmem:[#allocation3 + $0x5a] sm:$0xff] }
 0x99e   : > { %v11403_v57 = vadd.f32 %v11385_v30, %v11364_v25  ;;  %v19305_v19 = vpop.f32.mrb[187].mxu1 }
 0x9a0   : > { %11421 = vst [vmem:[#allocation2 + $0x88] sm:$0x7f] %v11403_v57  ;;  %19459 = vmatmul.mubr.bf16.gmra.mrb[36].mxu1 %v11950_v9  ;;  %v12197_v57 = vpack.c.bf16 %v12184_v2, %v12183_v50  ;;  %v12186_v9 = vld [vmem:[#allocation3 + $0x72] sm:$0xff] }
 0x9a1   : > { %19478 = vmatprep.mubr.msk.bf16.mxu1 %vm21550_vm8, %v23724_v16  ;;  %v12429_v50 = vld [vmem:[#allocation3 + $0x33] sm:$0xff] }
 0x9a3   : > { %v11548_v27 = vpop.f32.mrb[188].mxu1 }
 0x9a4   : > { %v23854_v40 = vadd.f32 %v11548_v27, %v23756_v48  ;;  %v19324_v34 = vpop.f32.mrb[189].mxu1  ;;  %v21309_v48 = vld [vmem:[%s24972_s3 + $0x1c8] sm:$0xff]  }
 0x9a5   : > { %v11551_v18 = vpop.f32.mrb[190].mxu1 }
 0x9a6   : > { %v23860_v52 = vadd.f32 %v11551_v18, %v23762_v0  ;;  %v19325_v20 = vpop.f32.mrb[191].mxu1  ;;  %v12185_v18 = vld [vmem:[#allocation3 + $0x6a] sm:$0xff] }
 0x9a7   : > { %v12198_v20 = vpack.c.bf16 %v12186_v9, %v12185_v18  ;;  %v21318_v9 = vld [vmem:[%s24972_s3 + $0x210] sm:$0xff]  }
 0x9a8   : > { %19479 = vmatmul.mubr.bf16.vlgmr.msra.gmra.mrb[40].mxu1 %v12193_v15 }
 0x9a9   : > { %19482 = vmatprep.mubr.msk.bf16.mxu1 %vm21550_vm8, %v23724_v16  ;;  %19515 = vmatpush3.bf16.msra.mxu1 %v21308_v23 }
 0x9aa   : > { %19516 = vmatprep.subr.bf16.mxu1 %v23724_v16 }
 0x9ab   : > { %v11556_v24 = vpop.f32.mrb[192].mxu1 }
 0x9ac   : > { %v23872_v0 = vadd.f32 %v11556_v24, %v23771_v7  ;;  %v19328_v33 = vpop.f32.mrb[193].mxu1  ;;  %v21311_v7 = vld [vmem:[%s24972_s3 + $0x1d8] sm:$0xff]  }
 0x9ad   : > { %v11559_v10 = vpop.f32.mrb[194].mxu1  ;;  %19517 = vmatpush3.bf16.msra.mxu1 %v21309_v48  ;;  %v12188_v24 = vld [vmem:[#allocation3 + $0x82] sm:$0xff] }
 0x9ae   : > { %v23878_v17 = vadd.f32 %v11559_v10, %v23777_v42  ;;  %v19329_v15 = vpop.f32.mrb[195].mxu1  ;;  %19518 = vmatprep.subr.bf16.mxu1 %v23724_v16  ;;  %v12187_v10 = vld [vmem:[#allocation3 + $0x7a] sm:$0xff] }
 0x9b0   : > { %19483 = vmatmul.mubr.bf16.gmra.mrb[44].mxu1 %v12194_v8  ;;  %v12189_v8 = vld [vmem:[#allocation3 + $0x8a] sm:$0xff] }
 0x9b1   : > { %19486 = vmatprep.mubr.msk.bf16.mxu1 %vm21550_vm8, %v23724_v16  ;;  %19519 = vmatpush3.bf16.msra.mxu1 %v21310_v58 }
 0x9b2   : > { %19520 = vmatprep.subr.bf16.mxu1 %v23724_v16 }
 0x9b3   : > { %v11564_v1 = vpop.f32.mrb[196].mxu1 }
 0x9b4   : > { %v23888_v42 = vadd.f32 %v11564_v1, %v23787_v49  ;;  %v19332_v54 = vpop.f32.mrb[197].mxu1  ;;  %v21313_v49 = vld [vmem:[%s24972_s3 + $0x1e8] sm:$0xff]  }
 0x9b5   : > { %v11567_v61 = vpop.f32.mrb[198].mxu1  ;;  %19521 = vmatpush3.bf16.msra.mxu1 %v21311_v7  ;;  %v12190_v7 = vld [vmem:[#allocation3 + $0x92] sm:$0xff] }
 0x9b6   : > { %v23894_v59 = vadd.f32 %v11567_v61, %v23793_v4  ;;  %v19333_v13 = vpop.f32.mrb[199].mxu1  ;;  %19522 = vmatprep.subr.bf16.mxu1 %v23724_v16 }
 0x9b7   : > { %v12192_v13 = vld [vmem:[#allocation3 + $0xa2] sm:$0x7f] }
 0x9b8   : > { %19487 = vmatmul.mubr.bf16.gmra.mrb[48].mxu1 %v12195_v5 }
 0x9b9   : > { %19490 = vmatprep.mubr.msk.bf16.mxu1 %vm21550_vm8, %v23724_v16  ;;  %19523 = vmatpush3.bf16.msra.mxu1 %v21312_v56  ;;  %v12191_v56 = vld [vmem:[#allocation3 + $0x9a] sm:$0xff] }
 0x9ba   : > { %19524 = vmatprep.subr.bf16.mxu1 %v23724_v16  ;;  %v12201_v21 = vpack.c.bf16 %v12192_v13, %v12191_v56 }
 0x9bb   : > { %v11572_v63 = vpop.f32.mrb[200].mxu1 }
 0x9bc   : > { %v23904_v4 = vadd.f32 %v11572_v63, %v23803_v14  ;;  %v19336_v29 = vpop.f32.mrb[201].mxu1  ;;  %v21315_v14 = vld [vmem:[%s24972_s3 + $0x1f8] sm:$0xff]   ;;  %v11636_v63 = vld [vmem:[#allocation2 + $0x88] sm:$0x7f] }
 0x9bd   : > { %v11575_v60 = vpop.f32.mrb[202].mxu1  ;;  %19525 = vmatpush3.bf16.msra.mxu1 %v21313_v49 }
 0x9be   : > { %v23910_v12 = vadd.f32 %v11575_v60, %v23809_v41  ;;  %v19337_v35 = vpop.f32.mrb[203].mxu1  ;;  %19526 = vmatprep.subr.bf16.mxu1 %v23724_v16 }
 0x9bf   : > { %v12426_v35 = vld [vmem:[#allocation3 + $0x1b] sm:$0xff] }
 0x9c0   : > { %19491 = vmatmul.mubr.bf16.gmra.mrb[52].mxu1 %v12196_v44 }
 0x9c1   : > { %19494 = vmatprep.mubr.msk.bf16.mxu1 %vm21550_vm8, %v23724_v16  ;;  %19527 = vmatpush3.bf16.msra.mxu1 %v21314_v26 }
 0x9c2   : > { %19528 = vmatprep.subr.bf16.mxu1 %v23724_v16 }
 0x9c3   : > { %v11580_v11 = vpop.f32.mrb[204].mxu1 }
 0x9c4   : > { %v23920_v41 = vadd.f32 %v11580_v11, %v23819_v47  ;;  %v19340_v45 = vpop.f32.mrb[205].mxu1 }
 0x9c5   : > { %v11583_v6 = vpop.f32.mrb[206].mxu1  ;;  %19529 = vmatpush3.bf16.msra.mxu1 %v21315_v14  ;;  %v21316_v14 = vld [vmem:[%s24972_s3 + $0x200] sm:$0xff]  }
 0x9c6   : > { %v23923_v25 = vadd.f32 %v11583_v6, %v23822_v32  ;;  %v19341_v30 = vpop.f32.mrb[207].mxu1  ;;  %19566 = vmatprep.subr.bf16.mxu1 %v23724_v16 }
 0x9c8   : > { %19495 = vmatmul.mubr.bf16.gmra.mrb[56].mxu1 %v12197_v57 }
 0x9c9   : > { %19498 = vmatprep.mubr.msk.bf16.mxu1 %vm21550_vm8, %v23724_v16 }
 0x9cb   : > { %v11588_v19 = vpop.f32.mrb[208].mxu1 }
 0x9cc   : > { %v23929_v47 = vadd.f32 %v11588_v19, %v23828_v31  ;;  %v19344_v27 = vpop.f32.mrb[209].mxu1  ;;  %v12428_v19 = vld [vmem:[#allocation3 + $0x2b] sm:$0xff] }
 0x9cd   : > { %v11591_v34 = vpop.f32.mrb[210].mxu1  ;;  %v12445_v18 = vpack.c.bf16 %v12429_v50, %v12428_v19  ;;  %v12439_v50 = vld [vmem:[#allocation3 + $0x83] sm:$0xff] }
 0x9ce   : > { %v23932_v23 = vadd.f32 %v11591_v34, %v23831_v38  ;;  %v19345_v32 = vpop.f32.mrb[211].mxu1  ;;  %v12199_v38 = vpack.c.bf16 %v12188_v24, %v12187_v10 }
 0x9d0   : > { %19499 = vmatmul.mubr.bf16.gmra.mrb[60].mxu1 %v12198_v20  ;;  %v12430_v20 = vld [vmem:[#allocation3 + $0x3b] sm:$0xff] }
 0x9d1   : > { %19502 = vmatprep.mubr.msk.bf16.mxu1 %vm21550_vm8, %v23724_v16 }
 0x9d3   : > { %v11596_v48 = vpop.f32.mrb[212].mxu1 }
 0x9d4   : > { %v23937_v37 = vadd.f32 %v11596_v48, %v23836_v36  ;;  %v19348_v33 = vpop.f32.mrb[213].mxu1  ;;  %v12431_v48 = vld [vmem:[#allocation3 + $0x43] sm:$0xff] }
 0x9d5   : > { %v11599_v31 = vpop.f32.mrb[214].mxu1 }
 0x9d6   : > { %v23940_v51 = vadd.f32 %v11599_v31, %v23839_v39  ;;  %v19349_v58 = vpop.f32.mrb[215].mxu1  ;;  %v12200_v39 = vpack.c.bf16 %v12190_v7, %v12189_v8  ;;  %v21320_v31 = vld [vmem:[%s24972_s3 + $0x220] sm:$0xff]   ;;  %v12433_v7 = vld [vmem:[#allocation3 + $0x53] sm:$0xff] }
 0x9d7   : > { %v12432_v8 = vld [vmem:[#allocation3 + $0x4b] sm:$0xff] }
 0x9d8   : > { %19503 = vmatmul.mubr.bf16.gmra.mrb[64].mxu1 %v12199_v38  ;;  %v12446_v38 = vpack.c.bf16 %v12431_v48, %v12430_v20  ;;  %v12447_v56 = vpack.c.bf16 %v12433_v7, %v12432_v8 }
 0x9d9   : > { %19506 = vmatprep.mubr.msk.bf16.mxu1 %vm21550_vm8, %v23724_v16 }
 0x9db   : > { %v11604_v15 = vpop.f32.mrb[216].mxu1 }
 0x9dc   : > { %v23945_v1 = vadd.f32 %v11604_v15, %v23844_v28  ;;  %v19352_v36 = vpop.f32.mrb[217].mxu1 }
 0x9dd   : > { %v11607_v55 = vpop.f32.mrb[218].mxu1 }
 0x9de   : > { %v23948_v62 = vadd.f32 %v11607_v55, %v23847_v3  ;;  %v19353_v54 = vpop.f32.mrb[219].mxu1  ;;  %v12427_v3 = vld [vmem:[#allocation3 + $0x23] sm:$0xff] }
 0x9df   : > { %v12444_v45 = vpack.c.bf16 %v12427_v3, %v12426_v35  ;;  %v21322_v54 = vld [vmem:[%s24972_s3 + $0x230] sm:$0xff]  }
 0x9e0   : > { %19507 = vmatmul.mubr.bf16.gmra.mrb[68].mxu1 %v12200_v39 }
 0x9e1   : > { %19510 = vmatprep.mubr.msk.bf16.mxu1 %vm21550_vm8, %v23724_v16 }
 0x9e3   : > { %v11612_v61 = vpop.f32.mrb[220].mxu1 }
 0x9e4   : > { %v19356_v5 = vpop.f32.mrb[221].mxu1 }
 0x9e5   : > { %v11615_v49 = vpop.f32.mrb[222].mxu1  ;;  %v12435_v5 = vld [vmem:[#allocation3 + $0x63] sm:$0xff] }
 0x9e6   : > { %v11654_v43 = vadd.f32 %v11636_v63, %v11615_v49  ;;  %v19357_v28 = vpop.f32.mrb[223].mxu1 }
 0x9e8   : > { %11672 = vst [vmem:[#allocation2 + $0x88] sm:$0x7f] %v11654_v43  ;;  %19511 = vmatmul.mubr.bf16.gmra.mrb[72].mxu1 %v12201_v21  ;;  %v12434_v43 = vld [vmem:[#allocation3 + $0x5b] sm:$0xff] }
 0x9e9   : > { %19530 = vmatprep.mubr.msk.bf16.mxu1 %vm21550_vm8, %v23724_v16  ;;  %v12448_v3 = vpack.c.bf16 %v12435_v5, %v12434_v43 }
 0x9eb   : > { %v11799_v29 = vpop.f32.mrb[224].mxu1 }
 0x9ec   : > { %v23955_v60 = vadd.f32 %v11799_v29, %v23854_v40  ;;  %v19376_v26 = vpop.f32.mrb[225].mxu1  ;;  %v21317_v40 = vld [vmem:[%s24972_s3 + $0x208] sm:$0xff]  }
 0x9ed   : > { %v11802_v44 = vpop.f32.mrb[226].mxu1  ;;  %v12437_v26 = vld [vmem:[#allocation3 + $0x73] sm:$0xff] }
 0x9ee   : > { %v23961_v11 = vadd.f32 %v11802_v44, %v23860_v52  ;;  %v19377_v2 = vpop.f32.mrb[227].mxu1 }
 0x9f0   : > { %19531 = vmatmul.mubr.bf16.vlgmr.msra.gmra.mrb[76].mxu1 %v12444_v45 }
 0x9f1   : > { %19534 = vmatprep.mubr.msk.bf16.mxu1 %vm21550_vm8, %v23724_v16  ;;  %19567 = vmatpush3.bf16.msra.mxu1 %v21316_v14  ;;  %v12436_v14 = vld [vmem:[#allocation3 + $0x6b] sm:$0xff] }
 0x9f2   : > { %19568 = vmatprep.subr.bf16.mxu1 %v23724_v16 }
 0x9f3   : > { %v11807_v6 = vpop.f32.mrb[228].mxu1 }
 0x9f4   : > { %v23970_v30 = vadd.f32 %v11807_v6, %v23872_v0  ;;  %v19380_v52 = vpop.f32.mrb[229].mxu1  ;;  %v21319_v0 = vld [vmem:[%s24972_s3 + $0x218] sm:$0xff]  }
 0x9f5   : > { %v11810_v57 = vpop.f32.mrb[230].mxu1  ;;  %19569 = vmatpush3.bf16.msra.mxu1 %v21317_v40  ;;  %v12438_v6 = vld [vmem:[#allocation3 + $0x7b] sm:$0xff] }
 0x9f6   : > { %v23976_v27 = vadd.f32 %v11810_v57, %v23878_v17  ;;  %v19381_v34 = vpop.f32.mrb[231].mxu1  ;;  %19570 = vmatprep.subr.bf16.mxu1 %v23724_v16 }
 0x9f8   : > { %19535 = vmatmul.mubr.bf16.gmra.mrb[80].mxu1 %v12445_v18  ;;  %v12440_v18 = vld [vmem:[#allocation3 + $0x8b] sm:$0xff] }
 0x9f9   : > { %19538 = vmatprep.mubr.msk.bf16.mxu1 %vm21550_vm8, %v23724_v16  ;;  %19571 = vmatpush3.bf16.msra.mxu1 %v21318_v9 }
 0x9fa   : > { %19572 = vmatprep.subr.bf16.mxu1 %v23724_v16 }
 0x9fb   : > { %v11815_v32 = vpop.f32.mrb[232].mxu1 }
 0x9fc   : > { %v23986_v17 = vadd.f32 %v11815_v32, %v23888_v42  ;;  %v19384_v24 = vpop.f32.mrb[233].mxu1  ;;  %v21321_v42 = vld [vmem:[%s24972_s3 + $0x228] sm:$0xff]  }
 0x9fd   : > { %v11818_v33 = vpop.f32.mrb[234].mxu1  ;;  %19573 = vmatpush3.bf16.msra.mxu1 %v21319_v0  ;;  %v12441_v0 = vld [vmem:[#allocation3 + $0x93] sm:$0xff] }
 0x9fe   : > { %v23992_v10 = vadd.f32 %v11818_v33, %v23894_v59  ;;  %v19385_v58 = vpop.f32.mrb[235].mxu1  ;;  %19574 = vmatprep.subr.bf16.mxu1 %v23724_v16 }
 0x9ff   : > { %v12443_v58 = vld [vmem:[#allocation3 + $0xa3] sm:$0x7f] }
 0xa00   : > { %19539 = vmatmul.mubr.bf16.gmra.mrb[84].mxu1 %v12446_v38 }
 0xa01   : > { %19542 = vmatprep.mubr.msk.bf16.mxu1 %vm21550_vm8, %v23724_v16  ;;  %19575 = vmatpush3.bf16.msra.mxu1 %v21320_v31  ;;  %v12442_v31 = vld [vmem:[#allocation3 + $0x9b] sm:$0xff] }
 0xa02   : > { %19576 = vmatprep.subr.bf16.mxu1 %v23724_v16  ;;  %v12452_v7 = vpack.c.bf16 %v12443_v58, %v12442_v31 }
 0xa03   : > { %v11823_v15 = vpop.f32.mrb[236].mxu1 }
 0xa04   : > { %v24002_v59 = vadd.f32 %v11823_v15, %v23904_v4  ;;  %v19388_v36 = vpop.f32.mrb[237].mxu1  ;;  %v21323_v4 = vld [vmem:[%s24972_s3 + $0x238] sm:$0xff]   ;;  %v11887_v15 = vld [vmem:[#allocation2 + $0x88] sm:$0x7f] }
 0xa05   : > { %v11826_v55 = vpop.f32.mrb[238].mxu1  ;;  %19577 = vmatpush3.bf16.msra.mxu1 %v21321_v42 }
 0xa06   : > { %v24008_v39 = vadd.f32 %v11826_v55, %v23910_v12  ;;  %v19389_v61 = vpop.f32.mrb[239].mxu1  ;;  %19578 = vmatprep.subr.bf16.mxu1 %v23724_v16 }
 0xa07   : > { %v12677_v61 = vld [vmem:[#allocation3 + $0x1c] sm:$0xff] }
 0xa08   : > { %19543 = vmatmul.mubr.bf16.gmra.mrb[88].mxu1 %v12447_v56 }
 0xa09   : > { %19546 = vmatprep.mubr.msk.bf16.mxu1 %vm21550_vm8, %v23724_v16  ;;  %19579 = vmatpush3.bf16.msra.mxu1 %v21322_v54 }
 0xa0a   : > { %19580 = vmatprep.subr.bf16.mxu1 %v23724_v16 }
 0xa0b   : > { %v11831_v13 = vpop.f32.mrb[240].mxu1 }
 0xa0c   : > { %v24018_v12 = vadd.f32 %v11831_v13, %v23920_v41  ;;  %v19392_v49 = vpop.f32.mrb[241].mxu1 }
 0xa0d   : > { %v11834_v63 = vpop.f32.mrb[242].mxu1  ;;  %19581 = vmatpush3.bf16.msra.mxu1 %v21323_v4 }
 0xa0e   : > { %v24021_v28 = vadd.f32 %v11834_v63, %v23923_v25  ;;  %v19393_v21 = vpop.f32.mrb[243].mxu1  ;;  %v12449_v25 = vpack.c.bf16 %v12437_v26, %v12436_v14  ;;  %v12680_v63 = vld [vmem:[#allocation3 + $0x34] sm:$0xff]  ;;  %v12682_v14 = vld [vmem:[#allocation3 + $0x44] sm:$0xff] }
 0xa10   : > { %19547 = vmatmul.mubr.bf16.gmra.mrb[92].mxu1 %v12448_v3  ;;  %v12679_v3 = vld [vmem:[#allocation3 + $0x2c] sm:$0xff] }
 0xa11   : > { %19550 = vmatprep.mubr.msk.bf16.mxu1 %vm21550_vm8, %v23724_v16 }
 0xa13   : > { %v11839_v29 = vpop.f32.mrb[244].mxu1 }
 0xa14   : > { %v24026_v35 = vadd.f32 %v11839_v29, %v23929_v47  ;;  %v19396_v41 = vpop.f32.mrb[245].mxu1 }
 0xa15   : > { %v11842_v44 = vpop.f32.mrb[246].mxu1 }
 0xa16   : > { %v24029_v2 = vadd.f32 %v11842_v44, %v23932_v23  ;;  %v19397_v45 = vpop.f32.mrb[247].mxu1  ;;  %v12450_v23 = vpack.c.bf16 %v12439_v50, %v12438_v6  ;;  %v12681_v44 = vld [vmem:[#allocation3 + $0x3c] sm:$0xff] }
 0xa18   : > { %19551 = vmatmul.mubr.bf16.gmra.mrb[96].mxu1 %v12449_v25 }
 0xa19   : > { %19554 = vmatprep.mubr.msk.bf16.mxu1 %vm21550_vm8, %v23724_v16 }
 0xa1b   : > { %v11847_v40 = vpop.f32.mrb[248].mxu1 }
 0xa1c   : > { %v24034_v52 = vadd.f32 %v11847_v40, %v23937_v37  ;;  %v19400_v47 = vpop.f32.mrb[249].mxu1 }
 0xa1d   : > { %v11850_v57 = vpop.f32.mrb[250].mxu1  ;;  %v12684_v47 = vld [vmem:[#allocation3 + $0x54] sm:$0xff] }
 0xa1e   : > { %v24037_v19 = vadd.f32 %v11850_v57, %v23940_v51  ;;  %v19401_v9 = vpop.f32.mrb[251].mxu1  ;;  %v12451_v51 = vpack.c.bf16 %v12441_v0, %v12440_v18 }
 0xa20   : > { %19555 = vmatmul.mubr.bf16.gmra.mrb[100].mxu1 %v12450_v23 }
 0xa21   : > { %19558 = vmatprep.mubr.msk.bf16.mxu1 %vm21550_vm8, %v23724_v16 }
 0xa23   : > { %v11855_v34 = vpop.f32.mrb[252].mxu1 }
 0xa24   : > { %v24042_v32 = vadd.f32 %v11855_v34, %v23945_v1  ;;  %v19404_v20 = vpop.f32.mrb[253].mxu1 }
 0xa25   : > { %v11858_v37 = vpop.f32.mrb[254].mxu1  ;;  %v12686_v20 = vld [vmem:[#allocation3 + $0x64] sm:$0xff] }
 0xa26   : > { %v24045_v48 = vadd.f32 %v11858_v37, %v23948_v62  ;;  %v19405_v24 = vpop.f32.mrb[255].mxu1  ;;  %v12678_v62 = vld [vmem:[#allocation3 + $0x24] sm:$0xff] }
 0xa27   : > { %v12695_v5 = vpack.c.bf16 %v12678_v62, %v12677_v61 }
 0xa28   : > { %19559 = vmatmul.mubr.bf16.gmra.mrb[104].mxu1 %v12451_v51  ;;  %v12685_v51 = vld [vmem:[#allocation3 + $0x5c] sm:$0xff] }
 0xa29   : > { %19562 = vmatprep.mubr.msk.bf16.mxu1 %vm21550_vm8, %v23724_v16 }
 0xa2b   : > { %v11863_v33 = vpop.f32.mrb[24].mxu1 }
 0xa2c   : > { %v19408_v38 = vpop.f32.mrb[25].mxu1 }
 0xa2d   : > { %v11866_v42 = vpop.f32.mrb[26].mxu1  ;;  %v12688_v38 = vld [vmem:[#allocation3 + $0x74] sm:$0xff] }
 0xa2e   : > { %v11905_v8 = vadd.f32 %v11887_v15, %v11866_v42  ;;  %v19409_v1 = vpop.f32.mrb[27].mxu1 }
 0xa30   : > { %11923 = vst [vmem:[#allocation2 + $0x88] sm:$0x7f] %v11905_v8  ;;  %19563 = vmatmul.mubr.bf16.gmra.mrb[108].mxu1 %v12452_v7  ;;  %v12687_v8 = vld [vmem:[#allocation3 + $0x6c] sm:$0xff] }
 0xa31   : > { %19582 = vmatprep.mubr.msk.bf16.mxu1 %vm21550_vm8, %v23724_v16 }
 0xa33   : > { %v12050_v36 = vpop.f32.mrb[0].mxu1 }
 0xa34   : > { %v24052_v55 = vadd.f32 %v12050_v36, %v23955_v60  ;;  %v19428_v54 = vpop.f32.mrb[1].mxu1  ;;  %v12689_v36 = vld [vmem:[#allocation3 + $0x7c] sm:$0xff] }
 0xa35   : > { %v12053_v56 = vpop.f32.mrb[2].mxu1  ;;  %v12690_v54 = vld [vmem:[#allocation3 + $0x84] sm:$0xff] }
 0xa36   : > { %v24055_v4 = vadd.f32 %v12053_v56, %v23961_v11  ;;  %v19429_v13 = vpop.f32.mrb[3].mxu1  ;;  %v12696_v11 = vpack.c.bf16 %v12680_v63, %v12679_v3  ;;  %v12691_v63 = vld [vmem:[#allocation3 + $0x8c] sm:$0xff] }
 0xa38   : > { %19583 = vmatmul.mubr.bf16.vlgmr.msra.gmra.mrb[112].mxu1 %v12695_v5 }
 0xa39   : > { %19586 = vmatprep.mubr.msk.bf16.mxu1 %vm21550_vm8, %v23724_v16 }
 0xa3b   : > { %v12058_v49 = vpop.f32.mrb[4].mxu1 }
 0xa3c   : > { %v24060_v43 = vadd.f32 %v12058_v49, %v23970_v30  ;;  %v19432_v21 = vpop.f32.mrb[5].mxu1 }
 0xa3d   : > { %v12061_v60 = vpop.f32.mrb[6].mxu1  ;;  %v12692_v21 = vld [vmem:[#allocation3 + $0x94] sm:$0xff] }
 0xa3e   : > { %v24063_v29 = vadd.f32 %v12061_v60, %v23976_v27  ;;  %v19433_v26 = vpop.f32.mrb[7].mxu1  ;;  %v12697_v27 = vpack.c.bf16 %v12682_v14, %v12681_v44  ;;  %v12693_v44 = vld [vmem:[#allocation3 + $0x9c] sm:$0xff]  ;;  %v12694_v14 = vld [vmem:[#allocation3 + $0xa4] sm:$0x7f] }
 0xa40   : > { %19587 = vmatmul.mubr.bf16.gmra.mrb[116].mxu1 %v12696_v11 }
 0xa41   : > { %19590 = vmatprep.mubr.msk.bf16.mxu1 %vm21550_vm8, %v23724_v16 }
 0xa43   : > { %v12066_v41 = vpop.f32.mrb[8].mxu1 }
 0xa44   : > { %v24068_v45 = vadd.f32 %v12066_v41, %v23986_v17  ;;  %v19436_v30 = vpop.f32.mrb[9].mxu1  ;;  %v12683_v17 = vld [vmem:[#allocation3 + $0x4c] sm:$0xff] }
 0xa45   : > { %v12069_v25 = vpop.f32.mrb[10].mxu1 }
 0xa46   : > { %v24071_v40 = vadd.f32 %v12069_v25, %v23992_v10  ;;  %v19437_v6 = vpop.f32.mrb[11].mxu1  ;;  %v12698_v10 = vpack.c.bf16 %v12684_v47, %v12683_v17  ;;  %v24115_v47 = vld [vmem:[#allocation4] sm:$0xff] }
 0xa47   : > { %v12138_v6 = vld [vmem:[#allocation2 + $0x88] sm:$0x7f] }
 0xa48   : > { %19591 = vmatmul.mubr.bf16.gmra.mrb[120].mxu1 %v12697_v27 }
 0xa49   : > { %19594 = vmatprep.mubr.msk.bf16.mxu1 %vm21550_vm8, %v23724_v16 }
 0xa4b   : > { %v12074_v50 = vpop.f32.mrb[12].mxu1 }
 0xa4c   : > { %v24076_v57 = vadd.f32 %v12074_v50, %v24002_v59  ;;  %v19440_v9 = vpop.f32.mrb[13].mxu1  ;;  %v12703_v50 = vpack.c.bf16 %v12694_v14, %v12693_v44 }
 0xa4d   : > { %v12077_v23 = vpop.f32.mrb[14].mxu1 }
 0xa4e   : > { %v24079_v34 = vadd.f32 %v12077_v23, %v24008_v39  ;;  %v19441_v18 = vpop.f32.mrb[15].mxu1  ;;  %v12699_v39 = vpack.c.bf16 %v12686_v20, %v12685_v51 }
 0xa50   : > { %19595 = vmatmul.mubr.bf16.gmra.mrb[124].mxu1 %v12698_v10 }
 0xa51   : > { %19598 = vmatprep.mubr.msk.bf16.mxu1 %vm21550_vm8, %v23724_v16 }
 0xa53   : > { %v12082_v0 = vpop.f32.mrb[16].mxu1 }
 0xa54   : > { %v24084_v37 = vadd.f32 %v12082_v0, %v24018_v12  ;;  %v19444_v24 = vpop.f32.mrb[17].mxu1 }
 0xa55   : > { %v12085_v59 = vpop.f32.mrb[18].mxu1 }
 0xa56   : > { %v24087_v33 = vadd.f32 %v12085_v59, %v24021_v28  ;;  %v19445_v31 = vpop.f32.mrb[19].mxu1  ;;  %v12700_v28 = vpack.c.bf16 %v12688_v38, %v12687_v8 }
 0xa58   : > { %19599 = vmatmul.mubr.bf16.gmra.mrb[128].mxu1 %v12699_v39 }
 0xa59   : > { %19602 = vmatprep.mubr.msk.bf16.mxu1 %vm21550_vm8, %v23724_v16 }
 0xa5b   : > { %v12090_v58 = vpop.f32.mrb[20].mxu1 }
 0xa5c   : > { %v24092_v42 = vadd.f32 %v12090_v58, %v24026_v35  ;;  %v19448_v15 = vpop.f32.mrb[21].mxu1 }
 0xa5d   : > { %v12093_v12 = vpop.f32.mrb[22].mxu1 }
 0xa5e   : > { %v24095_v1 = vadd.f32 %v12093_v12, %v24029_v2  ;;  %v19449_v7 = vpop.f32.mrb[23].mxu1  ;;  %v12701_v2 = vpack.c.bf16 %v12690_v54, %v12689_v36 }
 0xa60   : > { %19603 = vmatmul.mubr.bf16.gmra.mrb[132].mxu1 %v12700_v28 }
 0xa61   : > { %19606 = vmatprep.mubr.msk.bf16.mxu1 %vm21550_vm8, %v23724_v16 }
 0xa63   : > { %v12098_v62 = vpop.f32.mrb[28].mxu1 }
 0xa64   : > { %v24100_v61 = vadd.f32 %v12098_v62, %v24034_v52  ;;  %v19452_v35 = vpop.f32.mrb[29].mxu1 }
 0xa65   : > { %v12101_v56 = vpop.f32.mrb[30].mxu1 }
 0xa66   : > { %v24103_v13 = vadd.f32 %v12101_v56, %v24037_v19  ;;  %v19453_v5 = vpop.f32.mrb[31].mxu1  ;;  %v12702_v19 = vpack.c.bf16 %v12692_v21, %v12691_v63  ;;  %v21551_v63 = vmov 0.0|0.0  }
 0xa67   : > { %20328 = vmatprep.subr.bf16.mxu1 %v21551_v63 }
 0xa68   : > { %19607 = vmatmul.mubr.bf16.gmra.mrb[136].mxu1 %v12701_v2 }
 0xa69   : > { %19610 = vmatprep.mubr.msk.bf16.mxu1 %vm21550_vm8, %v23724_v16 }
 0xa6b   : > { %v12106_v49 = vpop.f32.mrb[32].mxu1 }
 0xa6c   : > { %v24108_v60 = vadd.f32 %v12106_v49, %v24042_v32  ;;  %v19456_v3 = vpop.f32.mrb[33].mxu1 }
 0xa6d   : > { %v12109_v52 = vpop.f32.mrb[34].mxu1 }
 0xa6e   : > { %v24111_v26 = vadd.f32 %v12109_v52, %v24045_v48  ;;  %v19457_v11 = vpop.f32.mrb[35].mxu1 }
 0xa70   : > { %19611 = vmatmul.mubr.bf16.gmra.mrb[140].mxu1 %v12702_v19 }
 0xa71   : > { %19614 = vmatprep.mubr.msk.bf16.mxu1 %vm21550_vm8, %v23724_v16 }
 0xa73   : > { %v12114_v41 = vpop.f32.mrb[36].mxu1 }
 0xa74   : > { %v19460_v30 = vpop.f32.mrb[37].mxu1 }
 0xa75   : > { %v12117_v25 = vpop.f32.mrb[38].mxu1 }
 0xa76   : > { %v12156_v27 = vadd.f32 %v12138_v6, %v12117_v25  ;;  %v19461_v32 = vpop.f32.mrb[39].mxu1 }
 0xa78   : > { %12174 = vst [vmem:[#allocation2 + $0x88] sm:$0x7f] %v12156_v27  ;;  %19615 = vmatmul.mubr.bf16.gmra.mrb[144].mxu1 %v12703_v50 }
 0xa79   : > { %19622 = vmatprep.mubr.msk.f32.mxu1 %vm21550_vm8, %v24115_v47 }
 0xa7b   : > { %v12301_v48 = vpop.f32.mrb[40].mxu1 }
 0xa7c   : > { %v12390_v9 = vadd.f32 %v12301_v48, %v24052_v55  ;;  %v19480_v16 = vpop.f32.mrb[41].mxu1 }
 0xa7d   : > { %v12304_v23 = vpop.f32.mrb[42].mxu1 }
 0xa7e   : > { %v12391_v17 = vadd.f32 %v12304_v23, %v24055_v4  ;;  %v19481_v18 = vpop.f32.mrb[43].mxu1 }
 0xa7f   : > { %v12389_v6 = vld [vmem:[#allocation2 + $0x88] sm:$0x7f] }
 0xa83   : > { %v12309_v10 = vpop.f32.mrb[44].mxu1 }
 0xa84   : > { %v12392_v0 = vadd.f32 %v12309_v10, %v24060_v43  ;;  %v19484_v20 = vpop.f32.mrb[45].mxu1 }
 0xa85   : > { %v12312_v24 = vpop.f32.mrb[46].mxu1 }
 0xa86   : > { %v12393_v59 = vadd.f32 %v12312_v24, %v24063_v29  ;;  %v19485_v51 = vpop.f32.mrb[47].mxu1 }
 0xa8b   : > { %v12317_v31 = vpop.f32.mrb[48].mxu1 }
 0xa8c   : > { %v12394_v39 = vadd.f32 %v12317_v31, %v24068_v45  ;;  %v19488_v58 = vpop.f32.mrb[49].mxu1 }
 0xa8d   : > { %v12320_v38 = vpop.f32.mrb[50].mxu1 }
 0xa8e   : > { %v12395_v55 = vadd.f32 %v12320_v38, %v24071_v40  ;;  %v19489_v15 = vpop.f32.mrb[51].mxu1 }
 0xa93   : > { %v12325_v12 = vpop.f32.mrb[52].mxu1 }
 0xa94   : > { %v12396_v4 = vadd.f32 %v12325_v12, %v24076_v57  ;;  %v19492_v8 = vpop.f32.mrb[53].mxu1 }
 0xa95   : > { %v12328_v7 = vpop.f32.mrb[54].mxu1 }
 0xa96   : > { %v12397_v43 = vadd.f32 %v12328_v7, %v24079_v34  ;;  %v19493_v28 = vpop.f32.mrb[55].mxu1 }
 0xa9b   : > { %v12333_v62 = vpop.f32.mrb[56].mxu1 }
 0xa9c   : > { %v12398_v29 = vadd.f32 %v12333_v62, %v24084_v37  ;;  %v19496_v36 = vpop.f32.mrb[57].mxu1 }
 0xa9d   : > { %v12336_v54 = vpop.f32.mrb[58].mxu1 }
 0xa9e   : > { %v12399_v45 = vadd.f32 %v12336_v54, %v24087_v33  ;;  %v19497_v35 = vpop.f32.mrb[59].mxu1 }
 0xaa3   : > { %v12341_v56 = vpop.f32.mrb[60].mxu1 }
 0xaa4   : > { %v12400_v40 = vadd.f32 %v12341_v56, %v24092_v42  ;;  %v19500_v5 = vpop.f32.mrb[61].mxu1 }
 0xaa5   : > { %v12344_v2 = vpop.f32.mrb[62].mxu1 }
 0xaa6   : > { %v12401_v57 = vadd.f32 %v12344_v2, %v24095_v1  ;;  %v19501_v49 = vpop.f32.mrb[63].mxu1 }
 0xaab   : > { %v12349_v34 = vpop.f32.mrb[64].mxu1 }
 0xaac   : > { %v12402_v21 = vadd.f32 %v12349_v34, %v24100_v61  ;;  %v19504_v37 = vpop.f32.mrb[65].mxu1 }
 0xaad   : > { %v12352_v3 = vpop.f32.mrb[66].mxu1 }
 0xaae   : > { %v12403_v52 = vadd.f32 %v12352_v3, %v24103_v13  ;;  %v19505_v33 = vpop.f32.mrb[67].mxu1 }
 0xab3   : > { %v12357_v11 = vpop.f32.mrb[68].mxu1 }
 0xab4   : > { %v12404_v19 = vadd.f32 %v12357_v11, %v24108_v60  ;;  %v19508_v42 = vpop.f32.mrb[69].mxu1 }
 0xab5   : > { %v12360_v41 = vpop.f32.mrb[70].mxu1 }
 0xab6   : > { %v12405_v44 = vadd.f32 %v12360_v41, %v24111_v26  ;;  %v19509_v1 = vpop.f32.mrb[71].mxu1 }
 0xabb   : > { %v12365_v14 = vpop.f32.mrb[72].mxu1 }
 0xabc   : > { %v19512_v30 = vpop.f32.mrb[73].mxu1 }
 0xabd   : > { %v12368_v25 = vpop.f32.mrb[74].mxu1 }
 0xabe   : > { %v12407_v27 = vadd.f32 %v12389_v6, %v12368_v25  ;;  %v19513_v32 = vpop.f32.mrb[75].mxu1 }
 0xac0   : > { %12425 = vst [vmem:[#allocation2 + $0x88] sm:$0x7f] %v12407_v27 }
 0xac3   : > { %v12552_v61 = vpop.f32.mrb[76].mxu1 }
 0xac4   : > { %v12641_v50 = vadd.f32 %v12552_v61, %v12390_v9  ;;  %v19532_v48 = vpop.f32.mrb[77].mxu1 }
 0xac5   : > { %v12555_v13 = vpop.f32.mrb[78].mxu1 }
 0xac6   : > { %v12642_v16 = vadd.f32 %v12555_v13, %v12391_v17  ;;  %v19533_v23 = vpop.f32.mrb[79].mxu1 }
 0xac7   : > { %v12640_v25 = vld [vmem:[#allocation2 + $0x88] sm:$0x7f] }
 0xacb   : > { %v12560_v18 = vpop.f32.mrb[80].mxu1 }
 0xacc   : > { %v12643_v60 = vadd.f32 %v12560_v18, %v12392_v0  ;;  %v19536_v10 = vpop.f32.mrb[81].mxu1 }
 0xacd   : > { %v12563_v20 = vpop.f32.mrb[82].mxu1 }
 0xace   : > { %v12644_v24 = vadd.f32 %v12563_v20, %v12393_v59  ;;  %v19537_v26 = vpop.f32.mrb[83].mxu1 }
 0xad3   : > { %v12568_v51 = vpop.f32.mrb[84].mxu1 }
 0xad4   : > { %v24136_v31 = vadd.f32 %v12568_v51, %v12394_v39  ;;  %v19540_v58 = vpop.f32.mrb[85].mxu1 }
 0xad5   : > { %v12571_v38 = vpop.f32.mrb[86].mxu1 }
 0xad6   : > { %v24138_v15 = vadd.f32 %v12571_v38, %v12395_v55  ;;  %v19541_v12 = vpop.f32.mrb[87].mxu1 }
 0xadb   : > { %v12576_v8 = vpop.f32.mrb[88].mxu1 }
 0xadc   : > { %v24140_v9 = vadd.f32 %v12576_v8, %v12396_v4  ;;  %v19544_v7 = vpop.f32.mrb[89].mxu1 }
 0xadd   : > { %v12579_v17 = vpop.f32.mrb[90].mxu1 }
 0xade   : > { %v24142_v28 = vadd.f32 %v12579_v17, %v12397_v43  ;;  %v19545_v0 = vpop.f32.mrb[91].mxu1 }
 0xae3   : > { %v12584_v62 = vpop.f32.mrb[92].mxu1 }
 0xae4   : > { %v24144_v36 = vadd.f32 %v12584_v62, %v12398_v29  ;;  %v19548_v59 = vpop.f32.mrb[93].mxu1 }
 0xae5   : > { %v12587_v54 = vpop.f32.mrb[94].mxu1 }
 0xae6   : > { %v24146_v39 = vadd.f32 %v12587_v54, %v12399_v45  ;;  %v19549_v35 = vpop.f32.mrb[95].mxu1 }
 0xaeb   : > { %v12592_v56 = vpop.f32.mrb[96].mxu1 }
 0xaec   : > { %v24148_v55 = vadd.f32 %v12592_v56, %v12400_v40  ;;  %v19552_v5 = vpop.f32.mrb[97].mxu1 }
 0xaed   : > { %v12595_v2 = vpop.f32.mrb[98].mxu1 }
 0xaee   : > { %v24150_v4 = vadd.f32 %v12595_v2, %v12401_v57  ;;  %v19553_v49 = vpop.f32.mrb[99].mxu1 }
 0xaf3   : > { %v12600_v34 = vpop.f32.mrb[100].mxu1 }
 0xaf4   : > { %v24152_v43 = vadd.f32 %v12600_v34, %v12402_v21  ;;  %v19556_v37 = vpop.f32.mrb[101].mxu1 }
 0xaf5   : > { %v12603_v3 = vpop.f32.mrb[102].mxu1 }
 0xaf6   : > { %v24154_v29 = vadd.f32 %v12603_v3, %v12403_v52  ;;  %v19557_v33 = vpop.f32.mrb[103].mxu1 }
 0xaf7   : > { %v21328_v33 = vld [vmem:[%s24974_s5 + $0x20] sm:$0xff]  }
 0xafb   : > { %v12608_v11 = vpop.f32.mrb[104].mxu1 }
 0xafc   : > { %v24156_v45 = vadd.f32 %v12608_v11, %v12404_v19  ;;  %v19560_v42 = vpop.f32.mrb[105].mxu1  ;;  %v24163_v19 = vld [vmem:[%s24973_s4] ss:$0 sm:$0xff] }
 0xafd   : > { %v12611_v41 = vpop.f32.mrb[106].mxu1 }
 0xafe   : > { %v24158_v40 = vadd.f32 %v12611_v41, %v12405_v44  ;;  %v19561_v1 = vpop.f32.mrb[107].mxu1 }
 0xb03   : > { %v12616_v14 = vpop.f32.mrb[108].mxu1 }
 0xb04   : > { %v19564_v57 = vpop.f32.mrb[109].mxu1 }
 0xb05   : > { %v12619_v30 = vpop.f32.mrb[110].mxu1 }
 0xb06   : > { %v12658_v6 = vadd.f32 %v12640_v25, %v12619_v30  ;;  %v19565_v21 = vpop.f32.mrb[111].mxu1 }
 0xb08   : > { %12676 = vst [vmem:[#allocation2 + $0x88] sm:$0x7f] %v12658_v6 }
 0xb0b   : > { %v12803_v27 = vpop.f32.mrb[112].mxu1 }
 0xb0c   : > { %v12892_v32 = vadd.f32 %v12803_v27, %v12641_v50  ;;  %v19584_v52 = vpop.f32.mrb[113].mxu1 }
 0xb0d   : > { %v12806_v61 = vpop.f32.mrb[114].mxu1 }
 0xb0e   : > { %v12893_v48 = vadd.f32 %v12806_v61, %v12642_v16  ;;  %v19585_v13 = vpop.f32.mrb[115].mxu1  ;;  %v12953_v7 = vadd.f32 %v24163_v19, %v12892_v32 }
 0xb10   : > { %v12954_v44 = vadd.f32 %v24163_v19, %v12893_v48 }
 0xb12   : > { %v12972_v23 = vmax.f32 %v12954_v44, 0.0 }
 0xb13   : > { %v12811_v18 = vpop.f32.mrb[116].mxu1 }
 0xb14   : > { %12990 = vst [vmem:[#allocation2 + $0x8] sm:$0xff] %v12972_v23  ;;  %v12894_v10 = vadd.f32 %v12811_v18, %v12643_v60  ;;  %v19588_v20 = vpop.f32.mrb[117].mxu1 }
 0xb15   : > { %v12814_v26 = vpop.f32.mrb[118].mxu1 }
 0xb16   : > { %v12955_v51 = vadd.f32 %v24163_v19, %v12894_v10  ;;  %v12895_v50 = vadd.f32 %v12814_v26, %v12644_v24  ;;  %v19589_v58 = vpop.f32.mrb[119].mxu1  ;;  %v12971_v24 = vmax.f32 %v12953_v7, 0.0 }
 0xb18   : > { %v12973_v38 = vmax.f32 %v12955_v51, 0.0  ;;  %v12956_v16 = vadd.f32 %v24163_v19, %v12895_v50 }
 0xb1a   : > { %12991 = vst [vmem:[#allocation2 + $0x10] sm:$0xff] %v12973_v38  ;;  %v12974_v12 = vmax.f32 %v12956_v16, 0.0 }
 0xb1b   : > { %v12819_v8 = vpop.f32.mrb[120].mxu1  ;;  %v13008_v5 = vld [vmem:[#allocation2 + $0x8] sm:$0x7] }
 0xb1c   : > { %12992 = vst [vmem:[#allocation2 + $0x18] sm:$0xff] %v12974_v12  ;;  %v12896_v17 = vadd.f32 %v12819_v8, %v24136_v31  ;;  %v19592_v0 = vpop.f32.mrb[121].mxu1 }
 0xb1d   : > { %v12822_v62 = vpop.f32.mrb[122].mxu1 }
 0xb1e   : > { %v12957_v60 = vadd.f32 %v24163_v19, %v12896_v17  ;;  %v12897_v59 = vadd.f32 %v12822_v62, %v24138_v15  ;;  %v19593_v54 = vpop.f32.mrb[123].mxu1 }
 0xb20   : > { %v12975_v35 = vmax.f32 %v12957_v60, 0.0  ;;  %v12958_v56 = vadd.f32 %v24163_v19, %v12897_v59 }
 0xb21   : > { %v13009_v2 = vld [vmem:[#allocation2 + $0xd] sm:$0xff]  ;;  %v13010_v49 = vld [vmem:[#allocation2 + $0x15] sm:$0x7] }
 0xb22   : > { %12993 = vst [vmem:[#allocation2 + $0x20] sm:$0xff] %v12975_v35  ;;  %v12976_v34 = vmax.f32 %v12958_v56, 0.0  ;;  %v13011_v37 = vmax.f32 %v12971_v24, %v13009_v2  ;;  %v13012_v3 = vmax.f32 %v13008_v5, %v13010_v49 }
 0xb23   : > { %v12827_v31 = vpop.f32.mrb[124].mxu1 }
 0xb24   : > { %12994 = vst [vmem:[#allocation2 + $0x28] sm:$0xff] %v12976_v34  ;;  %v12898_v15 = vadd.f32 %v12827_v31, %v24140_v9  ;;  %v19596_v11 = vpop.f32.mrb[125].mxu1  ;;  %v20329_v42 = vpack.c.bf16 %v13012_v3, %v13011_v37 }
 0xb25   : > { %v12830_v41 = vpop.f32.mrb[126].mxu1 }
 0xb26   : > { %v12959_v1 = vadd.f32 %v24163_v19, %v12898_v15  ;;  %v12899_v14 = vadd.f32 %v12830_v41, %v24142_v28  ;;  %v19597_v57 = vpop.f32.mrb[127].mxu1  ;;  %20331 = vmatpush3.bf16.msk.msra.mxu1 %vm24174_vm10, %v20329_v42 }
 0xb27   : > { %20332 = vmatprep.subr.bf16.mxu1 %v21551_v63 }
 0xb28   : > { %v12977_v30 = vmax.f32 %v12959_v1, 0.0  ;;  %v12960_v25 = vadd.f32 %v24163_v19, %v12899_v14 }
 0xb29   : > { %19623 = vmatmul.mubr.msk.f32.vlgmr.msra.gmra.mrb[148].mxu1 %vm13013_vm11, %v22775_v53  ;;  %v13164_v23 = vld [vmem:[#allocation2 + $0x1a] sm:$0xff]  ;;  %v13165_v18 = vld [vmem:[#allocation2 + $0x22] sm:$0x7] }
 0xb2a   : > { %12995 = vst [vmem:[#allocation2 + $0x30] sm:$0xff] %v12977_v30  ;;  %v12978_v9 = vmax.f32 %v12960_v25, 0.0  ;;  %20335 = vmatpush3.bf16.msk.msra.mxu1 %vm24174_vm10, %v20329_v42  ;;  %19629 = vmatprep.mubr.msk.f32.mxu1 %vm21550_vm8, %v24115_v47 }
 0xb2b   : > { %v12835_v28 = vpop.f32.mrb[128].mxu1  ;;  %20336 = vmatprep.subr.bf16.mxu1 %v21551_v63  ;;  %v13166_v48 = vld [vmem:[#allocation2 + $0x27] sm:$0xff] }
 0xb2c   : > { %12996 = vst [vmem:[#allocation2 + $0x38] sm:$0xff] %v12978_v9  ;;  %v12900_v6 = vadd.f32 %v12835_v28, %v24144_v36  ;;  %v19600_v21 = vpop.f32.mrb[129].mxu1  ;;  %v13168_v20 = vmax.f32 %v13164_v23, %v13166_v48  ;;  %v12891_v48 = vld [vmem:[#allocation2 + $0x88] sm:$0x7f] }
 0xb2d   : > { %v12838_v27 = vpop.f32.mrb[130].mxu1  ;;  %19630 = vmatmul.mubr.msk.f32.vlgmr.msra.gmra.mrb[150].mxu1 %vm13013_vm11, %v22873_v46 }
 0xb2e   : > { %v12961_v32 = vadd.f32 %v24163_v19, %v12900_v6  ;;  %v12901_v52 = vadd.f32 %v12838_v27, %v24146_v39  ;;  %v19601_v61 = vpop.f32.mrb[131].mxu1  ;;  %19636 = vmatprep.mubr.msk.f32.mxu1 %vm21550_vm8, %v24115_v47 }
 0xb30   : > { %v12979_v13 = vmax.f32 %v12961_v32, 0.0  ;;  %v12962_v44 = vadd.f32 %v24163_v19, %v12901_v52 }
 0xb31   : > { %v13167_v36 = vld [vmem:[#allocation2 + $0x2f] sm:$0x7] }
 0xb32   : > { %12997 = vst [vmem:[#allocation2 + $0x40] sm:$0xff] %v12979_v13  ;;  %v12980_v10 = vmax.f32 %v12962_v44, 0.0  ;;  %v13169_v26 = vmax.f32 %v13165_v18, %v13167_v36 }
 0xb33   : > { %v12843_v51 = vpop.f32.mrb[132].mxu1  ;;  %v13316_v62 = vld [vmem:[#allocation2 + $0x3c] sm:$0x7] }
 0xb34   : > { %12998 = vst [vmem:[#allocation2 + $0x48] sm:$0xff] %v12980_v10  ;;  %v12902_v50 = vadd.f32 %v12843_v51, %v24148_v55  ;;  %v19604_v39 = vpop.f32.mrb[133].mxu1  ;;  %v20337_v58 = vpack.c.bf16 %v13169_v26, %v13168_v20 }
 0xb35   : > { %v12846_v38 = vpop.f32.mrb[134].mxu1 }
 0xb36   : > { %v12963_v16 = vadd.f32 %v24163_v19, %v12902_v50  ;;  %v12903_v12 = vadd.f32 %v12846_v38, %v24150_v4  ;;  %v19605_v8 = vpop.f32.mrb[135].mxu1  ;;  %20339 = vmatpush3.bf16.msk.msra.mxu1 %vm24174_vm10, %v20337_v58  ;;  %v13315_v4 = vld [vmem:[#allocation2 + $0x34] sm:$0xff] }
 0xb37   : > { %20340 = vmatprep.subr.bf16.mxu1 %v21551_v63  ;;  %v21330_v38 = vld [vmem:[%s24974_s5 + $0x30] sm:$0xff]  }
 0xb38   : > { %v12981_v7 = vmax.f32 %v12963_v16, 0.0  ;;  %v12964_v17 = vadd.f32 %v24163_v19, %v12903_v12  ;;  %v21331_v16 = vld [vmem:[%s24974_s5 + $0x38] sm:$0xff]  }
 0xb39   : > { %19637 = vmatmul.mubr.msk.f32.vlgmr.msra.gmra.mrb[152].mxu1 %vm13013_vm11, %v22775_v53 }
 0xb3a   : > { %12999 = vst [vmem:[#allocation2 + $0x50] sm:$0xff] %v12981_v7  ;;  %v12982_v55 = vmax.f32 %v12964_v17, 0.0  ;;  %20343 = vmatpush3.bf16.msk.msra.mxu1 %vm24174_vm10, %v20337_v58  ;;  %19643 = vmatprep.mubr.msk.f32.mxu1 %vm21550_vm8, %v24115_v47  ;;  %v21329_v58 = vld [vmem:[%s24974_s5 + $0x28] sm:$0xff]  }
 0xb3b   : > { %v12851_v0 = vpop.f32.mrb[136].mxu1  ;;  %20344 = vmatprep.subr.bf16.mxu1 %v21551_v63  ;;  %v13317_v60 = vld [vmem:[#allocation2 + $0x41] sm:$0xff]  ;;  %v13318_v59 = vld [vmem:[#allocation2 + $0x49] sm:$0x7] }
 0xb3c   : > { %13000 = vst [vmem:[#allocation2 + $0x58] sm:$0xff] %v12982_v55  ;;  %v12904_v54 = vadd.f32 %v12851_v0, %v24152_v43  ;;  %v19608_v24 = vpop.f32.mrb[137].mxu1  ;;  %v13319_v35 = vmax.f32 %v13315_v4, %v13317_v60  ;;  %v13320_v56 = vmax.f32 %v13316_v62, %v13318_v59 }
 0xb3d   : > { %v12854_v5 = vpop.f32.mrb[138].mxu1  ;;  %19644 = vmatmul.mubr.msk.f32.vlgmr.msra.gmra.mrb[154].mxu1 %vm13013_vm11, %v22873_v46 }
 0xb3e   : > { %v12965_v2 = vadd.f32 %v24163_v19, %v12904_v54  ;;  %v12905_v49 = vadd.f32 %v12854_v5, %v24154_v29  ;;  %v19609_v34 = vpop.f32.mrb[139].mxu1  ;;  %v20345_v37 = vpack.c.bf16 %v13320_v56, %v13319_v35  ;;  %19650 = vmatprep.mubr.msk.f32.mxu1 %vm21550_vm8, %v24115_v47 }
 0xb3f   : > { %v21332_v34 = vld [vmem:[%s24974_s5 + $0x40] sm:$0xff]  }
 0xb40   : > { %v12983_v3 = vmax.f32 %v12965_v2, 0.0  ;;  %v12966_v31 = vadd.f32 %v24163_v19, %v12905_v49  ;;  %20347 = vmatpush3.bf16.msk.msra.mxu1 %vm24174_vm10, %v20345_v37 }
 0xb41   : > { %20348 = vmatprep.subr.bf16.mxu1 %v21551_v63  ;;  %v13466_v30 = vld [vmem:[#allocation2 + $0x4e] sm:$0xff] }
 0xb42   : > { %13001 = vst [vmem:[#allocation2 + $0x60] sm:$0xff] %v12983_v3  ;;  %v12984_v43 = vmax.f32 %v12966_v31, 0.0 }
 0xb43   : > { %v12859_v15 = vpop.f32.mrb[140].mxu1  ;;  %19651 = vmatmul.mubr.msk.f32.vlgmr.msra.gmra.mrb[156].mxu1 %vm13013_vm11, %v22775_v53  ;;  %v13467_v25 = vld [vmem:[#allocation2 + $0x56] sm:$0x7] }
 0xb44   : > { %13002 = vst [vmem:[#allocation2 + $0x68] sm:$0xff] %v12984_v43  ;;  %v12906_v29 = vadd.f32 %v12859_v15, %v24156_v45  ;;  %v19612_v11 = vpop.f32.mrb[141].mxu1  ;;  %20351 = vmatpush3.bf16.msk.msra.mxu1 %vm24174_vm10, %v20345_v37  ;;  %19657 = vmatprep.mubr.msk.f32.mxu1 %vm21550_vm8, %v24115_v47 }
 0xb45   : > { %v12862_v42 = vpop.f32.mrb[142].mxu1  ;;  %20352 = vmatprep.subr.bf16.mxu1 %v21551_v63 }
 0xb46   : > { %v12967_v41 = vadd.f32 %v24163_v19, %v12906_v29  ;;  %v12907_v1 = vadd.f32 %v12862_v42, %v24158_v40  ;;  %v19613_v14 = vpop.f32.mrb[143].mxu1  ;;  %v21334_v42 = vld [vmem:[%s24974_s5 + $0x50] sm:$0xff]  }
 0xb47   : > { %19658 = vmatmul.mubr.msk.f32.vlgmr.msra.gmra.mrb[158].mxu1 %vm13013_vm11, %v22873_v46  ;;  %v21335_v14 = vld [vmem:[%s24974_s5 + $0x58] sm:$0xff]  }
 0xb48   : > { %v12985_v57 = vmax.f32 %v12967_v41, 0.0  ;;  %v12968_v45 = vadd.f32 %v24163_v19, %v12907_v1  ;;  %19664 = vmatprep.mubr.msk.f32.mxu1 %vm21550_vm8, %v24115_v47 }
 0xb49   : > { %v13468_v9 = vld [vmem:[#allocation2 + $0x5b] sm:$0xff]  ;;  %v13469_v28 = vld [vmem:[#allocation2 + $0x63] sm:$0x7] }
 0xb4a   : > { %13003 = vst [vmem:[#allocation2 + $0x70] sm:$0xff] %v12985_v57  ;;  %v12986_v6 = vmax.f32 %v12968_v45, 0.0  ;;  %v13470_v21 = vmax.f32 %v13466_v30, %v13468_v9  ;;  %v13471_v27 = vmax.f32 %v13467_v25, %v13469_v28  ;;  %v21336_v25 = vld [vmem:[%s24974_s5 + $0x60] sm:$0xff]   ;;  %v21337_v9 = vld [vmem:[%s24974_s5 + $0x68] sm:$0xff]   ;;  %v21338_v28 = vld [vmem:[%s24974_s5 + $0x70] sm:$0xff]  }
 0xb4b   : > { %v12867_v32 = vpop.f32.mrb[144].mxu1 }
 0xb4c   : > { %13004 = vst [vmem:[#allocation2 + $0x78] sm:$0xff] %v12986_v6  ;;  %v19616_v40 = vpop.f32.mrb[145].mxu1  ;;  %v20353_v52 = vpack.c.bf16 %v13471_v27, %v13470_v21  ;;  %v21339_v6 = vld [vmem:[%s24974_s5 + $0x78] sm:$0xff]   ;;  %v21340_v32 = vld [vmem:[%s24974_s5 + $0x80] sm:$0xff]  }
 0xb4d   : > { %v12870_v61 = vpop.f32.mrb[146].mxu1 }
 0xb4e   : > { %v12909_v13 = vadd.f32 %v12891_v48, %v12870_v61  ;;  %v19617_v44 = vpop.f32.mrb[147].mxu1  ;;  %20355 = vmatpush3.bf16.msk.msra.mxu1 %vm24174_vm10, %v20353_v52  ;;  %v21342_v61 = vld [vmem:[%s24974_s5 + $0x90] sm:$0xff]   ;;  %v21343_v48 = vld [vmem:[%s24974_s5 + $0x98] sm:$0xff]  }
 0xb4f   : > { %20356 = vmatprep.subr.bf16.mxu1 %v21551_v63  ;;  %v21345_v44 = vld [vmem:[%s24974_s5 + $0xa8] sm:$0xff]  }
 0xb50   : > { %12927 = vst [vmem:[#allocation2 + $0x88] sm:$0x7f] %v12909_v13  ;;  %v21344_v13 = vld [vmem:[%s24974_s5 + $0xa0] sm:$0xff]  }
 0xb51   : > { %19665 = vmatmul.mubr.msk.f32.vlgmr.msra.gmra.mrb[160].mxu1 %vm13013_vm11, %v22775_v53  ;;  %v13618_v23 = vld [vmem:[#allocation2 + $0x70] sm:$0x7] }
 0xb52   : > { %20359 = vmatpush3.bf16.msk.msra.mxu1 %vm24174_vm10, %v20353_v52  ;;  %19671 = vmatprep.mubr.msk.f32.mxu1 %vm21550_vm8, %v24115_v47  ;;  %v21341_v52 = vld [vmem:[%s24974_s5 + $0x88] sm:$0xff]  }
 0xb53   : > { %20360 = vmatprep.subr.bf16.mxu1 %v21551_v63  ;;  %v13619_v18 = vld [vmem:[#allocation2 + $0x75] sm:$0xff]  ;;  %v13620_v36 = vld [vmem:[#allocation2 + $0x7d] sm:$0x7] }
 0xb54   : > { %v13621_v10 = vmax.f32 %v12984_v43, %v13619_v18  ;;  %v13622_v20 = vmax.f32 %v13618_v23, %v13620_v36  ;;  %v21333_v43 = vld [vmem:[%s24974_s5 + $0x48] sm:$0xff]   ;;  %v21346_v23 = vld [vmem:[%s24974_s5 + $0xb0] sm:$0xff]   ;;  %v21347_v18 = vld [vmem:[%s24974_s5 + $0xb8] sm:$0xff]  }
 0xb55   : > { %19672 = vmatmul.mubr.msk.f32.vlgmr.msra.gmra.mrb[162].mxu1 %vm13013_vm11, %v22873_v46 }
 0xb56   : > { %v20361_v26 = vpack.c.bf16 %v13622_v20, %v13621_v10  ;;  %19678 = vmatprep.mubr.msk.f32.mxu1 %vm21550_vm8, %v24115_v47  ;;  %v21348_v20 = vld [vmem:[%s24974_s5 + $0xc0] sm:$0xff]  }
 0xb57   : > { %v12945_v51 = vld [vmem:[#allocation2 + $0x88] sm:$0x7f] }
 0xb58   : > { %v12970_v50 = vadd.f32 %v24163_v19, %v12945_v51  ;;  %20363 = vmatpush3.bf16.msk.msra.mxu1 %vm24174_vm10, %v20361_v26  ;;  %v21324_v19 = vld [vmem:[%s24974_s5] sm:$0xff]   ;;  %v21349_v51 = vld [vmem:[%s24974_s5 + $0xc8] sm:$0xff]  }
 0xb59   : > { %20364 = vmatprep.subr.bf16.mxu1 %v21551_v63  ;;  %v21326_v63 = vld [vmem:[%s24974_s5 + $0x10] sm:$0xff]  }
 0xb5a   : > { %v12988_v39 = vmax.f32 %v12970_v50, 0.0  ;;  %v21350_v50 = vld [vmem:[%s24974_s5 + $0xd0] sm:$0xff]  }
 0xb5b   : > { %19679 = vmatmul.mubr.msk.f32.vlgmr.msra.gmra.mrb[164].mxu1 %vm13013_vm11, %v22775_v53  ;;  %v21325_v53 = vld [vmem:[%s24974_s5 + $0x8] sm:$0xff]  }
 0xb5c   : > { %13006 = vst [vmem:[#allocation2 + $0x88] sm:$0x7f] %v12988_v39  ;;  %20367 = vmatpush3.bf16.msk.msra.mxu1 %vm24174_vm10, %v20361_v26  ;;  %19685 = vmatprep.mubr.msk.f32.mxu1 %vm21550_vm8, %v24115_v47  ;;  %v21351_v39 = vld [vmem:[%s24974_s5 + $0xd8] sm:$0xff]  }
 0xb5d   : > { %19688 = vmatprep.subr.bf16.mxu1 %v24115_v47 }
 0xb5f   : > { %19686 = vmatmul.mubr.msk.f32.vlgmr.msra.gmra.mrb[166].mxu1 %vm13013_vm11, %v22873_v46  ;;  %v21327_v46 = vld [vmem:[%s24974_s5 + $0x18] sm:$0xff]  }
 0xb60   : > { %19689 = vmatpush3.bf16.msra.mxu1 %v21324_v19  ;;  %19704 = vmatprep.mubr.msk.bf16.mxu1 %vm21550_vm8, %v24115_v47  ;;  %v21352_v19 = vld [vmem:[%s24974_s5 + $0xe0] sm:$0xff]  }
 0xb61   : > { %19690 = vmatprep.subr.bf16.mxu1 %v24115_v47 }
 0xb64   : > { %19691 = vmatpush3.bf16.msra.mxu1 %v21325_v53  ;;  %v21353_v53 = vld [vmem:[%s24974_s5 + $0xe8] sm:$0xff]  }
 0xb65   : > { %19692 = vmatprep.subr.bf16.mxu1 %v24115_v47 }
 0xb68   : > { %19693 = vmatpush3.bf16.msra.mxu1 %v21326_v63  ;;  %v21354_v63 = vld [vmem:[%s24974_s5 + $0xf0] sm:$0xff]  }
 0xb69   : > { %19694 = vmatprep.subr.bf16.mxu1 %v24115_v47 }
 0xb6c   : > { %19695 = vmatpush3.bf16.msra.mxu1 %v21327_v46  ;;  %v21355_v46 = vld [vmem:[%s24974_s5 + $0xf8] sm:$0xff]  }
 0xb6d   : > { %19696 = vmatprep.subr.bf16.mxu1 %v24115_v47 }
 0xb70   : > { %19697 = vmatpush3.bf16.msra.mxu1 %v21328_v33 }
 0xb71   : > { %19698 = vmatprep.subr.bf16.mxu1 %v24115_v47 }
 0xb74   : > { %19699 = vmatpush3.bf16.msra.mxu1 %v21329_v58 }
 0xb75   : > { %19700 = vmatprep.subr.bf16.mxu1 %v24115_v47 }
 0xb78   : > { %19701 = vmatpush3.bf16.msra.mxu1 %v21330_v38  ;;  %v21356_v38 = vld [vmem:[%s24974_s5 + $0x100] sm:$0xff]  }
 0xb79   : > { %19702 = vmatprep.subr.bf16.mxu1 %v24115_v47 }
 0xb7c   : > { %19703 = vmatpush3.bf16.msra.mxu1 %v21331_v16 }
 0xb7d   : > { %19708 = vmatprep.subr.bf16.mxu1 %v24115_v47 }
 0xbfc   : > { %v13086_v12 = vpop.f32.mrb[148].mxu1 }
 0xbfd   : > { %v19624_v8 = vpop.f32.mrb[149].mxu1 }
 0xbfe   : > { %v21358_v8 = vld [vmem:[%s24974_s5 + $0x110] sm:$0xff]  }
 0xc00   : > { %v13158_v7 = vpop.f32.mrb[150].mxu1 }
 0xc01   : > { %v13162_v17 = vmax.f32 %v13086_v12, %v13158_v7  ;;  %v19631_v55 = vpop.f32.mrb[151].mxu1  ;;  %v21357_v12 = vld [vmem:[%s24974_s5 + $0x108] sm:$0xff]   ;;  %v21359_v7 = vld [vmem:[%s24974_s5 + $0x118] sm:$0xff]  }
 0xc02   : > { %v21361_v55 = vld [vmem:[%s24974_s5 + $0x128] sm:$0xff]  }
 0xc03   : > { %13163 = vst [vmem:[#allocation4] sm:$0x1f] %v13162_v17  ;;  %v21360_v17 = vld [vmem:[%s24974_s5 + $0x120] sm:$0xff]  }
 0xc0c   : > { %v13239_v4 = vpop.f32.mrb[152].mxu1 }
 0xc0d   : > { %v19638_v0 = vpop.f32.mrb[153].mxu1 }
 0xc0e   : > { %v21363_v0 = vld [vmem:[%s24974_s5 + $0x138] sm:$0xff]  }
 0xc10   : > { %v13309_v62 = vpop.f32.mrb[154].mxu1 }
 0xc11   : > { %v13313_v60 = vmax.f32 %v13239_v4, %v13309_v62  ;;  %v19645_v59 = vpop.f32.mrb[155].mxu1  ;;  %v21362_v4 = vld [vmem:[%s24974_s5 + $0x130] sm:$0xff]  }
 0xc12   : > { %v21364_v59 = vld [vmem:[%s24974_s5 + $0x140] sm:$0xff]  }
 0xc13   : > { %13314 = vst [vmem:[#allocation4 + $0x5] sm:$0x1f] %v13313_v60 }
 0xc16   : > { %v13390_v54 = vpop.f32.mrb[156].mxu1 }
 0xc17   : > { %v19652_v24 = vpop.f32.mrb[157].mxu1 }
 0xc18   : > { %v21365_v24 = vld [vmem:[%s24974_s5 + $0x148] sm:$0xff]  }
 0xc1a   : > { %v13460_v35 = vpop.f32.mrb[158].mxu1  ;;  %v13768_v2 = vld [vmem:[#allocation4] sm:$0xff] }
 0xc1b   : > { %v13464_v56 = vmax.f32 %v13390_v54, %v13460_v35  ;;  %v19659_v5 = vpop.f32.mrb[159].mxu1  ;;  %v13878_v27 = vld [vmem:[#allocation4 + $0x1] sm:$0xff] }
 0xc1c   : > { %v13993_v10 = vld [vmem:[#allocation4 + $0x2] sm:$0xff]  ;;  %v21368_v5 = vld [vmem:[%s24974_s5 + $0x160] sm:$0xff]  }
 0xc1d   : > { %13465 = vst [vmem:[#allocation4 + $0xa] sm:$0x1f] %v13464_v56  ;;  %v21366_v35 = vld [vmem:[%s24974_s5 + $0x150] sm:$0xff]   ;;  %v21367_v56 = vld [vmem:[%s24974_s5 + $0x158] sm:$0xff]  }
 0xc24   : > { %v13769_v49 = vld [vmem:[#allocation4 + $0x8] sm:$0x7f]  ;;  %v13541_v37 = vpop.f32.mrb[160].mxu1 }
 0xc25   : > { %v13770_v3 = vpack.c.bf16 %v13769_v49, %v13768_v2  ;;  %v19666_v31 = vpop.f32.mrb[161].mxu1  ;;  %v14108_v58 = vld [vmem:[#allocation4 + $0x5] sm:$0xff] }
 0xc26   : > { %v14223_v60 = vld [vmem:[#allocation4 + $0x6] sm:$0xff]  ;;  %v21372_v31 = vld [vmem:[%s24974_s5 + $0x180] sm:$0xff]  }
 0xc27   : > { %19705 = vmatmul.mubr.bf16.vlgmr.msra.gmra.mrb[168].mxu1 %v13770_v3  ;;  %v21369_v2 = vld [vmem:[%s24974_s5 + $0x168] sm:$0xff]   ;;  %v21370_v49 = vld [vmem:[%s24974_s5 + $0x170] sm:$0xff]  }
 0xc28   : > { %19709 = vmatpush3.bf16.msra.mxu1 %v21332_v34  ;;  %v13611_v15 = vpop.f32.mrb[162].mxu1  ;;  %19724 = vmatprep.mubr.msk.bf16.mxu1 %vm21550_vm8, %v24115_v47  ;;  %v21371_v34 = vld [vmem:[%s24974_s5 + $0x178] sm:$0xff]   ;;  %v14338_v3 = vld [vmem:[#allocation4 + $0x7] sm:$0xff] }
 0xc29   : > { %19710 = vmatprep.subr.bf16.mxu1 %v24115_v47  ;;  %v13615_v29 = vmax.f32 %v13541_v37, %v13611_v15  ;;  %v19673_v11 = vpop.f32.mrb[163].mxu1  ;;  %v21373_v15 = vld [vmem:[%s24974_s5 + $0x188] sm:$0xff]  }
 0xc2a   : > { %v21375_v11 = vld [vmem:[%s24974_s5 + $0x198] sm:$0xff]  }
 0xc2b   : > { %13616 = vst [vmem:[#allocation4 + $0xf] sm:$0x1f] %v13615_v29  ;;  %v21374_v29 = vld [vmem:[%s24974_s5 + $0x190] sm:$0xff]  }
 0xc2c   : > { %19711 = vmatpush3.bf16.msra.mxu1 %v21333_v43 }
 0xc2d   : > { %19712 = vmatprep.subr.bf16.mxu1 %v24115_v47 }
 0xc2e   : > { %v13692_v41 = vpop.f32.mrb[164].mxu1 }
 0xc2f   : > { %v19680_v1 = vpop.f32.mrb[165].mxu1 }
 0xc30   : > { %19713 = vmatpush3.bf16.msra.mxu1 %v21334_v42  ;;  %v21376_v42 = vld [vmem:[%s24974_s5 + $0x1a0] sm:$0xff]   ;;  %v21378_v1 = vld [vmem:[%s24974_s5 + $0x1b0] sm:$0xff]  }
 0xc31   : > { %19714 = vmatprep.subr.bf16.mxu1 %v24115_v47 }
 0xc32   : > { %v13762_v57 = vpop.f32.mrb[166].mxu1  ;;  %v13879_v21 = vld [vmem:[#allocation4 + $0x9] sm:$0x7f] }
 0xc33   : > { %v13766_v45 = vmax.f32 %v13692_v41, %v13762_v57  ;;  %v19687_v30 = vpop.f32.mrb[167].mxu1  ;;  %v13880_v40 = vpack.c.bf16 %v13879_v21, %v13878_v27  ;;  %v13994_v36 = vld [vmem:[#allocation4 + $0xa] sm:$0x7f]  ;;  %v21377_v41 = vld [vmem:[%s24974_s5 + $0x1a8] sm:$0xff]   ;;  %v21384_v21 = vld [vmem:[%s24974_s5 + $0x1e0] sm:$0xff]  }
 0xc34   : > { %19715 = vmatpush3.bf16.msra.mxu1 %v21335_v14  ;;  %v13995_v26 = vpack.c.bf16 %v13994_v36, %v13993_v10  ;;  %v14109_v33 = vld [vmem:[#allocation4 + $0xd] sm:$0x7f]  ;;  %v21380_v30 = vld [vmem:[%s24974_s5 + $0x1c0] sm:$0xff]   ;;  %v21385_v27 = vld [vmem:[%s24974_s5 + $0x1e8] sm:$0xff]  }
 0xc35   : > { %19716 = vmatprep.subr.bf16.mxu1 %v24115_v47  ;;  %13767 = vst [vmem:[#allocation4 + $0x14] sm:$0x1f] %v13766_v45  ;;  %v14110_v16 = vpack.c.bf16 %v14109_v33, %v14108_v58  ;;  %v21379_v14 = vld [vmem:[%s24974_s5 + $0x1b8] sm:$0xff]   ;;  %v21389_v10 = vld [vmem:[%s24974_s5 + $0x208] sm:$0xff]  }
 0xc36   : > { %v14453_v45 = vld [vmem:[#allocation4 + $0xa] sm:$0xff] }
 0xc38   : > { %19717 = vmatpush3.bf16.msra.mxu1 %v21336_v25 }
 0xc39   : > { %19718 = vmatprep.subr.bf16.mxu1 %v24115_v47 }
 0xc3c   : > { %19719 = vmatpush3.bf16.msra.mxu1 %v21337_v9  ;;  %v14224_v62 = vld [vmem:[#allocation4 + $0xe] sm:$0x7f]  ;;  %v21381_v9 = vld [vmem:[%s24974_s5 + $0x1c8] sm:$0xff]  }
 0xc3d   : > { %19720 = vmatprep.subr.bf16.mxu1 %v24115_v47  ;;  %v14225_v54 = vpack.c.bf16 %v14224_v62, %v14223_v60  ;;  %v14339_v37 = vld [vmem:[#allocation4 + $0xf] sm:$0x7f] }
 0xc3e   : > { %v14340_v43 = vpack.c.bf16 %v14339_v37, %v14338_v3  ;;  %v14454_v57 = vld [vmem:[#allocation4 + $0x12] sm:$0x7f]  ;;  %v21397_v37 = vld [vmem:[%s24976_s7 + $0x48] sm:$0xff]   ;;  %v21398_v3 = vld [vmem:[%s24976_s7 + $0x50] sm:$0xff]  }
 0xc3f   : > { %v14455_v25 = vpack.c.bf16 %v14454_v57, %v14453_v45  ;;  %v21401_v57 = vld [vmem:[%s24976_s7 + $0x68] sm:$0xff]   ;;  %v21402_v45 = vld [vmem:[%s24976_s7 + $0x70] sm:$0xff]  }
 0xc40   : > { %19721 = vmatpush3.bf16.msra.mxu1 %v21338_v28  ;;  %v21382_v28 = vld [vmem:[%s24974_s5 + $0x1d0] sm:$0xff]  }
 0xc41   : > { %19722 = vmatprep.subr.bf16.mxu1 %v24115_v47 }
 0xc44   : > { %19723 = vmatpush3.bf16.msra.mxu1 %v21339_v6  ;;  %v21383_v6 = vld [vmem:[%s24974_s5 + $0x1d8] sm:$0xff]  }
 0xc45   : > { %19728 = vmatprep.subr.bf16.mxu1 %v24115_v47 }
 0xc47   : > { %19725 = vmatmul.mubr.bf16.vlgmr.msra.gmra.mrb[172].mxu1 %v13880_v40 }
 0xc48   : > { %19729 = vmatpush3.bf16.msra.mxu1 %v21340_v32  ;;  %19744 = vmatprep.mubr.msk.bf16.mxu1 %vm21550_vm8, %v24115_v47 }
 0xc49   : > { %19730 = vmatprep.subr.bf16.mxu1 %v24115_v47 }
 0xc4c   : > { %19731 = vmatpush3.bf16.msra.mxu1 %v21341_v52  ;;  %v21386_v52 = vld [vmem:[%s24974_s5 + $0x1f0] sm:$0xff]  }
 0xc4d   : > { %19732 = vmatprep.subr.bf16.mxu1 %v24115_v47 }
 0xc50   : > { %19733 = vmatpush3.bf16.msra.mxu1 %v21342_v61 }
 0xc51   : > { %19734 = vmatprep.subr.bf16.mxu1 %v24115_v47 }
 0xc54   : > { %19735 = vmatpush3.bf16.msra.mxu1 %v21343_v48 }
 0xc55   : > { %19736 = vmatprep.subr.bf16.mxu1 %v24115_v47 }
 0xc58   : > { %19737 = vmatpush3.bf16.msra.mxu1 %v21344_v13  ;;  %v21387_v13 = vld [vmem:[%s24974_s5 + $0x1f8] sm:$0xff]  }
 0xc59   : > { %19738 = vmatprep.subr.bf16.mxu1 %v24115_v47 }
 0xc5c   : > { %19739 = vmatpush3.bf16.msra.mxu1 %v21345_v44  ;;  %v14569_v44 = vld [vmem:[#allocation4 + $0x13] sm:$0x7f] }
 0xc5d   : > { %19740 = vmatprep.subr.bf16.mxu1 %v24115_v47 }
 0xc60   : > { %19741 = vmatpush3.bf16.msra.mxu1 %v21346_v23  ;;  %v14568_v23 = vld [vmem:[#allocation4 + $0xb] sm:$0xff] }
 0xc61   : > { %19742 = vmatprep.subr.bf16.mxu1 %v24115_v47  ;;  %v14570_v36 = vpack.c.bf16 %v14569_v44, %v14568_v23 }
 0xc64   : > { %19743 = vmatpush3.bf16.msra.mxu1 %v21347_v18  ;;  %v21388_v18 = vld [vmem:[%s24974_s5 + $0x200] sm:$0xff]  }
 0xc65   : > { %19748 = vmatprep.subr.bf16.mxu1 %v24115_v47 }
 0xc67   : > { %19745 = vmatmul.mubr.bf16.vlgmr.msra.gmra.mrb[176].mxu1 %v13995_v26  ;;  %v21391_v26 = vld [vmem:[%s24974_s5 + $0x218] sm:$0xff]  }
 0xc68   : > { %19749 = vmatpush3.bf16.msra.mxu1 %v21348_v20  ;;  %19764 = vmatprep.mubr.msk.bf16.mxu1 %vm21550_vm8, %v24115_v47  ;;  %v21390_v20 = vld [vmem:[%s24974_s5 + $0x210] sm:$0xff]  }
 0xc69   : > { %19750 = vmatprep.subr.bf16.mxu1 %v24115_v47 }
 0xc6c   : > { %19751 = vmatpush3.bf16.msra.mxu1 %v21349_v51  ;;  %v21392_v51 = vld [vmem:[%s24974_s5 + $0x220] sm:$0xff]  }
 0xc6d   : > { %19752 = vmatprep.subr.bf16.mxu1 %v24115_v47 }
 0xc70   : > { %19753 = vmatpush3.bf16.msra.mxu1 %v21350_v50  ;;  %v21393_v50 = vld [vmem:[%s24974_s5 + $0x228] sm:$0xff]  }
 0xc71   : > { %19754 = vmatprep.subr.bf16.mxu1 %v24115_v47 }
 0xc74   : > { %19755 = vmatpush3.bf16.msra.mxu1 %v21351_v39 }
 0xc75   : > { %19756 = vmatprep.subr.bf16.mxu1 %v24115_v47 }
 0xc78   : > { %19757 = vmatpush3.bf16.msra.mxu1 %v21352_v19 }
 0xc79   : > { %19758 = vmatprep.subr.bf16.mxu1 %v24115_v47 }
 0xc7c   : > { %19759 = vmatpush3.bf16.msra.mxu1 %v21353_v53 }
 0xc7d   : > { %19760 = vmatprep.subr.bf16.mxu1 %v24115_v47 }
 0xc80   : > { %19761 = vmatpush3.bf16.msra.mxu1 %v21354_v63  ;;  %v21394_v63 = vld [vmem:[%s24974_s5 + $0x230] sm:$0xff]  }
 0xc81   : > { %19762 = vmatprep.subr.bf16.mxu1 %v24115_v47 }
 0xc84   : > { %19763 = vmatpush3.bf16.msra.mxu1 %v21355_v46 }
 0xc85   : > { %19768 = vmatprep.subr.bf16.mxu1 %v24115_v47 }
 0xc87   : > { %19765 = vmatmul.mubr.bf16.vlgmr.msra.gmra.mrb[180].mxu1 %v14110_v16  ;;  %v21395_v16 = vld [vmem:[%s24974_s5 + $0x238] sm:$0xff]  }
 0xc88   : > { %19769 = vmatpush3.bf16.msra.mxu1 %v21356_v38  ;;  %19784 = vmatprep.mubr.msk.bf16.mxu1 %vm21550_vm8, %v24115_v47 }
 0xc89   : > { %19770 = vmatprep.subr.bf16.mxu1 %v24115_v47 }
 0xc8c   : > { %19771 = vmatpush3.bf16.msra.mxu1 %v21357_v12  ;;  %v14684_v12 = vld [vmem:[#allocation4 + $0x14] sm:$0x7f] }
 0xc8d   : > { %19772 = vmatprep.subr.bf16.mxu1 %v24115_v47 }
 0xc90   : > { %19773 = vmatpush3.bf16.msra.mxu1 %v21358_v8  ;;  %v14683_v8 = vld [vmem:[#allocation4 + $0xc] sm:$0xff] }
 0xc91   : > { %19774 = vmatprep.subr.bf16.mxu1 %v24115_v47 }
 0xc94   : > { %19775 = vmatpush3.bf16.msra.mxu1 %v21359_v7  ;;  %v14685_v7 = vpack.c.bf16 %v14684_v12, %v14683_v8 }
 0xc95   : > { %19776 = vmatprep.subr.bf16.mxu1 %v24115_v47 }
 0xc98   : > { %19777 = vmatpush3.bf16.msra.mxu1 %v21360_v17 }
 0xc99   : > { %19778 = vmatprep.subr.bf16.mxu1 %v24115_v47 }
 0xc9c   : > { %19779 = vmatpush3.bf16.msra.mxu1 %v21361_v55 }
 0xc9d   : > { %19780 = vmatprep.subr.bf16.mxu1 %v24115_v47 }
 0xca0   : > { %19781 = vmatpush3.bf16.msra.mxu1 %v21362_v4 }
 0xca1   : > { %19782 = vmatprep.subr.bf16.mxu1 %v24115_v47 }
 0xca4   : > { %19783 = vmatpush3.bf16.msra.mxu1 %v21363_v0 }
 0xca5   : > { %19788 = vmatprep.subr.bf16.mxu1 %v24115_v47 }
 0xca7   : > { %19785 = vmatmul.mubr.bf16.vlgmr.msra.gmra.mrb[184].mxu1 %v14225_v54 }
 0xca8   : > { %19789 = vmatpush3.bf16.msra.mxu1 %v21364_v59  ;;  %19804 = vmatprep.mubr.msk.bf16.mxu1 %vm21550_vm8, %v24115_v47 }
 0xca9   : > { %19790 = vmatprep.subr.bf16.mxu1 %v24115_v47 }
 0xcac   : > { %19791 = vmatpush3.bf16.msra.mxu1 %v21365_v24 }
 0xcad   : > { %19792 = vmatprep.subr.bf16.mxu1 %v24115_v47 }
 0xcb0   : > { %19793 = vmatpush3.bf16.msra.mxu1 %v21366_v35 }
 0xcb1   : > { %19794 = vmatprep.subr.bf16.mxu1 %v24115_v47 }
 0xcb4   : > { %19795 = vmatpush3.bf16.msra.mxu1 %v21367_v56 }
 0xcb5   : > { %19796 = vmatprep.subr.bf16.mxu1 %v24115_v47 }
 0xcb8   : > { %19797 = vmatpush3.bf16.msra.mxu1 %v21368_v5 }
 0xcb9   : > { %19798 = vmatprep.subr.bf16.mxu1 %v24115_v47 }
 0xcbc   : > { %19799 = vmatpush3.bf16.msra.mxu1 %v21369_v2 }
 0xcbd   : > { %19800 = vmatprep.subr.bf16.mxu1 %v24115_v47 }
 0xcc0   : > { %19801 = vmatpush3.bf16.msra.mxu1 %v21370_v49 }
 0xcc1   : > { %19802 = vmatprep.subr.bf16.mxu1 %v24115_v47 }
 0xcc4   : > { %19803 = vmatpush3.bf16.msra.mxu1 %v21371_v34  ;;  %v21396_v34 = vld [vmem:[%s24976_s7 + $0x40] sm:$0xff]  }
 0xcc5   : > { %19808 = vmatprep.subr.bf16.mxu1 %v24115_v47 }
 0xcc7   : > { %19805 = vmatmul.mubr.bf16.vlgmr.msra.gmra.mrb[188].mxu1 %v14340_v43 }
 0xcc8   : > { %19809 = vmatpush3.bf16.msra.mxu1 %v21372_v31  ;;  %19824 = vmatprep.mubr.msk.bf16.mxu1 %vm21550_vm8, %v24115_v47  ;;  %v21399_v31 = vld [vmem:[%s24976_s7 + $0x58] sm:$0xff]  }
 0xcc9   : > { %19810 = vmatprep.subr.bf16.mxu1 %v24115_v47 }
 0xccc   : > { %19811 = vmatpush3.bf16.msra.mxu1 %v21373_v15 }
 0xccd   : > { %19812 = vmatprep.subr.bf16.mxu1 %v24115_v47 }
 0xcd0   : > { %19813 = vmatpush3.bf16.msra.mxu1 %v21374_v29 }
 0xcd1   : > { %19814 = vmatprep.subr.bf16.mxu1 %v24115_v47 }
 0xcd4   : > { %19815 = vmatpush3.bf16.msra.mxu1 %v21375_v11 }
 0xcd5   : > { %19816 = vmatprep.subr.bf16.mxu1 %v24115_v47 }
 0xcd8   : > { %19817 = vmatpush3.bf16.msra.mxu1 %v21376_v42 }
 0xcd9   : > { %19818 = vmatprep.subr.bf16.mxu1 %v24115_v47 }
 0xcdc   : > { %19819 = vmatpush3.bf16.msra.mxu1 %v21377_v41 }
 0xcdd   : > { %19820 = vmatprep.subr.bf16.mxu1 %v24115_v47 }
 0xce0   : > { %19821 = vmatpush3.bf16.msra.mxu1 %v21378_v1 }
 0xce1   : > { %19822 = vmatprep.subr.bf16.mxu1 %v24115_v47 }
 0xce4   : > { %19823 = vmatpush3.bf16.msra.mxu1 %v21379_v14  ;;  %v21400_v14 = vld [vmem:[%s24976_s7 + $0x60] sm:$0xff]  }
 0xce5   : > { %19828 = vmatprep.subr.bf16.mxu1 %v24115_v47 }
 0xce7   : > { %19825 = vmatmul.mubr.bf16.vlgmr.msra.gmra.mrb[192].mxu1 %v14455_v25 }
 0xce8   : > { %19829 = vmatpush3.bf16.msra.mxu1 %v21380_v30  ;;  %19844 = vmatprep.mubr.msk.bf16.mxu1 %vm21550_vm8, %v24115_v47  ;;  %v21403_v30 = vld [vmem:[%s24976_s7 + $0x78] sm:$0xff]  }
 0xce9   : > { %19830 = vmatprep.subr.bf16.mxu1 %v24115_v47 }
 0xcec   : > { %19831 = vmatpush3.bf16.msra.mxu1 %v21381_v9 }
 0xced   : > { %19832 = vmatprep.subr.bf16.mxu1 %v24115_v47 }
 0xcf0   : > { %19833 = vmatpush3.bf16.msra.mxu1 %v21382_v28 }
 0xcf1   : > { %19834 = vmatprep.subr.bf16.mxu1 %v24115_v47 }
 0xcf4   : > { %19835 = vmatpush3.bf16.msra.mxu1 %v21383_v6 }
 0xcf5   : > { %19836 = vmatprep.subr.bf16.mxu1 %v24115_v47 }
 0xcf8   : > { %19837 = vmatpush3.bf16.msra.mxu1 %v21384_v21 }
 0xcf9   : > { %19838 = vmatprep.subr.bf16.mxu1 %v24115_v47 }
 0xcfa   : > { %v13869_v32 = vpop.f32.mrb[168].mxu1 }
 0xcfb   : > { %v19706_v40 = vpop.f32.mrb[169].mxu1 }
 0xcfc   : > { %19839 = vmatpush3.bf16.msra.mxu1 %v21385_v27  ;;  %v13872_v61 = vpop.f32.mrb[170].mxu1 }
 0xcfd   : > { %19840 = vmatprep.subr.bf16.mxu1 %v24115_v47  ;;  %13877 = vst [vmem:[#allocation2 + $0x8] sm:$0x7f] %v13872_v61  ;;  %v19707_v48 = vpop.f32.mrb[171].mxu1 }
 0xd00   : > { %19841 = vmatpush3.bf16.msra.mxu1 %v21386_v52 }
 0xd01   : > { %19842 = vmatprep.subr.bf16.mxu1 %v24115_v47 }
 0xd04   : > { %19843 = vmatpush3.bf16.msra.mxu1 %v21387_v13  ;;  %v13988_v33 = vld [vmem:[#allocation2 + $0x8] sm:$0x7f] }
 0xd05   : > { %19848 = vmatprep.subr.bf16.mxu1 %v24115_v47 }
 0xd07   : > { %19845 = vmatmul.mubr.bf16.vlgmr.msra.gmra.mrb[196].mxu1 %v14570_v36 }
 0xd08   : > { %19849 = vmatpush3.bf16.msra.mxu1 %v21388_v18  ;;  %19864 = vmatprep.mubr.msk.bf16.mxu1 %vm21550_vm8, %v24115_v47 }
 0xd09   : > { %19850 = vmatprep.subr.bf16.mxu1 %v24115_v47 }
 0xd0c   : > { %19851 = vmatpush3.bf16.msra.mxu1 %v21389_v10 }
 0xd0d   : > { %19852 = vmatprep.subr.bf16.mxu1 %v24115_v47 }
 0xd10   : > { %19853 = vmatpush3.bf16.msra.mxu1 %v21390_v20 }
 0xd11   : > { %19854 = vmatprep.subr.bf16.mxu1 %v24115_v47 }
 0xd14   : > { %19855 = vmatpush3.bf16.msra.mxu1 %v21391_v26 }
 0xd15   : > { %19856 = vmatprep.subr.bf16.mxu1 %v24115_v47 }
 0xd18   : > { %19857 = vmatpush3.bf16.msra.mxu1 %v21392_v51 }
 0xd19   : > { %19858 = vmatprep.subr.bf16.mxu1 %v24115_v47 }
 0xd1a   : > { %v13980_v39 = vpop.f32.mrb[172].mxu1 }
 0xd1b   : > { %v13989_v19 = vadd.f32 %v13980_v39, %v13869_v32  ;;  %v19726_v53 = vpop.f32.mrb[173].mxu1 }
 0xd1c   : > { %19859 = vmatpush3.bf16.msra.mxu1 %v21393_v50  ;;  %v13983_v46 = vpop.f32.mrb[174].mxu1 }
 0xd1d   : > { %19860 = vmatprep.subr.bf16.mxu1 %v24115_v47  ;;  %v13990_v58 = vadd.f32 %v13988_v33, %v13983_v46  ;;  %v19727_v38 = vpop.f32.mrb[175].mxu1 }
 0xd1f   : > { %13992 = vst [vmem:[#allocation2 + $0x8] sm:$0x7f] %v13990_v58 }
 0xd20   : > { %19861 = vmatpush3.bf16.msra.mxu1 %v21394_v63 }
 0xd21   : > { %19862 = vmatprep.subr.bf16.mxu1 %v24115_v47 }
 0xd24   : > { %19863 = vmatpush3.bf16.msra.mxu1 %v21395_v16 }
 0xd25   : > { %19868 = vmatprep.subr.bf16.mxu1 %v24115_v47 }
 0xd26   : > { %v14103_v62 = vld [vmem:[#allocation2 + $0x8] sm:$0x7f] }
 0xd27   : > { %19865 = vmatmul.mubr.bf16.vlgmr.msra.gmra.mrb[200].mxu1 %v14685_v7 }
 0xd28   : > { %19884 = vmatprep.mubr.msk.bf16.mxu1 %vm21550_vm8, %v24115_v47  ;;  %19869 = vmatpush3.bf16.msra.mxu1 %v21396_v34  ;;  %v21413_v34 = vld [vmem:[%s24976_s7 + $0x88] sm:$0xff]  }
 0xd29   : > { %19870 = vmatprep.subr.bf16.mxu1 %v24115_v47 }
 0xd2c   : > { %19871 = vmatpush3.bf16.msra.mxu1 %v21397_v37  ;;  %v21414_v37 = vld [vmem:[%s24976_s7 + $0x90] sm:$0xff]  }
 0xd2d   : > { %19872 = vmatprep.subr.bf16.mxu1 %v24115_v47 }
 0xd30   : > { %19873 = vmatpush3.bf16.msra.mxu1 %v21398_v3  ;;  %v21415_v3 = vld [vmem:[%s24976_s7 + $0x98] sm:$0xff]  }
 0xd31   : > { %19874 = vmatprep.subr.bf16.mxu1 %v24115_v47 }
 0xd34   : > { %19875 = vmatpush3.bf16.msra.mxu1 %v21399_v31  ;;  %v21416_v31 = vld [vmem:[%s24976_s7 + $0xa0] sm:$0xff]  }
 0xd35   : > { %19876 = vmatprep.subr.bf16.mxu1 %v24115_v47 }
 0xd38   : > { %19877 = vmatpush3.bf16.msra.mxu1 %v21400_v14  ;;  %v21422_v14 = vld [vmem:[%s24976_s7 + $0xd0] sm:$0xff]  }
 0xd39   : > { %19878 = vmatprep.subr.bf16.mxu1 %v24115_v47 }
 0xd3a   : > { %v14095_v17 = vpop.f32.mrb[176].mxu1 }
 0xd3b   : > { %v14104_v55 = vadd.f32 %v14095_v17, %v13989_v19  ;;  %v19746_v4 = vpop.f32.mrb[177].mxu1  ;;  %v16684_v19 = vld [vmem:[%s24975_s6] ss:$0 sm:$0xff] }
 0xd3c   : > { %v14098_v0 = vpop.f32.mrb[178].mxu1  ;;  %19879 = vmatpush3.bf16.msra.mxu1 %v21401_v57  ;;  %v21423_v57 = vld [vmem:[%s24976_s7 + $0xd8] sm:$0xff]  }
 0xd3d   : > { %v14105_v60 = vadd.f32 %v14103_v62, %v14098_v0  ;;  %v19747_v59 = vpop.f32.mrb[179].mxu1  ;;  %19880 = vmatprep.subr.bf16.mxu1 %v24115_v47  ;;  %v21405_v62 = vld [vmem:[%s24976_s7 + $0x8] sm:$0xff]  }
 0xd3e   : > { %v21407_v59 = vld [vmem:[%s24976_s7 + $0x18] sm:$0xff]  }
 0xd3f   : > { %14107 = vst [vmem:[#allocation2 + $0x8] sm:$0x7f] %v14105_v60  ;;  %v21406_v60 = vld [vmem:[%s24976_s7 + $0x10] sm:$0xff]  }
 0xd40   : > { %19881 = vmatpush3.bf16.msra.mxu1 %v21402_v45  ;;  %v21424_v45 = vld [vmem:[%s24976_s7 + $0xe0] sm:$0xff]  }
 0xd41   : > { %19882 = vmatprep.subr.bf16.mxu1 %v24115_v47 }
 0xd44   : > { %19883 = vmatpush3.bf16.msra.mxu1 %v21403_v30  ;;  %v21425_v30 = vld [vmem:[%s24976_s7 + $0xe8] sm:$0xff]  }
 0xd45   : > { %19888 = vmatprep.subr.bf16.mxu1 %v24115_v47 }
 0xd46   : > { %v14218_v5 = vld [vmem:[#allocation2 + $0x8] sm:$0x7f] }
 0xd5a   : > { %v14210_v54 = vpop.f32.mrb[180].mxu1 }
 0xd5b   : > { %v14219_v24 = vadd.f32 %v14210_v54, %v14104_v55  ;;  %v19766_v35 = vpop.f32.mrb[181].mxu1  ;;  %v21404_v55 = vld [vmem:[%s24976_s7] sm:$0xff]  }
 0xd5c   : > { %v14213_v56 = vpop.f32.mrb[182].mxu1  ;;  %v21408_v54 = vld [vmem:[%s24976_s7 + $0x20] sm:$0xff]   ;;  %v21410_v35 = vld [vmem:[%s24976_s7 + $0x30] sm:$0xff]  }
 0xd5d   : > { %v14220_v2 = vadd.f32 %v14218_v5, %v14213_v56  ;;  %v19767_v49 = vpop.f32.mrb[183].mxu1  ;;  %v21411_v56 = vld [vmem:[%s24976_s7 + $0x38] sm:$0xff]  }
 0xd5f   : > { %14222 = vst [vmem:[#allocation2 + $0x8] sm:$0x7f] %v14220_v2  ;;  %v21412_v2 = vld [vmem:[%s24976_s7 + $0x80] sm:$0xff]  }
 0xd66   : > { %v14333_v42 = vld [vmem:[#allocation2 + $0x8] sm:$0x7f] }
 0xd7a   : > { %v14325_v43 = vpop.f32.mrb[184].mxu1 }
 0xd7b   : > { %v14334_v15 = vadd.f32 %v14325_v43, %v14219_v24  ;;  %v19786_v29 = vpop.f32.mrb[185].mxu1  ;;  %v21409_v24 = vld [vmem:[%s24976_s7 + $0x28] sm:$0xff]  }
 0xd7c   : > { %v14328_v11 = vpop.f32.mrb[186].mxu1  ;;  %v21417_v43 = vld [vmem:[%s24976_s7 + $0xa8] sm:$0xff]   ;;  %v21419_v29 = vld [vmem:[%s24976_s7 + $0xb8] sm:$0xff]  }
 0xd7d   : > { %v14335_v41 = vadd.f32 %v14333_v42, %v14328_v11  ;;  %v19787_v1 = vpop.f32.mrb[187].mxu1  ;;  %v21420_v42 = vld [vmem:[%s24976_s7 + $0xc0] sm:$0xff]  }
 0xd7e   : > { %v21421_v1 = vld [vmem:[%s24976_s7 + $0xc8] sm:$0xff]  }
 0xd7f   : > { %14337 = vst [vmem:[#allocation2 + $0x8] sm:$0x7f] %v14335_v41 }
 0xd86   : > { %v14448_v21 = vld [vmem:[#allocation2 + $0x8] sm:$0x7f] }
 0xd9a   : > { %v14440_v25 = vpop.f32.mrb[188].mxu1 }
 0xd9b   : > { %v14449_v9 = vadd.f32 %v14440_v25, %v14334_v15  ;;  %v19806_v28 = vpop.f32.mrb[189].mxu1  ;;  %v21418_v15 = vld [vmem:[%s24976_s7 + $0xb0] sm:$0xff]  }
 0xd9c   : > { %v14443_v6 = vpop.f32.mrb[190].mxu1  ;;  %v21426_v25 = vld [vmem:[%s24976_s7 + $0xf0] sm:$0xff]  }
 0xd9d   : > { %v14450_v27 = vadd.f32 %v14448_v21, %v14443_v6  ;;  %v19807_v32 = vpop.f32.mrb[191].mxu1  ;;  %v21428_v6 = vld [vmem:[%s24976_s7 + $0x100] sm:$0xff]  }
 0xd9e   : > { %v21430_v32 = vld [vmem:[%s24976_s7 + $0x110] sm:$0xff]  }
 0xd9f   : > { %14452 = vst [vmem:[#allocation2 + $0x8] sm:$0x7f] %v14450_v27  ;;  %v21429_v27 = vld [vmem:[%s24976_s7 + $0x108] sm:$0xff]  }
 0xda6   : > { %v14563_v13 = vld [vmem:[#allocation2 + $0x8] sm:$0x7f] }
 0xdba   : > { %v14555_v40 = vpop.f32.mrb[192].mxu1 }
 0xdbb   : > { %v14564_v52 = vadd.f32 %v14555_v40, %v14449_v9  ;;  %v19826_v61 = vpop.f32.mrb[193].mxu1  ;;  %v21427_v9 = vld [vmem:[%s24976_s7 + $0xf8] sm:$0xff]  }
 0xdbc   : > { %v14558_v48 = vpop.f32.mrb[194].mxu1  ;;  %v21431_v40 = vld [vmem:[%s24976_s7 + $0x118] sm:$0xff]   ;;  %v21433_v61 = vld [vmem:[%s24976_s7 + $0x128] sm:$0xff]  }
 0xdbd   : > { %v14565_v44 = vadd.f32 %v14563_v13, %v14558_v48  ;;  %v19827_v23 = vpop.f32.mrb[195].mxu1  ;;  %v21434_v48 = vld [vmem:[%s24976_s7 + $0x130] sm:$0xff]   ;;  %v21435_v13 = vld [vmem:[%s24976_s7 + $0x138] sm:$0xff]  }
 0xdbe   : > { %v21436_v23 = vld [vmem:[%s24976_s7 + $0x140] sm:$0xff]  }
 0xdbf   : > { %14567 = vst [vmem:[#allocation2 + $0x8] sm:$0x7f] %v14565_v44 }
 0xdc6   : > { %v14678_v26 = vld [vmem:[#allocation2 + $0x8] sm:$0x7f] }
 0xdda   : > { %v14670_v18 = vpop.f32.mrb[196].mxu1 }
 0xddb   : > { %v14679_v36 = vadd.f32 %v14670_v18, %v14564_v52  ;;  %v19846_v10 = vpop.f32.mrb[197].mxu1  ;;  %v21432_v52 = vld [vmem:[%s24976_s7 + $0x120] sm:$0xff]  }
 0xddc   : > { %v14673_v20 = vpop.f32.mrb[198].mxu1  ;;  %v21438_v10 = vld [vmem:[%s24976_s7 + $0x150] sm:$0xff]  }
 0xddd   : > { %v14680_v51 = vadd.f32 %v14678_v26, %v14673_v20  ;;  %v19847_v50 = vpop.f32.mrb[199].mxu1  ;;  %v21439_v20 = vld [vmem:[%s24976_s7 + $0x158] sm:$0xff]   ;;  %v21440_v26 = vld [vmem:[%s24976_s7 + $0x160] sm:$0xff]  }
 0xdde   : > { %v21442_v50 = vld [vmem:[%s24976_s7 + $0x170] sm:$0xff]  }
 0xddf   : > { %14682 = vst [vmem:[#allocation2 + $0x8] sm:$0x7f] %v14680_v51  ;;  %v21441_v51 = vld [vmem:[%s24976_s7 + $0x168] sm:$0xff]  }
 0xde6   : > { %v14793_v33 = vld [vmem:[#allocation2 + $0x8] sm:$0x7f] }
 0xdfa   : > { %v14785_v39 = vpop.f32.mrb[200].mxu1 }
 0xdfb   : > { %v14794_v53 = vadd.f32 %v14785_v39, %v14679_v36  ;;  %v19866_v63 = vpop.f32.mrb[201].mxu1  ;;  %v21437_v36 = vld [vmem:[%s24976_s7 + $0x148] sm:$0xff]   ;;  %v21443_v39 = vld [vmem:[%s24976_s7 + $0x178] sm:$0xff]  }
 0xdfc   : > { %v14788_v46 = vpop.f32.mrb[202].mxu1 }
 0xdfd   : > { %v14807_v58 = vadd.f32 %v16684_v19, %v14794_v53  ;;  %v14795_v38 = vadd.f32 %v14793_v33, %v14788_v46  ;;  %v19867_v16 = vpop.f32.mrb[203].mxu1  ;;  %v21444_v53 = vld [vmem:[%s24976_s7 + $0x180] sm:$0xff]   ;;  %v21445_v46 = vld [vmem:[%s24976_s7 + $0x188] sm:$0xff]   ;;  %v21446_v33 = vld [vmem:[%s24976_s7 + $0x190] sm:$0xff]  }
 0xdfe   : > { %v21449_v16 = vld [vmem:[%s24976_s7 + $0x1a8] sm:$0xff]  }
 0xdff   : > { %v14809_v12 = vmax.f32 %v14807_v58, 0.0  ;;  %14797 = vst [vmem:[#allocation2 + $0x8] sm:$0x7f] %v14795_v38  ;;  %v21447_v58 = vld [vmem:[%s24976_s7 + $0x198] sm:$0xff]   ;;  %v21448_v38 = vld [vmem:[%s24976_s7 + $0x1a0] sm:$0xff]  }
 0xe01   : > { %14811 = vst [vmem:[#allocation2] sm:$0xff] %v14809_v12  ;;  %v21450_v12 = vld [vmem:[%s24976_s7 + $0x1b0] sm:$0xff]  }
 0xe06   : > { %v14799_v8 = vld [vmem:[#allocation2 + $0x8] sm:$0x7f] }
 0xe07   : > { %v14808_v7 = vadd.f32 %v16684_v19, %v14799_v8  ;;  %v21451_v8 = vld [vmem:[%s24976_s7 + $0x1b8] sm:$0xff]  }
 0xe08   : > { %v14831_v17 = vld [vmem:[#allocation2 + $0x1] sm:$0x1]  ;;  %v14813_v5 = vld [vmem:[#allocation2] sm:$0x1]  ;;  %v15026_v11 = vld [vmem:[#allocation2 + $0x2] sm:$0x1] }
 0xe09   : > { %v14810_v4 = vmax.f32 %v14808_v7, 0.0  ;;  %v14832_v0 = vpack.c.bf16 %v14831_v17, %v14831_v17  ;;  %v14814_v49 = vpack.c.bf16 %v14813_v5, %v14813_v5  ;;  %v15027_v41 = vpack.c.bf16 %v15026_v11, %v15026_v11  ;;  %v15134_v28 = vld [vmem:[#allocation2 + $0x5] sm:$0x1]  ;;  %v15242_v44 = vld [vmem:[#allocation2 + $0x6] sm:$0x1] }
 0xe0a   : > { %v15135_v21 = vpack.c.bf16 %v15134_v28, %v15134_v28  ;;  %v15243_v18 = vpack.c.bf16 %v15242_v44, %v15242_v44  ;;  %v15350_v19 = vld [vmem:[#allocation2 + $0x7] sm:$0x1]  ;;  %v21469_v44 = vld [vmem:[%s24978_s9 + $0x8] sm:$0xff]  }
 0xe0b   : > { %14812 = vst [vmem:[#allocation2 + $0x8] sm:$0x7f] %v14810_v4  ;;  %19885 = vmatmul.mubr.bf16.vlgmr.msra.gmra.mrb[204].mxu1 %v14832_v0  ;;  %v15351_v63 = vpack.c.bf16 %v15350_v19, %v15350_v19  ;;  %v21452_v17 = vld [vmem:[%s24976_s7 + $0x1c0] sm:$0xff]   ;;  %v21453_v4 = vld [vmem:[%s24976_s7 + $0x1c8] sm:$0xff]   ;;  %v21454_v0 = vld [vmem:[%s24976_s7 + $0x1d0] sm:$0xff]  }
 0xe0c   : > { %19889 = vmatpush3.bf16.msra.mxu1 %v21404_v55  ;;  %19904 = vmatprep.mubr.msk.bf16.mxu1 %vm21550_vm8, %v24115_v47  ;;  %v21474_v19 = vld [vmem:[%s24978_s9 + $0x30] sm:$0xff]  }
 0xe0d   : > { %19890 = vmatprep.subr.bf16.mxu1 %v24115_v47 }
 0xe10   : > { %19891 = vmatpush3.bf16.msra.mxu1 %v21405_v62  ;;  %v21455_v62 = vld [vmem:[%s24976_s7 + $0x1d8] sm:$0xff]  }
 0xe11   : > { %19892 = vmatprep.subr.bf16.mxu1 %v24115_v47 }
 0xe12   : > { %v15458_v7 = vld [vmem:[#allocation2 + $0xa] sm:$0x1] }
 0xe13   : > { %v15459_v55 = vpack.c.bf16 %v15458_v7, %v15458_v7 }
 0xe14   : > { %19893 = vmatpush3.bf16.msra.mxu1 %v21406_v60  ;;  %v21456_v60 = vld [vmem:[%s24976_s7 + $0x1e0] sm:$0xff]  }
 0xe15   : > { %19894 = vmatprep.subr.bf16.mxu1 %v24115_v47 }
 0xe18   : > { %19895 = vmatpush3.bf16.msra.mxu1 %v21407_v59  ;;  %v21457_v59 = vld [vmem:[%s24976_s7 + $0x1e8] sm:$0xff]  }
 0xe19   : > { %19896 = vmatprep.subr.bf16.mxu1 %v24115_v47 }
 0xe1c   : > { %19897 = vmatpush3.bf16.msra.mxu1 %v21408_v54 }
 0xe1d   : > { %19898 = vmatprep.subr.bf16.mxu1 %v24115_v47 }
 0xe20   : > { %19899 = vmatpush3.bf16.msra.mxu1 %v21409_v24 }
 0xe21   : > { %19900 = vmatprep.subr.bf16.mxu1 %v24115_v47 }
 0xe24   : > { %19901 = vmatpush3.bf16.msra.mxu1 %v21410_v35 }
 0xe25   : > { %19902 = vmatprep.subr.bf16.mxu1 %v24115_v47 }
 0xe28   : > { %19903 = vmatpush3.bf16.msra.mxu1 %v21411_v56  ;;  %v21458_v56 = vld [vmem:[%s24976_s7 + $0x1f0] sm:$0xff]  }
 0xe29   : > { %19908 = vmatprep.subr.bf16.mxu1 %v24115_v47 }
 0xe2b   : > { %19905 = vmatmul.mubr.bf16.vlgmr.msra.gmra.mrb[208].mxu1 %v14814_v49  ;;  %v15566_v49 = vld [vmem:[#allocation2 + $0xb] sm:$0x1] }
 0xe2c   : > { %19909 = vmatpush3.bf16.msra.mxu1 %v21412_v2  ;;  %19924 = vmatprep.mubr.msk.bf16.mxu1 %vm21550_vm8, %v24115_v47  ;;  %v21459_v2 = vld [vmem:[%s24976_s7 + $0x1f8] sm:$0xff]  }
 0xe2d   : > { %19910 = vmatprep.subr.bf16.mxu1 %v24115_v47 }
 0xe30   : > { %19911 = vmatpush3.bf16.msra.mxu1 %v21413_v34  ;;  %v21460_v34 = vld [vmem:[%s24976_s7 + $0x200] sm:$0xff]  }
 0xe31   : > { %19912 = vmatprep.subr.bf16.mxu1 %v24115_v47 }
 0xe34   : > { %19913 = vmatpush3.bf16.msra.mxu1 %v21414_v37  ;;  %v15567_v37 = vpack.c.bf16 %v15566_v49, %v15566_v49 }
 0xe35   : > { %19914 = vmatprep.subr.bf16.mxu1 %v24115_v47 }
 0xe38   : > { %19915 = vmatpush3.bf16.msra.mxu1 %v21415_v3  ;;  %v21461_v3 = vld [vmem:[%s24976_s7 + $0x208] sm:$0xff]  }
 0xe39   : > { %19916 = vmatprep.subr.bf16.mxu1 %v24115_v47 }
 0xe3c   : > { %19917 = vmatpush3.bf16.msra.mxu1 %v21416_v31  ;;  %v21462_v31 = vld [vmem:[%s24976_s7 + $0x210] sm:$0xff]  }
 0xe3d   : > { %19918 = vmatprep.subr.bf16.mxu1 %v24115_v47 }
 0xe40   : > { %19919 = vmatpush3.bf16.msra.mxu1 %v21417_v43  ;;  %v21463_v43 = vld [vmem:[%s24976_s7 + $0x218] sm:$0xff]  }
 0xe41   : > { %19920 = vmatprep.subr.bf16.mxu1 %v24115_v47 }
 0xe44   : > { %19921 = vmatpush3.bf16.msra.mxu1 %v21418_v15  ;;  %v21464_v15 = vld [vmem:[%s24976_s7 + $0x220] sm:$0xff]  }
 0xe45   : > { %19922 = vmatprep.subr.bf16.mxu1 %v24115_v47 }
 0xe48   : > { %19923 = vmatpush3.bf16.msra.mxu1 %v21419_v29  ;;  %v21465_v29 = vld [vmem:[%s24976_s7 + $0x228] sm:$0xff]  }
 0xe49   : > { %19928 = vmatprep.subr.bf16.mxu1 %v24115_v47 }
 0xe4b   : > { %19925 = vmatmul.mubr.bf16.vlgmr.msra.gmra.mrb[212].mxu1 %v15027_v41 }
 0xe4c   : > { %19929 = vmatpush3.bf16.msra.mxu1 %v21420_v42  ;;  %19944 = vmatprep.mubr.msk.bf16.mxu1 %vm21550_vm8, %v24115_v47 }
 0xe4d   : > { %19930 = vmatprep.subr.bf16.mxu1 %v24115_v47 }
 0xe50   : > { %19931 = vmatpush3.bf16.msra.mxu1 %v21421_v1 }
 0xe51   : > { %19932 = vmatprep.subr.bf16.mxu1 %v24115_v47 }
 0xe54   : > { %19933 = vmatpush3.bf16.msra.mxu1 %v21422_v14  ;;  %v21466_v14 = vld [vmem:[%s24976_s7 + $0x230] sm:$0xff]  }
 0xe55   : > { %19934 = vmatprep.subr.bf16.mxu1 %v24115_v47 }
 0xe58   : > { %19935 = vmatpush3.bf16.msra.mxu1 %v21423_v57 }
 0xe59   : > { %19936 = vmatprep.subr.bf16.mxu1 %v24115_v47 }
 0xe5c   : > { %19937 = vmatpush3.bf16.msra.mxu1 %v21424_v45  ;;  %v21467_v45 = vld [vmem:[%s24976_s7 + $0x238] sm:$0xff]  }
 0xe5d   : > { %19938 = vmatprep.subr.bf16.mxu1 %v24115_v47 }
 0xe60   : > { %19939 = vmatpush3.bf16.msra.mxu1 %v21425_v30  ;;  %v15674_v30 = vld [vmem:[#allocation2 + $0xc] sm:$0x1] }
 0xe61   : > { %19940 = vmatprep.subr.bf16.mxu1 %v24115_v47 }
 0xe64   : > { %19941 = vmatpush3.bf16.msra.mxu1 %v21426_v25  ;;  %v15675_v25 = vpack.c.bf16 %v15674_v30, %v15674_v30 }
 0xe65   : > { %19942 = vmatprep.subr.bf16.mxu1 %v24115_v47 }
 0xe68   : > { %19943 = vmatpush3.bf16.msra.mxu1 %v21427_v9 }
 0xe69   : > { %19948 = vmatprep.subr.bf16.mxu1 %v24115_v47 }
 0xe6b   : > { %19945 = vmatmul.mubr.bf16.vlgmr.msra.gmra.mrb[216].mxu1 %v15135_v21 }
 0xe6c   : > { %19949 = vmatpush3.bf16.msra.mxu1 %v21428_v6  ;;  %19964 = vmatprep.mubr.msk.bf16.mxu1 %vm21550_vm8, %v24115_v47 }
 0xe6d   : > { %19950 = vmatprep.subr.bf16.mxu1 %v24115_v47 }
 0xe70   : > { %19951 = vmatpush3.bf16.msra.mxu1 %v21429_v27 }
 0xe71   : > { %19952 = vmatprep.subr.bf16.mxu1 %v24115_v47 }
 0xe74   : > { %19953 = vmatpush3.bf16.msra.mxu1 %v21430_v32 }
 0xe75   : > { %19954 = vmatprep.subr.bf16.mxu1 %v24115_v47 }
 0xe78   : > { %19955 = vmatpush3.bf16.msra.mxu1 %v21431_v40 }
 0xe79   : > { %19956 = vmatprep.subr.bf16.mxu1 %v24115_v47 }
 0xe7c   : > { %19957 = vmatpush3.bf16.msra.mxu1 %v21432_v52 }
 0xe7d   : > { %19958 = vmatprep.subr.bf16.mxu1 %v24115_v47 }
 0xe80   : > { %19959 = vmatpush3.bf16.msra.mxu1 %v21433_v61 }
 0xe81   : > { %19960 = vmatprep.subr.bf16.mxu1 %v24115_v47 }
 0xe84   : > { %19961 = vmatpush3.bf16.msra.mxu1 %v21434_v48 }
 0xe85   : > { %19962 = vmatprep.subr.bf16.mxu1 %v24115_v47 }
 0xe88   : > { %19963 = vmatpush3.bf16.msra.mxu1 %v21435_v13  ;;  %v21468_v13 = vld [vmem:[%s24978_s9] sm:$0xff]  }
 0xe89   : > { %19968 = vmatprep.subr.bf16.mxu1 %v24115_v47 }
 0xe8b   : > { %19965 = vmatmul.mubr.bf16.vlgmr.msra.gmra.mrb[220].mxu1 %v15243_v18  ;;  %v21471_v18 = vld [vmem:[%s24978_s9 + $0x18] sm:$0xff]  }
 0xe8c   : > { %19969 = vmatpush3.bf16.msra.mxu1 %v21436_v23  ;;  %19984 = vmatprep.mubr.msk.bf16.mxu1 %vm21550_vm8, %v24115_v47  ;;  %v21470_v23 = vld [vmem:[%s24978_s9 + $0x10] sm:$0xff]  }
 0xe8d   : > { %19970 = vmatprep.subr.bf16.mxu1 %v24115_v47 }
 0xe90   : > { %19971 = vmatpush3.bf16.msra.mxu1 %v21437_v36  ;;  %v21472_v36 = vld [vmem:[%s24978_s9 + $0x20] sm:$0xff]  }
 0xe91   : > { %19972 = vmatprep.subr.bf16.mxu1 %v24115_v47 }
 0xe94   : > { %19973 = vmatpush3.bf16.msra.mxu1 %v21438_v10  ;;  %v21473_v10 = vld [vmem:[%s24978_s9 + $0x28] sm:$0xff]  }
 0xe95   : > { %19974 = vmatprep.subr.bf16.mxu1 %v24115_v47 }
 0xe98   : > { %19975 = vmatpush3.bf16.msra.mxu1 %v21439_v20 }
 0xe99   : > { %19976 = vmatprep.subr.bf16.mxu1 %v24115_v47 }
 0xe9c   : > { %19977 = vmatpush3.bf16.msra.mxu1 %v21440_v26 }
 0xe9d   : > { %19978 = vmatprep.subr.bf16.mxu1 %v24115_v47 }
 0xea0   : > { %19979 = vmatpush3.bf16.msra.mxu1 %v21441_v51 }
 0xea1   : > { %19980 = vmatprep.subr.bf16.mxu1 %v24115_v47 }
 0xea4   : > { %19981 = vmatpush3.bf16.msra.mxu1 %v21442_v50 }
 0xea5   : > { %19982 = vmatprep.subr.bf16.mxu1 %v24115_v47 }
 0xea8   : > { %19983 = vmatpush3.bf16.msra.mxu1 %v21443_v39 }
 0xea9   : > { %19988 = vmatprep.subr.bf16.mxu1 %v24115_v47 }
 0xeab   : > { %19985 = vmatmul.mubr.bf16.vlgmr.msra.gmra.mrb[224].mxu1 %v15351_v63 }
 0xeac   : > { %19989 = vmatpush3.bf16.msra.mxu1 %v21444_v53  ;;  %20004 = vmatprep.mubr.msk.bf16.mxu1 %vm21550_vm8, %v24115_v47  ;;  %v21475_v53 = vld [vmem:[%s24978_s9 + $0x38] sm:$0xff]  }
 0xead   : > { %19990 = vmatprep.subr.bf16.mxu1 %v24115_v47 }
 0xeb0   : > { %19991 = vmatpush3.bf16.msra.mxu1 %v21445_v46 }
 0xeb1   : > { %19992 = vmatprep.subr.bf16.mxu1 %v24115_v47 }
 0xeb4   : > { %19993 = vmatpush3.bf16.msra.mxu1 %v21446_v33 }
 0xeb5   : > { %19994 = vmatprep.subr.bf16.mxu1 %v24115_v47 }
 0xeb8   : > { %19995 = vmatpush3.bf16.msra.mxu1 %v21447_v58 }
 0xeb9   : > { %19996 = vmatprep.subr.bf16.mxu1 %v24115_v47 }
 0xebc   : > { %19997 = vmatpush3.bf16.msra.mxu1 %v21448_v38 }
 0xebd   : > { %19998 = vmatprep.subr.bf16.mxu1 %v24115_v47 }
 0xec0   : > { %19999 = vmatpush3.bf16.msra.mxu1 %v21449_v16 }
 0xec1   : > { %20000 = vmatprep.subr.bf16.mxu1 %v24115_v47 }
 0xec4   : > { %20001 = vmatpush3.bf16.msra.mxu1 %v21450_v12 }
 0xec5   : > { %20002 = vmatprep.subr.bf16.mxu1 %v24115_v47 }
 0xec8   : > { %20003 = vmatpush3.bf16.msra.mxu1 %v21451_v8 }
 0xec9   : > { %20008 = vmatprep.subr.bf16.mxu1 %v24115_v47 }
 0xecb   : > { %20005 = vmatmul.mubr.bf16.vlgmr.msra.gmra.mrb[228].mxu1 %v15459_v55 }
 0xecc   : > { %20009 = vmatpush3.bf16.msra.mxu1 %v21452_v17  ;;  %20024 = vmatprep.mubr.msk.bf16.mxu1 %vm21550_vm8, %v24115_v47 }
 0xecd   : > { %20010 = vmatprep.subr.bf16.mxu1 %v24115_v47 }
 0xed0   : > { %20011 = vmatpush3.bf16.msra.mxu1 %v21453_v4 }
 0xed1   : > { %20012 = vmatprep.subr.bf16.mxu1 %v24115_v47 }
 0xed4   : > { %20013 = vmatpush3.bf16.msra.mxu1 %v21454_v0 }
 0xed5   : > { %20014 = vmatprep.subr.bf16.mxu1 %v24115_v47 }
 0xed8   : > { %20015 = vmatpush3.bf16.msra.mxu1 %v21455_v62 }
 0xed9   : > { %20016 = vmatprep.subr.bf16.mxu1 %v24115_v47 }
 0xedc   : > { %20017 = vmatpush3.bf16.msra.mxu1 %v21456_v60 }
 0xedd   : > { %20018 = vmatprep.subr.bf16.mxu1 %v24115_v47 }
 0xede   : > { %v14932_v54 = vpop.f32.mrb[204].mxu1 }
 0xedf   : > { %v19886_v24 = vpop.f32.mrb[205].mxu1 }
 0xee0   : > { %20019 = vmatpush3.bf16.msra.mxu1 %v21457_v59  ;;  %v14935_v35 = vpop.f32.mrb[206].mxu1  ;;  %v15782_v59 = vld [vmem:[%s24977_s8] sm:$0x1] }
 0xee1   : > { %v19887_v5 = vpop.f32.mrb[207].mxu1  ;;  %20020 = vmatprep.subr.bf16.mxu1 %v24115_v47 }
 0xee4   : > { %20021 = vmatpush3.bf16.msra.mxu1 %v21458_v56 }
 0xee5   : > { %20022 = vmatprep.subr.bf16.mxu1 %v24115_v47 }
 0xee8   : > { %20023 = vmatpush3.bf16.msra.mxu1 %v21459_v2 }
 0xee9   : > { %20028 = vmatprep.subr.bf16.mxu1 %v24115_v47 }
 0xeeb   : > { %20025 = vmatmul.mubr.bf16.vlgmr.msra.gmra.mrb[232].mxu1 %v15567_v37 }
 0xeec   : > { %20029 = vmatpush3.bf16.msra.mxu1 %v21460_v34  ;;  %20044 = vmatprep.mubr.msk.bf16.mxu1 %vm21550_vm8, %v24115_v47  ;;  %v15802_v34 = vld [vmem:[%s24979_s10] sm:$0x1] }
 0xeed   : > { %20030 = vmatprep.subr.bf16.mxu1 %v24115_v47 }
 0xef0   : > { %20031 = vmatpush3.bf16.msra.mxu1 %v21461_v3 }
 0xef1   : > { %20032 = vmatprep.subr.bf16.mxu1 %v24115_v47 }
 0xef4   : > { %20033 = vmatpush3.bf16.msra.mxu1 %v21462_v31 }
 0xef5   : > { %20034 = vmatprep.subr.bf16.mxu1 %v24115_v47 }
 0xef8   : > { %20035 = vmatpush3.bf16.msra.mxu1 %v21463_v43 }
 0xef9   : > { %20036 = vmatprep.subr.bf16.mxu1 %v24115_v47 }
 0xefc   : > { %20037 = vmatpush3.bf16.msra.mxu1 %v21464_v15 }
 0xefd   : > { %20038 = vmatprep.subr.bf16.mxu1 %v24115_v47 }
 0xefe   : > { %v15020_v11 = vpop.f32.mrb[208].mxu1 }
 0xeff   : > { %v15021_v42 = vadd.f32 %v15020_v11, %v14932_v54  ;;  %v19906_v41 = vpop.f32.mrb[209].mxu1 }
 0xf00   : > { %v15023_v1 = vpop.f32.mrb[210].mxu1  ;;  %20039 = vmatpush3.bf16.msra.mxu1 %v21465_v29 }
 0xf01   : > { %v19907_v57 = vpop.f32.mrb[211].mxu1  ;;  %20040 = vmatprep.subr.bf16.mxu1 %v24115_v47 }
 0xf04   : > { %20041 = vmatpush3.bf16.msra.mxu1 %v21466_v14 }
 0xf05   : > { %20042 = vmatprep.subr.bf16.mxu1 %v24115_v47 }
 0xf08   : > { %20043 = vmatpush3.bf16.msra.mxu1 %v21467_v45 }
 0xf09   : > { %20048 = vmatprep.subr.bf16.mxu1 %v24115_v47 }
 0xf0b   : > { %20045 = vmatmul.mubr.bf16.vlgmr.msra.gmra.mrb[236].mxu1 %v15675_v25 }
 0xf0c   : > { %20064 = vmatprep.mubr.msk.bf16.mxu1 %vm21550_vm8, %v24115_v47  ;;  %20049 = vmatpush3.bf16.msra.mxu1 %v21468_v13 }
 0xf0d   : > { %20050 = vmatprep.subr.bf16.mxu1 %v24115_v47 }
 0xf10   : > { %20051 = vmatpush3.bf16.msra.mxu1 %v21469_v44 }
 0xf11   : > { %20052 = vmatprep.subr.bf16.mxu1 %v24115_v47 }
 0xf14   : > { %20053 = vmatpush3.bf16.msra.mxu1 %v21470_v23 }
 0xf15   : > { %20054 = vmatprep.subr.bf16.mxu1 %v24115_v47 }
 0xf18   : > { %20055 = vmatpush3.bf16.msra.mxu1 %v21471_v18 }
 0xf19   : > { %20056 = vmatprep.subr.bf16.mxu1 %v24115_v47 }
 0xf1c   : > { %20057 = vmatpush3.bf16.msra.mxu1 %v21472_v36 }
 0xf1d   : > { %20058 = vmatprep.subr.bf16.mxu1 %v24115_v47 }
 0xf1e   : > { %v15127_v9 = vpop.f32.mrb[212].mxu1 }
 0xf1f   : > { %v15133_v28 = vadd.f32 %v15127_v9, %v15021_v42  ;;  %v19926_v6 = vpop.f32.mrb[213].mxu1 }
 0xf20   : > { %v15130_v21 = vpop.f32.mrb[214].mxu1  ;;  %20059 = vmatpush3.bf16.msra.mxu1 %v21473_v10 }
 0xf21   : > { %v19927_v27 = vpop.f32.mrb[215].mxu1  ;;  %20060 = vmatprep.subr.bf16.mxu1 %v24115_v47 }
 0xf24   : > { %20061 = vmatpush3.bf16.msra.mxu1 %v21474_v19 }
 0xf25   : > { %20062 = vmatprep.subr.bf16.mxu1 %v24115_v47 }
 0xf28   : > { %20063 = vmatpush3.bf16.msra.mxu1 %v21475_v53 }
 0xf3e   : > { %v15235_v32 = vpop.f32.mrb[216].mxu1 }
 0xf3f   : > { %v15241_v40 = vadd.f32 %v15235_v32, %v15133_v28  ;;  %v19946_v52 = vpop.f32.mrb[217].mxu1 }
 0xf40   : > { %v15238_v61 = vpop.f32.mrb[218].mxu1 }
 0xf41   : > { %v19947_v48 = vpop.f32.mrb[219].mxu1 }
 0xf5e   : > { %v15343_v20 = vpop.f32.mrb[220].mxu1 }
 0xf5f   : > { %v15349_v26 = vadd.f32 %v15343_v20, %v15241_v40  ;;  %v19966_v51 = vpop.f32.mrb[221].mxu1 }
 0xf60   : > { %v15346_v50 = vpop.f32.mrb[222].mxu1 }
 0xf61   : > { %v19967_v39 = vpop.f32.mrb[223].mxu1 }
 0xf7e   : > { %v15451_v63 = vpop.f32.mrb[224].mxu1 }
 0xf7f   : > { %v15457_v46 = vadd.f32 %v15451_v63, %v15349_v26  ;;  %v19986_v33 = vpop.f32.mrb[225].mxu1 }
 0xf80   : > { %v15454_v58 = vpop.f32.mrb[226].mxu1 }
 0xf81   : > { %v19987_v38 = vpop.f32.mrb[227].mxu1 }
 0xf9e   : > { %v15559_v16 = vpop.f32.mrb[228].mxu1 }
 0xf9f   : > { %v15565_v12 = vadd.f32 %v15559_v16, %v15457_v46  ;;  %v20006_v8 = vpop.f32.mrb[229].mxu1 }
 0xfa0   : > { %v15562_v7 = vpop.f32.mrb[230].mxu1 }
 0xfa1   : > { %v20007_v17 = vpop.f32.mrb[231].mxu1 }
 0xfbe   : > { %v15667_v55 = vpop.f32.mrb[232].mxu1 }
 0xfbf   : > { %v15673_v4 = vadd.f32 %v15667_v55, %v15565_v12  ;;  %v20026_v0 = vpop.f32.mrb[233].mxu1 }
 0xfc0   : > { %v15670_v62 = vpop.f32.mrb[234].mxu1 }
 0xfc1   : > { %v20027_v47 = vpop.f32.mrb[235].mxu1 }
 0xfde   : > { %v15775_v60 = vpop.f32.mrb[236].mxu1 }
 0xfdf   : > { %v15781_v54 = vadd.f32 %v15775_v60, %v15673_v4  ;;  %v20046_v24 = vpop.f32.mrb[237].mxu1 }
 0xfe0   : > { %v15778_v35 = vpop.f32.mrb[238].mxu1 }
 0xfe1   : > { %v15783_v56 = vadd.f32 %v15782_v59, %v15781_v54  ;;  %v20047_v5 = vpop.f32.mrb[239].mxu1 }
 0xfe3   : > { %v15784_v2 = vmax.f32 %v15783_v56, 0.0 }
 0xfe5   : > { %v15785_v49 = vpack.c.bf16 %v15784_v2, %v15784_v2 }
 0xfe7   : > { %20065 = vmatmul.mubr.bf16.vlgmr.msra.gmra.mrb[240].mxu1 %v15785_v49 }
0x10ba   : > { %v15885_v37 = vpop.f32.mrb[240].mxu1 }
0x10bb   : > { %v15886_v3 = vadd.f32 %v15885_v37, %v15802_v34  ;;  %v20066_v31 = vpop.f32.mrb[241].mxu1 }
0x10bc   : > { %v15888_v43 = vpop.f32.mrb[242].mxu1 }
0x10bd   : > { %v20067_v15 = vpop.f32.mrb[243].mxu1  ;;  %v15892_v29 = vsel %vm15891_vm12, %v15886_v3, -1e+30 }
0x10be   : > { %v15894_v11 = vsel %vm15893_vm13, %v15892_v29, -inf }
0x10bf   : > { %15895 = vmax.xlane.f32.xlu0 %v15894_v11 }
0x114c   : > { %v15896_v42 = vpop.xlane.xlu0 %15895 }
0x114d   : > { %v15897_v41 = vsub.f32 %v15892_v29, %v15896_v42 }
0x114f   : > { %v15898_v1 = vmul.f32 1.442695, %v15897_v41 }
0x1151   : > { %21476 = vpow2.f32 %v15898_v1 }
0x115b   : > { %v21477_v14 = vpop.eup %21476 }
0x115c   : > { %v15900_v57 = vsel %vm15893_vm13, %v21477_v14, 0.0 }
0x115d   : > { %15901 = vadd.xlane.f32.xlu0 %v15900_v57 }
0x11ea   : > { %v15902_v45 = vpop.xlane.xlu0 %15901 }
0x11eb   : > { %21478 = vlog2.f32 %v15902_v45 }
0x11f5   : > { %v21479_v22 = vpop.eup %21478 }
0x11f6   : > { %v15904_v30 = vmul.f32 0.6931472, %v21479_v22 }
0x11f8   : > { %v15905_v25 = vsub.f32 %v15897_v41, %v15904_v30 }
0x11fa   : > { %15906 = vst [vmem:[%s378_s29] sm:$0x1] %v15905_v25 }
0x11fb   : > { %21497 = shalt.err (!%p21494_p3)
}
0x11fc   : > { %s21498_s14 = scalar_lea.hbm %s24927_s25, 16  ;;  %s21502_s22 = scalar_lea.hbm %s24980_s11, 32 }
0x11fd   : > { %p21499_p4 = scmp.ne.s32.totalorder %s24927_s25, %s21498_s14  ;;  %p21503_p9 = scmp.lt.u32.totalorder %s24927_s25, %s24980_s11 }
0x11fe   : > { %p21504_p10 = scmp.lt.u32.totalorder %s21502_s22, %s21498_s14  ;;  %p21506_p12 = scmp.lt.u32.totalorder %s21498_s14, %s24927_s25 }
0x11ff   : > { %p21500_p7 = pnand %p21499_p4, %p21651_p5 }
0x1200   : > { %p21505_p11 = por %p21504_p10, %p21503_p9 }
0x1201   : > { %p21501_p8 = pneg %p21500_p7 }
0x1202   : > { %p21507_p13 = por %p21506_p12, %p21505_p11 }
0x1204   : > { %p21508_p0 = pnand %p21507_p13, %p21501_p8 }
0x1206   : > { %21511 = shalt.err (!%p21508_p0)
}
0x1207   : > { %21137 = dma.vmem_to_hbm [thread:$0]  (%p21651_p5), %s24929_s16, 16, %s24927_s25, %s15908_s30  }
0x1208 PF: > { %p21143_p1 = scmp.ge.s32.totalorder %s21546_s20, 2  ;;  %s15932_s0 = sand.u32 1, %s21534_s17  }
0x1209   : > { %s15933_s12 = scalar_lea.sflag [#allocation6], %s15932_s0 }
0x120a   : > { %p21140_p2 = pnand %p21143_p1, %p21655_p6 }
0x120c   : > { %21529 = dma.done.wait (!%p21140_p2), %s15933_s12, 16  }
0x120d   : > { %21531 = vsyncadd (!%p21140_p2), %s15933_s12, 4294967280  ;;  %p21_p3 = scmp.ge.s32.totalorder %s21638_s23, 4   ;;  %s24989_s17 = smov %s21538_s18 }
0x120e   : > { %s24990_s18 = smov %s21542_s19  ;;  %s24991_s19 = smov %s21649_s26 }
0x120f   : > { %s24992_s20 = smov %s21638_s23  ;;  %23 = sbr.rel (!%p21_p3) target bundleno = 5 (0x5), region = 131 }
0x1216   :  { %15937 = vsyncpa [#allocation6], 1 }
0x1217   :  { %15939 = vsyncpa [#allocation6 + $0x1], 1 }

</bundles_post_ra>
